<compile_context>
chip_gen: v5e
topology: v5e:2x2
jax: 0.10.0
libtpu: 0.0.40
codegen_flags: <defaults>
</compile_context>

<pallas_src>
import functools
import itertools
import math

import numpy as np
import jax
import jax.numpy as jnp
from jax.experimental import pallas as pl
from jax.experimental.pallas import tpu as pltpu

# ---------------------------------------------------------------------------
# Config (SSD-300 structure, channels scaled by 1/8)
# ---------------------------------------------------------------------------
CH_DIV = 8


def _scale(v):
    return v if isinstance(v, str) else v // CH_DIV


BASE_CFG = [_scale(v) for v in
            [64, 64, 'M', 128, 128, 'M', 256, 256, 256, 'C',
             512, 512, 512, 'M', 512, 512, 512]]
EXTRAS_CFG = [_scale(v) for v in
              [256, 'S', 512, 128, 'S', 256, 128, 256, 128, 256]]
MBOX = [4, 6, 6, 6, 4, 4]
NUM_CLASSES = 4
IMG = 300
VGG_SPLIT = 13          # descriptor index == torch nn.ModuleList index 23

V2 = {
    'feature_maps': [38, 19, 10, 5, 3, 1],
    'min_dim': 300,
    'steps': [8, 16, 32, 64, 100, 300],
    'min_sizes': [30, 60, 111, 162, 213, 264],
    'max_sizes': [60, 111, 162, 213, 264, 315],
    'aspect_ratios': [[2], [2, 3], [2, 3], [2, 3], [2], [2]],
    'variance': [0.1, 0.2],
    'clip': True,
}

# ---------------------------------------------------------------------------
# VMEM budgeting helpers
# ---------------------------------------------------------------------------
_VMEM_LIMIT = 32 * 1024 * 1024       # explicit scoped-VMEM limit (safe v5e/v6e/v7x)
_TILE_BUDGET = 12 * 1024 * 1024      # target per-step VMEM footprint


def _round_up(v, m):
    return -(-v // m) * m


def _pick_rows(rows, per_row_bytes, fixed_bytes=0,
               budget=_TILE_BUDGET, max_rows=8192):
    """Largest row-tile (multiple of 8, <= rows rounded down to 8) fitting budget."""
    tm = max_rows
    while tm > 8 and fixed_bytes + tm * per_row_bytes > budget:
        tm //= 2
    if rows >= 8:
        tm = min(tm, (rows // 8) * 8)
    return max(tm, 8)


def _cparams():
    return pltpu.CompilerParams(dimension_semantics=("parallel",),
                                vmem_limit_bytes=_VMEM_LIMIT)


# ---------------------------------------------------------------------------
# Pallas kernels
# ---------------------------------------------------------------------------
def _gemm_bias_kernel(x_ref, w_ref, b_ref, o_ref, *, relu):
    acc = jnp.dot(x_ref[...], w_ref[...], preferred_element_type=jnp.float32)
    acc = acc + b_ref[...]
    if relu:
        acc = jnp.maximum(acc, 0.0)
    o_ref[...] = acc.astype(o_ref.dtype)


def _max_pool_kernel(*refs):
    *in_refs, o_ref = refs
    acc = in_refs[0][...]
    for r in in_refs[1:]:
        acc = jnp.maximum(acc, r[...])
    o_ref[...] = acc


def _l2norm_kernel(x_ref, w_ref, o_ref):
    x = x_ref[...].astype(jnp.float32)
    s = jnp.sum(x * x, axis=-1, keepdims=True)
    inv = jax.lax.rsqrt(s + 1e-20)                 # EUP rsqrt, eps ~ original 1e-10
    o_ref[...] = (x * inv * w_ref[...]).astype(o_ref.dtype)


def _clstm_step_kernel(ax_ref, ah_ref, wx_ref, wh_ref, b_ref, c_ref,
                       h_ref, cnew_ref, y_ref):
    """Fused ConvLSTM step: gates GEMM (x & h parts), gate nonlinearities,
    cell update and output ReLU in one epilogue."""
    C = cnew_ref.shape[-1]
    g = jnp.dot(ax_ref[...], wx_ref[...], preferred_element_type=jnp.float32)
    g = g + jnp.dot(ah_ref[...], wh_ref[...], preferred_element_type=jnp.float32)
    g = g + b_ref[...]
    i_g = jax.nn.sigmoid(g[:, 0 * C:1 * C])
    f_g = jax.nn.sigmoid(g[:, 1 * C:2 * C])
    o_g = jax.nn.sigmoid(g[:, 2 * C:3 * C])
    g_g = jnp.tanh(g[:, 3 * C:4 * C])
    c_new = f_g * c_ref[...] + i_g * g_g
    h = o_g * jnp.tanh(c_new)
    cnew_ref[...] = c_new
    h_ref[...] = h.astype(h_ref.dtype)                    # recurrent h (no ReLU)
    y_ref[...] = jnp.maximum(h, 0.0).astype(y_ref.dtype)  # fused F.relu output


# ---------------------------------------------------------------------------
# Layer wrappers (glue: im2col / padding / view building only)
# ---------------------------------------------------------------------------
def im2col(x, KH, KW, stride, padding, dilation):
    """x: (N,H,W,Cin) -> (N*Ho*Wo, KH*KW*Cin) in bf16 (halves HBM bytes)."""
    N, H, W, Cin = x.shape
    Ho = (H + 2 * padding - dilation * (KH - 1) - 1) // stride + 1
    Wo = (W + 2 * padding - dilation * (KW - 1) - 1) // stride + 1
    xb = x.astype(jnp.bfloat16)
    if KH == 1 and KW == 1 and stride == 1 and padding == 0:
        return xb.reshape(N * H * W, Cin), Ho, Wo            # no copies at all
    xp = xb if padding == 0 else jnp.pad(
        xb, ((0, 0), (padding, padding), (padding, padding), (0, 0)))
    cols = []
    for kh in range(KH):
        for kw in range(KW):
            y0, x0 = kh * dilation, kw * dilation
            patch = jax.lax.slice(
                xp, (0, y0, x0, 0),
                (N, y0 + (Ho - 1) * stride + 1, x0 + (Wo - 1) * stride + 1, Cin),
                (1, stride, stride, 1))
            cols.append(patch)
    cols = cols[0] if len(cols) == 1 else jnp.concatenate(cols, axis=-1)
    return cols.reshape(N * Ho * Wo, KH * KW * Cin), Ho, Wo


def gemm_bias_act(lhs, rhs, bias, relu=False, out_dtype=jnp.float32):
    """(M, K)bf16 @ (K, N)bf16 + bias(f32), optional ReLU; f32 accumulation."""
    M, K = lhs.shape
    _, N = rhs.shape
    out_bytes = jnp.dtype(out_dtype).itemsize
    Kp, Np = _round_up(K, 128), _round_up(N, 128)
    per_row = 2 * Kp * 2 + 2 * Np * out_bytes            # dbl-buffered lhs + out
    fixed = 2 * Kp * Np * 2 + 2 * 8 * Np * 4             # rhs + bias buffers
    Ms = M
    if M < 8:                                            # only the tiny 1x1/3x3 maps
        lhs = jnp.pad(lhs, ((0, 8 - M), (0, 0)))
        Ms = 8
    TM = _pick_rows(Ms, per_row, fixed)
    out = pl.pallas_call(
        functools.partial(_gemm_bias_kernel, relu=relu),
        out_shape=jax.ShapeDtypeStruct((Ms, N), out_dtype),
        grid=(pl.cdiv(Ms, TM),),
        in_specs=[pl.BlockSpec((TM, K), lambda i: (i, 0)),
                  pl.BlockSpec((K, N), lambda i: (0, 0)),
                  pl.BlockSpec((1, N), lambda i: (0, 0))],
        out_specs=pl.BlockSpec((TM, N), lambda i: (i, 0)),
        compiler_params=_cparams(),
    )(lhs, rhs, bias.reshape(1, N).astype(jnp.float32))
    return out[:M] if Ms != M else out


def conv2d(x, w, b, *, stride=1, padding=0, dilation=1, relu=False,
           out_dtype=jnp.bfloat16):
    """x: (N, H, W, Cin) NHWC; w: (KH, KW, Cin, Cout) HWIO; b: (Cout,)."""
    N = x.shape[0]
    KH, KW, Cin, Cout = w.shape
    lhs, Ho, Wo = im2col(x, KH, KW, stride, padding, dilation)
    rhs = w.reshape(KH * KW * Cin, Cout).astype(jnp.bfloat16)
    out = gemm_bias_act(lhs, rhs, b, relu=relu, out_dtype=out_dtype)
    return out.reshape(N, Ho, Wo, Cout)


def maxpool2d(x, k, s, p=0, ceil_mode=False):
    N, H, W, C = x.shape
    if ceil_mode:
        Ho = -(-(H + 2 * p - k) // s) + 1
        Wo = -(-(W + 2 * p - k) // s) + 1
    else:
        Ho = (H + 2 * p - k) // s + 1
        Wo = (W + 2 * p - k) // s + 1
    need_h = (Ho - 1) * s + k
    need_w = (Wo - 1) * s + k
    pad_b = max(0, need_h - H - p)
    pad_r = max(0, need_w - W - p)
    if p or pad_b or pad_r:
        xp = jnp.pad(x, ((0, 0), (p, pad_b), (p, pad_r), (0, 0)),
                     constant_values=-jnp.inf)
    else:
        xp = x
    # k*k strided views, each reshaped to a lane-dense 2-D (rows, Wo*C) slab
    views = []
    for dy in range(k):
        for dx in range(k):
            v = jax.lax.slice(
                xp, (0, dy, dx, 0),
                (N, dy + (Ho - 1) * s + 1, dx + (Wo - 1) * s + 1, C),
                (1, s, s, 1))
            views.append(v.reshape(N * Ho, Wo * C))
    R, L = N * Ho, Wo * C
    nb = jnp.dtype(x.dtype).itemsize
    per_row = (len(views) + 1) * 2 * _round_up(L, 128) * nb
    TR = _pick_rows(R, per_row, 0, budget=8 * 1024 * 1024)
    out = pl.pallas_call(
        _max_pool_kernel,
        out_shape=jax.ShapeDtypeStruct((R, L), x.dtype),
        grid=(pl.cdiv(R, TR),),
        in_specs=[pl.BlockSpec((TR, L), lambda i: (i, 0))] * len(views),
        out_specs=pl.BlockSpec((TR, L), lambda i: (i, 0)),
        compiler_params=_cparams(),
    )(*views)
    return out.reshape(N, Ho, Wo, C)


def l2norm(x, weight):
    N, H, W, C = x.shape
    R = N * H * W
    x2 = x.reshape(R, C)
    nb = jnp.dtype(x.dtype).itemsize
    per_row = 2 * _round_up(C, 128) * (nb + nb)
    TR = _pick_rows(R, per_row)
    out = pl.pallas_call(
        _l2norm_kernel,
        out_shape=jax.ShapeDtypeStruct((R, C), x.dtype),
        grid=(pl.cdiv(R, TR),),
        in_specs=[pl.BlockSpec((TR, C), lambda i: (i, 0)),
                  pl.BlockSpec((1, C), lambda i: (0, 0))],
        out_specs=pl.BlockSpec((TR, C), lambda i: (i, 0)),
        compiler_params=_cparams(),
    )(x2, weight.reshape(1, C).astype(jnp.float32))
    return out.reshape(N, H, W, C)


def clstm_step(ax, ah, wx, wh, bias, c_prev):
    """One fused ConvLSTM timestep (gates GEMM + cell update + ReLU output)."""
    M, K9 = ax.shape
    C = c_prev.shape[-1]
    C4 = 4 * C
    Kp, Cp, C4p = _round_up(K9, 128), _round_up(C, 128), _round_up(C4, 128)
    per_row = 2 * (2 * Kp * 2) + 2 * Cp * 4 + 2 * Cp * (2 + 4 + 2)
    fixed = 2 * 2 * Kp * C4p * 2 + 2 * 8 * C4p * 4
    TM = _pick_rows(M, per_row, fixed)
    h, c_new, y = pl.pallas_call(
        _clstm_step_kernel,
        out_shape=(jax.ShapeDtypeStruct((M, C), jnp.bfloat16),
                   jax.ShapeDtypeStruct((M, C), jnp.float32),
                   jax.ShapeDtypeStruct((M, C), jnp.bfloat16)),
        grid=(pl.cdiv(M, TM),),
        in_specs=[pl.BlockSpec((TM, K9), lambda i: (i, 0)),
                  pl.BlockSpec((TM, K9), lambda i: (i, 0)),
                  pl.BlockSpec((K9, C4), lambda i: (0, 0)),
                  pl.BlockSpec((K9, C4), lambda i: (0, 0)),
                  pl.BlockSpec((1, C4), lambda i: (0, 0)),
                  pl.BlockSpec((TM, C), lambda i: (i, 0))],
        out_specs=(pl.BlockSpec((TM, C), lambda i: (i, 0)),
                   pl.BlockSpec((TM, C), lambda i: (i, 0)),
                   pl.BlockSpec((TM, C), lambda i: (i, 0))),
        compiler_params=_cparams(),
    )(ax, ah, wx, wh, bias, c_prev)
    return h, c_new, y


# ---------------------------------------------------------------------------
# Parameter construction (deterministic, synthetic)
# ---------------------------------------------------------------------------
def conv_init(key, kh, kw, cin, cout):
    k1, k2 = jax.random.split(key)
    scale = 1.0 / math.sqrt(kh * kw * cin)
    w = jax.random.normal(k1, (kh, kw, cin, cout), jnp.float32) * scale
    b = jax.random.normal(k2, (cout,), jnp.float32) * 0.01
    return {'w': w, 'b': b}


def build_vgg(key, in_ch=3):
    layers = []
    keys = iter(jax.random.split(key, 32))
    c = in_ch
    for v in BASE_CFG:
        if v == 'M':
            layers.append(dict(op='pool', k=2, s=2, p=0, ceil=False))
        elif v == 'C':
            layers.append(dict(op='pool', k=2, s=2, p=0, ceil=True))
        else:
            layers.append(dict(op='conv', p=conv_init(next(keys), 3, 3, c, v),
                               stride=1, pad=1, dil=1))
            c = v
    # pool5 + conv6 (dilated) + conv7  (torch vgg() tail)
    layers.append(dict(op='pool', k=3, s=1, p=1, ceil=False))
    c6 = 1024 // CH_DIV
    layers.append(dict(op='conv', p=conv_init(next(keys), 3, 3, c, c6),
                       stride=1, pad=6, dil=6))
    layers.append(dict(op='conv', p=conv_init(next(keys), 1, 1, c6, c6),
                       stride=1, pad=0, dil=1))
    return layers


def build_extras(key, in_ch):
    cfg = EXTRAS_CFG
    convs = []
    keys = list(jax.random.split(key, len(cfg)))
    c = in_ch
    flag = False
    for k, v in enumerate(cfg):
        if c != 'S':
            ksz = 3 if flag else 1
            if v == 'S':
                convs.append(dict(p=conv_init(keys[k], ksz, ksz, c, cfg[k + 1]),
                                  stride=2, pad=1))
            else:
                convs.append(dict(p=conv_init(keys[k], ksz, ksz, c, v),
                                  stride=1, pad=0))
            flag = not flag
        c = v
    return convs


def build_heads(key, src_channels):
    loc, conf = [], []
    keys = list(jax.random.split(key, 2 * len(src_channels)))
    for i, c in enumerate(src_channels):
        loc.append(conv_init(keys[2 * i], 3, 3, c, MBOX[i] * 4))
        conf.append(conv_init(keys[2 * i + 1], 3, 3, c, MBOX[i] * NUM_CLASSES))
    return loc, conf


def init_ssd_params(key):
    k_vgg, k_lstm, k_extra, k_head = jax.random.split(key, 4)
    vgg_layers = build_vgg(k_vgg, in_ch=3)
    hid = 512 // CH_DIV                         # CLSTM(512,512,3,1) scaled
    clstm = conv_init(k_lstm, 3, 3, 2 * hid, 4 * hid)
    l2norm_w = 20.0 * jnp.ones((hid,), jnp.float32)   # L2Norm(512, 20)
    extras_layers = build_extras(k_extra, 1024 // CH_DIV)
    src_ch = [hid, 1024 // CH_DIV] + \
             [int(extras_layers[i]['p']['w'].shape[-1]) for i in (1, 3, 5, 7)]
    loc_h, conf_h = build_heads(k_head, src_ch)
    return dict(vgg=vgg_layers, clstm=clstm, l2norm=l2norm_w,
                extras=extras_layers, loc=loc_h, conf=conf_h)


# ---------------------------------------------------------------------------
# PriorBox (v2) — constant tensor, computed on host
# ---------------------------------------------------------------------------
def priorbox_forward(cfg=V2):
    mean = []
    image_size = cfg['min_dim']
    for k, f in enumerate(cfg['feature_maps']):
        for i, j in itertools.product(range(f), repeat=2):
            f_k = image_size / cfg['steps'][k]
            cx = (j + 0.5) / f_k
            cy = (i + 0.5) / f_k
            s_k = cfg['min_sizes'][k] / image_size
            mean += [cx, cy, s_k, s_k]
            s_k_p = math.sqrt(s_k * (cfg['max_sizes'][k] / image_size))
            mean += [cx, cy, s_k_p, s_k_p]
            for ar in cfg['aspect_ratios'][k]:
                mean += [cx, cy, s_k * math.sqrt(ar), s_k / math.sqrt(ar)]
                mean += [cx, cy, s_k / math.sqrt(ar), s_k * math.sqrt(ar)]
    out = np.asarray(mean, dtype=np.float32).reshape(-1, 4)
    if cfg['clip']:
        out = np.clip(out, 0.0, 1.0)
    return jnp.asarray(out)


# ---------------------------------------------------------------------------
# Forward pass
# ---------------------------------------------------------------------------
def apply_vgg_layer(layer, x):
    if layer['op'] == 'conv':
        p = layer['p']
        return conv2d(x, p['w'], p['b'], stride=layer['stride'],
                      padding=layer['pad'], dilation=layer['dil'], relu=True)
    return maxpool2d(x, layer['k'], layer['s'], layer['p'], layer['ceil'])


def clstm_run(clstm_p, seq):
    """ConvLSTM over one reset group: seq (T, H, W, C) as T time steps,
    batch 1, zero initial (h, c).  Output is the per-step ReLU'd hidden."""
    T, Hs, Ws, C = seq.shape
    M = Hs * Ws
    w = clstm_p['w']                                   # (3, 3, 2C, 4C) HWIO
    wx = w[:, :, :C, :].reshape(9 * C, 4 * C).astype(jnp.bfloat16)
    wh = w[:, :, C:, :].reshape(9 * C, 4 * C).astype(jnp.bfloat16)
    b = clstm_p['b'].astype(jnp.float32).reshape(1, 4 * C)
    h = jnp.zeros((1, Hs, Ws, C), jnp.bfloat16)
    c = jnp.zeros((M, C), jnp.float32)
    ys = []
    for t in range(T):
        ax, _, _ = im2col(seq[t:t + 1], 3, 3, 1, 1, 1)     # x-part taps
        ah, _, _ = im2col(h, 3, 3, 1, 1, 1)                # h-part taps
        h_flat, c, y = clstm_step(ax, ah, wx, wh, b, c)
        h = h_flat.reshape(1, Hs, Ws, C)
        ys.append(y.reshape(1, Hs, Ws, C))
    return jnp.concatenate(ys, axis=0)


def convlstm_forward(x, clstm_p, reset_group):
    if len(reset_group) > 0:
        yyy = []
        if reset_group[0][0] > 0:
            yyy.append(clstm_run(clstm_p, x[0:reset_group[0][0]]))
        for a, b in reset_group:
            yyy.append(clstm_run(clstm_p, x[a:b]))
        y = jnp.concatenate(yyy, axis=0)
    else:
        y = clstm_run(clstm_p, x)
    return y                                   # ReLU fused inside clstm_step


def ssd_forward(params, x_nchw, indexes, priors):
    x = jnp.transpose(x_nchw, (0, 2, 3, 1)).astype(jnp.bfloat16)  # NCHW -> NHWC

    # --- reset-group bookkeeping (host control flow, verbatim from module) ---
    reset_indexes = []
    reset_cnt = 0
    for item in indexes:
        if item[1] is True:
            reset_indexes.append(reset_cnt)
        reset_cnt += 1
    reset_group = []
    if len(reset_indexes) > 0:
        reset_indexes.append(len(indexes))
        for i in range(len(reset_indexes) - 1):
            reset_group.append([reset_indexes[i], reset_indexes[i + 1]])

    sources, loc, conf = [], [], []
    vgg = params['vgg']

    for layer in vgg[:VGG_SPLIT]:        # == self.vgg[0:23]
        x = apply_vgg_layer(layer, x)

    x = convlstm_forward(x, params['clstm'], reset_group)
    s = l2norm(x, params['l2norm'])
    sources.append(s)

    for layer in vgg[VGG_SPLIT:]:        # == self.vgg[23:]
        x = apply_vgg_layer(layer, x)
    sources.append(x)

    for k, ext in enumerate(params['extras']):
        x = conv2d(x, ext['p']['w'], ext['p']['b'], stride=ext['stride'],
                   padding=ext['pad'], relu=True)
        if k % 2 == 1:
            sources.append(x)

    # fused loc+conf heads (one im2col + one GEMM per source, wider lanes);
    # NHWC output already matches torch's permute(0, 2, 3, 1)
    for src, lp, cp in zip(sources, params['loc'], params['conf']):
        nl = lp['w'].shape[-1]
        wf = jnp.concatenate([lp['w'], cp['w']], axis=-1)
        bf = jnp.concatenate([lp['b'], cp['b']], axis=0)
        o = conv2d(src, wf, bf, padding=1, out_dtype=jnp.float32)
        loc.append(o[..., :nl].reshape(o.shape[0], -1))
        conf.append(o[..., nl:].reshape(o.shape[0], -1))
    loc = jnp.concatenate(loc, axis=1)
    conf = jnp.concatenate(conf, axis=1)
    B = loc.shape[0]
    return (loc.reshape(B, -1, 4),
            conf.reshape(B, -1, NUM_CLASSES),
            priors)


# ---------------------------------------------------------------------------
if __name__ == "__main__":
    key = jax.random.PRNGKey(0)
    kp, kx = jax.random.split(key)
    params = init_ssd_params(kp)
    priors = priorbox_forward()

    # batch of 2 video frames, frame 0 starts a new sequence
    x = jax.random.normal(kx, (2, 3, IMG, IMG), jnp.float32)
    indexes = [[0, True], [1, False]]

    loc, conf, pri = ssd_forward(params, x, indexes, priors)
    jax.block_until_ready((loc, conf, pri))

    assert loc.shape == (2, 8732, 4), loc.shape
    assert conf.shape == (2, 8732, NUM_CLASSES), conf.shape
    assert pri.shape == (8732, 4), pri.shape
    assert bool(jnp.all(jnp.isfinite(loc))) and bool(jnp.all(jnp.isfinite(conf)))
    print("KERNEL_OK")
</pallas_src>

<mosaic_0001>
module attributes {stable_mosaic.version = 11 : i64} {
  func.func @_gemm_bias_kernel(%arg0: i32, %arg1: memref<8192x27xbf16, #tpu.memory_space<vmem>>, %arg2: memref<27x8xbf16, #tpu.memory_space<vmem>>, %arg3: memref<1x8xf32, #tpu.memory_space<vmem>>, %arg4: memref<8192x8xbf16, #tpu.memory_space<vmem>>) attributes {dimension_semantics = [#tpu.dimension_semantics<parallel>], iteration_bounds = array<i64: 22>, scalar_prefetch = 0 : i64, scratch_operands = 0 : i64, tpu.core_type = #tpu.core_type<tc>, window_params = [{transform_indices = @transform_0, window_bounds = array<i64: 8192, 27>}, {pipeline_mode = #tpu.pipeline_mode<synchronous>, transform_indices = @transform_1, window_bounds = array<i64: 27, 8>}, {pipeline_mode = #tpu.pipeline_mode<synchronous>, transform_indices = @transform_2, window_bounds = array<i64: 1, 8>}, {transform_indices = @transform_3, window_bounds = array<i64: 8192, 8>}]} {
    %c0 = arith.constant 0 : index
    %c0_0 = arith.constant 0 : index
    %0 = vector.load %arg1[%c0, %c0_0] : memref<8192x27xbf16, #tpu.memory_space<vmem>>, vector<8192x27xbf16>
    %c0_1 = arith.constant 0 : index
    %c0_2 = arith.constant 0 : index
    %1 = vector.load %arg2[%c0_1, %c0_2] : memref<27x8xbf16, #tpu.memory_space<vmem>>, vector<27x8xbf16>
    %cst = arith.constant dense<0.000000e+00> : vector<8192x8xf32>
    %2 = tpu.matmul %0, %1, %cst {dimension_numbers = #tpu.dot_dimension_numbers<[1], [0], [0], [1], [0, 0, 1, 1], [], []>} : vector<8192x27xbf16>, vector<27x8xbf16>, vector<8192x8xf32> -> vector<8192x8xf32>
    %c0_3 = arith.constant 0 : index
    %c0_4 = arith.constant 0 : index
    %3 = vector.load %arg3[%c0_3, %c0_4] : memref<1x8xf32, #tpu.memory_space<vmem>>, vector<1x8xf32>
    %4 = vector.broadcast %3 : vector<1x8xf32> to vector<8192x8xf32>
    %5 = arith.addf %2, %4 : vector<8192x8xf32>
    %cst_5 = arith.constant 0.000000e+00 : f32
    %6 = vector.broadcast %cst_5 : f32 to vector<8192x8xf32>
    %7 = arith.maximumf %5, %6 : vector<8192x8xf32>
    %8 = arith.truncf %7 : vector<8192x8xf32> to vector<8192x8xbf16>
    %c0_6 = arith.constant 0 : index
    %c0_7 = arith.constant 0 : index
    %9 = vector.load %arg4[%c0_6, %c0_7] : memref<8192x8xbf16, #tpu.memory_space<vmem>>, vector<8192x8xbf16>
    tpu.vector_store %arg4[%c0_6, %c0_7], %8 {strides = array<i32>} : memref<8192x8xbf16, #tpu.memory_space<vmem>>, vector<8192x8xbf16>,
    return
  }
  func.func @transform_0(%arg0: i32) -> (i32, i32) {
    %c0_i32 = arith.constant 0 : i32
    %c0_i32_0 = arith.constant 0 : i32
    return %arg0, %c0_i32 : i32, i32
  }
  func.func @transform_1(%arg0: i32) -> (i32, i32) {
    %c0_i32 = arith.constant 0 : i32
    %c0_i32_0 = arith.constant 0 : i32
    %c0_i32_1 = arith.constant 0 : i32
    return %c0_i32, %c0_i32_0 : i32, i32
  }
  func.func @transform_2(%arg0: i32) -> (i32, i32) {
    %c0_i32 = arith.constant 0 : i32
    %c0_i32_0 = arith.constant 0 : i32
    %c0_i32_1 = arith.constant 0 : i32
    return %c0_i32, %c0_i32_0 : i32, i32
  }
  func.func @transform_3(%arg0: i32) -> (i32, i32) {
    %c0_i32 = arith.constant 0 : i32
    %c0_i32_0 = arith.constant 0 : i32
    return %arg0, %c0_i32 : i32, i32
  }
}

</mosaic_0001>

<bundles_post_ra>
// kernel: tpu_custom_call.1
= control target key start
LH: loop header
LB: loop body
LE: loop exit
PB: predicated region body
PF: predicated region fallthrough
CT: control target
= control target key end

     0   :  { %s14647_s12 = smov 0   ;;  %s14649_s13 = smov 0   ;;  %s18996_s0 = inlined_call_operand.vmem [shape: bf16[180000,27], index: 0, kind: input, shape index: {}]   ;;  %s18997_s1 = inlined_call_operand.vmem [shape: bf16[27,8], index: 1, kind: input, shape index: {}]   ;;  %s18998_s2 = inlined_call_operand.vmem [shape: f32[1,8], index: 2, kind: input, shape index: {}]   ;;  %s18999_s3 = inlined_call_operand.vmem [shape: bf16[180000,8], index: 3, kind: output, shape index: {}]  }
   0x1   :  { %s14651_s14 = smov 0  }
   0x2 LB: > { %s14660_s15 = sadd.s32 4294967295, %s14592_s14   ;;  %s14662_s16 = sadd.s32 1, %s14592_s14   ;;  %s14592_s14 = sphi %s14651_s14, %s19008_s14   ;;  %s14588_s13 = sphi %s14649_s13, %s19007_s13   ;;  %s14584_s12 = sphi %s14647_s12, %s19006_s12  }
   0x3   : > { %s85_s17 = ssub.s32 %s14592_s14, %s14662_s16  ;;  %s88_s18 = sadd.s32 1, %s14588_s13 }
   0x4   : > { %p86_p0 = scmp.eq.s32.totalorder %s85_s17, 0  ;;  %p98_p1 = scmp.ne.s32.totalorder %s14588_s13, %s14584_s12 }
   0x5   : > { %p99_p2 = scmp.eq.s32.totalorder %s14660_s15, 21  ;;  %p11325_p3 = scmp.ge.s32.totalorder %s14592_s14, 1 }
   0x6   : > { %s14670_s19 = scalar_select %p86_p0, %s14588_s13, %s88_s18  }
   0x7   : > { %p14672_p4 = por %p99_p2, %p98_p1  ;;  %p146_p5 = scmp.lt.s32.totalorder %s14592_s14, 23 }
   0x9   : > { %p147_p6 = pnand %p11325_p3, %p146_p5 }
   0xa   : > { %s14683_s25 = sshll.u32 (!%p147_p6), %s14660_s15, 10  ;;  %s170_s8 = sand.u32 (!%p147_p6), 1, %s14584_s12  }
   0xb   : > { %150 = sbr.rel (%p147_p6) target bundleno = 2274 (0x8e2), region = 32  ;;  %p178_p7 = scmp.lt.s32.totalorder (!%p147_p6), %s14683_s25, 22499 }
   0xc   : > { %s11326_s9 = sshll.u32 (!%p147_p6), %s170_s8, 12 }
   0xd   : > { %s14775_s10 = scalar_lea.vmem (!%p147_p6), [#allocation2], %s11326_s9  }
  0x10   : > { %v13383_v0 = vld [vmem:[%s18997_s1 + $0x8] sm:$0xf]  ;;  %v14427_v1 = vld [vmem:[%s18997_s1 + $0x8] sm:$0x30]  ;;  %vm5333_vm0 = vcmask 1044480   ;;  %vm5334_vm1 = vcmask 1045504  }
  0x11   : > { %v13384_v2 = vor.u32 %v14427_v1, %v13383_v0  ;;  %v14626_v3 = vmov 65535   ;;  %s179_s26 = scalar_select %p178_p7, %s14683_s25, 22499  ;;  %v14426_v7 = vld [vmem:[%s18997_s1] sm:$0xff]  ;;  %vm3796_vm2 = vcmask 220160   ;;  %vm9957_vm3 = vcmask 60416  }
  0x12   : > { %v5335_v4 = vsel %vm5333_vm0, 4294967295, %v14626_v3  ;;  %v14762_v40 = vld [vmem:[%s18998_s2] ss:$0 sm:$0xff]  ;;  %s10990_s14 = ssub.s32 (%p14672_p4), 22500, %s14683_s25  ;;  %s14428_s17 = sshll.u32 (%p14672_p4), %s14660_s15, 12 }
  0x13   : > { %v5336_v5 = vsel %vm5334_vm1, %v5335_v4, 0  ;;  %s11328_s29 = sshll.u32 %s179_s26, 2  ;;  %p10991_p8 = scmp.lt.s32.totalorder (%p14672_p4), %s10990_s14, 1024 }
  0x14   : > { %v5338_v6 = vand.u32 %v13384_v2, %v5336_v5  ;;  %s14693_s5 = scalar_lea.vmem %s18996_s0, %s11328_s29  ;;  %s18861_s22 = scalar_lea.vmem (%p14672_p4), %s18999_s3, %s14428_s17  }
  0x15   : > { %v13914_v8 = vld [vmem:[%s14693_s5] sm:$0xff]  ;;  %v13915_v12 = vld [vmem:[%s14693_s5 + $0x8] sm:$0xff]  ;;  %v13916_v16 = vld [vmem:[%s14693_s5 + $0x10] sm:$0xff] }
  0x16   : > { %5346 = vmatpush.bf16.msra.mxu0 %v5338_v6  ;;  %14431 = vmatpush.bf16.msra.mxu1 %v5338_v6  ;;  %v14042_v9 = vld [vmem:[%s14693_s5 + $0x400] sm:$0xff]  ;;  %v14043_v13 = vld [vmem:[%s14693_s5 + $0x408] sm:$0xff]  ;;  %v14044_v17 = vld [vmem:[%s14693_s5 + $0x410] sm:$0xff] }
  0x17   : > { %14432 = vmatpush.bf16.msra.mxu2 %v5338_v6  ;;  %14433 = vmatpush.bf16.msra.mxu3 %v5338_v6  ;;  %v14170_v10 = vld [vmem:[%s14693_s5 + $0x800] sm:$0xff]  ;;  %v14171_v14 = vld [vmem:[%s14693_s5 + $0x808] sm:$0xff]  ;;  %v14172_v18 = vld [vmem:[%s14693_s5 + $0x810] sm:$0xff] }
  0x18   : > { %v14298_v11 = vld [vmem:[%s14693_s5 + $0xc00] sm:$0xff]  ;;  %v14299_v15 = vld [vmem:[%s14693_s5 + $0xc08] sm:$0xff]  ;;  %v14300_v19 = vld [vmem:[%s14693_s5 + $0xc10] sm:$0xff] }
  0x19   : > { %v13917_v20 = vld [vmem:[%s14693_s5 + $0x18] sm:$0xff]  ;;  %v13918_v24 = vld [vmem:[%s14693_s5 + $0x20] sm:$0xff]  ;;  %v13919_v28 = vld [vmem:[%s14693_s5 + $0x28] sm:$0xff] }
  0x1a   : > { %5347 = vmatpush.bf16.msra.mxu0 %v14426_v7  ;;  %14434 = vmatpush.bf16.msra.mxu1 %v14426_v7  ;;  %v14045_v21 = vld [vmem:[%s14693_s5 + $0x418] sm:$0xff]  ;;  %v14046_v25 = vld [vmem:[%s14693_s5 + $0x420] sm:$0xff]  ;;  %v14047_v29 = vld [vmem:[%s14693_s5 + $0x428] sm:$0xff] }
  0x1b   : > { %14435 = vmatpush.bf16.msra.mxu2 %v14426_v7  ;;  %14436 = vmatpush.bf16.msra.mxu3 %v14426_v7  ;;  %v14173_v22 = vld [vmem:[%s14693_s5 + $0x818] sm:$0xff]  ;;  %v14174_v26 = vld [vmem:[%s14693_s5 + $0x820] sm:$0xff]  ;;  %v14175_v30 = vld [vmem:[%s14693_s5 + $0x828] sm:$0xff] }
  0x1c   : > { %v14301_v23 = vld [vmem:[%s14693_s5 + $0xc18] sm:$0xff]  ;;  %v14302_v27 = vld [vmem:[%s14693_s5 + $0xc20] sm:$0xff]  ;;  %v14303_v31 = vld [vmem:[%s14693_s5 + $0xc28] sm:$0xff] }
  0x1d   : > { %13385 = vmatmul.msk.bf16.vlgmr.msra.gmra.mxu0 %vm3796_vm2, %v13914_v8  ;;  %13513 = vmatmul.msk.bf16.vlgmr.msra.gmra.mxu1 %vm3796_vm2, %v14042_v9  ;;  %v13920_v32 = vld [vmem:[%s14693_s5 + $0x30] sm:$0xff]  ;;  %v13921_v36 = vld [vmem:[%s14693_s5 + $0x38] sm:$0xff]  ;;  %v13922_v41 = vld [vmem:[%s14693_s5 + $0x40] sm:$0xff] }
  0x1e   : > { %13641 = vmatmul.msk.bf16.vlgmr.msra.gmra.mxu2 %vm3796_vm2, %v14170_v10  ;;  %13769 = vmatmul.msk.bf16.vlgmr.msra.gmra.mxu3 %vm3796_vm2, %v14298_v11  ;;  %v14048_v33 = vld [vmem:[%s14693_s5 + $0x430] sm:$0xff]  ;;  %v14049_v37 = vld [vmem:[%s14693_s5 + $0x438] sm:$0xff]  ;;  %v14050_v42 = vld [vmem:[%s14693_s5 + $0x440] sm:$0xff] }
  0x1f   : > { %v14176_v34 = vld [vmem:[%s14693_s5 + $0x830] sm:$0xff]  ;;  %v14177_v38 = vld [vmem:[%s14693_s5 + $0x838] sm:$0xff]  ;;  %v14178_v45 = vld [vmem:[%s14693_s5 + $0x840] sm:$0xff] }
  0x20   : > { %v14304_v35 = vld [vmem:[%s14693_s5 + $0xc30] sm:$0xff]  ;;  %v14305_v39 = vld [vmem:[%s14693_s5 + $0xc38] sm:$0xff]  ;;  %v14306_v46 = vld [vmem:[%s14693_s5 + $0xc40] sm:$0xff] }
  0x21   : > { %v13923_v7 = vld [vmem:[%s14693_s5 + $0x48] sm:$0xff] }
  0x22   : > { %v14051_v8 = vld [vmem:[%s14693_s5 + $0x448] sm:$0xff] }
  0x2d   : > { %13386 = vmatmul.msk.bf16.gmra.mxu0 %vm3796_vm2, %v13915_v12  ;;  %13514 = vmatmul.msk.bf16.gmra.mxu1 %vm3796_vm2, %v14043_v13  ;;  %v14179_v13 = vld [vmem:[%s14693_s5 + $0x848] sm:$0xff] }
  0x2e   : > { %13642 = vmatmul.msk.bf16.gmra.mxu2 %vm3796_vm2, %v14171_v14  ;;  %13770 = vmatmul.msk.bf16.gmra.mxu3 %vm3796_vm2, %v14299_v15  ;;  %v14307_v14 = vld [vmem:[%s14693_s5 + $0xc48] sm:$0xff] }
  0x3d   : > { %13387 = vmatmul.msk.bf16.gmra.mxu0 %vm3796_vm2, %v13916_v16  ;;  %13515 = vmatmul.msk.bf16.gmra.mxu1 %vm3796_vm2, %v14044_v17 }
  0x3e   : > { %13643 = vmatmul.msk.bf16.gmra.mxu2 %vm3796_vm2, %v14172_v18  ;;  %13771 = vmatmul.msk.bf16.gmra.mxu3 %vm3796_vm2, %v14300_v19 }
  0x4d   : > { %13388 = vmatmul.msk.bf16.gmra.mxu0 %vm3796_vm2, %v13917_v20  ;;  %13516 = vmatmul.msk.bf16.gmra.mxu1 %vm3796_vm2, %v14045_v21 }
  0x4e   : > { %13644 = vmatmul.msk.bf16.gmra.mxu2 %vm3796_vm2, %v14173_v22  ;;  %13772 = vmatmul.msk.bf16.gmra.mxu3 %vm3796_vm2, %v14301_v23 }
  0x5d   : > { %13389 = vmatmul.msk.bf16.gmra.mxu0 %vm3796_vm2, %v13918_v24  ;;  %13517 = vmatmul.msk.bf16.gmra.mxu1 %vm3796_vm2, %v14046_v25 }
  0x5e   : > { %13645 = vmatmul.msk.bf16.gmra.mxu2 %vm3796_vm2, %v14174_v26  ;;  %13773 = vmatmul.msk.bf16.gmra.mxu3 %vm3796_vm2, %v14302_v27 }
  0x6d   : > { %13390 = vmatmul.msk.bf16.gmra.mxu0 %vm3796_vm2, %v13919_v28  ;;  %13518 = vmatmul.msk.bf16.gmra.mxu1 %vm3796_vm2, %v14047_v29 }
  0x6e   : > { %13646 = vmatmul.msk.bf16.gmra.mxu2 %vm3796_vm2, %v14175_v30  ;;  %13774 = vmatmul.msk.bf16.gmra.mxu3 %vm3796_vm2, %v14303_v31 }
  0x7d   : > { %13391 = vmatmul.msk.bf16.gmra.mxu0 %vm3796_vm2, %v13920_v32  ;;  %13519 = vmatmul.msk.bf16.gmra.mxu1 %vm3796_vm2, %v14048_v33 }
  0x7e   : > { %13647 = vmatmul.msk.bf16.gmra.mxu2 %vm3796_vm2, %v14176_v34  ;;  %13775 = vmatmul.msk.bf16.gmra.mxu3 %vm3796_vm2, %v14304_v35 }
  0x8d   : > { %13392 = vmatmul.msk.bf16.gmra.mxu0 %vm3796_vm2, %v13921_v36  ;;  %13520 = vmatmul.msk.bf16.gmra.mxu1 %vm3796_vm2, %v14049_v37 }
  0x8e   : > { %13648 = vmatmul.msk.bf16.gmra.mxu2 %vm3796_vm2, %v14177_v38  ;;  %13776 = vmatmul.msk.bf16.gmra.mxu3 %vm3796_vm2, %v14305_v39 }
  0x9a   : > { %v5349_v43 = vpop.f32.mrf.mxu0  ;;  %v5989_v44 = vpop.f32.mrf.mxu1 }
  0x9b   : > { %v5350_v47 = vadd.f32 %v14762_v40, %v5349_v43  ;;  %v5990_v48 = vadd.f32 %v14762_v40, %v5989_v44  ;;  %v13924_v44 = vld [vmem:[%s14693_s5 + $0x50] sm:$0xff] }
  0x9d   : > { %v7909_v49 = vmax.f32 %v5350_v47, 0.0  ;;  %v8165_v50 = vmax.f32 %v5990_v48, 0.0  ;;  %13393 = vmatmul.msk.bf16.gmra.mxu0 %vm3796_vm2, %v13922_v41  ;;  %13521 = vmatmul.msk.bf16.gmra.mxu1 %vm3796_vm2, %v14050_v42 }
  0x9e   : > { %13649 = vmatmul.msk.bf16.gmra.mxu2 %vm3796_vm2, %v14178_v45  ;;  %13777 = vmatmul.msk.bf16.gmra.mxu3 %vm3796_vm2, %v14306_v46  ;;  %v14052_v45 = vld [vmem:[%s14693_s5 + $0x450] sm:$0xff] }
  0x9f   : > { %v8933_v51 = vpack.c.bf16 %v7909_v49, %v7909_v49  ;;  %v9189_v52 = vpack.c.bf16 %v8165_v50, %v8165_v50  ;;  %v14180_v50 = vld [vmem:[%s14693_s5 + $0x850] sm:$0xff] }
  0xa1   : > { %9958 = vst.msk [vmem:[%s14775_s10] sm:$0xf] %vm9957_vm3, %v8933_v51  ;;  %v6629_v53 = vpop.f32.mrf.mxu2  ;;  %v7269_v54 = vpop.f32.mrf.mxu3  ;;  %v14308_v51 = vld [vmem:[%s14693_s5 + $0xc50] sm:$0xff] }
  0xa2   : > { %10214 = vst.msk [vmem:[%s14775_s10 + $0x400] sm:$0xf] %vm9957_vm3, %v9189_v52  ;;  %v6630_v55 = vadd.f32 %v14762_v40, %v6629_v53  ;;  %v7270_v56 = vadd.f32 %v14762_v40, %v7269_v54  ;;  %v5351_v57 = vpop.f32.mrf.mxu0  ;;  %v5991_v58 = vpop.f32.mrf.mxu1 }
  0xa3   : > { %v5352_v59 = vadd.f32 %v14762_v40, %v5351_v57  ;;  %v5992_v60 = vadd.f32 %v14762_v40, %v5991_v58 }
  0xa4   : > { %v8421_v61 = vmax.f32 %v6630_v55, 0.0  ;;  %v8677_v62 = vmax.f32 %v7270_v56, 0.0 }
  0xa5   : > { %v7910_v63 = vmax.f32 %v5352_v59, 0.0  ;;  %v8166_v0 = vmax.f32 %v5992_v60, 0.0 }
  0xa6   : > { %v9445_v1 = vpack.c.bf16 %v8421_v61, %v8421_v61  ;;  %v9701_v2 = vpack.c.bf16 %v8677_v62, %v8677_v62 }
  0xa7   : > { %v8934_v3 = vpack.c.bf16 %v7910_v63, %v7910_v63  ;;  %v9190_v4 = vpack.c.bf16 %v8166_v0, %v8166_v0 }
  0xa8   : > { %10470 = vst.msk [vmem:[%s14775_s10 + $0x800] sm:$0xf] %vm9957_vm3, %v9445_v1 }
  0xa9   : > { %10726 = vst.msk [vmem:[%s14775_s10 + $0xc00] sm:$0xf] %vm9957_vm3, %v9701_v2  ;;  %v6631_v5 = vpop.f32.mrf.mxu2  ;;  %v7271_v6 = vpop.f32.mrf.mxu3 }
  0xaa   : > { %9959 = vst.msk [vmem:[%s14775_s10 + $0x4] sm:$0xf] %vm9957_vm3, %v8934_v3  ;;  %v6632_v9 = vadd.f32 %v14762_v40, %v6631_v5  ;;  %v7272_v10 = vadd.f32 %v14762_v40, %v7271_v6  ;;  %v5354_v11 = vpop.f32.mrf.mxu0  ;;  %v5994_v12 = vpop.f32.mrf.mxu1 }
  0xab   : > { %10215 = vst.msk [vmem:[%s14775_s10 + $0x404] sm:$0xf] %vm9957_vm3, %v9190_v4  ;;  %v5355_v15 = vadd.f32 %v14762_v40, %v5354_v11  ;;  %v5995_v16 = vadd.f32 %v14762_v40, %v5994_v12 }
  0xac   : > { %v8422_v17 = vmax.f32 %v6632_v9, 0.0  ;;  %v8678_v18 = vmax.f32 %v7272_v10, 0.0 }
  0xad   : > { %v7911_v19 = vmax.f32 %v5355_v15, 0.0  ;;  %v8167_v20 = vmax.f32 %v5995_v16, 0.0  ;;  %13394 = vmatmul.msk.bf16.gmra.mxu0 %vm3796_vm2, %v13923_v7  ;;  %13522 = vmatmul.msk.bf16.gmra.mxu1 %vm3796_vm2, %v14051_v8  ;;  %v13925_v16 = vld [vmem:[%s14693_s5 + $0x58] sm:$0xff] }
  0xae   : > { %v9446_v21 = vpack.c.bf16 %v8422_v17, %v8422_v17  ;;  %v9702_v22 = vpack.c.bf16 %v8678_v18, %v8678_v18  ;;  %13650 = vmatmul.msk.bf16.gmra.mxu2 %vm3796_vm2, %v14179_v13  ;;  %13778 = vmatmul.msk.bf16.gmra.mxu3 %vm3796_vm2, %v14307_v14  ;;  %v14053_v17 = vld [vmem:[%s14693_s5 + $0x458] sm:$0xff] }
  0xaf   : > { %v8935_v23 = vpack.c.bf16 %v7911_v19, %v7911_v19  ;;  %v9191_v24 = vpack.c.bf16 %v8167_v20, %v8167_v20 }
  0xb0   : > { %10471 = vst.msk [vmem:[%s14775_s10 + $0x804] sm:$0xf] %vm9957_vm3, %v9446_v21 }
  0xb1   : > { %10727 = vst.msk [vmem:[%s14775_s10 + $0xc04] sm:$0xf] %vm9957_vm3, %v9702_v22  ;;  %v6634_v25 = vpop.f32.mrf.mxu2  ;;  %v7274_v26 = vpop.f32.mrf.mxu3  ;;  %v14181_v22 = vld [vmem:[%s14693_s5 + $0x858] sm:$0xff] }
  0xb2   : > { %9960 = vst.msk [vmem:[%s14775_s10 + $0x8] sm:$0xf] %vm9957_vm3, %v8935_v23  ;;  %v6635_v27 = vadd.f32 %v14762_v40, %v6634_v25  ;;  %v7275_v28 = vadd.f32 %v14762_v40, %v7274_v26  ;;  %v5356_v29 = vpop.f32.mrf.mxu0  ;;  %v5996_v30 = vpop.f32.mrf.mxu1  ;;  %v14309_v23 = vld [vmem:[%s14693_s5 + $0xc58] sm:$0xff] }
  0xb3   : > { %10216 = vst.msk [vmem:[%s14775_s10 + $0x408] sm:$0xf] %vm9957_vm3, %v9191_v24  ;;  %v5357_v31 = vadd.f32 %v14762_v40, %v5356_v29  ;;  %v5997_v32 = vadd.f32 %v14762_v40, %v5996_v30 }
  0xb4   : > { %v8423_v33 = vmax.f32 %v6635_v27, 0.0  ;;  %v8679_v34 = vmax.f32 %v7275_v28, 0.0 }
  0xb5   : > { %v7912_v35 = vmax.f32 %v5357_v31, 0.0  ;;  %v8168_v36 = vmax.f32 %v5997_v32, 0.0 }
  0xb6   : > { %v9447_v37 = vpack.c.bf16 %v8423_v33, %v8423_v33  ;;  %v9703_v38 = vpack.c.bf16 %v8679_v34, %v8679_v34 }
  0xb7   : > { %v8936_v39 = vpack.c.bf16 %v7912_v35, %v7912_v35  ;;  %v9192_v41 = vpack.c.bf16 %v8168_v36, %v8168_v36 }
  0xb8   : > { %10472 = vst.msk [vmem:[%s14775_s10 + $0x808] sm:$0xf] %vm9957_vm3, %v9447_v37 }
  0xb9   : > { %10728 = vst.msk [vmem:[%s14775_s10 + $0xc08] sm:$0xf] %vm9957_vm3, %v9703_v38  ;;  %v6636_v42 = vpop.f32.mrf.mxu2  ;;  %v7276_v43 = vpop.f32.mrf.mxu3 }
  0xba   : > { %9961 = vst.msk [vmem:[%s14775_s10 + $0xc] sm:$0xf] %vm9957_vm3, %v8936_v39  ;;  %v6637_v46 = vadd.f32 %v14762_v40, %v6636_v42  ;;  %v7277_v47 = vadd.f32 %v14762_v40, %v7276_v43  ;;  %v5359_v48 = vpop.f32.mrf.mxu0  ;;  %v5999_v49 = vpop.f32.mrf.mxu1 }
  0xbb   : > { %10217 = vst.msk [vmem:[%s14775_s10 + $0x40c] sm:$0xf] %vm9957_vm3, %v9192_v41  ;;  %v5360_v52 = vadd.f32 %v14762_v40, %v5359_v48  ;;  %v6000_v53 = vadd.f32 %v14762_v40, %v5999_v49 }
  0xbc   : > { %v8424_v54 = vmax.f32 %v6637_v46, 0.0  ;;  %v8680_v55 = vmax.f32 %v7277_v47, 0.0 }
  0xbd   : > { %v7913_v56 = vmax.f32 %v5360_v52, 0.0  ;;  %v8169_v57 = vmax.f32 %v6000_v53, 0.0  ;;  %13395 = vmatmul.msk.bf16.gmra.mxu0 %vm3796_vm2, %v13924_v44  ;;  %13523 = vmatmul.msk.bf16.gmra.mxu1 %vm3796_vm2, %v14052_v45  ;;  %v13926_v53 = vld [vmem:[%s14693_s5 + $0x60] sm:$0xff] }
  0xbe   : > { %v9448_v58 = vpack.c.bf16 %v8424_v54, %v8424_v54  ;;  %v9704_v59 = vpack.c.bf16 %v8680_v55, %v8680_v55  ;;  %13651 = vmatmul.msk.bf16.gmra.mxu2 %vm3796_vm2, %v14180_v50  ;;  %13779 = vmatmul.msk.bf16.gmra.mxu3 %vm3796_vm2, %v14308_v51  ;;  %v14054_v54 = vld [vmem:[%s14693_s5 + $0x460] sm:$0xff] }
  0xbf   : > { %v8937_v60 = vpack.c.bf16 %v7913_v56, %v7913_v56  ;;  %v9193_v61 = vpack.c.bf16 %v8169_v57, %v8169_v57 }
  0xc0   : > { %10473 = vst.msk [vmem:[%s14775_s10 + $0x80c] sm:$0xf] %vm9957_vm3, %v9448_v58 }
  0xc1   : > { %10729 = vst.msk [vmem:[%s14775_s10 + $0xc0c] sm:$0xf] %vm9957_vm3, %v9704_v59  ;;  %v6639_v62 = vpop.f32.mrf.mxu2  ;;  %v7279_v63 = vpop.f32.mrf.mxu3  ;;  %v14182_v59 = vld [vmem:[%s14693_s5 + $0x860] sm:$0xff] }
  0xc2   : > { %9962 = vst.msk [vmem:[%s14775_s10 + $0x10] sm:$0xf] %vm9957_vm3, %v8937_v60  ;;  %v6640_v0 = vadd.f32 %v14762_v40, %v6639_v62  ;;  %v7280_v1 = vadd.f32 %v14762_v40, %v7279_v63  ;;  %v5361_v2 = vpop.f32.mrf.mxu0  ;;  %v6001_v3 = vpop.f32.mrf.mxu1  ;;  %v14310_v60 = vld [vmem:[%s14693_s5 + $0xc60] sm:$0xff] }
  0xc3   : > { %10218 = vst.msk [vmem:[%s14775_s10 + $0x410] sm:$0xf] %vm9957_vm3, %v9193_v61  ;;  %v5362_v4 = vadd.f32 %v14762_v40, %v5361_v2  ;;  %v6002_v5 = vadd.f32 %v14762_v40, %v6001_v3 }
  0xc4   : > { %v8425_v6 = vmax.f32 %v6640_v0, 0.0  ;;  %v8681_v7 = vmax.f32 %v7280_v1, 0.0 }
  0xc5   : > { %v7914_v8 = vmax.f32 %v5362_v4, 0.0  ;;  %v8170_v9 = vmax.f32 %v6002_v5, 0.0 }
  0xc6   : > { %v9449_v10 = vpack.c.bf16 %v8425_v6, %v8425_v6  ;;  %v9705_v11 = vpack.c.bf16 %v8681_v7, %v8681_v7 }
  0xc7   : > { %v8938_v12 = vpack.c.bf16 %v7914_v8, %v7914_v8  ;;  %v9194_v13 = vpack.c.bf16 %v8170_v9, %v8170_v9 }
  0xc8   : > { %10474 = vst.msk [vmem:[%s14775_s10 + $0x810] sm:$0xf] %vm9957_vm3, %v9449_v10 }
  0xc9   : > { %10730 = vst.msk [vmem:[%s14775_s10 + $0xc10] sm:$0xf] %vm9957_vm3, %v9705_v11  ;;  %v6641_v14 = vpop.f32.mrf.mxu2  ;;  %v7281_v15 = vpop.f32.mrf.mxu3 }
  0xca   : > { %9963 = vst.msk [vmem:[%s14775_s10 + $0x14] sm:$0xf] %vm9957_vm3, %v8938_v12  ;;  %v6642_v18 = vadd.f32 %v14762_v40, %v6641_v14  ;;  %v7282_v19 = vadd.f32 %v14762_v40, %v7281_v15  ;;  %v5364_v20 = vpop.f32.mrf.mxu0  ;;  %v6004_v21 = vpop.f32.mrf.mxu1 }
  0xcb   : > { %10219 = vst.msk [vmem:[%s14775_s10 + $0x414] sm:$0xf] %vm9957_vm3, %v9194_v13  ;;  %v5365_v24 = vadd.f32 %v14762_v40, %v5364_v20  ;;  %v6005_v25 = vadd.f32 %v14762_v40, %v6004_v21 }
  0xcc   : > { %v8426_v26 = vmax.f32 %v6642_v18, 0.0  ;;  %v8682_v27 = vmax.f32 %v7282_v19, 0.0 }
  0xcd   : > { %v7915_v28 = vmax.f32 %v5365_v24, 0.0  ;;  %v8171_v29 = vmax.f32 %v6005_v25, 0.0  ;;  %13396 = vmatmul.msk.bf16.gmra.mxu0 %vm3796_vm2, %v13925_v16  ;;  %13524 = vmatmul.msk.bf16.gmra.mxu1 %vm3796_vm2, %v14053_v17  ;;  %v13927_v25 = vld [vmem:[%s14693_s5 + $0x68] sm:$0xff] }
  0xce   : > { %v9450_v30 = vpack.c.bf16 %v8426_v26, %v8426_v26  ;;  %v9706_v31 = vpack.c.bf16 %v8682_v27, %v8682_v27  ;;  %13652 = vmatmul.msk.bf16.gmra.mxu2 %vm3796_vm2, %v14181_v22  ;;  %13780 = vmatmul.msk.bf16.gmra.mxu3 %vm3796_vm2, %v14309_v23  ;;  %v14055_v26 = vld [vmem:[%s14693_s5 + $0x468] sm:$0xff] }
  0xcf   : > { %v8939_v32 = vpack.c.bf16 %v7915_v28, %v7915_v28  ;;  %v9195_v33 = vpack.c.bf16 %v8171_v29, %v8171_v29 }
  0xd0   : > { %10475 = vst.msk [vmem:[%s14775_s10 + $0x814] sm:$0xf] %vm9957_vm3, %v9450_v30 }
  0xd1   : > { %10731 = vst.msk [vmem:[%s14775_s10 + $0xc14] sm:$0xf] %vm9957_vm3, %v9706_v31  ;;  %v6644_v34 = vpop.f32.mrf.mxu2  ;;  %v7284_v35 = vpop.f32.mrf.mxu3  ;;  %v14183_v31 = vld [vmem:[%s14693_s5 + $0x868] sm:$0xff] }
  0xd2   : > { %9964 = vst.msk [vmem:[%s14775_s10 + $0x18] sm:$0xf] %vm9957_vm3, %v8939_v32  ;;  %v6645_v36 = vadd.f32 %v14762_v40, %v6644_v34  ;;  %v7285_v37 = vadd.f32 %v14762_v40, %v7284_v35  ;;  %v5366_v38 = vpop.f32.mrf.mxu0  ;;  %v6006_v39 = vpop.f32.mrf.mxu1  ;;  %v14311_v32 = vld [vmem:[%s14693_s5 + $0xc68] sm:$0xff] }
  0xd3   : > { %10220 = vst.msk [vmem:[%s14775_s10 + $0x418] sm:$0xf] %vm9957_vm3, %v9195_v33  ;;  %v5367_v41 = vadd.f32 %v14762_v40, %v5366_v38  ;;  %v6007_v42 = vadd.f32 %v14762_v40, %v6006_v39 }
  0xd4   : > { %v8427_v43 = vmax.f32 %v6645_v36, 0.0  ;;  %v8683_v44 = vmax.f32 %v7285_v37, 0.0 }
  0xd5   : > { %v7916_v45 = vmax.f32 %v5367_v41, 0.0  ;;  %v8172_v46 = vmax.f32 %v6007_v42, 0.0 }
  0xd6   : > { %v9451_v47 = vpack.c.bf16 %v8427_v43, %v8427_v43  ;;  %v9707_v48 = vpack.c.bf16 %v8683_v44, %v8683_v44 }
  0xd7   : > { %v8940_v49 = vpack.c.bf16 %v7916_v45, %v7916_v45  ;;  %v9196_v50 = vpack.c.bf16 %v8172_v46, %v8172_v46 }
  0xd8   : > { %10476 = vst.msk [vmem:[%s14775_s10 + $0x818] sm:$0xf] %vm9957_vm3, %v9451_v47 }
  0xd9   : > { %10732 = vst.msk [vmem:[%s14775_s10 + $0xc18] sm:$0xf] %vm9957_vm3, %v9707_v48  ;;  %v6646_v51 = vpop.f32.mrf.mxu2  ;;  %v7286_v52 = vpop.f32.mrf.mxu3 }
  0xda   : > { %9965 = vst.msk [vmem:[%s14775_s10 + $0x1c] sm:$0xf] %vm9957_vm3, %v8940_v49  ;;  %v6647_v55 = vadd.f32 %v14762_v40, %v6646_v51  ;;  %v7287_v56 = vadd.f32 %v14762_v40, %v7286_v52  ;;  %v5369_v57 = vpop.f32.mrf.mxu0  ;;  %v6009_v58 = vpop.f32.mrf.mxu1 }
  0xdb   : > { %10221 = vst.msk [vmem:[%s14775_s10 + $0x41c] sm:$0xf] %vm9957_vm3, %v9196_v50  ;;  %v5370_v61 = vadd.f32 %v14762_v40, %v5369_v57  ;;  %v6010_v62 = vadd.f32 %v14762_v40, %v6009_v58 }
  0xdc   : > { %v8428_v63 = vmax.f32 %v6647_v55, 0.0  ;;  %v8684_v0 = vmax.f32 %v7287_v56, 0.0 }
  0xdd   : > { %v7917_v1 = vmax.f32 %v5370_v61, 0.0  ;;  %v8173_v2 = vmax.f32 %v6010_v62, 0.0  ;;  %13397 = vmatmul.msk.bf16.gmra.mxu0 %vm3796_vm2, %v13926_v53  ;;  %13525 = vmatmul.msk.bf16.gmra.mxu1 %vm3796_vm2, %v14054_v54  ;;  %v13928_v62 = vld [vmem:[%s14693_s5 + $0x70] sm:$0xff] }
  0xde   : > { %v9452_v3 = vpack.c.bf16 %v8428_v63, %v8428_v63  ;;  %v9708_v4 = vpack.c.bf16 %v8684_v0, %v8684_v0  ;;  %13653 = vmatmul.msk.bf16.gmra.mxu2 %vm3796_vm2, %v14182_v59  ;;  %13781 = vmatmul.msk.bf16.gmra.mxu3 %vm3796_vm2, %v14310_v60  ;;  %v14056_v63 = vld [vmem:[%s14693_s5 + $0x470] sm:$0xff] }
  0xdf   : > { %v8941_v5 = vpack.c.bf16 %v7917_v1, %v7917_v1  ;;  %v9197_v6 = vpack.c.bf16 %v8173_v2, %v8173_v2 }
  0xe0   : > { %10477 = vst.msk [vmem:[%s14775_s10 + $0x81c] sm:$0xf] %vm9957_vm3, %v9452_v3 }
  0xe1   : > { %10733 = vst.msk [vmem:[%s14775_s10 + $0xc1c] sm:$0xf] %vm9957_vm3, %v9708_v4  ;;  %v6649_v7 = vpop.f32.mrf.mxu2  ;;  %v7289_v8 = vpop.f32.mrf.mxu3  ;;  %v14184_v4 = vld [vmem:[%s14693_s5 + $0x870] sm:$0xff] }
  0xe2   : > { %9966 = vst.msk [vmem:[%s14775_s10 + $0x20] sm:$0xf] %vm9957_vm3, %v8941_v5  ;;  %v6650_v9 = vadd.f32 %v14762_v40, %v6649_v7  ;;  %v7290_v10 = vadd.f32 %v14762_v40, %v7289_v8  ;;  %v5371_v11 = vpop.f32.mrf.mxu0  ;;  %v6011_v12 = vpop.f32.mrf.mxu1  ;;  %v14312_v5 = vld [vmem:[%s14693_s5 + $0xc70] sm:$0xff] }
  0xe3   : > { %10222 = vst.msk [vmem:[%s14775_s10 + $0x420] sm:$0xf] %vm9957_vm3, %v9197_v6  ;;  %v5372_v13 = vadd.f32 %v14762_v40, %v5371_v11  ;;  %v6012_v14 = vadd.f32 %v14762_v40, %v6011_v12 }
  0xe4   : > { %v8429_v15 = vmax.f32 %v6650_v9, 0.0  ;;  %v8685_v16 = vmax.f32 %v7290_v10, 0.0 }
  0xe5   : > { %v7918_v17 = vmax.f32 %v5372_v13, 0.0  ;;  %v8174_v18 = vmax.f32 %v6012_v14, 0.0 }
  0xe6   : > { %v9453_v19 = vpack.c.bf16 %v8429_v15, %v8429_v15  ;;  %v9709_v20 = vpack.c.bf16 %v8685_v16, %v8685_v16 }
  0xe7   : > { %v8942_v21 = vpack.c.bf16 %v7918_v17, %v7918_v17  ;;  %v9198_v22 = vpack.c.bf16 %v8174_v18, %v8174_v18 }
  0xe8   : > { %10478 = vst.msk [vmem:[%s14775_s10 + $0x820] sm:$0xf] %vm9957_vm3, %v9453_v19 }
  0xe9   : > { %10734 = vst.msk [vmem:[%s14775_s10 + $0xc20] sm:$0xf] %vm9957_vm3, %v9709_v20  ;;  %v6651_v23 = vpop.f32.mrf.mxu2  ;;  %v7291_v24 = vpop.f32.mrf.mxu3 }
  0xea   : > { %9967 = vst.msk [vmem:[%s14775_s10 + $0x24] sm:$0xf] %vm9957_vm3, %v8942_v21  ;;  %v6652_v27 = vadd.f32 %v14762_v40, %v6651_v23  ;;  %v7292_v28 = vadd.f32 %v14762_v40, %v7291_v24  ;;  %v5374_v29 = vpop.f32.mrf.mxu0  ;;  %v6014_v30 = vpop.f32.mrf.mxu1 }
  0xeb   : > { %10223 = vst.msk [vmem:[%s14775_s10 + $0x424] sm:$0xf] %vm9957_vm3, %v9198_v22  ;;  %v5375_v33 = vadd.f32 %v14762_v40, %v5374_v29  ;;  %v6015_v34 = vadd.f32 %v14762_v40, %v6014_v30 }
  0xec   : > { %v8430_v35 = vmax.f32 %v6652_v27, 0.0  ;;  %v8686_v36 = vmax.f32 %v7292_v28, 0.0 }
  0xed   : > { %v7919_v37 = vmax.f32 %v5375_v33, 0.0  ;;  %v8175_v38 = vmax.f32 %v6015_v34, 0.0  ;;  %13398 = vmatmul.msk.bf16.gmra.mxu0 %vm3796_vm2, %v13927_v25  ;;  %13526 = vmatmul.msk.bf16.gmra.mxu1 %vm3796_vm2, %v14055_v26  ;;  %v13929_v34 = vld [vmem:[%s14693_s5 + $0x78] sm:$0xff] }
  0xee   : > { %v9454_v39 = vpack.c.bf16 %v8430_v35, %v8430_v35  ;;  %v9710_v41 = vpack.c.bf16 %v8686_v36, %v8686_v36  ;;  %13654 = vmatmul.msk.bf16.gmra.mxu2 %vm3796_vm2, %v14183_v31  ;;  %13782 = vmatmul.msk.bf16.gmra.mxu3 %vm3796_vm2, %v14311_v32  ;;  %v14057_v35 = vld [vmem:[%s14693_s5 + $0x478] sm:$0xff] }
  0xef   : > { %v8943_v42 = vpack.c.bf16 %v7919_v37, %v7919_v37  ;;  %v9199_v43 = vpack.c.bf16 %v8175_v38, %v8175_v38 }
  0xf0   : > { %10479 = vst.msk [vmem:[%s14775_s10 + $0x824] sm:$0xf] %vm9957_vm3, %v9454_v39 }
  0xf1   : > { %10735 = vst.msk [vmem:[%s14775_s10 + $0xc24] sm:$0xf] %vm9957_vm3, %v9710_v41  ;;  %v6654_v44 = vpop.f32.mrf.mxu2  ;;  %v7294_v45 = vpop.f32.mrf.mxu3  ;;  %v14185_v41 = vld [vmem:[%s14693_s5 + $0x878] sm:$0xff] }
  0xf2   : > { %9968 = vst.msk [vmem:[%s14775_s10 + $0x28] sm:$0xf] %vm9957_vm3, %v8943_v42  ;;  %v6655_v46 = vadd.f32 %v14762_v40, %v6654_v44  ;;  %v7295_v47 = vadd.f32 %v14762_v40, %v7294_v45  ;;  %v5376_v48 = vpop.f32.mrf.mxu0  ;;  %v6016_v49 = vpop.f32.mrf.mxu1  ;;  %v14313_v42 = vld [vmem:[%s14693_s5 + $0xc78] sm:$0xff] }
  0xf3   : > { %10224 = vst.msk [vmem:[%s14775_s10 + $0x428] sm:$0xf] %vm9957_vm3, %v9199_v43  ;;  %v5377_v50 = vadd.f32 %v14762_v40, %v5376_v48  ;;  %v6017_v51 = vadd.f32 %v14762_v40, %v6016_v49 }
  0xf4   : > { %v8431_v52 = vmax.f32 %v6655_v46, 0.0  ;;  %v8687_v53 = vmax.f32 %v7295_v47, 0.0 }
  0xf5   : > { %v7920_v54 = vmax.f32 %v5377_v50, 0.0  ;;  %v8176_v55 = vmax.f32 %v6017_v51, 0.0 }
  0xf6   : > { %v9455_v56 = vpack.c.bf16 %v8431_v52, %v8431_v52  ;;  %v9711_v57 = vpack.c.bf16 %v8687_v53, %v8687_v53 }
  0xf7   : > { %v8944_v58 = vpack.c.bf16 %v7920_v54, %v7920_v54  ;;  %v9200_v59 = vpack.c.bf16 %v8176_v55, %v8176_v55 }
  0xf8   : > { %10480 = vst.msk [vmem:[%s14775_s10 + $0x828] sm:$0xf] %vm9957_vm3, %v9455_v56 }
  0xf9   : > { %10736 = vst.msk [vmem:[%s14775_s10 + $0xc28] sm:$0xf] %vm9957_vm3, %v9711_v57  ;;  %v6656_v60 = vpop.f32.mrf.mxu2  ;;  %v7296_v61 = vpop.f32.mrf.mxu3 }
  0xfa   : > { %9969 = vst.msk [vmem:[%s14775_s10 + $0x2c] sm:$0xf] %vm9957_vm3, %v8944_v58  ;;  %v6657_v0 = vadd.f32 %v14762_v40, %v6656_v60  ;;  %v7297_v1 = vadd.f32 %v14762_v40, %v7296_v61  ;;  %v5379_v2 = vpop.f32.mrf.mxu0  ;;  %v6019_v3 = vpop.f32.mrf.mxu1 }
  0xfb   : > { %10225 = vst.msk [vmem:[%s14775_s10 + $0x42c] sm:$0xf] %vm9957_vm3, %v9200_v59  ;;  %v5380_v6 = vadd.f32 %v14762_v40, %v5379_v2  ;;  %v6020_v7 = vadd.f32 %v14762_v40, %v6019_v3 }
  0xfc   : > { %v8432_v8 = vmax.f32 %v6657_v0, 0.0  ;;  %v8688_v9 = vmax.f32 %v7297_v1, 0.0 }
  0xfd   : > { %v7921_v10 = vmax.f32 %v5380_v6, 0.0  ;;  %v8177_v11 = vmax.f32 %v6020_v7, 0.0  ;;  %13399 = vmatmul.msk.bf16.gmra.mxu0 %vm3796_vm2, %v13928_v62  ;;  %13527 = vmatmul.msk.bf16.gmra.mxu1 %vm3796_vm2, %v14056_v63  ;;  %v13930_v7 = vld [vmem:[%s14693_s5 + $0x80] sm:$0xff] }
  0xfe   : > { %v9456_v12 = vpack.c.bf16 %v8432_v8, %v8432_v8  ;;  %v9712_v13 = vpack.c.bf16 %v8688_v9, %v8688_v9  ;;  %13655 = vmatmul.msk.bf16.gmra.mxu2 %vm3796_vm2, %v14184_v4  ;;  %13783 = vmatmul.msk.bf16.gmra.mxu3 %vm3796_vm2, %v14312_v5  ;;  %v14058_v8 = vld [vmem:[%s14693_s5 + $0x480] sm:$0xff] }
  0xff   : > { %v8945_v14 = vpack.c.bf16 %v7921_v10, %v7921_v10  ;;  %v9201_v15 = vpack.c.bf16 %v8177_v11, %v8177_v11 }
 0x100   : > { %10481 = vst.msk [vmem:[%s14775_s10 + $0x82c] sm:$0xf] %vm9957_vm3, %v9456_v12 }
 0x101   : > { %10737 = vst.msk [vmem:[%s14775_s10 + $0xc2c] sm:$0xf] %vm9957_vm3, %v9712_v13  ;;  %v6659_v16 = vpop.f32.mrf.mxu2  ;;  %v7299_v17 = vpop.f32.mrf.mxu3  ;;  %v14186_v13 = vld [vmem:[%s14693_s5 + $0x880] sm:$0xff] }
 0x102   : > { %9970 = vst.msk [vmem:[%s14775_s10 + $0x30] sm:$0xf] %vm9957_vm3, %v8945_v14  ;;  %v6660_v18 = vadd.f32 %v14762_v40, %v6659_v16  ;;  %v7300_v19 = vadd.f32 %v14762_v40, %v7299_v17  ;;  %v5381_v20 = vpop.f32.mrf.mxu0  ;;  %v6021_v21 = vpop.f32.mrf.mxu1  ;;  %v14314_v14 = vld [vmem:[%s14693_s5 + $0xc80] sm:$0xff] }
 0x103   : > { %10226 = vst.msk [vmem:[%s14775_s10 + $0x430] sm:$0xf] %vm9957_vm3, %v9201_v15  ;;  %v5382_v22 = vadd.f32 %v14762_v40, %v5381_v20  ;;  %v6022_v23 = vadd.f32 %v14762_v40, %v6021_v21 }
 0x104   : > { %v8433_v24 = vmax.f32 %v6660_v18, 0.0  ;;  %v8689_v25 = vmax.f32 %v7300_v19, 0.0 }
 0x105   : > { %v7922_v26 = vmax.f32 %v5382_v22, 0.0  ;;  %v8178_v27 = vmax.f32 %v6022_v23, 0.0 }
 0x106   : > { %v9457_v28 = vpack.c.bf16 %v8433_v24, %v8433_v24  ;;  %v9713_v29 = vpack.c.bf16 %v8689_v25, %v8689_v25 }
 0x107   : > { %v8946_v30 = vpack.c.bf16 %v7922_v26, %v7922_v26  ;;  %v9202_v31 = vpack.c.bf16 %v8178_v27, %v8178_v27 }
 0x108   : > { %10482 = vst.msk [vmem:[%s14775_s10 + $0x830] sm:$0xf] %vm9957_vm3, %v9457_v28 }
 0x109   : > { %10738 = vst.msk [vmem:[%s14775_s10 + $0xc30] sm:$0xf] %vm9957_vm3, %v9713_v29  ;;  %v6661_v32 = vpop.f32.mrf.mxu2  ;;  %v7301_v33 = vpop.f32.mrf.mxu3 }
 0x10a   : > { %9971 = vst.msk [vmem:[%s14775_s10 + $0x34] sm:$0xf] %vm9957_vm3, %v8946_v30  ;;  %v6662_v36 = vadd.f32 %v14762_v40, %v6661_v32  ;;  %v7302_v37 = vadd.f32 %v14762_v40, %v7301_v33  ;;  %v5384_v38 = vpop.f32.mrf.mxu0  ;;  %v6024_v39 = vpop.f32.mrf.mxu1 }
 0x10b   : > { %10227 = vst.msk [vmem:[%s14775_s10 + $0x434] sm:$0xf] %vm9957_vm3, %v9202_v31  ;;  %v5385_v43 = vadd.f32 %v14762_v40, %v5384_v38  ;;  %v6025_v44 = vadd.f32 %v14762_v40, %v6024_v39 }
 0x10c   : > { %v8434_v45 = vmax.f32 %v6662_v36, 0.0  ;;  %v8690_v46 = vmax.f32 %v7302_v37, 0.0 }
 0x10d   : > { %v7923_v47 = vmax.f32 %v5385_v43, 0.0  ;;  %v8179_v48 = vmax.f32 %v6025_v44, 0.0  ;;  %13400 = vmatmul.msk.bf16.gmra.mxu0 %vm3796_vm2, %v13929_v34  ;;  %13528 = vmatmul.msk.bf16.gmra.mxu1 %vm3796_vm2, %v14057_v35  ;;  %v13931_v44 = vld [vmem:[%s14693_s5 + $0x88] sm:$0xff] }
 0x10e   : > { %v9458_v49 = vpack.c.bf16 %v8434_v45, %v8434_v45  ;;  %v9714_v50 = vpack.c.bf16 %v8690_v46, %v8690_v46  ;;  %13656 = vmatmul.msk.bf16.gmra.mxu2 %vm3796_vm2, %v14185_v41  ;;  %13784 = vmatmul.msk.bf16.gmra.mxu3 %vm3796_vm2, %v14313_v42  ;;  %v14059_v45 = vld [vmem:[%s14693_s5 + $0x488] sm:$0xff] }
 0x10f   : > { %v8947_v51 = vpack.c.bf16 %v7923_v47, %v7923_v47  ;;  %v9203_v52 = vpack.c.bf16 %v8179_v48, %v8179_v48 }
 0x110   : > { %10483 = vst.msk [vmem:[%s14775_s10 + $0x834] sm:$0xf] %vm9957_vm3, %v9458_v49 }
 0x111   : > { %10739 = vst.msk [vmem:[%s14775_s10 + $0xc34] sm:$0xf] %vm9957_vm3, %v9714_v50  ;;  %v6664_v53 = vpop.f32.mrf.mxu2  ;;  %v7304_v54 = vpop.f32.mrf.mxu3  ;;  %v14187_v50 = vld [vmem:[%s14693_s5 + $0x888] sm:$0xff] }
 0x112   : > { %9972 = vst.msk [vmem:[%s14775_s10 + $0x38] sm:$0xf] %vm9957_vm3, %v8947_v51  ;;  %v6665_v55 = vadd.f32 %v14762_v40, %v6664_v53  ;;  %v7305_v56 = vadd.f32 %v14762_v40, %v7304_v54  ;;  %v5386_v57 = vpop.f32.mrf.mxu0  ;;  %v6026_v58 = vpop.f32.mrf.mxu1  ;;  %v14315_v51 = vld [vmem:[%s14693_s5 + $0xc88] sm:$0xff] }
 0x113   : > { %10228 = vst.msk [vmem:[%s14775_s10 + $0x438] sm:$0xf] %vm9957_vm3, %v9203_v52  ;;  %v5387_v59 = vadd.f32 %v14762_v40, %v5386_v57  ;;  %v6027_v60 = vadd.f32 %v14762_v40, %v6026_v58 }
 0x114   : > { %v8435_v61 = vmax.f32 %v6665_v55, 0.0  ;;  %v8691_v62 = vmax.f32 %v7305_v56, 0.0 }
 0x115   : > { %v7924_v63 = vmax.f32 %v5387_v59, 0.0  ;;  %v8180_v0 = vmax.f32 %v6027_v60, 0.0 }
 0x116   : > { %v9459_v1 = vpack.c.bf16 %v8435_v61, %v8435_v61  ;;  %v9715_v2 = vpack.c.bf16 %v8691_v62, %v8691_v62 }
 0x117   : > { %v8948_v3 = vpack.c.bf16 %v7924_v63, %v7924_v63  ;;  %v9204_v4 = vpack.c.bf16 %v8180_v0, %v8180_v0 }
 0x118   : > { %10484 = vst.msk [vmem:[%s14775_s10 + $0x838] sm:$0xf] %vm9957_vm3, %v9459_v1 }
 0x119   : > { %10740 = vst.msk [vmem:[%s14775_s10 + $0xc38] sm:$0xf] %vm9957_vm3, %v9715_v2  ;;  %v6666_v5 = vpop.f32.mrf.mxu2  ;;  %v7306_v6 = vpop.f32.mrf.mxu3 }
 0x11a   : > { %9973 = vst.msk [vmem:[%s14775_s10 + $0x3c] sm:$0xf] %vm9957_vm3, %v8948_v3  ;;  %v6667_v9 = vadd.f32 %v14762_v40, %v6666_v5  ;;  %v7307_v10 = vadd.f32 %v14762_v40, %v7306_v6  ;;  %v5389_v11 = vpop.f32.mrf.mxu0  ;;  %v6029_v12 = vpop.f32.mrf.mxu1 }
 0x11b   : > { %10229 = vst.msk [vmem:[%s14775_s10 + $0x43c] sm:$0xf] %vm9957_vm3, %v9204_v4  ;;  %v5390_v15 = vadd.f32 %v14762_v40, %v5389_v11  ;;  %v6030_v16 = vadd.f32 %v14762_v40, %v6029_v12 }
 0x11c   : > { %v8436_v17 = vmax.f32 %v6667_v9, 0.0  ;;  %v8692_v18 = vmax.f32 %v7307_v10, 0.0 }
 0x11d   : > { %v7925_v19 = vmax.f32 %v5390_v15, 0.0  ;;  %v8181_v20 = vmax.f32 %v6030_v16, 0.0  ;;  %13401 = vmatmul.msk.bf16.gmra.mxu0 %vm3796_vm2, %v13930_v7  ;;  %13529 = vmatmul.msk.bf16.gmra.mxu1 %vm3796_vm2, %v14058_v8  ;;  %v13932_v16 = vld [vmem:[%s14693_s5 + $0x90] sm:$0xff] }
 0x11e   : > { %v9460_v21 = vpack.c.bf16 %v8436_v17, %v8436_v17  ;;  %v9716_v22 = vpack.c.bf16 %v8692_v18, %v8692_v18  ;;  %13657 = vmatmul.msk.bf16.gmra.mxu2 %vm3796_vm2, %v14186_v13  ;;  %13785 = vmatmul.msk.bf16.gmra.mxu3 %vm3796_vm2, %v14314_v14  ;;  %v14060_v17 = vld [vmem:[%s14693_s5 + $0x490] sm:$0xff] }
 0x11f   : > { %v8949_v23 = vpack.c.bf16 %v7925_v19, %v7925_v19  ;;  %v9205_v24 = vpack.c.bf16 %v8181_v20, %v8181_v20 }
 0x120   : > { %10485 = vst.msk [vmem:[%s14775_s10 + $0x83c] sm:$0xf] %vm9957_vm3, %v9460_v21 }
 0x121   : > { %10741 = vst.msk [vmem:[%s14775_s10 + $0xc3c] sm:$0xf] %vm9957_vm3, %v9716_v22  ;;  %v6669_v25 = vpop.f32.mrf.mxu2  ;;  %v7309_v26 = vpop.f32.mrf.mxu3  ;;  %v14188_v22 = vld [vmem:[%s14693_s5 + $0x890] sm:$0xff] }
 0x122   : > { %9974 = vst.msk [vmem:[%s14775_s10 + $0x40] sm:$0xf] %vm9957_vm3, %v8949_v23  ;;  %v6670_v27 = vadd.f32 %v14762_v40, %v6669_v25  ;;  %v7310_v28 = vadd.f32 %v14762_v40, %v7309_v26  ;;  %v5391_v29 = vpop.f32.mrf.mxu0  ;;  %v6031_v30 = vpop.f32.mrf.mxu1  ;;  %v14316_v23 = vld [vmem:[%s14693_s5 + $0xc90] sm:$0xff] }
 0x123   : > { %10230 = vst.msk [vmem:[%s14775_s10 + $0x440] sm:$0xf] %vm9957_vm3, %v9205_v24  ;;  %v5392_v31 = vadd.f32 %v14762_v40, %v5391_v29  ;;  %v6032_v32 = vadd.f32 %v14762_v40, %v6031_v30 }
 0x124   : > { %v8437_v33 = vmax.f32 %v6670_v27, 0.0  ;;  %v8693_v34 = vmax.f32 %v7310_v28, 0.0 }
 0x125   : > { %v7926_v35 = vmax.f32 %v5392_v31, 0.0  ;;  %v8182_v36 = vmax.f32 %v6032_v32, 0.0 }
 0x126   : > { %v9461_v37 = vpack.c.bf16 %v8437_v33, %v8437_v33  ;;  %v9717_v38 = vpack.c.bf16 %v8693_v34, %v8693_v34 }
 0x127   : > { %v8950_v39 = vpack.c.bf16 %v7926_v35, %v7926_v35  ;;  %v9206_v41 = vpack.c.bf16 %v8182_v36, %v8182_v36 }
 0x128   : > { %10486 = vst.msk [vmem:[%s14775_s10 + $0x840] sm:$0xf] %vm9957_vm3, %v9461_v37 }
 0x129   : > { %10742 = vst.msk [vmem:[%s14775_s10 + $0xc40] sm:$0xf] %vm9957_vm3, %v9717_v38  ;;  %v6671_v42 = vpop.f32.mrf.mxu2  ;;  %v7311_v43 = vpop.f32.mrf.mxu3 }
 0x12a   : > { %9975 = vst.msk [vmem:[%s14775_s10 + $0x44] sm:$0xf] %vm9957_vm3, %v8950_v39  ;;  %v6672_v46 = vadd.f32 %v14762_v40, %v6671_v42  ;;  %v7312_v47 = vadd.f32 %v14762_v40, %v7311_v43  ;;  %v5394_v48 = vpop.f32.mrf.mxu0  ;;  %v6034_v49 = vpop.f32.mrf.mxu1 }
 0x12b   : > { %10231 = vst.msk [vmem:[%s14775_s10 + $0x444] sm:$0xf] %vm9957_vm3, %v9206_v41  ;;  %v5395_v52 = vadd.f32 %v14762_v40, %v5394_v48  ;;  %v6035_v53 = vadd.f32 %v14762_v40, %v6034_v49 }
 0x12c   : > { %v8438_v54 = vmax.f32 %v6672_v46, 0.0  ;;  %v8694_v55 = vmax.f32 %v7312_v47, 0.0 }
 0x12d   : > { %v7927_v56 = vmax.f32 %v5395_v52, 0.0  ;;  %v8183_v57 = vmax.f32 %v6035_v53, 0.0  ;;  %13402 = vmatmul.msk.bf16.gmra.mxu0 %vm3796_vm2, %v13931_v44  ;;  %13530 = vmatmul.msk.bf16.gmra.mxu1 %vm3796_vm2, %v14059_v45  ;;  %v13933_v53 = vld [vmem:[%s14693_s5 + $0x98] sm:$0xff] }
 0x12e   : > { %v9462_v58 = vpack.c.bf16 %v8438_v54, %v8438_v54  ;;  %v9718_v59 = vpack.c.bf16 %v8694_v55, %v8694_v55  ;;  %13658 = vmatmul.msk.bf16.gmra.mxu2 %vm3796_vm2, %v14187_v50  ;;  %13786 = vmatmul.msk.bf16.gmra.mxu3 %vm3796_vm2, %v14315_v51  ;;  %v14061_v54 = vld [vmem:[%s14693_s5 + $0x498] sm:$0xff] }
 0x12f   : > { %v8951_v60 = vpack.c.bf16 %v7927_v56, %v7927_v56  ;;  %v9207_v61 = vpack.c.bf16 %v8183_v57, %v8183_v57 }
 0x130   : > { %10487 = vst.msk [vmem:[%s14775_s10 + $0x844] sm:$0xf] %vm9957_vm3, %v9462_v58 }
 0x131   : > { %10743 = vst.msk [vmem:[%s14775_s10 + $0xc44] sm:$0xf] %vm9957_vm3, %v9718_v59  ;;  %v6674_v62 = vpop.f32.mrf.mxu2  ;;  %v7314_v63 = vpop.f32.mrf.mxu3  ;;  %v14189_v59 = vld [vmem:[%s14693_s5 + $0x898] sm:$0xff] }
 0x132   : > { %9976 = vst.msk [vmem:[%s14775_s10 + $0x48] sm:$0xf] %vm9957_vm3, %v8951_v60  ;;  %v6675_v0 = vadd.f32 %v14762_v40, %v6674_v62  ;;  %v7315_v1 = vadd.f32 %v14762_v40, %v7314_v63  ;;  %v5396_v2 = vpop.f32.mrf.mxu0  ;;  %v6036_v3 = vpop.f32.mrf.mxu1  ;;  %v14317_v60 = vld [vmem:[%s14693_s5 + $0xc98] sm:$0xff] }
 0x133   : > { %10232 = vst.msk [vmem:[%s14775_s10 + $0x448] sm:$0xf] %vm9957_vm3, %v9207_v61  ;;  %v5397_v4 = vadd.f32 %v14762_v40, %v5396_v2  ;;  %v6037_v5 = vadd.f32 %v14762_v40, %v6036_v3 }
 0x134   : > { %v8439_v6 = vmax.f32 %v6675_v0, 0.0  ;;  %v8695_v7 = vmax.f32 %v7315_v1, 0.0 }
 0x135   : > { %v7928_v8 = vmax.f32 %v5397_v4, 0.0  ;;  %v8184_v9 = vmax.f32 %v6037_v5, 0.0 }
 0x136   : > { %v9463_v10 = vpack.c.bf16 %v8439_v6, %v8439_v6  ;;  %v9719_v11 = vpack.c.bf16 %v8695_v7, %v8695_v7 }
 0x137   : > { %v8952_v12 = vpack.c.bf16 %v7928_v8, %v7928_v8  ;;  %v9208_v13 = vpack.c.bf16 %v8184_v9, %v8184_v9 }
 0x138   : > { %10488 = vst.msk [vmem:[%s14775_s10 + $0x848] sm:$0xf] %vm9957_vm3, %v9463_v10 }
 0x139   : > { %10744 = vst.msk [vmem:[%s14775_s10 + $0xc48] sm:$0xf] %vm9957_vm3, %v9719_v11  ;;  %v6676_v14 = vpop.f32.mrf.mxu2  ;;  %v7316_v15 = vpop.f32.mrf.mxu3 }
 0x13a   : > { %9977 = vst.msk [vmem:[%s14775_s10 + $0x4c] sm:$0xf] %vm9957_vm3, %v8952_v12  ;;  %v6677_v18 = vadd.f32 %v14762_v40, %v6676_v14  ;;  %v7317_v19 = vadd.f32 %v14762_v40, %v7316_v15  ;;  %v5399_v20 = vpop.f32.mrf.mxu0  ;;  %v6039_v21 = vpop.f32.mrf.mxu1 }
 0x13b   : > { %10233 = vst.msk [vmem:[%s14775_s10 + $0x44c] sm:$0xf] %vm9957_vm3, %v9208_v13  ;;  %v5400_v24 = vadd.f32 %v14762_v40, %v5399_v20  ;;  %v6040_v25 = vadd.f32 %v14762_v40, %v6039_v21 }
 0x13c   : > { %v8440_v26 = vmax.f32 %v6677_v18, 0.0  ;;  %v8696_v27 = vmax.f32 %v7317_v19, 0.0 }
 0x13d   : > { %v7929_v28 = vmax.f32 %v5400_v24, 0.0  ;;  %v8185_v29 = vmax.f32 %v6040_v25, 0.0  ;;  %13403 = vmatmul.msk.bf16.gmra.mxu0 %vm3796_vm2, %v13932_v16  ;;  %13531 = vmatmul.msk.bf16.gmra.mxu1 %vm3796_vm2, %v14060_v17  ;;  %v13934_v25 = vld [vmem:[%s14693_s5 + $0xa0] sm:$0xff] }
 0x13e   : > { %v9464_v30 = vpack.c.bf16 %v8440_v26, %v8440_v26  ;;  %v9720_v31 = vpack.c.bf16 %v8696_v27, %v8696_v27  ;;  %13659 = vmatmul.msk.bf16.gmra.mxu2 %vm3796_vm2, %v14188_v22  ;;  %13787 = vmatmul.msk.bf16.gmra.mxu3 %vm3796_vm2, %v14316_v23  ;;  %v14062_v26 = vld [vmem:[%s14693_s5 + $0x4a0] sm:$0xff] }
 0x13f   : > { %v8953_v32 = vpack.c.bf16 %v7929_v28, %v7929_v28  ;;  %v9209_v33 = vpack.c.bf16 %v8185_v29, %v8185_v29 }
 0x140   : > { %10489 = vst.msk [vmem:[%s14775_s10 + $0x84c] sm:$0xf] %vm9957_vm3, %v9464_v30 }
 0x141   : > { %10745 = vst.msk [vmem:[%s14775_s10 + $0xc4c] sm:$0xf] %vm9957_vm3, %v9720_v31  ;;  %v6679_v34 = vpop.f32.mrf.mxu2  ;;  %v7319_v35 = vpop.f32.mrf.mxu3  ;;  %v14190_v31 = vld [vmem:[%s14693_s5 + $0x8a0] sm:$0xff] }
 0x142   : > { %9978 = vst.msk [vmem:[%s14775_s10 + $0x50] sm:$0xf] %vm9957_vm3, %v8953_v32  ;;  %v6680_v36 = vadd.f32 %v14762_v40, %v6679_v34  ;;  %v7320_v37 = vadd.f32 %v14762_v40, %v7319_v35  ;;  %v5401_v38 = vpop.f32.mrf.mxu0  ;;  %v6041_v39 = vpop.f32.mrf.mxu1  ;;  %v14318_v32 = vld [vmem:[%s14693_s5 + $0xca0] sm:$0xff] }
 0x143   : > { %10234 = vst.msk [vmem:[%s14775_s10 + $0x450] sm:$0xf] %vm9957_vm3, %v9209_v33  ;;  %v5402_v41 = vadd.f32 %v14762_v40, %v5401_v38  ;;  %v6042_v42 = vadd.f32 %v14762_v40, %v6041_v39  ;;  %v15116_v40 = vld [vmem:[%s18998_s2] ss:$0 sm:$0xff] }
 0x144   : > { %v8441_v43 = vmax.f32 %v6680_v36, 0.0  ;;  %v8697_v44 = vmax.f32 %v7320_v37, 0.0 }
 0x145   : > { %v7930_v45 = vmax.f32 %v5402_v41, 0.0  ;;  %v8186_v46 = vmax.f32 %v6042_v42, 0.0 }
 0x146   : > { %v9465_v47 = vpack.c.bf16 %v8441_v43, %v8441_v43  ;;  %v9721_v48 = vpack.c.bf16 %v8697_v44, %v8697_v44 }
 0x147   : > { %v8954_v49 = vpack.c.bf16 %v7930_v45, %v7930_v45  ;;  %v9210_v50 = vpack.c.bf16 %v8186_v46, %v8186_v46 }
 0x148   : > { %10490 = vst.msk [vmem:[%s14775_s10 + $0x850] sm:$0xf] %vm9957_vm3, %v9465_v47 }
 0x149   : > { %10746 = vst.msk [vmem:[%s14775_s10 + $0xc50] sm:$0xf] %vm9957_vm3, %v9721_v48  ;;  %v6681_v51 = vpop.f32.mrf.mxu2  ;;  %v7321_v52 = vpop.f32.mrf.mxu3 }
 0x14a   : > { %9979 = vst.msk [vmem:[%s14775_s10 + $0x54] sm:$0xf] %vm9957_vm3, %v8954_v49  ;;  %v6682_v55 = vadd.f32 %v15116_v40, %v6681_v51  ;;  %v7322_v56 = vadd.f32 %v15116_v40, %v7321_v52  ;;  %v5404_v57 = vpop.f32.mrf.mxu0  ;;  %v6044_v58 = vpop.f32.mrf.mxu1 }
 0x14b   : > { %10235 = vst.msk [vmem:[%s14775_s10 + $0x454] sm:$0xf] %vm9957_vm3, %v9210_v50  ;;  %v5405_v61 = vadd.f32 %v15116_v40, %v5404_v57  ;;  %v6045_v62 = vadd.f32 %v15116_v40, %v6044_v58 }
 0x14c   : > { %v8442_v63 = vmax.f32 %v6682_v55, 0.0  ;;  %v8698_v0 = vmax.f32 %v7322_v56, 0.0 }
 0x14d   : > { %v7931_v1 = vmax.f32 %v5405_v61, 0.0  ;;  %v8187_v2 = vmax.f32 %v6045_v62, 0.0  ;;  %13404 = vmatmul.msk.bf16.gmra.mxu0 %vm3796_vm2, %v13933_v53  ;;  %13532 = vmatmul.msk.bf16.gmra.mxu1 %vm3796_vm2, %v14061_v54  ;;  %v13935_v62 = vld [vmem:[%s14693_s5 + $0xa8] sm:$0xff] }
 0x14e   : > { %v9466_v3 = vpack.c.bf16 %v8442_v63, %v8442_v63  ;;  %v9722_v4 = vpack.c.bf16 %v8698_v0, %v8698_v0  ;;  %13660 = vmatmul.msk.bf16.gmra.mxu2 %vm3796_vm2, %v14189_v59  ;;  %13788 = vmatmul.msk.bf16.gmra.mxu3 %vm3796_vm2, %v14317_v60  ;;  %v14063_v63 = vld [vmem:[%s14693_s5 + $0x4a8] sm:$0xff] }
 0x14f   : > { %v8955_v5 = vpack.c.bf16 %v7931_v1, %v7931_v1  ;;  %v9211_v6 = vpack.c.bf16 %v8187_v2, %v8187_v2 }
 0x150   : > { %10491 = vst.msk [vmem:[%s14775_s10 + $0x854] sm:$0xf] %vm9957_vm3, %v9466_v3 }
 0x151   : > { %10747 = vst.msk [vmem:[%s14775_s10 + $0xc54] sm:$0xf] %vm9957_vm3, %v9722_v4  ;;  %v6684_v7 = vpop.f32.mrf.mxu2  ;;  %v7324_v8 = vpop.f32.mrf.mxu3  ;;  %v14191_v4 = vld [vmem:[%s14693_s5 + $0x8a8] sm:$0xff] }
 0x152   : > { %9980 = vst.msk [vmem:[%s14775_s10 + $0x58] sm:$0xf] %vm9957_vm3, %v8955_v5  ;;  %v6685_v9 = vadd.f32 %v15116_v40, %v6684_v7  ;;  %v7325_v10 = vadd.f32 %v15116_v40, %v7324_v8  ;;  %v5406_v11 = vpop.f32.mrf.mxu0  ;;  %v6046_v12 = vpop.f32.mrf.mxu1  ;;  %v14319_v5 = vld [vmem:[%s14693_s5 + $0xca8] sm:$0xff] }
 0x153   : > { %10236 = vst.msk [vmem:[%s14775_s10 + $0x458] sm:$0xf] %vm9957_vm3, %v9211_v6  ;;  %v5407_v13 = vadd.f32 %v15116_v40, %v5406_v11  ;;  %v6047_v14 = vadd.f32 %v15116_v40, %v6046_v12 }
 0x154   : > { %v8443_v15 = vmax.f32 %v6685_v9, 0.0  ;;  %v8699_v16 = vmax.f32 %v7325_v10, 0.0 }
 0x155   : > { %v7932_v17 = vmax.f32 %v5407_v13, 0.0  ;;  %v8188_v18 = vmax.f32 %v6047_v14, 0.0 }
 0x156   : > { %v9467_v19 = vpack.c.bf16 %v8443_v15, %v8443_v15  ;;  %v9723_v20 = vpack.c.bf16 %v8699_v16, %v8699_v16 }
 0x157   : > { %v8956_v21 = vpack.c.bf16 %v7932_v17, %v7932_v17  ;;  %v9212_v22 = vpack.c.bf16 %v8188_v18, %v8188_v18 }
 0x158   : > { %10492 = vst.msk [vmem:[%s14775_s10 + $0x858] sm:$0xf] %vm9957_vm3, %v9467_v19 }
 0x159   : > { %10748 = vst.msk [vmem:[%s14775_s10 + $0xc58] sm:$0xf] %vm9957_vm3, %v9723_v20  ;;  %v6686_v23 = vpop.f32.mrf.mxu2  ;;  %v7326_v24 = vpop.f32.mrf.mxu3 }
 0x15a   : > { %9981 = vst.msk [vmem:[%s14775_s10 + $0x5c] sm:$0xf] %vm9957_vm3, %v8956_v21  ;;  %v6687_v27 = vadd.f32 %v15116_v40, %v6686_v23  ;;  %v7327_v28 = vadd.f32 %v15116_v40, %v7326_v24  ;;  %v5409_v29 = vpop.f32.mrf.mxu0  ;;  %v6049_v30 = vpop.f32.mrf.mxu1 }
 0x15b   : > { %10237 = vst.msk [vmem:[%s14775_s10 + $0x45c] sm:$0xf] %vm9957_vm3, %v9212_v22  ;;  %v5410_v33 = vadd.f32 %v15116_v40, %v5409_v29  ;;  %v6050_v34 = vadd.f32 %v15116_v40, %v6049_v30 }
 0x15c   : > { %v8444_v35 = vmax.f32 %v6687_v27, 0.0  ;;  %v8700_v36 = vmax.f32 %v7327_v28, 0.0 }
 0x15d   : > { %v7933_v37 = vmax.f32 %v5410_v33, 0.0  ;;  %v8189_v38 = vmax.f32 %v6050_v34, 0.0  ;;  %13405 = vmatmul.msk.bf16.gmra.mxu0 %vm3796_vm2, %v13934_v25  ;;  %13533 = vmatmul.msk.bf16.gmra.mxu1 %vm3796_vm2, %v14062_v26  ;;  %v13936_v34 = vld [vmem:[%s14693_s5 + $0xb0] sm:$0xff] }
 0x15e   : > { %v9468_v39 = vpack.c.bf16 %v8444_v35, %v8444_v35  ;;  %v9724_v41 = vpack.c.bf16 %v8700_v36, %v8700_v36  ;;  %13661 = vmatmul.msk.bf16.gmra.mxu2 %vm3796_vm2, %v14190_v31  ;;  %13789 = vmatmul.msk.bf16.gmra.mxu3 %vm3796_vm2, %v14318_v32  ;;  %v14064_v35 = vld [vmem:[%s14693_s5 + $0x4b0] sm:$0xff] }
 0x15f   : > { %v8957_v42 = vpack.c.bf16 %v7933_v37, %v7933_v37  ;;  %v9213_v43 = vpack.c.bf16 %v8189_v38, %v8189_v38 }
 0x160   : > { %10493 = vst.msk [vmem:[%s14775_s10 + $0x85c] sm:$0xf] %vm9957_vm3, %v9468_v39 }
 0x161   : > { %10749 = vst.msk [vmem:[%s14775_s10 + $0xc5c] sm:$0xf] %vm9957_vm3, %v9724_v41  ;;  %v6689_v44 = vpop.f32.mrf.mxu2  ;;  %v7329_v45 = vpop.f32.mrf.mxu3  ;;  %v14192_v41 = vld [vmem:[%s14693_s5 + $0x8b0] sm:$0xff] }
 0x162   : > { %9982 = vst.msk [vmem:[%s14775_s10 + $0x60] sm:$0xf] %vm9957_vm3, %v8957_v42  ;;  %v6690_v46 = vadd.f32 %v15116_v40, %v6689_v44  ;;  %v7330_v47 = vadd.f32 %v15116_v40, %v7329_v45  ;;  %v5411_v48 = vpop.f32.mrf.mxu0  ;;  %v6051_v49 = vpop.f32.mrf.mxu1  ;;  %v14320_v42 = vld [vmem:[%s14693_s5 + $0xcb0] sm:$0xff] }
 0x163   : > { %10238 = vst.msk [vmem:[%s14775_s10 + $0x460] sm:$0xf] %vm9957_vm3, %v9213_v43  ;;  %v5412_v50 = vadd.f32 %v15116_v40, %v5411_v48  ;;  %v6052_v51 = vadd.f32 %v15116_v40, %v6051_v49 }
 0x164   : > { %v8445_v52 = vmax.f32 %v6690_v46, 0.0  ;;  %v8701_v53 = vmax.f32 %v7330_v47, 0.0 }
 0x165   : > { %v7934_v54 = vmax.f32 %v5412_v50, 0.0  ;;  %v8190_v55 = vmax.f32 %v6052_v51, 0.0 }
 0x166   : > { %v9469_v56 = vpack.c.bf16 %v8445_v52, %v8445_v52  ;;  %v9725_v57 = vpack.c.bf16 %v8701_v53, %v8701_v53 }
 0x167   : > { %v8958_v58 = vpack.c.bf16 %v7934_v54, %v7934_v54  ;;  %v9214_v59 = vpack.c.bf16 %v8190_v55, %v8190_v55 }
 0x168   : > { %10494 = vst.msk [vmem:[%s14775_s10 + $0x860] sm:$0xf] %vm9957_vm3, %v9469_v56 }
 0x169   : > { %10750 = vst.msk [vmem:[%s14775_s10 + $0xc60] sm:$0xf] %vm9957_vm3, %v9725_v57  ;;  %v6691_v60 = vpop.f32.mrf.mxu2  ;;  %v7331_v61 = vpop.f32.mrf.mxu3 }
 0x16a   : > { %9983 = vst.msk [vmem:[%s14775_s10 + $0x64] sm:$0xf] %vm9957_vm3, %v8958_v58  ;;  %v6692_v0 = vadd.f32 %v15116_v40, %v6691_v60  ;;  %v7332_v1 = vadd.f32 %v15116_v40, %v7331_v61  ;;  %v5414_v2 = vpop.f32.mrf.mxu0  ;;  %v6054_v3 = vpop.f32.mrf.mxu1 }
 0x16b   : > { %10239 = vst.msk [vmem:[%s14775_s10 + $0x464] sm:$0xf] %vm9957_vm3, %v9214_v59  ;;  %v5415_v6 = vadd.f32 %v15116_v40, %v5414_v2  ;;  %v6055_v7 = vadd.f32 %v15116_v40, %v6054_v3 }
 0x16c   : > { %v8446_v8 = vmax.f32 %v6692_v0, 0.0  ;;  %v8702_v9 = vmax.f32 %v7332_v1, 0.0 }
 0x16d   : > { %v7935_v10 = vmax.f32 %v5415_v6, 0.0  ;;  %v8191_v11 = vmax.f32 %v6055_v7, 0.0  ;;  %13406 = vmatmul.msk.bf16.gmra.mxu0 %vm3796_vm2, %v13935_v62  ;;  %13534 = vmatmul.msk.bf16.gmra.mxu1 %vm3796_vm2, %v14063_v63  ;;  %v13937_v7 = vld [vmem:[%s14693_s5 + $0xb8] sm:$0xff] }
 0x16e   : > { %v9470_v12 = vpack.c.bf16 %v8446_v8, %v8446_v8  ;;  %v9726_v13 = vpack.c.bf16 %v8702_v9, %v8702_v9  ;;  %13662 = vmatmul.msk.bf16.gmra.mxu2 %vm3796_vm2, %v14191_v4  ;;  %13790 = vmatmul.msk.bf16.gmra.mxu3 %vm3796_vm2, %v14319_v5  ;;  %v14065_v8 = vld [vmem:[%s14693_s5 + $0x4b8] sm:$0xff] }
 0x16f   : > { %v8959_v14 = vpack.c.bf16 %v7935_v10, %v7935_v10  ;;  %v9215_v15 = vpack.c.bf16 %v8191_v11, %v8191_v11 }
 0x170   : > { %10495 = vst.msk [vmem:[%s14775_s10 + $0x864] sm:$0xf] %vm9957_vm3, %v9470_v12 }
 0x171   : > { %10751 = vst.msk [vmem:[%s14775_s10 + $0xc64] sm:$0xf] %vm9957_vm3, %v9726_v13  ;;  %v6694_v16 = vpop.f32.mrf.mxu2  ;;  %v7334_v17 = vpop.f32.mrf.mxu3  ;;  %v14193_v13 = vld [vmem:[%s14693_s5 + $0x8b8] sm:$0xff] }
 0x172   : > { %9984 = vst.msk [vmem:[%s14775_s10 + $0x68] sm:$0xf] %vm9957_vm3, %v8959_v14  ;;  %v6695_v18 = vadd.f32 %v15116_v40, %v6694_v16  ;;  %v7335_v19 = vadd.f32 %v15116_v40, %v7334_v17  ;;  %v5416_v20 = vpop.f32.mrf.mxu0  ;;  %v6056_v21 = vpop.f32.mrf.mxu1  ;;  %v14321_v14 = vld [vmem:[%s14693_s5 + $0xcb8] sm:$0xff] }
 0x173   : > { %10240 = vst.msk [vmem:[%s14775_s10 + $0x468] sm:$0xf] %vm9957_vm3, %v9215_v15  ;;  %v5417_v22 = vadd.f32 %v15116_v40, %v5416_v20  ;;  %v6057_v23 = vadd.f32 %v15116_v40, %v6056_v21 }
 0x174   : > { %v8447_v24 = vmax.f32 %v6695_v18, 0.0  ;;  %v8703_v25 = vmax.f32 %v7335_v19, 0.0 }
 0x175   : > { %v7936_v26 = vmax.f32 %v5417_v22, 0.0  ;;  %v8192_v27 = vmax.f32 %v6057_v23, 0.0 }
 0x176   : > { %v9471_v28 = vpack.c.bf16 %v8447_v24, %v8447_v24  ;;  %v9727_v29 = vpack.c.bf16 %v8703_v25, %v8703_v25 }
 0x177   : > { %v8960_v30 = vpack.c.bf16 %v7936_v26, %v7936_v26  ;;  %v9216_v31 = vpack.c.bf16 %v8192_v27, %v8192_v27 }
 0x178   : > { %10496 = vst.msk [vmem:[%s14775_s10 + $0x868] sm:$0xf] %vm9957_vm3, %v9471_v28 }
 0x179   : > { %10752 = vst.msk [vmem:[%s14775_s10 + $0xc68] sm:$0xf] %vm9957_vm3, %v9727_v29  ;;  %v6696_v32 = vpop.f32.mrf.mxu2  ;;  %v7336_v33 = vpop.f32.mrf.mxu3 }
 0x17a   : > { %9985 = vst.msk [vmem:[%s14775_s10 + $0x6c] sm:$0xf] %vm9957_vm3, %v8960_v30  ;;  %v6697_v36 = vadd.f32 %v15116_v40, %v6696_v32  ;;  %v7337_v37 = vadd.f32 %v15116_v40, %v7336_v33  ;;  %v5419_v38 = vpop.f32.mrf.mxu0  ;;  %v6059_v39 = vpop.f32.mrf.mxu1 }
 0x17b   : > { %10241 = vst.msk [vmem:[%s14775_s10 + $0x46c] sm:$0xf] %vm9957_vm3, %v9216_v31  ;;  %v5420_v43 = vadd.f32 %v15116_v40, %v5419_v38  ;;  %v6060_v44 = vadd.f32 %v15116_v40, %v6059_v39 }
 0x17c   : > { %v8448_v45 = vmax.f32 %v6697_v36, 0.0  ;;  %v8704_v46 = vmax.f32 %v7337_v37, 0.0 }
 0x17d   : > { %v7937_v47 = vmax.f32 %v5420_v43, 0.0  ;;  %v8193_v48 = vmax.f32 %v6060_v44, 0.0  ;;  %13407 = vmatmul.msk.bf16.gmra.mxu0 %vm3796_vm2, %v13936_v34  ;;  %13535 = vmatmul.msk.bf16.gmra.mxu1 %vm3796_vm2, %v14064_v35  ;;  %v13938_v44 = vld [vmem:[%s14693_s5 + $0xc0] sm:$0xff] }
 0x17e   : > { %v9472_v49 = vpack.c.bf16 %v8448_v45, %v8448_v45  ;;  %v9728_v50 = vpack.c.bf16 %v8704_v46, %v8704_v46  ;;  %13663 = vmatmul.msk.bf16.gmra.mxu2 %vm3796_vm2, %v14192_v41  ;;  %13791 = vmatmul.msk.bf16.gmra.mxu3 %vm3796_vm2, %v14320_v42  ;;  %v14066_v45 = vld [vmem:[%s14693_s5 + $0x4c0] sm:$0xff] }
 0x17f   : > { %v8961_v51 = vpack.c.bf16 %v7937_v47, %v7937_v47  ;;  %v9217_v52 = vpack.c.bf16 %v8193_v48, %v8193_v48 }
 0x180   : > { %10497 = vst.msk [vmem:[%s14775_s10 + $0x86c] sm:$0xf] %vm9957_vm3, %v9472_v49 }
 0x181   : > { %10753 = vst.msk [vmem:[%s14775_s10 + $0xc6c] sm:$0xf] %vm9957_vm3, %v9728_v50  ;;  %v6699_v53 = vpop.f32.mrf.mxu2  ;;  %v7339_v54 = vpop.f32.mrf.mxu3  ;;  %v14194_v50 = vld [vmem:[%s14693_s5 + $0x8c0] sm:$0xff] }
 0x182   : > { %9986 = vst.msk [vmem:[%s14775_s10 + $0x70] sm:$0xf] %vm9957_vm3, %v8961_v51  ;;  %v6700_v55 = vadd.f32 %v15116_v40, %v6699_v53  ;;  %v7340_v56 = vadd.f32 %v15116_v40, %v7339_v54  ;;  %v5421_v57 = vpop.f32.mrf.mxu0  ;;  %v6061_v58 = vpop.f32.mrf.mxu1  ;;  %v14322_v51 = vld [vmem:[%s14693_s5 + $0xcc0] sm:$0xff] }
 0x183   : > { %10242 = vst.msk [vmem:[%s14775_s10 + $0x470] sm:$0xf] %vm9957_vm3, %v9217_v52  ;;  %v5422_v59 = vadd.f32 %v15116_v40, %v5421_v57  ;;  %v6062_v60 = vadd.f32 %v15116_v40, %v6061_v58 }
 0x184   : > { %v8449_v61 = vmax.f32 %v6700_v55, 0.0  ;;  %v8705_v62 = vmax.f32 %v7340_v56, 0.0 }
 0x185   : > { %v7938_v63 = vmax.f32 %v5422_v59, 0.0  ;;  %v8194_v0 = vmax.f32 %v6062_v60, 0.0 }
 0x186   : > { %v9473_v1 = vpack.c.bf16 %v8449_v61, %v8449_v61  ;;  %v9729_v2 = vpack.c.bf16 %v8705_v62, %v8705_v62 }
 0x187   : > { %v8962_v3 = vpack.c.bf16 %v7938_v63, %v7938_v63  ;;  %v9218_v4 = vpack.c.bf16 %v8194_v0, %v8194_v0 }
 0x188   : > { %10498 = vst.msk [vmem:[%s14775_s10 + $0x870] sm:$0xf] %vm9957_vm3, %v9473_v1 }
 0x189   : > { %10754 = vst.msk [vmem:[%s14775_s10 + $0xc70] sm:$0xf] %vm9957_vm3, %v9729_v2  ;;  %v6701_v5 = vpop.f32.mrf.mxu2  ;;  %v7341_v6 = vpop.f32.mrf.mxu3 }
 0x18a   : > { %9987 = vst.msk [vmem:[%s14775_s10 + $0x74] sm:$0xf] %vm9957_vm3, %v8962_v3  ;;  %v6702_v9 = vadd.f32 %v15116_v40, %v6701_v5  ;;  %v7342_v10 = vadd.f32 %v15116_v40, %v7341_v6  ;;  %v5424_v11 = vpop.f32.mrf.mxu0  ;;  %v6064_v12 = vpop.f32.mrf.mxu1 }
 0x18b   : > { %10243 = vst.msk [vmem:[%s14775_s10 + $0x474] sm:$0xf] %vm9957_vm3, %v9218_v4  ;;  %v5425_v15 = vadd.f32 %v15116_v40, %v5424_v11  ;;  %v6065_v16 = vadd.f32 %v15116_v40, %v6064_v12 }
 0x18c   : > { %v8450_v17 = vmax.f32 %v6702_v9, 0.0  ;;  %v8706_v18 = vmax.f32 %v7342_v10, 0.0 }
 0x18d   : > { %v7939_v19 = vmax.f32 %v5425_v15, 0.0  ;;  %v8195_v20 = vmax.f32 %v6065_v16, 0.0  ;;  %13408 = vmatmul.msk.bf16.gmra.mxu0 %vm3796_vm2, %v13937_v7  ;;  %13536 = vmatmul.msk.bf16.gmra.mxu1 %vm3796_vm2, %v14065_v8  ;;  %v13939_v16 = vld [vmem:[%s14693_s5 + $0xc8] sm:$0xff] }
 0x18e   : > { %v9474_v21 = vpack.c.bf16 %v8450_v17, %v8450_v17  ;;  %v9730_v22 = vpack.c.bf16 %v8706_v18, %v8706_v18  ;;  %13664 = vmatmul.msk.bf16.gmra.mxu2 %vm3796_vm2, %v14193_v13  ;;  %13792 = vmatmul.msk.bf16.gmra.mxu3 %vm3796_vm2, %v14321_v14  ;;  %v14067_v17 = vld [vmem:[%s14693_s5 + $0x4c8] sm:$0xff] }
 0x18f   : > { %v8963_v23 = vpack.c.bf16 %v7939_v19, %v7939_v19  ;;  %v9219_v24 = vpack.c.bf16 %v8195_v20, %v8195_v20 }
 0x190   : > { %10499 = vst.msk [vmem:[%s14775_s10 + $0x874] sm:$0xf] %vm9957_vm3, %v9474_v21 }
 0x191   : > { %10755 = vst.msk [vmem:[%s14775_s10 + $0xc74] sm:$0xf] %vm9957_vm3, %v9730_v22  ;;  %v6704_v25 = vpop.f32.mrf.mxu2  ;;  %v7344_v26 = vpop.f32.mrf.mxu3  ;;  %v14195_v22 = vld [vmem:[%s14693_s5 + $0x8c8] sm:$0xff] }
 0x192   : > { %9988 = vst.msk [vmem:[%s14775_s10 + $0x78] sm:$0xf] %vm9957_vm3, %v8963_v23  ;;  %v6705_v27 = vadd.f32 %v15116_v40, %v6704_v25  ;;  %v7345_v28 = vadd.f32 %v15116_v40, %v7344_v26  ;;  %v5426_v29 = vpop.f32.mrf.mxu0  ;;  %v6066_v30 = vpop.f32.mrf.mxu1  ;;  %v14323_v23 = vld [vmem:[%s14693_s5 + $0xcc8] sm:$0xff] }
 0x193   : > { %10244 = vst.msk [vmem:[%s14775_s10 + $0x478] sm:$0xf] %vm9957_vm3, %v9219_v24  ;;  %v5427_v31 = vadd.f32 %v15116_v40, %v5426_v29  ;;  %v6067_v32 = vadd.f32 %v15116_v40, %v6066_v30 }
 0x194   : > { %v8451_v33 = vmax.f32 %v6705_v27, 0.0  ;;  %v8707_v34 = vmax.f32 %v7345_v28, 0.0 }
 0x195   : > { %v7940_v35 = vmax.f32 %v5427_v31, 0.0  ;;  %v8196_v36 = vmax.f32 %v6067_v32, 0.0 }
 0x196   : > { %v9475_v37 = vpack.c.bf16 %v8451_v33, %v8451_v33  ;;  %v9731_v38 = vpack.c.bf16 %v8707_v34, %v8707_v34 }
 0x197   : > { %v8964_v39 = vpack.c.bf16 %v7940_v35, %v7940_v35  ;;  %v9220_v41 = vpack.c.bf16 %v8196_v36, %v8196_v36 }
 0x198   : > { %10500 = vst.msk [vmem:[%s14775_s10 + $0x878] sm:$0xf] %vm9957_vm3, %v9475_v37 }
 0x199   : > { %10756 = vst.msk [vmem:[%s14775_s10 + $0xc78] sm:$0xf] %vm9957_vm3, %v9731_v38  ;;  %v6706_v42 = vpop.f32.mrf.mxu2  ;;  %v7346_v43 = vpop.f32.mrf.mxu3 }
 0x19a   : > { %9989 = vst.msk [vmem:[%s14775_s10 + $0x7c] sm:$0xf] %vm9957_vm3, %v8964_v39  ;;  %v6707_v46 = vadd.f32 %v15116_v40, %v6706_v42  ;;  %v7347_v47 = vadd.f32 %v15116_v40, %v7346_v43  ;;  %v5429_v48 = vpop.f32.mrf.mxu0  ;;  %v6069_v49 = vpop.f32.mrf.mxu1 }
 0x19b   : > { %10245 = vst.msk [vmem:[%s14775_s10 + $0x47c] sm:$0xf] %vm9957_vm3, %v9220_v41  ;;  %v5430_v52 = vadd.f32 %v15116_v40, %v5429_v48  ;;  %v6070_v53 = vadd.f32 %v15116_v40, %v6069_v49 }
 0x19c   : > { %v8452_v54 = vmax.f32 %v6707_v46, 0.0  ;;  %v8708_v55 = vmax.f32 %v7347_v47, 0.0 }
 0x19d   : > { %v7941_v56 = vmax.f32 %v5430_v52, 0.0  ;;  %v8197_v57 = vmax.f32 %v6070_v53, 0.0  ;;  %13409 = vmatmul.msk.bf16.gmra.mxu0 %vm3796_vm2, %v13938_v44  ;;  %13537 = vmatmul.msk.bf16.gmra.mxu1 %vm3796_vm2, %v14066_v45  ;;  %v13940_v53 = vld [vmem:[%s14693_s5 + $0xd0] sm:$0xff] }
 0x19e   : > { %v9476_v58 = vpack.c.bf16 %v8452_v54, %v8452_v54  ;;  %v9732_v59 = vpack.c.bf16 %v8708_v55, %v8708_v55  ;;  %13665 = vmatmul.msk.bf16.gmra.mxu2 %vm3796_vm2, %v14194_v50  ;;  %13793 = vmatmul.msk.bf16.gmra.mxu3 %vm3796_vm2, %v14322_v51  ;;  %v14068_v54 = vld [vmem:[%s14693_s5 + $0x4d0] sm:$0xff] }
 0x19f   : > { %v8965_v60 = vpack.c.bf16 %v7941_v56, %v7941_v56  ;;  %v9221_v61 = vpack.c.bf16 %v8197_v57, %v8197_v57 }
 0x1a0   : > { %10501 = vst.msk [vmem:[%s14775_s10 + $0x87c] sm:$0xf] %vm9957_vm3, %v9476_v58 }
 0x1a1   : > { %10757 = vst.msk [vmem:[%s14775_s10 + $0xc7c] sm:$0xf] %vm9957_vm3, %v9732_v59  ;;  %v6709_v62 = vpop.f32.mrf.mxu2  ;;  %v7349_v63 = vpop.f32.mrf.mxu3  ;;  %v14196_v59 = vld [vmem:[%s14693_s5 + $0x8d0] sm:$0xff] }
 0x1a2   : > { %9990 = vst.msk [vmem:[%s14775_s10 + $0x80] sm:$0xf] %vm9957_vm3, %v8965_v60  ;;  %v6710_v0 = vadd.f32 %v15116_v40, %v6709_v62  ;;  %v7350_v1 = vadd.f32 %v15116_v40, %v7349_v63  ;;  %v5431_v2 = vpop.f32.mrf.mxu0  ;;  %v6071_v3 = vpop.f32.mrf.mxu1  ;;  %v14324_v60 = vld [vmem:[%s14693_s5 + $0xcd0] sm:$0xff] }
 0x1a3   : > { %10246 = vst.msk [vmem:[%s14775_s10 + $0x480] sm:$0xf] %vm9957_vm3, %v9221_v61  ;;  %v5432_v4 = vadd.f32 %v15116_v40, %v5431_v2  ;;  %v6072_v5 = vadd.f32 %v15116_v40, %v6071_v3 }
 0x1a4   : > { %v8453_v6 = vmax.f32 %v6710_v0, 0.0  ;;  %v8709_v7 = vmax.f32 %v7350_v1, 0.0 }
 0x1a5   : > { %v7942_v8 = vmax.f32 %v5432_v4, 0.0  ;;  %v8198_v9 = vmax.f32 %v6072_v5, 0.0 }
 0x1a6   : > { %v9477_v10 = vpack.c.bf16 %v8453_v6, %v8453_v6  ;;  %v9733_v11 = vpack.c.bf16 %v8709_v7, %v8709_v7 }
 0x1a7   : > { %v8966_v12 = vpack.c.bf16 %v7942_v8, %v7942_v8  ;;  %v9222_v13 = vpack.c.bf16 %v8198_v9, %v8198_v9 }
 0x1a8   : > { %10502 = vst.msk [vmem:[%s14775_s10 + $0x880] sm:$0xf] %vm9957_vm3, %v9477_v10 }
 0x1a9   : > { %10758 = vst.msk [vmem:[%s14775_s10 + $0xc80] sm:$0xf] %vm9957_vm3, %v9733_v11  ;;  %v6711_v14 = vpop.f32.mrf.mxu2  ;;  %v7351_v15 = vpop.f32.mrf.mxu3 }
 0x1aa   : > { %9991 = vst.msk [vmem:[%s14775_s10 + $0x84] sm:$0xf] %vm9957_vm3, %v8966_v12  ;;  %v6712_v18 = vadd.f32 %v15116_v40, %v6711_v14  ;;  %v7352_v19 = vadd.f32 %v15116_v40, %v7351_v15  ;;  %v5434_v20 = vpop.f32.mrf.mxu0  ;;  %v6074_v21 = vpop.f32.mrf.mxu1 }
 0x1ab   : > { %10247 = vst.msk [vmem:[%s14775_s10 + $0x484] sm:$0xf] %vm9957_vm3, %v9222_v13  ;;  %v5435_v24 = vadd.f32 %v15116_v40, %v5434_v20  ;;  %v6075_v25 = vadd.f32 %v15116_v40, %v6074_v21 }
 0x1ac   : > { %v8454_v26 = vmax.f32 %v6712_v18, 0.0  ;;  %v8710_v27 = vmax.f32 %v7352_v19, 0.0 }
 0x1ad   : > { %v7943_v28 = vmax.f32 %v5435_v24, 0.0  ;;  %v8199_v29 = vmax.f32 %v6075_v25, 0.0  ;;  %13410 = vmatmul.msk.bf16.gmra.mxu0 %vm3796_vm2, %v13939_v16  ;;  %13538 = vmatmul.msk.bf16.gmra.mxu1 %vm3796_vm2, %v14067_v17  ;;  %v13941_v25 = vld [vmem:[%s14693_s5 + $0xd8] sm:$0xff] }
 0x1ae   : > { %v9478_v30 = vpack.c.bf16 %v8454_v26, %v8454_v26  ;;  %v9734_v31 = vpack.c.bf16 %v8710_v27, %v8710_v27  ;;  %13666 = vmatmul.msk.bf16.gmra.mxu2 %vm3796_vm2, %v14195_v22  ;;  %13794 = vmatmul.msk.bf16.gmra.mxu3 %vm3796_vm2, %v14323_v23  ;;  %v14069_v26 = vld [vmem:[%s14693_s5 + $0x4d8] sm:$0xff] }
 0x1af   : > { %v8967_v32 = vpack.c.bf16 %v7943_v28, %v7943_v28  ;;  %v9223_v33 = vpack.c.bf16 %v8199_v29, %v8199_v29 }
 0x1b0   : > { %10503 = vst.msk [vmem:[%s14775_s10 + $0x884] sm:$0xf] %vm9957_vm3, %v9478_v30 }
 0x1b1   : > { %10759 = vst.msk [vmem:[%s14775_s10 + $0xc84] sm:$0xf] %vm9957_vm3, %v9734_v31  ;;  %v6714_v34 = vpop.f32.mrf.mxu2  ;;  %v7354_v35 = vpop.f32.mrf.mxu3  ;;  %v14197_v31 = vld [vmem:[%s14693_s5 + $0x8d8] sm:$0xff] }
 0x1b2   : > { %9992 = vst.msk [vmem:[%s14775_s10 + $0x88] sm:$0xf] %vm9957_vm3, %v8967_v32  ;;  %v6715_v36 = vadd.f32 %v15116_v40, %v6714_v34  ;;  %v7355_v37 = vadd.f32 %v15116_v40, %v7354_v35  ;;  %v5436_v38 = vpop.f32.mrf.mxu0  ;;  %v6076_v39 = vpop.f32.mrf.mxu1  ;;  %v14325_v32 = vld [vmem:[%s14693_s5 + $0xcd8] sm:$0xff] }
 0x1b3   : > { %10248 = vst.msk [vmem:[%s14775_s10 + $0x488] sm:$0xf] %vm9957_vm3, %v9223_v33  ;;  %v5437_v41 = vadd.f32 %v15116_v40, %v5436_v38  ;;  %v6077_v42 = vadd.f32 %v15116_v40, %v6076_v39 }
 0x1b4   : > { %v8455_v43 = vmax.f32 %v6715_v36, 0.0  ;;  %v8711_v44 = vmax.f32 %v7355_v37, 0.0 }
 0x1b5   : > { %v7944_v45 = vmax.f32 %v5437_v41, 0.0  ;;  %v8200_v46 = vmax.f32 %v6077_v42, 0.0 }
 0x1b6   : > { %v9479_v47 = vpack.c.bf16 %v8455_v43, %v8455_v43  ;;  %v9735_v48 = vpack.c.bf16 %v8711_v44, %v8711_v44 }
 0x1b7   : > { %v8968_v49 = vpack.c.bf16 %v7944_v45, %v7944_v45  ;;  %v9224_v50 = vpack.c.bf16 %v8200_v46, %v8200_v46 }
 0x1b8   : > { %10504 = vst.msk [vmem:[%s14775_s10 + $0x888] sm:$0xf] %vm9957_vm3, %v9479_v47 }
 0x1b9   : > { %10760 = vst.msk [vmem:[%s14775_s10 + $0xc88] sm:$0xf] %vm9957_vm3, %v9735_v48  ;;  %v6716_v51 = vpop.f32.mrf.mxu2  ;;  %v7356_v52 = vpop.f32.mrf.mxu3 }
 0x1ba   : > { %9993 = vst.msk [vmem:[%s14775_s10 + $0x8c] sm:$0xf] %vm9957_vm3, %v8968_v49  ;;  %v6717_v55 = vadd.f32 %v15116_v40, %v6716_v51  ;;  %v7357_v56 = vadd.f32 %v15116_v40, %v7356_v52  ;;  %v5439_v57 = vpop.f32.mrf.mxu0  ;;  %v6079_v58 = vpop.f32.mrf.mxu1 }
 0x1bb   : > { %10249 = vst.msk [vmem:[%s14775_s10 + $0x48c] sm:$0xf] %vm9957_vm3, %v9224_v50  ;;  %v5440_v61 = vadd.f32 %v15116_v40, %v5439_v57  ;;  %v6080_v62 = vadd.f32 %v15116_v40, %v6079_v58 }
 0x1bc   : > { %v8456_v63 = vmax.f32 %v6717_v55, 0.0  ;;  %v8712_v0 = vmax.f32 %v7357_v56, 0.0 }
 0x1bd   : > { %v7945_v1 = vmax.f32 %v5440_v61, 0.0  ;;  %v8201_v2 = vmax.f32 %v6080_v62, 0.0  ;;  %13411 = vmatmul.msk.bf16.gmra.mxu0 %vm3796_vm2, %v13940_v53  ;;  %13539 = vmatmul.msk.bf16.gmra.mxu1 %vm3796_vm2, %v14068_v54  ;;  %v13942_v62 = vld [vmem:[%s14693_s5 + $0xe0] sm:$0xff] }
 0x1be   : > { %v9480_v3 = vpack.c.bf16 %v8456_v63, %v8456_v63  ;;  %v9736_v4 = vpack.c.bf16 %v8712_v0, %v8712_v0  ;;  %13667 = vmatmul.msk.bf16.gmra.mxu2 %vm3796_vm2, %v14196_v59  ;;  %13795 = vmatmul.msk.bf16.gmra.mxu3 %vm3796_vm2, %v14324_v60  ;;  %v14070_v63 = vld [vmem:[%s14693_s5 + $0x4e0] sm:$0xff] }
 0x1bf   : > { %v8969_v5 = vpack.c.bf16 %v7945_v1, %v7945_v1  ;;  %v9225_v6 = vpack.c.bf16 %v8201_v2, %v8201_v2 }
 0x1c0   : > { %10505 = vst.msk [vmem:[%s14775_s10 + $0x88c] sm:$0xf] %vm9957_vm3, %v9480_v3 }
 0x1c1   : > { %10761 = vst.msk [vmem:[%s14775_s10 + $0xc8c] sm:$0xf] %vm9957_vm3, %v9736_v4  ;;  %v6719_v7 = vpop.f32.mrf.mxu2  ;;  %v7359_v8 = vpop.f32.mrf.mxu3  ;;  %v14198_v4 = vld [vmem:[%s14693_s5 + $0x8e0] sm:$0xff] }
 0x1c2   : > { %9994 = vst.msk [vmem:[%s14775_s10 + $0x90] sm:$0xf] %vm9957_vm3, %v8969_v5  ;;  %v6720_v9 = vadd.f32 %v15116_v40, %v6719_v7  ;;  %v7360_v10 = vadd.f32 %v15116_v40, %v7359_v8  ;;  %v5441_v11 = vpop.f32.mrf.mxu0  ;;  %v6081_v12 = vpop.f32.mrf.mxu1  ;;  %v14326_v5 = vld [vmem:[%s14693_s5 + $0xce0] sm:$0xff] }
 0x1c3   : > { %10250 = vst.msk [vmem:[%s14775_s10 + $0x490] sm:$0xf] %vm9957_vm3, %v9225_v6  ;;  %v5442_v13 = vadd.f32 %v15116_v40, %v5441_v11  ;;  %v6082_v14 = vadd.f32 %v15116_v40, %v6081_v12 }
 0x1c4   : > { %v8457_v15 = vmax.f32 %v6720_v9, 0.0  ;;  %v8713_v16 = vmax.f32 %v7360_v10, 0.0 }
 0x1c5   : > { %v7946_v17 = vmax.f32 %v5442_v13, 0.0  ;;  %v8202_v18 = vmax.f32 %v6082_v14, 0.0 }
 0x1c6   : > { %v9481_v19 = vpack.c.bf16 %v8457_v15, %v8457_v15  ;;  %v9737_v20 = vpack.c.bf16 %v8713_v16, %v8713_v16 }
 0x1c7   : > { %v8970_v21 = vpack.c.bf16 %v7946_v17, %v7946_v17  ;;  %v9226_v22 = vpack.c.bf16 %v8202_v18, %v8202_v18 }
 0x1c8   : > { %10506 = vst.msk [vmem:[%s14775_s10 + $0x890] sm:$0xf] %vm9957_vm3, %v9481_v19 }
 0x1c9   : > { %10762 = vst.msk [vmem:[%s14775_s10 + $0xc90] sm:$0xf] %vm9957_vm3, %v9737_v20  ;;  %v6721_v23 = vpop.f32.mrf.mxu2  ;;  %v7361_v24 = vpop.f32.mrf.mxu3 }
 0x1ca   : > { %9995 = vst.msk [vmem:[%s14775_s10 + $0x94] sm:$0xf] %vm9957_vm3, %v8970_v21  ;;  %v6722_v27 = vadd.f32 %v15116_v40, %v6721_v23  ;;  %v7362_v28 = vadd.f32 %v15116_v40, %v7361_v24  ;;  %v5444_v29 = vpop.f32.mrf.mxu0  ;;  %v6084_v30 = vpop.f32.mrf.mxu1 }
 0x1cb   : > { %10251 = vst.msk [vmem:[%s14775_s10 + $0x494] sm:$0xf] %vm9957_vm3, %v9226_v22  ;;  %v5445_v33 = vadd.f32 %v15116_v40, %v5444_v29  ;;  %v6085_v34 = vadd.f32 %v15116_v40, %v6084_v30 }
 0x1cc   : > { %v8458_v35 = vmax.f32 %v6722_v27, 0.0  ;;  %v8714_v36 = vmax.f32 %v7362_v28, 0.0 }
 0x1cd   : > { %v7947_v37 = vmax.f32 %v5445_v33, 0.0  ;;  %v8203_v38 = vmax.f32 %v6085_v34, 0.0  ;;  %13412 = vmatmul.msk.bf16.gmra.mxu0 %vm3796_vm2, %v13941_v25  ;;  %13540 = vmatmul.msk.bf16.gmra.mxu1 %vm3796_vm2, %v14069_v26  ;;  %v13943_v34 = vld [vmem:[%s14693_s5 + $0xe8] sm:$0xff] }
 0x1ce   : > { %v9482_v39 = vpack.c.bf16 %v8458_v35, %v8458_v35  ;;  %v9738_v41 = vpack.c.bf16 %v8714_v36, %v8714_v36  ;;  %13668 = vmatmul.msk.bf16.gmra.mxu2 %vm3796_vm2, %v14197_v31  ;;  %13796 = vmatmul.msk.bf16.gmra.mxu3 %vm3796_vm2, %v14325_v32  ;;  %v14071_v35 = vld [vmem:[%s14693_s5 + $0x4e8] sm:$0xff] }
 0x1cf   : > { %v8971_v42 = vpack.c.bf16 %v7947_v37, %v7947_v37  ;;  %v9227_v43 = vpack.c.bf16 %v8203_v38, %v8203_v38 }
 0x1d0   : > { %10507 = vst.msk [vmem:[%s14775_s10 + $0x894] sm:$0xf] %vm9957_vm3, %v9482_v39 }
 0x1d1   : > { %10763 = vst.msk [vmem:[%s14775_s10 + $0xc94] sm:$0xf] %vm9957_vm3, %v9738_v41  ;;  %v6724_v44 = vpop.f32.mrf.mxu2  ;;  %v7364_v45 = vpop.f32.mrf.mxu3  ;;  %v14199_v41 = vld [vmem:[%s14693_s5 + $0x8e8] sm:$0xff] }
 0x1d2   : > { %9996 = vst.msk [vmem:[%s14775_s10 + $0x98] sm:$0xf] %vm9957_vm3, %v8971_v42  ;;  %v6725_v46 = vadd.f32 %v15116_v40, %v6724_v44  ;;  %v7365_v47 = vadd.f32 %v15116_v40, %v7364_v45  ;;  %v5446_v48 = vpop.f32.mrf.mxu0  ;;  %v6086_v49 = vpop.f32.mrf.mxu1  ;;  %v14327_v42 = vld [vmem:[%s14693_s5 + $0xce8] sm:$0xff] }
 0x1d3   : > { %10252 = vst.msk [vmem:[%s14775_s10 + $0x498] sm:$0xf] %vm9957_vm3, %v9227_v43  ;;  %v5447_v50 = vadd.f32 %v15116_v40, %v5446_v48  ;;  %v6087_v51 = vadd.f32 %v15116_v40, %v6086_v49 }
 0x1d4   : > { %v8459_v52 = vmax.f32 %v6725_v46, 0.0  ;;  %v8715_v53 = vmax.f32 %v7365_v47, 0.0 }
 0x1d5   : > { %v7948_v54 = vmax.f32 %v5447_v50, 0.0  ;;  %v8204_v55 = vmax.f32 %v6087_v51, 0.0 }
 0x1d6   : > { %v9483_v56 = vpack.c.bf16 %v8459_v52, %v8459_v52  ;;  %v9739_v57 = vpack.c.bf16 %v8715_v53, %v8715_v53 }
 0x1d7   : > { %v8972_v58 = vpack.c.bf16 %v7948_v54, %v7948_v54  ;;  %v9228_v59 = vpack.c.bf16 %v8204_v55, %v8204_v55 }
 0x1d8   : > { %10508 = vst.msk [vmem:[%s14775_s10 + $0x898] sm:$0xf] %vm9957_vm3, %v9483_v56 }
 0x1d9   : > { %10764 = vst.msk [vmem:[%s14775_s10 + $0xc98] sm:$0xf] %vm9957_vm3, %v9739_v57  ;;  %v6726_v60 = vpop.f32.mrf.mxu2  ;;  %v7366_v61 = vpop.f32.mrf.mxu3 }
 0x1da   : > { %9997 = vst.msk [vmem:[%s14775_s10 + $0x9c] sm:$0xf] %vm9957_vm3, %v8972_v58  ;;  %v6727_v0 = vadd.f32 %v15116_v40, %v6726_v60  ;;  %v7367_v1 = vadd.f32 %v15116_v40, %v7366_v61  ;;  %v5449_v2 = vpop.f32.mrf.mxu0  ;;  %v6089_v3 = vpop.f32.mrf.mxu1  ;;  %v15464_v60 = vld [vmem:[%s18998_s2] ss:$0 sm:$0xff] }
 0x1db   : > { %10253 = vst.msk [vmem:[%s14775_s10 + $0x49c] sm:$0xf] %vm9957_vm3, %v9228_v59  ;;  %v5450_v6 = vadd.f32 %v15116_v40, %v5449_v2  ;;  %v6090_v7 = vadd.f32 %v15116_v40, %v6089_v3 }
 0x1dc   : > { %v8460_v8 = vmax.f32 %v6727_v0, 0.0  ;;  %v8716_v9 = vmax.f32 %v7367_v1, 0.0 }
 0x1dd   : > { %v7949_v10 = vmax.f32 %v5450_v6, 0.0  ;;  %v8205_v11 = vmax.f32 %v6090_v7, 0.0  ;;  %13413 = vmatmul.msk.bf16.gmra.mxu0 %vm3796_vm2, %v13942_v62  ;;  %13541 = vmatmul.msk.bf16.gmra.mxu1 %vm3796_vm2, %v14070_v63  ;;  %v13944_v7 = vld [vmem:[%s14693_s5 + $0xf0] sm:$0xff] }
 0x1de   : > { %v9484_v12 = vpack.c.bf16 %v8460_v8, %v8460_v8  ;;  %v9740_v13 = vpack.c.bf16 %v8716_v9, %v8716_v9  ;;  %13669 = vmatmul.msk.bf16.gmra.mxu2 %vm3796_vm2, %v14198_v4  ;;  %13797 = vmatmul.msk.bf16.gmra.mxu3 %vm3796_vm2, %v14326_v5  ;;  %v14072_v8 = vld [vmem:[%s14693_s5 + $0x4f0] sm:$0xff] }
 0x1df   : > { %v8973_v14 = vpack.c.bf16 %v7949_v10, %v7949_v10  ;;  %v9229_v15 = vpack.c.bf16 %v8205_v11, %v8205_v11 }
 0x1e0   : > { %10509 = vst.msk [vmem:[%s14775_s10 + $0x89c] sm:$0xf] %vm9957_vm3, %v9484_v12 }
 0x1e1   : > { %10765 = vst.msk [vmem:[%s14775_s10 + $0xc9c] sm:$0xf] %vm9957_vm3, %v9740_v13  ;;  %v6729_v16 = vpop.f32.mrf.mxu2  ;;  %v7369_v17 = vpop.f32.mrf.mxu3  ;;  %v14200_v13 = vld [vmem:[%s14693_s5 + $0x8f0] sm:$0xff] }
 0x1e2   : > { %9998 = vst.msk [vmem:[%s14775_s10 + $0xa0] sm:$0xf] %vm9957_vm3, %v8973_v14  ;;  %v6730_v18 = vadd.f32 %v15116_v40, %v6729_v16  ;;  %v7370_v19 = vadd.f32 %v15116_v40, %v7369_v17  ;;  %v5451_v20 = vpop.f32.mrf.mxu0  ;;  %v6091_v21 = vpop.f32.mrf.mxu1  ;;  %v14328_v14 = vld [vmem:[%s14693_s5 + $0xcf0] sm:$0xff] }
 0x1e3   : > { %10254 = vst.msk [vmem:[%s14775_s10 + $0x4a0] sm:$0xf] %vm9957_vm3, %v9229_v15  ;;  %v5452_v22 = vadd.f32 %v15116_v40, %v5451_v20  ;;  %v6092_v23 = vadd.f32 %v15116_v40, %v6091_v21 }
 0x1e4   : > { %v8461_v24 = vmax.f32 %v6730_v18, 0.0  ;;  %v8717_v25 = vmax.f32 %v7370_v19, 0.0 }
 0x1e5   : > { %v7950_v26 = vmax.f32 %v5452_v22, 0.0  ;;  %v8206_v27 = vmax.f32 %v6092_v23, 0.0 }
 0x1e6   : > { %v9485_v28 = vpack.c.bf16 %v8461_v24, %v8461_v24  ;;  %v9741_v29 = vpack.c.bf16 %v8717_v25, %v8717_v25 }
 0x1e7   : > { %v8974_v30 = vpack.c.bf16 %v7950_v26, %v7950_v26  ;;  %v9230_v31 = vpack.c.bf16 %v8206_v27, %v8206_v27 }
 0x1e8   : > { %10510 = vst.msk [vmem:[%s14775_s10 + $0x8a0] sm:$0xf] %vm9957_vm3, %v9485_v28 }
 0x1e9   : > { %10766 = vst.msk [vmem:[%s14775_s10 + $0xca0] sm:$0xf] %vm9957_vm3, %v9741_v29  ;;  %v6731_v32 = vpop.f32.mrf.mxu2  ;;  %v7371_v33 = vpop.f32.mrf.mxu3 }
 0x1ea   : > { %9999 = vst.msk [vmem:[%s14775_s10 + $0xa4] sm:$0xf] %vm9957_vm3, %v8974_v30  ;;  %v6732_v36 = vadd.f32 %v15116_v40, %v6731_v32  ;;  %v7372_v37 = vadd.f32 %v15116_v40, %v7371_v33  ;;  %v5454_v38 = vpop.f32.mrf.mxu0  ;;  %v6094_v39 = vpop.f32.mrf.mxu1 }
 0x1eb   : > { %10255 = vst.msk [vmem:[%s14775_s10 + $0x4a4] sm:$0xf] %vm9957_vm3, %v9230_v31  ;;  %v5455_v43 = vadd.f32 %v15116_v40, %v5454_v38  ;;  %v6095_v44 = vadd.f32 %v15116_v40, %v6094_v39 }
 0x1ec   : > { %v8462_v45 = vmax.f32 %v6732_v36, 0.0  ;;  %v8718_v46 = vmax.f32 %v7372_v37, 0.0 }
 0x1ed   : > { %v7951_v47 = vmax.f32 %v5455_v43, 0.0  ;;  %v8207_v48 = vmax.f32 %v6095_v44, 0.0  ;;  %13414 = vmatmul.msk.bf16.gmra.mxu0 %vm3796_vm2, %v13943_v34  ;;  %13542 = vmatmul.msk.bf16.gmra.mxu1 %vm3796_vm2, %v14071_v35  ;;  %v13945_v44 = vld [vmem:[%s14693_s5 + $0xf8] sm:$0xff] }
 0x1ee   : > { %v9486_v49 = vpack.c.bf16 %v8462_v45, %v8462_v45  ;;  %v9742_v50 = vpack.c.bf16 %v8718_v46, %v8718_v46  ;;  %13670 = vmatmul.msk.bf16.gmra.mxu2 %vm3796_vm2, %v14199_v41  ;;  %13798 = vmatmul.msk.bf16.gmra.mxu3 %vm3796_vm2, %v14327_v42  ;;  %v14073_v45 = vld [vmem:[%s14693_s5 + $0x4f8] sm:$0xff] }
 0x1ef   : > { %v8975_v51 = vpack.c.bf16 %v7951_v47, %v7951_v47  ;;  %v9231_v52 = vpack.c.bf16 %v8207_v48, %v8207_v48 }
 0x1f0   : > { %10511 = vst.msk [vmem:[%s14775_s10 + $0x8a4] sm:$0xf] %vm9957_vm3, %v9486_v49 }
 0x1f1   : > { %10767 = vst.msk [vmem:[%s14775_s10 + $0xca4] sm:$0xf] %vm9957_vm3, %v9742_v50  ;;  %v6734_v53 = vpop.f32.mrf.mxu2  ;;  %v7374_v54 = vpop.f32.mrf.mxu3  ;;  %v14201_v50 = vld [vmem:[%s14693_s5 + $0x8f8] sm:$0xff] }
 0x1f2   : > { %10000 = vst.msk [vmem:[%s14775_s10 + $0xa8] sm:$0xf] %vm9957_vm3, %v8975_v51  ;;  %v6735_v55 = vadd.f32 %v15116_v40, %v6734_v53  ;;  %v7375_v56 = vadd.f32 %v15116_v40, %v7374_v54  ;;  %v5456_v57 = vpop.f32.mrf.mxu0  ;;  %v6096_v58 = vpop.f32.mrf.mxu1  ;;  %v14329_v51 = vld [vmem:[%s14693_s5 + $0xcf8] sm:$0xff] }
 0x1f3   : > { %10256 = vst.msk [vmem:[%s14775_s10 + $0x4a8] sm:$0xf] %vm9957_vm3, %v9231_v52  ;;  %v5457_v59 = vadd.f32 %v15116_v40, %v5456_v57  ;;  %v6097_v61 = vadd.f32 %v15464_v60, %v6096_v58 }
 0x1f4   : > { %v8463_v62 = vmax.f32 %v6735_v55, 0.0  ;;  %v8719_v63 = vmax.f32 %v7375_v56, 0.0 }
 0x1f5   : > { %v7952_v0 = vmax.f32 %v5457_v59, 0.0  ;;  %v8208_v1 = vmax.f32 %v6097_v61, 0.0 }
 0x1f6   : > { %v9487_v2 = vpack.c.bf16 %v8463_v62, %v8463_v62  ;;  %v9743_v3 = vpack.c.bf16 %v8719_v63, %v8719_v63 }
 0x1f7   : > { %v8976_v4 = vpack.c.bf16 %v7952_v0, %v7952_v0  ;;  %v9232_v40 = vpack.c.bf16 %v8208_v1, %v8208_v1 }
 0x1f8   : > { %10512 = vst.msk [vmem:[%s14775_s10 + $0x8a8] sm:$0xf] %vm9957_vm3, %v9487_v2 }
 0x1f9   : > { %10768 = vst.msk [vmem:[%s14775_s10 + $0xca8] sm:$0xf] %vm9957_vm3, %v9743_v3  ;;  %v6736_v5 = vpop.f32.mrf.mxu2  ;;  %v7376_v6 = vpop.f32.mrf.mxu3 }
 0x1fa   : > { %10001 = vst.msk [vmem:[%s14775_s10 + $0xac] sm:$0xf] %vm9957_vm3, %v8976_v4  ;;  %v6737_v9 = vadd.f32 %v15464_v60, %v6736_v5  ;;  %v7377_v10 = vadd.f32 %v15464_v60, %v7376_v6  ;;  %v5459_v11 = vpop.f32.mrf.mxu0  ;;  %v6099_v12 = vpop.f32.mrf.mxu1 }
 0x1fb   : > { %10257 = vst.msk [vmem:[%s14775_s10 + $0x4ac] sm:$0xf] %vm9957_vm3, %v9232_v40  ;;  %v5460_v15 = vadd.f32 %v15464_v60, %v5459_v11  ;;  %v6100_v16 = vadd.f32 %v15464_v60, %v6099_v12 }
 0x1fc   : > { %v8464_v17 = vmax.f32 %v6737_v9, 0.0  ;;  %v8720_v18 = vmax.f32 %v7377_v10, 0.0 }
 0x1fd   : > { %v7953_v19 = vmax.f32 %v5460_v15, 0.0  ;;  %v8209_v20 = vmax.f32 %v6100_v16, 0.0  ;;  %13415 = vmatmul.msk.bf16.gmra.mxu0 %vm3796_vm2, %v13944_v7  ;;  %13543 = vmatmul.msk.bf16.gmra.mxu1 %vm3796_vm2, %v14072_v8  ;;  %v13946_v16 = vld [vmem:[%s14693_s5 + $0x100] sm:$0xff] }
 0x1fe   : > { %v9488_v21 = vpack.c.bf16 %v8464_v17, %v8464_v17  ;;  %v9744_v22 = vpack.c.bf16 %v8720_v18, %v8720_v18  ;;  %13671 = vmatmul.msk.bf16.gmra.mxu2 %vm3796_vm2, %v14200_v13  ;;  %13799 = vmatmul.msk.bf16.gmra.mxu3 %vm3796_vm2, %v14328_v14  ;;  %v14074_v17 = vld [vmem:[%s14693_s5 + $0x500] sm:$0xff] }
 0x1ff   : > { %v8977_v23 = vpack.c.bf16 %v7953_v19, %v7953_v19  ;;  %v9233_v24 = vpack.c.bf16 %v8209_v20, %v8209_v20 }
 0x200   : > { %10513 = vst.msk [vmem:[%s14775_s10 + $0x8ac] sm:$0xf] %vm9957_vm3, %v9488_v21 }
 0x201   : > { %10769 = vst.msk [vmem:[%s14775_s10 + $0xcac] sm:$0xf] %vm9957_vm3, %v9744_v22  ;;  %v6739_v25 = vpop.f32.mrf.mxu2  ;;  %v7379_v26 = vpop.f32.mrf.mxu3  ;;  %v14202_v22 = vld [vmem:[%s14693_s5 + $0x900] sm:$0xff] }
 0x202   : > { %10002 = vst.msk [vmem:[%s14775_s10 + $0xb0] sm:$0xf] %vm9957_vm3, %v8977_v23  ;;  %v6740_v27 = vadd.f32 %v15464_v60, %v6739_v25  ;;  %v7380_v28 = vadd.f32 %v15464_v60, %v7379_v26  ;;  %v5461_v29 = vpop.f32.mrf.mxu0  ;;  %v6101_v30 = vpop.f32.mrf.mxu1  ;;  %v14330_v23 = vld [vmem:[%s14693_s5 + $0xd00] sm:$0xff] }
 0x203   : > { %10258 = vst.msk [vmem:[%s14775_s10 + $0x4b0] sm:$0xf] %vm9957_vm3, %v9233_v24  ;;  %v5462_v31 = vadd.f32 %v15464_v60, %v5461_v29  ;;  %v6102_v32 = vadd.f32 %v15464_v60, %v6101_v30 }
 0x204   : > { %v8465_v33 = vmax.f32 %v6740_v27, 0.0  ;;  %v8721_v34 = vmax.f32 %v7380_v28, 0.0 }
 0x205   : > { %v7954_v35 = vmax.f32 %v5462_v31, 0.0  ;;  %v8210_v36 = vmax.f32 %v6102_v32, 0.0 }
 0x206   : > { %v9489_v37 = vpack.c.bf16 %v8465_v33, %v8465_v33  ;;  %v9745_v38 = vpack.c.bf16 %v8721_v34, %v8721_v34 }
 0x207   : > { %v8978_v39 = vpack.c.bf16 %v7954_v35, %v7954_v35  ;;  %v9234_v41 = vpack.c.bf16 %v8210_v36, %v8210_v36 }
 0x208   : > { %10514 = vst.msk [vmem:[%s14775_s10 + $0x8b0] sm:$0xf] %vm9957_vm3, %v9489_v37 }
 0x209   : > { %10770 = vst.msk [vmem:[%s14775_s10 + $0xcb0] sm:$0xf] %vm9957_vm3, %v9745_v38  ;;  %v6741_v42 = vpop.f32.mrf.mxu2  ;;  %v7381_v43 = vpop.f32.mrf.mxu3 }
 0x20a   : > { %10003 = vst.msk [vmem:[%s14775_s10 + $0xb4] sm:$0xf] %vm9957_vm3, %v8978_v39  ;;  %v6742_v46 = vadd.f32 %v15464_v60, %v6741_v42  ;;  %v7382_v47 = vadd.f32 %v15464_v60, %v7381_v43  ;;  %v5464_v48 = vpop.f32.mrf.mxu0  ;;  %v6104_v49 = vpop.f32.mrf.mxu1 }
 0x20b   : > { %10259 = vst.msk [vmem:[%s14775_s10 + $0x4b4] sm:$0xf] %vm9957_vm3, %v9234_v41  ;;  %v5465_v52 = vadd.f32 %v15464_v60, %v5464_v48  ;;  %v6105_v53 = vadd.f32 %v15464_v60, %v6104_v49 }
 0x20c   : > { %v8466_v54 = vmax.f32 %v6742_v46, 0.0  ;;  %v8722_v55 = vmax.f32 %v7382_v47, 0.0 }
 0x20d   : > { %v7955_v56 = vmax.f32 %v5465_v52, 0.0  ;;  %v8211_v57 = vmax.f32 %v6105_v53, 0.0  ;;  %13416 = vmatmul.msk.bf16.gmra.mxu0 %vm3796_vm2, %v13945_v44  ;;  %13544 = vmatmul.msk.bf16.gmra.mxu1 %vm3796_vm2, %v14073_v45  ;;  %v13947_v53 = vld [vmem:[%s14693_s5 + $0x108] sm:$0xff] }
 0x20e   : > { %v9490_v58 = vpack.c.bf16 %v8466_v54, %v8466_v54  ;;  %v9746_v59 = vpack.c.bf16 %v8722_v55, %v8722_v55  ;;  %13672 = vmatmul.msk.bf16.gmra.mxu2 %vm3796_vm2, %v14201_v50  ;;  %13800 = vmatmul.msk.bf16.gmra.mxu3 %vm3796_vm2, %v14329_v51  ;;  %v14075_v54 = vld [vmem:[%s14693_s5 + $0x508] sm:$0xff] }
 0x20f   : > { %v8979_v61 = vpack.c.bf16 %v7955_v56, %v7955_v56  ;;  %v9235_v62 = vpack.c.bf16 %v8211_v57, %v8211_v57 }
 0x210   : > { %10515 = vst.msk [vmem:[%s14775_s10 + $0x8b4] sm:$0xf] %vm9957_vm3, %v9490_v58 }
 0x211   : > { %10771 = vst.msk [vmem:[%s14775_s10 + $0xcb4] sm:$0xf] %vm9957_vm3, %v9746_v59  ;;  %v6744_v63 = vpop.f32.mrf.mxu2  ;;  %v7384_v0 = vpop.f32.mrf.mxu3  ;;  %v14203_v59 = vld [vmem:[%s14693_s5 + $0x908] sm:$0xff] }
 0x212   : > { %10004 = vst.msk [vmem:[%s14775_s10 + $0xb8] sm:$0xf] %vm9957_vm3, %v8979_v61  ;;  %v6745_v1 = vadd.f32 %v15464_v60, %v6744_v63  ;;  %v7385_v2 = vadd.f32 %v15464_v60, %v7384_v0  ;;  %v5466_v3 = vpop.f32.mrf.mxu0  ;;  %v6106_v4 = vpop.f32.mrf.mxu1  ;;  %v14331_v61 = vld [vmem:[%s14693_s5 + $0xd08] sm:$0xff] }
 0x213   : > { %10260 = vst.msk [vmem:[%s14775_s10 + $0x4b8] sm:$0xf] %vm9957_vm3, %v9235_v62  ;;  %v5467_v40 = vadd.f32 %v15464_v60, %v5466_v3  ;;  %v6107_v5 = vadd.f32 %v15464_v60, %v6106_v4 }
 0x214   : > { %v8467_v6 = vmax.f32 %v6745_v1, 0.0  ;;  %v8723_v7 = vmax.f32 %v7385_v2, 0.0 }
 0x215   : > { %v7956_v8 = vmax.f32 %v5467_v40, 0.0  ;;  %v8212_v9 = vmax.f32 %v6107_v5, 0.0 }
 0x216   : > { %v9491_v10 = vpack.c.bf16 %v8467_v6, %v8467_v6  ;;  %v9747_v11 = vpack.c.bf16 %v8723_v7, %v8723_v7 }
 0x217   : > { %v8980_v12 = vpack.c.bf16 %v7956_v8, %v7956_v8  ;;  %v9236_v13 = vpack.c.bf16 %v8212_v9, %v8212_v9 }
 0x218   : > { %10516 = vst.msk [vmem:[%s14775_s10 + $0x8b8] sm:$0xf] %vm9957_vm3, %v9491_v10 }
 0x219   : > { %10772 = vst.msk [vmem:[%s14775_s10 + $0xcb8] sm:$0xf] %vm9957_vm3, %v9747_v11  ;;  %v6746_v14 = vpop.f32.mrf.mxu2  ;;  %v7386_v15 = vpop.f32.mrf.mxu3 }
 0x21a   : > { %10005 = vst.msk [vmem:[%s14775_s10 + $0xbc] sm:$0xf] %vm9957_vm3, %v8980_v12  ;;  %v6747_v18 = vadd.f32 %v15464_v60, %v6746_v14  ;;  %v7387_v19 = vadd.f32 %v15464_v60, %v7386_v15  ;;  %v5469_v20 = vpop.f32.mrf.mxu0  ;;  %v6109_v21 = vpop.f32.mrf.mxu1 }
 0x21b   : > { %10261 = vst.msk [vmem:[%s14775_s10 + $0x4bc] sm:$0xf] %vm9957_vm3, %v9236_v13  ;;  %v5470_v24 = vadd.f32 %v15464_v60, %v5469_v20  ;;  %v6110_v25 = vadd.f32 %v15464_v60, %v6109_v21 }
 0x21c   : > { %v8468_v26 = vmax.f32 %v6747_v18, 0.0  ;;  %v8724_v27 = vmax.f32 %v7387_v19, 0.0 }
 0x21d   : > { %v7957_v28 = vmax.f32 %v5470_v24, 0.0  ;;  %v8213_v29 = vmax.f32 %v6110_v25, 0.0  ;;  %13417 = vmatmul.msk.bf16.gmra.mxu0 %vm3796_vm2, %v13946_v16  ;;  %13545 = vmatmul.msk.bf16.gmra.mxu1 %vm3796_vm2, %v14074_v17  ;;  %v13948_v25 = vld [vmem:[%s14693_s5 + $0x110] sm:$0xff] }
 0x21e   : > { %v9492_v30 = vpack.c.bf16 %v8468_v26, %v8468_v26  ;;  %v9748_v31 = vpack.c.bf16 %v8724_v27, %v8724_v27  ;;  %13673 = vmatmul.msk.bf16.gmra.mxu2 %vm3796_vm2, %v14202_v22  ;;  %13801 = vmatmul.msk.bf16.gmra.mxu3 %vm3796_vm2, %v14330_v23  ;;  %v14076_v26 = vld [vmem:[%s14693_s5 + $0x510] sm:$0xff] }
 0x21f   : > { %v8981_v32 = vpack.c.bf16 %v7957_v28, %v7957_v28  ;;  %v9237_v33 = vpack.c.bf16 %v8213_v29, %v8213_v29 }
 0x220   : > { %10517 = vst.msk [vmem:[%s14775_s10 + $0x8bc] sm:$0xf] %vm9957_vm3, %v9492_v30 }
 0x221   : > { %10773 = vst.msk [vmem:[%s14775_s10 + $0xcbc] sm:$0xf] %vm9957_vm3, %v9748_v31  ;;  %v6749_v34 = vpop.f32.mrf.mxu2  ;;  %v7389_v35 = vpop.f32.mrf.mxu3  ;;  %v14204_v31 = vld [vmem:[%s14693_s5 + $0x910] sm:$0xff] }
 0x222   : > { %10006 = vst.msk [vmem:[%s14775_s10 + $0xc0] sm:$0xf] %vm9957_vm3, %v8981_v32  ;;  %v6750_v36 = vadd.f32 %v15464_v60, %v6749_v34  ;;  %v7390_v37 = vadd.f32 %v15464_v60, %v7389_v35  ;;  %v5471_v38 = vpop.f32.mrf.mxu0  ;;  %v6111_v39 = vpop.f32.mrf.mxu1  ;;  %v14332_v32 = vld [vmem:[%s14693_s5 + $0xd10] sm:$0xff] }
 0x223   : > { %10262 = vst.msk [vmem:[%s14775_s10 + $0x4c0] sm:$0xf] %vm9957_vm3, %v9237_v33  ;;  %v5472_v41 = vadd.f32 %v15464_v60, %v5471_v38  ;;  %v6112_v42 = vadd.f32 %v15464_v60, %v6111_v39 }
 0x224   : > { %v8469_v43 = vmax.f32 %v6750_v36, 0.0  ;;  %v8725_v44 = vmax.f32 %v7390_v37, 0.0 }
 0x225   : > { %v7958_v45 = vmax.f32 %v5472_v41, 0.0  ;;  %v8214_v46 = vmax.f32 %v6112_v42, 0.0 }
 0x226   : > { %v9493_v47 = vpack.c.bf16 %v8469_v43, %v8469_v43  ;;  %v9749_v48 = vpack.c.bf16 %v8725_v44, %v8725_v44 }
 0x227   : > { %v8982_v49 = vpack.c.bf16 %v7958_v45, %v7958_v45  ;;  %v9238_v50 = vpack.c.bf16 %v8214_v46, %v8214_v46 }
 0x228   : > { %10518 = vst.msk [vmem:[%s14775_s10 + $0x8c0] sm:$0xf] %vm9957_vm3, %v9493_v47 }
 0x229   : > { %10774 = vst.msk [vmem:[%s14775_s10 + $0xcc0] sm:$0xf] %vm9957_vm3, %v9749_v48  ;;  %v6751_v51 = vpop.f32.mrf.mxu2  ;;  %v7391_v52 = vpop.f32.mrf.mxu3 }
 0x22a   : > { %10007 = vst.msk [vmem:[%s14775_s10 + $0xc4] sm:$0xf] %vm9957_vm3, %v8982_v49  ;;  %v6752_v55 = vadd.f32 %v15464_v60, %v6751_v51  ;;  %v7392_v56 = vadd.f32 %v15464_v60, %v7391_v52  ;;  %v5474_v57 = vpop.f32.mrf.mxu0  ;;  %v6114_v58 = vpop.f32.mrf.mxu1 }
 0x22b   : > { %10263 = vst.msk [vmem:[%s14775_s10 + $0x4c4] sm:$0xf] %vm9957_vm3, %v9238_v50  ;;  %v5475_v62 = vadd.f32 %v15464_v60, %v5474_v57  ;;  %v6115_v63 = vadd.f32 %v15464_v60, %v6114_v58 }
 0x22c   : > { %v8470_v0 = vmax.f32 %v6752_v55, 0.0  ;;  %v8726_v1 = vmax.f32 %v7392_v56, 0.0 }
 0x22d   : > { %v7959_v2 = vmax.f32 %v5475_v62, 0.0  ;;  %v8215_v3 = vmax.f32 %v6115_v63, 0.0  ;;  %13418 = vmatmul.msk.bf16.gmra.mxu0 %vm3796_vm2, %v13947_v53  ;;  %13546 = vmatmul.msk.bf16.gmra.mxu1 %vm3796_vm2, %v14075_v54  ;;  %v13949_v63 = vld [vmem:[%s14693_s5 + $0x118] sm:$0xff] }
 0x22e   : > { %v9494_v4 = vpack.c.bf16 %v8470_v0, %v8470_v0  ;;  %v9750_v40 = vpack.c.bf16 %v8726_v1, %v8726_v1  ;;  %13674 = vmatmul.msk.bf16.gmra.mxu2 %vm3796_vm2, %v14203_v59  ;;  %13802 = vmatmul.msk.bf16.gmra.mxu3 %vm3796_vm2, %v14331_v61  ;;  %v14077_v0 = vld [vmem:[%s14693_s5 + $0x518] sm:$0xff] }
 0x22f   : > { %v8983_v5 = vpack.c.bf16 %v7959_v2, %v7959_v2  ;;  %v9239_v6 = vpack.c.bf16 %v8215_v3, %v8215_v3 }
 0x230   : > { %10519 = vst.msk [vmem:[%s14775_s10 + $0x8c4] sm:$0xf] %vm9957_vm3, %v9494_v4 }
 0x231   : > { %10775 = vst.msk [vmem:[%s14775_s10 + $0xcc4] sm:$0xf] %vm9957_vm3, %v9750_v40  ;;  %v6754_v7 = vpop.f32.mrf.mxu2  ;;  %v7394_v8 = vpop.f32.mrf.mxu3  ;;  %v14205_v40 = vld [vmem:[%s14693_s5 + $0x918] sm:$0xff] }
 0x232   : > { %10008 = vst.msk [vmem:[%s14775_s10 + $0xc8] sm:$0xf] %vm9957_vm3, %v8983_v5  ;;  %v6755_v9 = vadd.f32 %v15464_v60, %v6754_v7  ;;  %v7395_v10 = vadd.f32 %v15464_v60, %v7394_v8  ;;  %v5476_v11 = vpop.f32.mrf.mxu0  ;;  %v6116_v12 = vpop.f32.mrf.mxu1  ;;  %v14333_v5 = vld [vmem:[%s14693_s5 + $0xd18] sm:$0xff] }
 0x233   : > { %10264 = vst.msk [vmem:[%s14775_s10 + $0x4c8] sm:$0xf] %vm9957_vm3, %v9239_v6  ;;  %v5477_v13 = vadd.f32 %v15464_v60, %v5476_v11  ;;  %v6117_v14 = vadd.f32 %v15464_v60, %v6116_v12 }
 0x234   : > { %v8471_v15 = vmax.f32 %v6755_v9, 0.0  ;;  %v8727_v16 = vmax.f32 %v7395_v10, 0.0 }
 0x235   : > { %v7960_v17 = vmax.f32 %v5477_v13, 0.0  ;;  %v8216_v18 = vmax.f32 %v6117_v14, 0.0 }
 0x236   : > { %v9495_v19 = vpack.c.bf16 %v8471_v15, %v8471_v15  ;;  %v9751_v20 = vpack.c.bf16 %v8727_v16, %v8727_v16 }
 0x237   : > { %v8984_v21 = vpack.c.bf16 %v7960_v17, %v7960_v17  ;;  %v9240_v22 = vpack.c.bf16 %v8216_v18, %v8216_v18 }
 0x238   : > { %10520 = vst.msk [vmem:[%s14775_s10 + $0x8c8] sm:$0xf] %vm9957_vm3, %v9495_v19 }
 0x239   : > { %10776 = vst.msk [vmem:[%s14775_s10 + $0xcc8] sm:$0xf] %vm9957_vm3, %v9751_v20  ;;  %v6756_v23 = vpop.f32.mrf.mxu2  ;;  %v7396_v24 = vpop.f32.mrf.mxu3 }
 0x23a   : > { %10009 = vst.msk [vmem:[%s14775_s10 + $0xcc] sm:$0xf] %vm9957_vm3, %v8984_v21  ;;  %v6757_v27 = vadd.f32 %v15464_v60, %v6756_v23  ;;  %v7397_v28 = vadd.f32 %v15464_v60, %v7396_v24  ;;  %v5479_v29 = vpop.f32.mrf.mxu0  ;;  %v6119_v30 = vpop.f32.mrf.mxu1 }
 0x23b   : > { %10265 = vst.msk [vmem:[%s14775_s10 + $0x4cc] sm:$0xf] %vm9957_vm3, %v9240_v22  ;;  %v5480_v33 = vadd.f32 %v15464_v60, %v5479_v29  ;;  %v6120_v34 = vadd.f32 %v15464_v60, %v6119_v30 }
 0x23c   : > { %v8472_v35 = vmax.f32 %v6757_v27, 0.0  ;;  %v8728_v36 = vmax.f32 %v7397_v28, 0.0 }
 0x23d   : > { %v7961_v37 = vmax.f32 %v5480_v33, 0.0  ;;  %v8217_v38 = vmax.f32 %v6120_v34, 0.0  ;;  %13419 = vmatmul.msk.bf16.gmra.mxu0 %vm3796_vm2, %v13948_v25  ;;  %13547 = vmatmul.msk.bf16.gmra.mxu1 %vm3796_vm2, %v14076_v26  ;;  %v13950_v34 = vld [vmem:[%s14693_s5 + $0x120] sm:$0xff] }
 0x23e   : > { %v9496_v39 = vpack.c.bf16 %v8472_v35, %v8472_v35  ;;  %v9752_v41 = vpack.c.bf16 %v8728_v36, %v8728_v36  ;;  %13675 = vmatmul.msk.bf16.gmra.mxu2 %vm3796_vm2, %v14204_v31  ;;  %13803 = vmatmul.msk.bf16.gmra.mxu3 %vm3796_vm2, %v14332_v32  ;;  %v14078_v35 = vld [vmem:[%s14693_s5 + $0x520] sm:$0xff] }
 0x23f   : > { %v8985_v42 = vpack.c.bf16 %v7961_v37, %v7961_v37  ;;  %v9241_v43 = vpack.c.bf16 %v8217_v38, %v8217_v38 }
 0x240   : > { %10521 = vst.msk [vmem:[%s14775_s10 + $0x8cc] sm:$0xf] %vm9957_vm3, %v9496_v39 }
 0x241   : > { %10777 = vst.msk [vmem:[%s14775_s10 + $0xccc] sm:$0xf] %vm9957_vm3, %v9752_v41  ;;  %v6759_v44 = vpop.f32.mrf.mxu2  ;;  %v7399_v45 = vpop.f32.mrf.mxu3  ;;  %v14206_v41 = vld [vmem:[%s14693_s5 + $0x920] sm:$0xff] }
 0x242   : > { %10010 = vst.msk [vmem:[%s14775_s10 + $0xd0] sm:$0xf] %vm9957_vm3, %v8985_v42  ;;  %v6760_v46 = vadd.f32 %v15464_v60, %v6759_v44  ;;  %v7400_v47 = vadd.f32 %v15464_v60, %v7399_v45  ;;  %v5481_v48 = vpop.f32.mrf.mxu0  ;;  %v6121_v49 = vpop.f32.mrf.mxu1  ;;  %v14334_v42 = vld [vmem:[%s14693_s5 + $0xd20] sm:$0xff] }
 0x243   : > { %10266 = vst.msk [vmem:[%s14775_s10 + $0x4d0] sm:$0xf] %vm9957_vm3, %v9241_v43  ;;  %v5482_v50 = vadd.f32 %v15464_v60, %v5481_v48  ;;  %v6122_v51 = vadd.f32 %v15464_v60, %v6121_v49 }
 0x244   : > { %v8473_v52 = vmax.f32 %v6760_v46, 0.0  ;;  %v8729_v53 = vmax.f32 %v7400_v47, 0.0 }
 0x245   : > { %v7962_v54 = vmax.f32 %v5482_v50, 0.0  ;;  %v8218_v55 = vmax.f32 %v6122_v51, 0.0 }
 0x246   : > { %v9497_v56 = vpack.c.bf16 %v8473_v52, %v8473_v52  ;;  %v9753_v57 = vpack.c.bf16 %v8729_v53, %v8729_v53 }
 0x247   : > { %v8986_v58 = vpack.c.bf16 %v7962_v54, %v7962_v54  ;;  %v9242_v59 = vpack.c.bf16 %v8218_v55, %v8218_v55 }
 0x248   : > { %10522 = vst.msk [vmem:[%s14775_s10 + $0x8d0] sm:$0xf] %vm9957_vm3, %v9497_v56 }
 0x249   : > { %10778 = vst.msk [vmem:[%s14775_s10 + $0xcd0] sm:$0xf] %vm9957_vm3, %v9753_v57  ;;  %v6761_v61 = vpop.f32.mrf.mxu2  ;;  %v7401_v62 = vpop.f32.mrf.mxu3 }
 0x24a   : > { %10011 = vst.msk [vmem:[%s14775_s10 + $0xd4] sm:$0xf] %vm9957_vm3, %v8986_v58  ;;  %v6762_v1 = vadd.f32 %v15464_v60, %v6761_v61  ;;  %v7402_v2 = vadd.f32 %v15464_v60, %v7401_v62  ;;  %v5484_v3 = vpop.f32.mrf.mxu0  ;;  %v6124_v4 = vpop.f32.mrf.mxu1 }
 0x24b   : > { %10267 = vst.msk [vmem:[%s14775_s10 + $0x4d4] sm:$0xf] %vm9957_vm3, %v9242_v59  ;;  %v5485_v6 = vadd.f32 %v15464_v60, %v5484_v3  ;;  %v6125_v7 = vadd.f32 %v15464_v60, %v6124_v4 }
 0x24c   : > { %v8474_v8 = vmax.f32 %v6762_v1, 0.0  ;;  %v8730_v9 = vmax.f32 %v7402_v2, 0.0 }
 0x24d   : > { %v7963_v10 = vmax.f32 %v5485_v6, 0.0  ;;  %v8219_v11 = vmax.f32 %v6125_v7, 0.0  ;;  %13420 = vmatmul.msk.bf16.gmra.mxu0 %vm3796_vm2, %v13949_v63  ;;  %13548 = vmatmul.msk.bf16.gmra.mxu1 %vm3796_vm2, %v14077_v0  ;;  %v13951_v7 = vld [vmem:[%s14693_s5 + $0x128] sm:$0xff] }
 0x24e   : > { %v9498_v12 = vpack.c.bf16 %v8474_v8, %v8474_v8  ;;  %v9754_v13 = vpack.c.bf16 %v8730_v9, %v8730_v9  ;;  %13676 = vmatmul.msk.bf16.gmra.mxu2 %vm3796_vm2, %v14205_v40  ;;  %13804 = vmatmul.msk.bf16.gmra.mxu3 %vm3796_vm2, %v14333_v5  ;;  %v14079_v8 = vld [vmem:[%s14693_s5 + $0x528] sm:$0xff] }
 0x24f   : > { %v8987_v14 = vpack.c.bf16 %v7963_v10, %v7963_v10  ;;  %v9243_v15 = vpack.c.bf16 %v8219_v11, %v8219_v11 }
 0x250   : > { %10523 = vst.msk [vmem:[%s14775_s10 + $0x8d4] sm:$0xf] %vm9957_vm3, %v9498_v12 }
 0x251   : > { %10779 = vst.msk [vmem:[%s14775_s10 + $0xcd4] sm:$0xf] %vm9957_vm3, %v9754_v13  ;;  %v6764_v16 = vpop.f32.mrf.mxu2  ;;  %v7404_v17 = vpop.f32.mrf.mxu3  ;;  %v14207_v13 = vld [vmem:[%s14693_s5 + $0x928] sm:$0xff] }
 0x252   : > { %10012 = vst.msk [vmem:[%s14775_s10 + $0xd8] sm:$0xf] %vm9957_vm3, %v8987_v14  ;;  %v6765_v18 = vadd.f32 %v15464_v60, %v6764_v16  ;;  %v7405_v19 = vadd.f32 %v15464_v60, %v7404_v17  ;;  %v5486_v20 = vpop.f32.mrf.mxu0  ;;  %v6126_v21 = vpop.f32.mrf.mxu1  ;;  %v14335_v14 = vld [vmem:[%s14693_s5 + $0xd28] sm:$0xff] }
 0x253   : > { %10268 = vst.msk [vmem:[%s14775_s10 + $0x4d8] sm:$0xf] %vm9957_vm3, %v9243_v15  ;;  %v5487_v22 = vadd.f32 %v15464_v60, %v5486_v20  ;;  %v6127_v23 = vadd.f32 %v15464_v60, %v6126_v21 }
 0x254   : > { %v8475_v24 = vmax.f32 %v6765_v18, 0.0  ;;  %v8731_v25 = vmax.f32 %v7405_v19, 0.0 }
 0x255   : > { %v7964_v26 = vmax.f32 %v5487_v22, 0.0  ;;  %v8220_v27 = vmax.f32 %v6127_v23, 0.0 }
 0x256   : > { %v9499_v28 = vpack.c.bf16 %v8475_v24, %v8475_v24  ;;  %v9755_v29 = vpack.c.bf16 %v8731_v25, %v8731_v25 }
 0x257   : > { %v8988_v30 = vpack.c.bf16 %v7964_v26, %v7964_v26  ;;  %v9244_v31 = vpack.c.bf16 %v8220_v27, %v8220_v27 }
 0x258   : > { %10524 = vst.msk [vmem:[%s14775_s10 + $0x8d8] sm:$0xf] %vm9957_vm3, %v9499_v28 }
 0x259   : > { %10780 = vst.msk [vmem:[%s14775_s10 + $0xcd8] sm:$0xf] %vm9957_vm3, %v9755_v29  ;;  %v6766_v32 = vpop.f32.mrf.mxu2  ;;  %v7406_v33 = vpop.f32.mrf.mxu3 }
 0x25a   : > { %10013 = vst.msk [vmem:[%s14775_s10 + $0xdc] sm:$0xf] %vm9957_vm3, %v8988_v30  ;;  %v6767_v36 = vadd.f32 %v15464_v60, %v6766_v32  ;;  %v7407_v37 = vadd.f32 %v15464_v60, %v7406_v33  ;;  %v5489_v38 = vpop.f32.mrf.mxu0  ;;  %v6129_v39 = vpop.f32.mrf.mxu1 }
 0x25b   : > { %10269 = vst.msk [vmem:[%s14775_s10 + $0x4dc] sm:$0xf] %vm9957_vm3, %v9244_v31  ;;  %v5490_v43 = vadd.f32 %v15464_v60, %v5489_v38  ;;  %v6130_v44 = vadd.f32 %v15464_v60, %v6129_v39 }
 0x25c   : > { %v8476_v45 = vmax.f32 %v6767_v36, 0.0  ;;  %v8732_v46 = vmax.f32 %v7407_v37, 0.0 }
 0x25d   : > { %v7965_v47 = vmax.f32 %v5490_v43, 0.0  ;;  %v8221_v48 = vmax.f32 %v6130_v44, 0.0  ;;  %13421 = vmatmul.msk.bf16.gmra.mxu0 %vm3796_vm2, %v13950_v34  ;;  %13549 = vmatmul.msk.bf16.gmra.mxu1 %vm3796_vm2, %v14078_v35  ;;  %v13952_v44 = vld [vmem:[%s14693_s5 + $0x130] sm:$0xff] }
 0x25e   : > { %v9500_v49 = vpack.c.bf16 %v8476_v45, %v8476_v45  ;;  %v9756_v50 = vpack.c.bf16 %v8732_v46, %v8732_v46  ;;  %13677 = vmatmul.msk.bf16.gmra.mxu2 %vm3796_vm2, %v14206_v41  ;;  %13805 = vmatmul.msk.bf16.gmra.mxu3 %vm3796_vm2, %v14334_v42  ;;  %v14080_v45 = vld [vmem:[%s14693_s5 + $0x530] sm:$0xff] }
 0x25f   : > { %v8989_v51 = vpack.c.bf16 %v7965_v47, %v7965_v47  ;;  %v9245_v52 = vpack.c.bf16 %v8221_v48, %v8221_v48 }
 0x260   : > { %10525 = vst.msk [vmem:[%s14775_s10 + $0x8dc] sm:$0xf] %vm9957_vm3, %v9500_v49 }
 0x261   : > { %10781 = vst.msk [vmem:[%s14775_s10 + $0xcdc] sm:$0xf] %vm9957_vm3, %v9756_v50  ;;  %v6769_v53 = vpop.f32.mrf.mxu2  ;;  %v7409_v54 = vpop.f32.mrf.mxu3  ;;  %v14208_v50 = vld [vmem:[%s14693_s5 + $0x930] sm:$0xff] }
 0x262   : > { %10014 = vst.msk [vmem:[%s14775_s10 + $0xe0] sm:$0xf] %vm9957_vm3, %v8989_v51  ;;  %v6770_v55 = vadd.f32 %v15464_v60, %v6769_v53  ;;  %v7410_v56 = vadd.f32 %v15464_v60, %v7409_v54  ;;  %v5491_v57 = vpop.f32.mrf.mxu0  ;;  %v6131_v58 = vpop.f32.mrf.mxu1  ;;  %v14336_v51 = vld [vmem:[%s14693_s5 + $0xd30] sm:$0xff] }
 0x263   : > { %10270 = vst.msk [vmem:[%s14775_s10 + $0x4e0] sm:$0xf] %vm9957_vm3, %v9245_v52  ;;  %v5492_v59 = vadd.f32 %v15464_v60, %v5491_v57  ;;  %v6132_v61 = vadd.f32 %v15464_v60, %v6131_v58 }
 0x264   : > { %v8477_v62 = vmax.f32 %v6770_v55, 0.0  ;;  %v8733_v63 = vmax.f32 %v7410_v56, 0.0 }
 0x265   : > { %v7966_v0 = vmax.f32 %v5492_v59, 0.0  ;;  %v8222_v1 = vmax.f32 %v6132_v61, 0.0 }
 0x266   : > { %v9501_v2 = vpack.c.bf16 %v8477_v62, %v8477_v62  ;;  %v9757_v3 = vpack.c.bf16 %v8733_v63, %v8733_v63 }
 0x267   : > { %v8990_v4 = vpack.c.bf16 %v7966_v0, %v7966_v0  ;;  %v9246_v40 = vpack.c.bf16 %v8222_v1, %v8222_v1 }
 0x268   : > { %10526 = vst.msk [vmem:[%s14775_s10 + $0x8e0] sm:$0xf] %vm9957_vm3, %v9501_v2 }
 0x269   : > { %10782 = vst.msk [vmem:[%s14775_s10 + $0xce0] sm:$0xf] %vm9957_vm3, %v9757_v3  ;;  %v6771_v5 = vpop.f32.mrf.mxu2  ;;  %v7411_v6 = vpop.f32.mrf.mxu3 }
 0x26a   : > { %10015 = vst.msk [vmem:[%s14775_s10 + $0xe4] sm:$0xf] %vm9957_vm3, %v8990_v4  ;;  %v6772_v9 = vadd.f32 %v15464_v60, %v6771_v5  ;;  %v7412_v10 = vadd.f32 %v15464_v60, %v7411_v6  ;;  %v5494_v11 = vpop.f32.mrf.mxu0  ;;  %v6134_v12 = vpop.f32.mrf.mxu1 }
 0x26b   : > { %10271 = vst.msk [vmem:[%s14775_s10 + $0x4e4] sm:$0xf] %vm9957_vm3, %v9246_v40  ;;  %v5495_v15 = vadd.f32 %v15464_v60, %v5494_v11  ;;  %v6135_v16 = vadd.f32 %v15464_v60, %v6134_v12 }
 0x26c   : > { %v8478_v17 = vmax.f32 %v6772_v9, 0.0  ;;  %v8734_v18 = vmax.f32 %v7412_v10, 0.0 }
 0x26d   : > { %v7967_v19 = vmax.f32 %v5495_v15, 0.0  ;;  %v8223_v20 = vmax.f32 %v6135_v16, 0.0  ;;  %13422 = vmatmul.msk.bf16.gmra.mxu0 %vm3796_vm2, %v13951_v7  ;;  %13550 = vmatmul.msk.bf16.gmra.mxu1 %vm3796_vm2, %v14079_v8  ;;  %v13953_v16 = vld [vmem:[%s14693_s5 + $0x138] sm:$0xff] }
 0x26e   : > { %v9502_v21 = vpack.c.bf16 %v8478_v17, %v8478_v17  ;;  %v9758_v22 = vpack.c.bf16 %v8734_v18, %v8734_v18  ;;  %13678 = vmatmul.msk.bf16.gmra.mxu2 %vm3796_vm2, %v14207_v13  ;;  %13806 = vmatmul.msk.bf16.gmra.mxu3 %vm3796_vm2, %v14335_v14  ;;  %v14081_v17 = vld [vmem:[%s14693_s5 + $0x538] sm:$0xff] }
 0x26f   : > { %v8991_v23 = vpack.c.bf16 %v7967_v19, %v7967_v19  ;;  %v9247_v24 = vpack.c.bf16 %v8223_v20, %v8223_v20 }
 0x270   : > { %10527 = vst.msk [vmem:[%s14775_s10 + $0x8e4] sm:$0xf] %vm9957_vm3, %v9502_v21 }
 0x271   : > { %10783 = vst.msk [vmem:[%s14775_s10 + $0xce4] sm:$0xf] %vm9957_vm3, %v9758_v22  ;;  %v6774_v25 = vpop.f32.mrf.mxu2  ;;  %v7414_v26 = vpop.f32.mrf.mxu3  ;;  %v14209_v22 = vld [vmem:[%s14693_s5 + $0x938] sm:$0xff] }
 0x272   : > { %10016 = vst.msk [vmem:[%s14775_s10 + $0xe8] sm:$0xf] %vm9957_vm3, %v8991_v23  ;;  %v6775_v27 = vadd.f32 %v15464_v60, %v6774_v25  ;;  %v7415_v28 = vadd.f32 %v15464_v60, %v7414_v26  ;;  %v5496_v29 = vpop.f32.mrf.mxu0  ;;  %v6136_v30 = vpop.f32.mrf.mxu1  ;;  %v14337_v23 = vld [vmem:[%s14693_s5 + $0xd38] sm:$0xff] }
 0x273   : > { %10272 = vst.msk [vmem:[%s14775_s10 + $0x4e8] sm:$0xf] %vm9957_vm3, %v9247_v24  ;;  %v5497_v31 = vadd.f32 %v15464_v60, %v5496_v29  ;;  %v6137_v32 = vadd.f32 %v15464_v60, %v6136_v30 }
 0x274   : > { %v8479_v33 = vmax.f32 %v6775_v27, 0.0  ;;  %v8735_v34 = vmax.f32 %v7415_v28, 0.0 }
 0x275   : > { %v7968_v35 = vmax.f32 %v5497_v31, 0.0  ;;  %v8224_v36 = vmax.f32 %v6137_v32, 0.0 }
 0x276   : > { %v9503_v37 = vpack.c.bf16 %v8479_v33, %v8479_v33  ;;  %v9759_v38 = vpack.c.bf16 %v8735_v34, %v8735_v34 }
 0x277   : > { %v8992_v39 = vpack.c.bf16 %v7968_v35, %v7968_v35  ;;  %v9248_v41 = vpack.c.bf16 %v8224_v36, %v8224_v36 }
 0x278   : > { %10528 = vst.msk [vmem:[%s14775_s10 + $0x8e8] sm:$0xf] %vm9957_vm3, %v9503_v37 }
 0x279   : > { %10784 = vst.msk [vmem:[%s14775_s10 + $0xce8] sm:$0xf] %vm9957_vm3, %v9759_v38  ;;  %v6776_v42 = vpop.f32.mrf.mxu2  ;;  %v7416_v43 = vpop.f32.mrf.mxu3 }
 0x27a   : > { %10017 = vst.msk [vmem:[%s14775_s10 + $0xec] sm:$0xf] %vm9957_vm3, %v8992_v39  ;;  %v6777_v46 = vadd.f32 %v15464_v60, %v6776_v42  ;;  %v7417_v47 = vadd.f32 %v15464_v60, %v7416_v43  ;;  %v5499_v48 = vpop.f32.mrf.mxu0  ;;  %v6139_v49 = vpop.f32.mrf.mxu1 }
 0x27b   : > { %10273 = vst.msk [vmem:[%s14775_s10 + $0x4ec] sm:$0xf] %vm9957_vm3, %v9248_v41  ;;  %v5500_v52 = vadd.f32 %v15464_v60, %v5499_v48  ;;  %v6140_v53 = vadd.f32 %v15464_v60, %v6139_v49 }
 0x27c   : > { %v8480_v54 = vmax.f32 %v6777_v46, 0.0  ;;  %v8736_v55 = vmax.f32 %v7417_v47, 0.0 }
 0x27d   : > { %v7969_v56 = vmax.f32 %v5500_v52, 0.0  ;;  %v8225_v57 = vmax.f32 %v6140_v53, 0.0  ;;  %13423 = vmatmul.msk.bf16.gmra.mxu0 %vm3796_vm2, %v13952_v44  ;;  %13551 = vmatmul.msk.bf16.gmra.mxu1 %vm3796_vm2, %v14080_v45  ;;  %v13954_v53 = vld [vmem:[%s14693_s5 + $0x140] sm:$0xff] }
 0x27e   : > { %v9504_v58 = vpack.c.bf16 %v8480_v54, %v8480_v54  ;;  %v9760_v59 = vpack.c.bf16 %v8736_v55, %v8736_v55  ;;  %13679 = vmatmul.msk.bf16.gmra.mxu2 %vm3796_vm2, %v14208_v50  ;;  %13807 = vmatmul.msk.bf16.gmra.mxu3 %vm3796_vm2, %v14336_v51  ;;  %v14082_v54 = vld [vmem:[%s14693_s5 + $0x540] sm:$0xff] }
 0x27f   : > { %v8993_v61 = vpack.c.bf16 %v7969_v56, %v7969_v56  ;;  %v9249_v62 = vpack.c.bf16 %v8225_v57, %v8225_v57 }
 0x280   : > { %10529 = vst.msk [vmem:[%s14775_s10 + $0x8ec] sm:$0xf] %vm9957_vm3, %v9504_v58 }
 0x281   : > { %10785 = vst.msk [vmem:[%s14775_s10 + $0xcec] sm:$0xf] %vm9957_vm3, %v9760_v59  ;;  %v6779_v63 = vpop.f32.mrf.mxu2  ;;  %v7419_v0 = vpop.f32.mrf.mxu3  ;;  %v14210_v59 = vld [vmem:[%s14693_s5 + $0x940] sm:$0xff] }
 0x282   : > { %10018 = vst.msk [vmem:[%s14775_s10 + $0xf0] sm:$0xf] %vm9957_vm3, %v8993_v61  ;;  %v6780_v1 = vadd.f32 %v15464_v60, %v6779_v63  ;;  %v7420_v2 = vadd.f32 %v15464_v60, %v7419_v0  ;;  %v5501_v3 = vpop.f32.mrf.mxu0  ;;  %v6141_v4 = vpop.f32.mrf.mxu1  ;;  %v14338_v61 = vld [vmem:[%s14693_s5 + $0xd40] sm:$0xff] }
 0x283   : > { %10274 = vst.msk [vmem:[%s14775_s10 + $0x4f0] sm:$0xf] %vm9957_vm3, %v9249_v62  ;;  %v5502_v40 = vadd.f32 %v15464_v60, %v5501_v3  ;;  %v6142_v5 = vadd.f32 %v15464_v60, %v6141_v4 }
 0x284   : > { %v8481_v6 = vmax.f32 %v6780_v1, 0.0  ;;  %v8737_v7 = vmax.f32 %v7420_v2, 0.0 }
 0x285   : > { %v7970_v8 = vmax.f32 %v5502_v40, 0.0  ;;  %v8226_v9 = vmax.f32 %v6142_v5, 0.0 }
 0x286   : > { %v9505_v10 = vpack.c.bf16 %v8481_v6, %v8481_v6  ;;  %v9761_v11 = vpack.c.bf16 %v8737_v7, %v8737_v7 }
 0x287   : > { %v8994_v12 = vpack.c.bf16 %v7970_v8, %v7970_v8  ;;  %v9250_v13 = vpack.c.bf16 %v8226_v9, %v8226_v9  ;;  %v15816_v8 = vld [vmem:[%s18998_s2] ss:$0 sm:$0xff] }
 0x288   : > { %10530 = vst.msk [vmem:[%s14775_s10 + $0x8f0] sm:$0xf] %vm9957_vm3, %v9505_v10 }
 0x289   : > { %10786 = vst.msk [vmem:[%s14775_s10 + $0xcf0] sm:$0xf] %vm9957_vm3, %v9761_v11  ;;  %v6781_v14 = vpop.f32.mrf.mxu2  ;;  %v7421_v15 = vpop.f32.mrf.mxu3 }
 0x28a   : > { %10019 = vst.msk [vmem:[%s14775_s10 + $0xf4] sm:$0xf] %vm9957_vm3, %v8994_v12  ;;  %v6782_v18 = vadd.f32 %v15464_v60, %v6781_v14  ;;  %v7422_v19 = vadd.f32 %v15464_v60, %v7421_v15  ;;  %v5504_v20 = vpop.f32.mrf.mxu0  ;;  %v6144_v21 = vpop.f32.mrf.mxu1 }
 0x28b   : > { %10275 = vst.msk [vmem:[%s14775_s10 + $0x4f4] sm:$0xf] %vm9957_vm3, %v9250_v13  ;;  %v5505_v24 = vadd.f32 %v15464_v60, %v5504_v20  ;;  %v6145_v25 = vadd.f32 %v15464_v60, %v6144_v21 }
 0x28c   : > { %v8482_v26 = vmax.f32 %v6782_v18, 0.0  ;;  %v8738_v27 = vmax.f32 %v7422_v19, 0.0 }
 0x28d   : > { %v7971_v28 = vmax.f32 %v5505_v24, 0.0  ;;  %v8227_v29 = vmax.f32 %v6145_v25, 0.0  ;;  %13424 = vmatmul.msk.bf16.gmra.mxu0 %vm3796_vm2, %v13953_v16  ;;  %13552 = vmatmul.msk.bf16.gmra.mxu1 %vm3796_vm2, %v14081_v17  ;;  %v13955_v25 = vld [vmem:[%s14693_s5 + $0x148] sm:$0xff] }
 0x28e   : > { %v9506_v30 = vpack.c.bf16 %v8482_v26, %v8482_v26  ;;  %v9762_v31 = vpack.c.bf16 %v8738_v27, %v8738_v27  ;;  %13680 = vmatmul.msk.bf16.gmra.mxu2 %vm3796_vm2, %v14209_v22  ;;  %13808 = vmatmul.msk.bf16.gmra.mxu3 %vm3796_vm2, %v14337_v23  ;;  %v14083_v26 = vld [vmem:[%s14693_s5 + $0x548] sm:$0xff] }
 0x28f   : > { %v8995_v32 = vpack.c.bf16 %v7971_v28, %v7971_v28  ;;  %v9251_v33 = vpack.c.bf16 %v8227_v29, %v8227_v29 }
 0x290   : > { %10531 = vst.msk [vmem:[%s14775_s10 + $0x8f4] sm:$0xf] %vm9957_vm3, %v9506_v30 }
 0x291   : > { %10787 = vst.msk [vmem:[%s14775_s10 + $0xcf4] sm:$0xf] %vm9957_vm3, %v9762_v31  ;;  %v6784_v34 = vpop.f32.mrf.mxu2  ;;  %v7424_v35 = vpop.f32.mrf.mxu3  ;;  %v14211_v31 = vld [vmem:[%s14693_s5 + $0x948] sm:$0xff] }
 0x292   : > { %10020 = vst.msk [vmem:[%s14775_s10 + $0xf8] sm:$0xf] %vm9957_vm3, %v8995_v32  ;;  %v6785_v36 = vadd.f32 %v15464_v60, %v6784_v34  ;;  %v7425_v37 = vadd.f32 %v15464_v60, %v7424_v35  ;;  %v5506_v38 = vpop.f32.mrf.mxu0  ;;  %v6146_v39 = vpop.f32.mrf.mxu1  ;;  %v14339_v32 = vld [vmem:[%s14693_s5 + $0xd48] sm:$0xff] }
 0x293   : > { %10276 = vst.msk [vmem:[%s14775_s10 + $0x4f8] sm:$0xf] %vm9957_vm3, %v9251_v33  ;;  %v5507_v41 = vadd.f32 %v15464_v60, %v5506_v38  ;;  %v6147_v42 = vadd.f32 %v15464_v60, %v6146_v39 }
 0x294   : > { %v8483_v43 = vmax.f32 %v6785_v36, 0.0  ;;  %v8739_v44 = vmax.f32 %v7425_v37, 0.0 }
 0x295   : > { %v7972_v45 = vmax.f32 %v5507_v41, 0.0  ;;  %v8228_v46 = vmax.f32 %v6147_v42, 0.0 }
 0x296   : > { %v9507_v47 = vpack.c.bf16 %v8483_v43, %v8483_v43  ;;  %v9763_v48 = vpack.c.bf16 %v8739_v44, %v8739_v44 }
 0x297   : > { %v8996_v49 = vpack.c.bf16 %v7972_v45, %v7972_v45  ;;  %v9252_v50 = vpack.c.bf16 %v8228_v46, %v8228_v46 }
 0x298   : > { %10532 = vst.msk [vmem:[%s14775_s10 + $0x8f8] sm:$0xf] %vm9957_vm3, %v9507_v47 }
 0x299   : > { %10788 = vst.msk [vmem:[%s14775_s10 + $0xcf8] sm:$0xf] %vm9957_vm3, %v9763_v48  ;;  %v6786_v51 = vpop.f32.mrf.mxu2  ;;  %v7426_v52 = vpop.f32.mrf.mxu3 }
 0x29a   : > { %10021 = vst.msk [vmem:[%s14775_s10 + $0xfc] sm:$0xf] %vm9957_vm3, %v8996_v49  ;;  %v6787_v55 = vadd.f32 %v15464_v60, %v6786_v51  ;;  %v7427_v56 = vadd.f32 %v15464_v60, %v7426_v52  ;;  %v5509_v57 = vpop.f32.mrf.mxu0  ;;  %v6149_v58 = vpop.f32.mrf.mxu1 }
 0x29b   : > { %10277 = vst.msk [vmem:[%s14775_s10 + $0x4fc] sm:$0xf] %vm9957_vm3, %v9252_v50  ;;  %v5510_v62 = vadd.f32 %v15464_v60, %v5509_v57  ;;  %v6150_v63 = vadd.f32 %v15464_v60, %v6149_v58 }
 0x29c   : > { %v8484_v0 = vmax.f32 %v6787_v55, 0.0  ;;  %v8740_v1 = vmax.f32 %v7427_v56, 0.0 }
 0x29d   : > { %v7973_v2 = vmax.f32 %v5510_v62, 0.0  ;;  %v8229_v3 = vmax.f32 %v6150_v63, 0.0  ;;  %13425 = vmatmul.msk.bf16.gmra.mxu0 %vm3796_vm2, %v13954_v53  ;;  %13553 = vmatmul.msk.bf16.gmra.mxu1 %vm3796_vm2, %v14082_v54  ;;  %v13956_v63 = vld [vmem:[%s14693_s5 + $0x150] sm:$0xff] }
 0x29e   : > { %v9508_v4 = vpack.c.bf16 %v8484_v0, %v8484_v0  ;;  %v9764_v40 = vpack.c.bf16 %v8740_v1, %v8740_v1  ;;  %13681 = vmatmul.msk.bf16.gmra.mxu2 %vm3796_vm2, %v14210_v59  ;;  %13809 = vmatmul.msk.bf16.gmra.mxu3 %vm3796_vm2, %v14338_v61  ;;  %v14084_v0 = vld [vmem:[%s14693_s5 + $0x550] sm:$0xff] }
 0x29f   : > { %v8997_v5 = vpack.c.bf16 %v7973_v2, %v7973_v2  ;;  %v9253_v6 = vpack.c.bf16 %v8229_v3, %v8229_v3 }
 0x2a0   : > { %10533 = vst.msk [vmem:[%s14775_s10 + $0x8fc] sm:$0xf] %vm9957_vm3, %v9508_v4 }
 0x2a1   : > { %10789 = vst.msk [vmem:[%s14775_s10 + $0xcfc] sm:$0xf] %vm9957_vm3, %v9764_v40  ;;  %v6789_v60 = vpop.f32.mrf.mxu2  ;;  %v7429_v7 = vpop.f32.mrf.mxu3  ;;  %v14212_v40 = vld [vmem:[%s14693_s5 + $0x950] sm:$0xff] }
 0x2a2   : > { %10022 = vst.msk [vmem:[%s14775_s10 + $0x100] sm:$0xf] %vm9957_vm3, %v8997_v5  ;;  %v6790_v9 = vadd.f32 %v15816_v8, %v6789_v60  ;;  %v7430_v10 = vadd.f32 %v15816_v8, %v7429_v7  ;;  %v5511_v11 = vpop.f32.mrf.mxu0  ;;  %v6151_v12 = vpop.f32.mrf.mxu1  ;;  %v14340_v5 = vld [vmem:[%s14693_s5 + $0xd50] sm:$0xff] }
 0x2a3   : > { %10278 = vst.msk [vmem:[%s14775_s10 + $0x500] sm:$0xf] %vm9957_vm3, %v9253_v6  ;;  %v5512_v13 = vadd.f32 %v15816_v8, %v5511_v11  ;;  %v6152_v14 = vadd.f32 %v15816_v8, %v6151_v12 }
 0x2a4   : > { %v8485_v15 = vmax.f32 %v6790_v9, 0.0  ;;  %v8741_v16 = vmax.f32 %v7430_v10, 0.0 }
 0x2a5   : > { %v7974_v17 = vmax.f32 %v5512_v13, 0.0  ;;  %v8230_v18 = vmax.f32 %v6152_v14, 0.0 }
 0x2a6   : > { %v9509_v19 = vpack.c.bf16 %v8485_v15, %v8485_v15  ;;  %v9765_v20 = vpack.c.bf16 %v8741_v16, %v8741_v16 }
 0x2a7   : > { %v8998_v21 = vpack.c.bf16 %v7974_v17, %v7974_v17  ;;  %v9254_v22 = vpack.c.bf16 %v8230_v18, %v8230_v18 }
 0x2a8   : > { %10534 = vst.msk [vmem:[%s14775_s10 + $0x900] sm:$0xf] %vm9957_vm3, %v9509_v19 }
 0x2a9   : > { %10790 = vst.msk [vmem:[%s14775_s10 + $0xd00] sm:$0xf] %vm9957_vm3, %v9765_v20  ;;  %v6791_v23 = vpop.f32.mrf.mxu2  ;;  %v7431_v24 = vpop.f32.mrf.mxu3 }
 0x2aa   : > { %10023 = vst.msk [vmem:[%s14775_s10 + $0x104] sm:$0xf] %vm9957_vm3, %v8998_v21  ;;  %v6792_v27 = vadd.f32 %v15816_v8, %v6791_v23  ;;  %v7432_v28 = vadd.f32 %v15816_v8, %v7431_v24  ;;  %v5514_v29 = vpop.f32.mrf.mxu0  ;;  %v6154_v30 = vpop.f32.mrf.mxu1 }
 0x2ab   : > { %10279 = vst.msk [vmem:[%s14775_s10 + $0x504] sm:$0xf] %vm9957_vm3, %v9254_v22  ;;  %v5515_v33 = vadd.f32 %v15816_v8, %v5514_v29  ;;  %v6155_v34 = vadd.f32 %v15816_v8, %v6154_v30 }
 0x2ac   : > { %v8486_v35 = vmax.f32 %v6792_v27, 0.0  ;;  %v8742_v36 = vmax.f32 %v7432_v28, 0.0 }
 0x2ad   : > { %v7975_v37 = vmax.f32 %v5515_v33, 0.0  ;;  %v8231_v38 = vmax.f32 %v6155_v34, 0.0  ;;  %13426 = vmatmul.msk.bf16.gmra.mxu0 %vm3796_vm2, %v13955_v25  ;;  %13554 = vmatmul.msk.bf16.gmra.mxu1 %vm3796_vm2, %v14083_v26  ;;  %v13957_v34 = vld [vmem:[%s14693_s5 + $0x158] sm:$0xff] }
 0x2ae   : > { %v9510_v39 = vpack.c.bf16 %v8486_v35, %v8486_v35  ;;  %v9766_v41 = vpack.c.bf16 %v8742_v36, %v8742_v36  ;;  %13682 = vmatmul.msk.bf16.gmra.mxu2 %vm3796_vm2, %v14211_v31  ;;  %13810 = vmatmul.msk.bf16.gmra.mxu3 %vm3796_vm2, %v14339_v32  ;;  %v14085_v35 = vld [vmem:[%s14693_s5 + $0x558] sm:$0xff] }
 0x2af   : > { %v8999_v42 = vpack.c.bf16 %v7975_v37, %v7975_v37  ;;  %v9255_v43 = vpack.c.bf16 %v8231_v38, %v8231_v38 }
 0x2b0   : > { %10535 = vst.msk [vmem:[%s14775_s10 + $0x904] sm:$0xf] %vm9957_vm3, %v9510_v39 }
 0x2b1   : > { %10791 = vst.msk [vmem:[%s14775_s10 + $0xd04] sm:$0xf] %vm9957_vm3, %v9766_v41  ;;  %v6794_v44 = vpop.f32.mrf.mxu2  ;;  %v7434_v45 = vpop.f32.mrf.mxu3  ;;  %v14213_v41 = vld [vmem:[%s14693_s5 + $0x958] sm:$0xff] }
 0x2b2   : > { %10024 = vst.msk [vmem:[%s14775_s10 + $0x108] sm:$0xf] %vm9957_vm3, %v8999_v42  ;;  %v6795_v46 = vadd.f32 %v15816_v8, %v6794_v44  ;;  %v7435_v47 = vadd.f32 %v15816_v8, %v7434_v45  ;;  %v5516_v48 = vpop.f32.mrf.mxu0  ;;  %v6156_v49 = vpop.f32.mrf.mxu1  ;;  %v14341_v42 = vld [vmem:[%s14693_s5 + $0xd58] sm:$0xff] }
 0x2b3   : > { %10280 = vst.msk [vmem:[%s14775_s10 + $0x508] sm:$0xf] %vm9957_vm3, %v9255_v43  ;;  %v5517_v50 = vadd.f32 %v15816_v8, %v5516_v48  ;;  %v6157_v51 = vadd.f32 %v15816_v8, %v6156_v49 }
 0x2b4   : > { %v8487_v52 = vmax.f32 %v6795_v46, 0.0  ;;  %v8743_v53 = vmax.f32 %v7435_v47, 0.0 }
 0x2b5   : > { %v7976_v54 = vmax.f32 %v5517_v50, 0.0  ;;  %v8232_v55 = vmax.f32 %v6157_v51, 0.0 }
 0x2b6   : > { %v9511_v56 = vpack.c.bf16 %v8487_v52, %v8487_v52  ;;  %v9767_v57 = vpack.c.bf16 %v8743_v53, %v8743_v53 }
 0x2b7   : > { %v9000_v58 = vpack.c.bf16 %v7976_v54, %v7976_v54  ;;  %v9256_v59 = vpack.c.bf16 %v8232_v55, %v8232_v55 }
 0x2b8   : > { %10536 = vst.msk [vmem:[%s14775_s10 + $0x908] sm:$0xf] %vm9957_vm3, %v9511_v56 }
 0x2b9   : > { %10792 = vst.msk [vmem:[%s14775_s10 + $0xd08] sm:$0xf] %vm9957_vm3, %v9767_v57  ;;  %v6796_v61 = vpop.f32.mrf.mxu2  ;;  %v7436_v62 = vpop.f32.mrf.mxu3 }
 0x2ba   : > { %10025 = vst.msk [vmem:[%s14775_s10 + $0x10c] sm:$0xf] %vm9957_vm3, %v9000_v58  ;;  %v6797_v1 = vadd.f32 %v15816_v8, %v6796_v61  ;;  %v7437_v2 = vadd.f32 %v15816_v8, %v7436_v62  ;;  %v5519_v3 = vpop.f32.mrf.mxu0  ;;  %v6159_v4 = vpop.f32.mrf.mxu1 }
 0x2bb   : > { %10281 = vst.msk [vmem:[%s14775_s10 + $0x50c] sm:$0xf] %vm9957_vm3, %v9256_v59  ;;  %v5520_v6 = vadd.f32 %v15816_v8, %v5519_v3  ;;  %v6160_v60 = vadd.f32 %v15816_v8, %v6159_v4 }
 0x2bc   : > { %v8488_v7 = vmax.f32 %v6797_v1, 0.0  ;;  %v8744_v9 = vmax.f32 %v7437_v2, 0.0 }
 0x2bd   : > { %v7977_v10 = vmax.f32 %v5520_v6, 0.0  ;;  %v8233_v11 = vmax.f32 %v6160_v60, 0.0  ;;  %13427 = vmatmul.msk.bf16.gmra.mxu0 %vm3796_vm2, %v13956_v63  ;;  %13555 = vmatmul.msk.bf16.gmra.mxu1 %vm3796_vm2, %v14084_v0  ;;  %v13958_v60 = vld [vmem:[%s14693_s5 + $0x160] sm:$0xff] }
 0x2be   : > { %v9512_v12 = vpack.c.bf16 %v8488_v7, %v8488_v7  ;;  %v9768_v13 = vpack.c.bf16 %v8744_v9, %v8744_v9  ;;  %13683 = vmatmul.msk.bf16.gmra.mxu2 %vm3796_vm2, %v14212_v40  ;;  %13811 = vmatmul.msk.bf16.gmra.mxu3 %vm3796_vm2, %v14340_v5  ;;  %v14086_v7 = vld [vmem:[%s14693_s5 + $0x560] sm:$0xff] }
 0x2bf   : > { %v9001_v14 = vpack.c.bf16 %v7977_v10, %v7977_v10  ;;  %v9257_v15 = vpack.c.bf16 %v8233_v11, %v8233_v11 }
 0x2c0   : > { %10537 = vst.msk [vmem:[%s14775_s10 + $0x90c] sm:$0xf] %vm9957_vm3, %v9512_v12 }
 0x2c1   : > { %10793 = vst.msk [vmem:[%s14775_s10 + $0xd0c] sm:$0xf] %vm9957_vm3, %v9768_v13  ;;  %v6799_v16 = vpop.f32.mrf.mxu2  ;;  %v7439_v17 = vpop.f32.mrf.mxu3  ;;  %v14214_v13 = vld [vmem:[%s14693_s5 + $0x960] sm:$0xff] }
 0x2c2   : > { %10026 = vst.msk [vmem:[%s14775_s10 + $0x110] sm:$0xf] %vm9957_vm3, %v9001_v14  ;;  %v6800_v18 = vadd.f32 %v15816_v8, %v6799_v16  ;;  %v7440_v19 = vadd.f32 %v15816_v8, %v7439_v17  ;;  %v5521_v20 = vpop.f32.mrf.mxu0  ;;  %v6161_v21 = vpop.f32.mrf.mxu1  ;;  %v14342_v14 = vld [vmem:[%s14693_s5 + $0xd60] sm:$0xff] }
 0x2c3   : > { %10282 = vst.msk [vmem:[%s14775_s10 + $0x510] sm:$0xf] %vm9957_vm3, %v9257_v15  ;;  %v5522_v22 = vadd.f32 %v15816_v8, %v5521_v20  ;;  %v6162_v23 = vadd.f32 %v15816_v8, %v6161_v21 }
 0x2c4   : > { %v8489_v24 = vmax.f32 %v6800_v18, 0.0  ;;  %v8745_v25 = vmax.f32 %v7440_v19, 0.0 }
 0x2c5   : > { %v7978_v26 = vmax.f32 %v5522_v22, 0.0  ;;  %v8234_v27 = vmax.f32 %v6162_v23, 0.0 }
 0x2c6   : > { %v9513_v28 = vpack.c.bf16 %v8489_v24, %v8489_v24  ;;  %v9769_v29 = vpack.c.bf16 %v8745_v25, %v8745_v25 }
 0x2c7   : > { %v9002_v30 = vpack.c.bf16 %v7978_v26, %v7978_v26  ;;  %v9258_v31 = vpack.c.bf16 %v8234_v27, %v8234_v27 }
 0x2c8   : > { %10538 = vst.msk [vmem:[%s14775_s10 + $0x910] sm:$0xf] %vm9957_vm3, %v9513_v28 }
 0x2c9   : > { %10794 = vst.msk [vmem:[%s14775_s10 + $0xd10] sm:$0xf] %vm9957_vm3, %v9769_v29  ;;  %v6801_v32 = vpop.f32.mrf.mxu2  ;;  %v7441_v33 = vpop.f32.mrf.mxu3 }
 0x2ca   : > { %10027 = vst.msk [vmem:[%s14775_s10 + $0x114] sm:$0xf] %vm9957_vm3, %v9002_v30  ;;  %v6802_v36 = vadd.f32 %v15816_v8, %v6801_v32  ;;  %v7442_v37 = vadd.f32 %v15816_v8, %v7441_v33  ;;  %v5524_v38 = vpop.f32.mrf.mxu0  ;;  %v6164_v39 = vpop.f32.mrf.mxu1 }
 0x2cb   : > { %10283 = vst.msk [vmem:[%s14775_s10 + $0x514] sm:$0xf] %vm9957_vm3, %v9258_v31  ;;  %v5525_v43 = vadd.f32 %v15816_v8, %v5524_v38  ;;  %v6165_v44 = vadd.f32 %v15816_v8, %v6164_v39 }
 0x2cc   : > { %v8490_v45 = vmax.f32 %v6802_v36, 0.0  ;;  %v8746_v46 = vmax.f32 %v7442_v37, 0.0 }
 0x2cd   : > { %v7979_v47 = vmax.f32 %v5525_v43, 0.0  ;;  %v8235_v48 = vmax.f32 %v6165_v44, 0.0  ;;  %13428 = vmatmul.msk.bf16.gmra.mxu0 %vm3796_vm2, %v13957_v34  ;;  %13556 = vmatmul.msk.bf16.gmra.mxu1 %vm3796_vm2, %v14085_v35  ;;  %v13959_v44 = vld [vmem:[%s14693_s5 + $0x168] sm:$0xff] }
 0x2ce   : > { %v9514_v49 = vpack.c.bf16 %v8490_v45, %v8490_v45  ;;  %v9770_v50 = vpack.c.bf16 %v8746_v46, %v8746_v46  ;;  %13684 = vmatmul.msk.bf16.gmra.mxu2 %vm3796_vm2, %v14213_v41  ;;  %13812 = vmatmul.msk.bf16.gmra.mxu3 %vm3796_vm2, %v14341_v42  ;;  %v14087_v45 = vld [vmem:[%s14693_s5 + $0x568] sm:$0xff] }
 0x2cf   : > { %v9003_v51 = vpack.c.bf16 %v7979_v47, %v7979_v47  ;;  %v9259_v52 = vpack.c.bf16 %v8235_v48, %v8235_v48 }
 0x2d0   : > { %10539 = vst.msk [vmem:[%s14775_s10 + $0x914] sm:$0xf] %vm9957_vm3, %v9514_v49 }
 0x2d1   : > { %10795 = vst.msk [vmem:[%s14775_s10 + $0xd14] sm:$0xf] %vm9957_vm3, %v9770_v50  ;;  %v6804_v53 = vpop.f32.mrf.mxu2  ;;  %v7444_v54 = vpop.f32.mrf.mxu3  ;;  %v14215_v50 = vld [vmem:[%s14693_s5 + $0x968] sm:$0xff] }
 0x2d2   : > { %10028 = vst.msk [vmem:[%s14775_s10 + $0x118] sm:$0xf] %vm9957_vm3, %v9003_v51  ;;  %v6805_v55 = vadd.f32 %v15816_v8, %v6804_v53  ;;  %v7445_v56 = vadd.f32 %v15816_v8, %v7444_v54  ;;  %v5526_v57 = vpop.f32.mrf.mxu0  ;;  %v6166_v58 = vpop.f32.mrf.mxu1  ;;  %v14343_v51 = vld [vmem:[%s14693_s5 + $0xd68] sm:$0xff] }
 0x2d3   : > { %10284 = vst.msk [vmem:[%s14775_s10 + $0x518] sm:$0xf] %vm9957_vm3, %v9259_v52  ;;  %v5527_v59 = vadd.f32 %v15816_v8, %v5526_v57  ;;  %v6167_v61 = vadd.f32 %v15816_v8, %v6166_v58 }
 0x2d4   : > { %v8491_v62 = vmax.f32 %v6805_v55, 0.0  ;;  %v8747_v63 = vmax.f32 %v7445_v56, 0.0 }
 0x2d5   : > { %v7980_v0 = vmax.f32 %v5527_v59, 0.0  ;;  %v8236_v1 = vmax.f32 %v6167_v61, 0.0 }
 0x2d6   : > { %v9515_v2 = vpack.c.bf16 %v8491_v62, %v8491_v62  ;;  %v9771_v3 = vpack.c.bf16 %v8747_v63, %v8747_v63 }
 0x2d7   : > { %v9004_v4 = vpack.c.bf16 %v7980_v0, %v7980_v0  ;;  %v9260_v40 = vpack.c.bf16 %v8236_v1, %v8236_v1 }
 0x2d8   : > { %10540 = vst.msk [vmem:[%s14775_s10 + $0x918] sm:$0xf] %vm9957_vm3, %v9515_v2 }
 0x2d9   : > { %10796 = vst.msk [vmem:[%s14775_s10 + $0xd18] sm:$0xf] %vm9957_vm3, %v9771_v3  ;;  %v6806_v5 = vpop.f32.mrf.mxu2  ;;  %v7446_v6 = vpop.f32.mrf.mxu3 }
 0x2da   : > { %10029 = vst.msk [vmem:[%s14775_s10 + $0x11c] sm:$0xf] %vm9957_vm3, %v9004_v4  ;;  %v6807_v9 = vadd.f32 %v15816_v8, %v6806_v5  ;;  %v7447_v10 = vadd.f32 %v15816_v8, %v7446_v6  ;;  %v5529_v11 = vpop.f32.mrf.mxu0  ;;  %v6169_v12 = vpop.f32.mrf.mxu1 }
 0x2db   : > { %10285 = vst.msk [vmem:[%s14775_s10 + $0x51c] sm:$0xf] %vm9957_vm3, %v9260_v40  ;;  %v5530_v15 = vadd.f32 %v15816_v8, %v5529_v11  ;;  %v6170_v16 = vadd.f32 %v15816_v8, %v6169_v12 }
 0x2dc   : > { %v8492_v17 = vmax.f32 %v6807_v9, 0.0  ;;  %v8748_v18 = vmax.f32 %v7447_v10, 0.0 }
 0x2dd   : > { %v7981_v19 = vmax.f32 %v5530_v15, 0.0  ;;  %v8237_v20 = vmax.f32 %v6170_v16, 0.0  ;;  %13429 = vmatmul.msk.bf16.gmra.mxu0 %vm3796_vm2, %v13958_v60  ;;  %13557 = vmatmul.msk.bf16.gmra.mxu1 %vm3796_vm2, %v14086_v7  ;;  %v13960_v16 = vld [vmem:[%s14693_s5 + $0x170] sm:$0xff] }
 0x2de   : > { %v9516_v21 = vpack.c.bf16 %v8492_v17, %v8492_v17  ;;  %v9772_v22 = vpack.c.bf16 %v8748_v18, %v8748_v18  ;;  %13685 = vmatmul.msk.bf16.gmra.mxu2 %vm3796_vm2, %v14214_v13  ;;  %13813 = vmatmul.msk.bf16.gmra.mxu3 %vm3796_vm2, %v14342_v14  ;;  %v14088_v17 = vld [vmem:[%s14693_s5 + $0x570] sm:$0xff] }
 0x2df   : > { %v9005_v23 = vpack.c.bf16 %v7981_v19, %v7981_v19  ;;  %v9261_v24 = vpack.c.bf16 %v8237_v20, %v8237_v20 }
 0x2e0   : > { %10541 = vst.msk [vmem:[%s14775_s10 + $0x91c] sm:$0xf] %vm9957_vm3, %v9516_v21 }
 0x2e1   : > { %10797 = vst.msk [vmem:[%s14775_s10 + $0xd1c] sm:$0xf] %vm9957_vm3, %v9772_v22  ;;  %v6809_v25 = vpop.f32.mrf.mxu2  ;;  %v7449_v26 = vpop.f32.mrf.mxu3  ;;  %v14216_v22 = vld [vmem:[%s14693_s5 + $0x970] sm:$0xff] }
 0x2e2   : > { %10030 = vst.msk [vmem:[%s14775_s10 + $0x120] sm:$0xf] %vm9957_vm3, %v9005_v23  ;;  %v6810_v27 = vadd.f32 %v15816_v8, %v6809_v25  ;;  %v7450_v28 = vadd.f32 %v15816_v8, %v7449_v26  ;;  %v5531_v29 = vpop.f32.mrf.mxu0  ;;  %v6171_v30 = vpop.f32.mrf.mxu1  ;;  %v14344_v23 = vld [vmem:[%s14693_s5 + $0xd70] sm:$0xff] }
 0x2e3   : > { %10286 = vst.msk [vmem:[%s14775_s10 + $0x520] sm:$0xf] %vm9957_vm3, %v9261_v24  ;;  %v5532_v31 = vadd.f32 %v15816_v8, %v5531_v29  ;;  %v6172_v32 = vadd.f32 %v15816_v8, %v6171_v30 }
 0x2e4   : > { %v8493_v33 = vmax.f32 %v6810_v27, 0.0  ;;  %v8749_v34 = vmax.f32 %v7450_v28, 0.0 }
 0x2e5   : > { %v7982_v35 = vmax.f32 %v5532_v31, 0.0  ;;  %v8238_v36 = vmax.f32 %v6172_v32, 0.0 }
 0x2e6   : > { %v9517_v37 = vpack.c.bf16 %v8493_v33, %v8493_v33  ;;  %v9773_v38 = vpack.c.bf16 %v8749_v34, %v8749_v34 }
 0x2e7   : > { %v9006_v39 = vpack.c.bf16 %v7982_v35, %v7982_v35  ;;  %v9262_v41 = vpack.c.bf16 %v8238_v36, %v8238_v36 }
 0x2e8   : > { %10542 = vst.msk [vmem:[%s14775_s10 + $0x920] sm:$0xf] %vm9957_vm3, %v9517_v37 }
 0x2e9   : > { %10798 = vst.msk [vmem:[%s14775_s10 + $0xd20] sm:$0xf] %vm9957_vm3, %v9773_v38  ;;  %v6811_v42 = vpop.f32.mrf.mxu2  ;;  %v7451_v43 = vpop.f32.mrf.mxu3 }
 0x2ea   : > { %10031 = vst.msk [vmem:[%s14775_s10 + $0x124] sm:$0xf] %vm9957_vm3, %v9006_v39  ;;  %v6812_v46 = vadd.f32 %v15816_v8, %v6811_v42  ;;  %v7452_v47 = vadd.f32 %v15816_v8, %v7451_v43  ;;  %v5534_v48 = vpop.f32.mrf.mxu0  ;;  %v6174_v49 = vpop.f32.mrf.mxu1 }
 0x2eb   : > { %10287 = vst.msk [vmem:[%s14775_s10 + $0x524] sm:$0xf] %vm9957_vm3, %v9262_v41  ;;  %v5535_v52 = vadd.f32 %v15816_v8, %v5534_v48  ;;  %v6175_v53 = vadd.f32 %v15816_v8, %v6174_v49 }
 0x2ec   : > { %v8494_v54 = vmax.f32 %v6812_v46, 0.0  ;;  %v8750_v55 = vmax.f32 %v7452_v47, 0.0 }
 0x2ed   : > { %v7983_v56 = vmax.f32 %v5535_v52, 0.0  ;;  %v8239_v57 = vmax.f32 %v6175_v53, 0.0  ;;  %13430 = vmatmul.msk.bf16.gmra.mxu0 %vm3796_vm2, %v13959_v44  ;;  %13558 = vmatmul.msk.bf16.gmra.mxu1 %vm3796_vm2, %v14087_v45  ;;  %v13961_v53 = vld [vmem:[%s14693_s5 + $0x178] sm:$0xff] }
 0x2ee   : > { %v9518_v58 = vpack.c.bf16 %v8494_v54, %v8494_v54  ;;  %v9774_v59 = vpack.c.bf16 %v8750_v55, %v8750_v55  ;;  %13686 = vmatmul.msk.bf16.gmra.mxu2 %vm3796_vm2, %v14215_v50  ;;  %13814 = vmatmul.msk.bf16.gmra.mxu3 %vm3796_vm2, %v14343_v51  ;;  %v14089_v54 = vld [vmem:[%s14693_s5 + $0x578] sm:$0xff] }
 0x2ef   : > { %v9007_v61 = vpack.c.bf16 %v7983_v56, %v7983_v56  ;;  %v9263_v62 = vpack.c.bf16 %v8239_v57, %v8239_v57 }
 0x2f0   : > { %10543 = vst.msk [vmem:[%s14775_s10 + $0x924] sm:$0xf] %vm9957_vm3, %v9518_v58 }
 0x2f1   : > { %10799 = vst.msk [vmem:[%s14775_s10 + $0xd24] sm:$0xf] %vm9957_vm3, %v9774_v59  ;;  %v6814_v63 = vpop.f32.mrf.mxu2  ;;  %v7454_v0 = vpop.f32.mrf.mxu3  ;;  %v14217_v59 = vld [vmem:[%s14693_s5 + $0x978] sm:$0xff] }
 0x2f2   : > { %10032 = vst.msk [vmem:[%s14775_s10 + $0x128] sm:$0xf] %vm9957_vm3, %v9007_v61  ;;  %v6815_v1 = vadd.f32 %v15816_v8, %v6814_v63  ;;  %v7455_v2 = vadd.f32 %v15816_v8, %v7454_v0  ;;  %v5536_v3 = vpop.f32.mrf.mxu0  ;;  %v6176_v4 = vpop.f32.mrf.mxu1  ;;  %v14345_v61 = vld [vmem:[%s14693_s5 + $0xd78] sm:$0xff] }
 0x2f3   : > { %10288 = vst.msk [vmem:[%s14775_s10 + $0x528] sm:$0xf] %vm9957_vm3, %v9263_v62  ;;  %v5537_v40 = vadd.f32 %v15816_v8, %v5536_v3  ;;  %v6177_v5 = vadd.f32 %v15816_v8, %v6176_v4 }
 0x2f4   : > { %v8495_v6 = vmax.f32 %v6815_v1, 0.0  ;;  %v8751_v60 = vmax.f32 %v7455_v2, 0.0 }
 0x2f5   : > { %v7984_v7 = vmax.f32 %v5537_v40, 0.0  ;;  %v8240_v9 = vmax.f32 %v6177_v5, 0.0 }
 0x2f6   : > { %v9519_v10 = vpack.c.bf16 %v8495_v6, %v8495_v6  ;;  %v9775_v11 = vpack.c.bf16 %v8751_v60, %v8751_v60 }
 0x2f7   : > { %v9008_v12 = vpack.c.bf16 %v7984_v7, %v7984_v7  ;;  %v9264_v13 = vpack.c.bf16 %v8240_v9, %v8240_v9 }
 0x2f8   : > { %10544 = vst.msk [vmem:[%s14775_s10 + $0x928] sm:$0xf] %vm9957_vm3, %v9519_v10 }
 0x2f9   : > { %10800 = vst.msk [vmem:[%s14775_s10 + $0xd28] sm:$0xf] %vm9957_vm3, %v9775_v11  ;;  %v6816_v14 = vpop.f32.mrf.mxu2  ;;  %v7456_v15 = vpop.f32.mrf.mxu3 }
 0x2fa   : > { %10033 = vst.msk [vmem:[%s14775_s10 + $0x12c] sm:$0xf] %vm9957_vm3, %v9008_v12  ;;  %v6817_v18 = vadd.f32 %v15816_v8, %v6816_v14  ;;  %v7457_v19 = vadd.f32 %v15816_v8, %v7456_v15  ;;  %v5539_v20 = vpop.f32.mrf.mxu0  ;;  %v6179_v21 = vpop.f32.mrf.mxu1 }
 0x2fb   : > { %10289 = vst.msk [vmem:[%s14775_s10 + $0x52c] sm:$0xf] %vm9957_vm3, %v9264_v13  ;;  %v5540_v24 = vadd.f32 %v15816_v8, %v5539_v20  ;;  %v6180_v25 = vadd.f32 %v15816_v8, %v6179_v21 }
 0x2fc   : > { %v8496_v26 = vmax.f32 %v6817_v18, 0.0  ;;  %v8752_v27 = vmax.f32 %v7457_v19, 0.0 }
 0x2fd   : > { %v7985_v28 = vmax.f32 %v5540_v24, 0.0  ;;  %v8241_v29 = vmax.f32 %v6180_v25, 0.0  ;;  %13431 = vmatmul.msk.bf16.gmra.mxu0 %vm3796_vm2, %v13960_v16  ;;  %13559 = vmatmul.msk.bf16.gmra.mxu1 %vm3796_vm2, %v14088_v17  ;;  %v13962_v25 = vld [vmem:[%s14693_s5 + $0x180] sm:$0xff] }
 0x2fe   : > { %v9520_v30 = vpack.c.bf16 %v8496_v26, %v8496_v26  ;;  %v9776_v31 = vpack.c.bf16 %v8752_v27, %v8752_v27  ;;  %13687 = vmatmul.msk.bf16.gmra.mxu2 %vm3796_vm2, %v14216_v22  ;;  %13815 = vmatmul.msk.bf16.gmra.mxu3 %vm3796_vm2, %v14344_v23  ;;  %v14090_v26 = vld [vmem:[%s14693_s5 + $0x580] sm:$0xff] }
 0x2ff   : > { %v9009_v32 = vpack.c.bf16 %v7985_v28, %v7985_v28  ;;  %v9265_v33 = vpack.c.bf16 %v8241_v29, %v8241_v29 }
 0x300   : > { %10545 = vst.msk [vmem:[%s14775_s10 + $0x92c] sm:$0xf] %vm9957_vm3, %v9520_v30 }
 0x301   : > { %10801 = vst.msk [vmem:[%s14775_s10 + $0xd2c] sm:$0xf] %vm9957_vm3, %v9776_v31  ;;  %v6819_v34 = vpop.f32.mrf.mxu2  ;;  %v7459_v35 = vpop.f32.mrf.mxu3  ;;  %v14218_v31 = vld [vmem:[%s14693_s5 + $0x980] sm:$0xff] }
 0x302   : > { %10034 = vst.msk [vmem:[%s14775_s10 + $0x130] sm:$0xf] %vm9957_vm3, %v9009_v32  ;;  %v6820_v36 = vadd.f32 %v15816_v8, %v6819_v34  ;;  %v7460_v37 = vadd.f32 %v15816_v8, %v7459_v35  ;;  %v5541_v38 = vpop.f32.mrf.mxu0  ;;  %v6181_v39 = vpop.f32.mrf.mxu1  ;;  %v14346_v32 = vld [vmem:[%s14693_s5 + $0xd80] sm:$0xff] }
 0x303   : > { %10290 = vst.msk [vmem:[%s14775_s10 + $0x530] sm:$0xf] %vm9957_vm3, %v9265_v33  ;;  %v5542_v41 = vadd.f32 %v15816_v8, %v5541_v38  ;;  %v6182_v42 = vadd.f32 %v15816_v8, %v6181_v39 }
 0x304   : > { %v8497_v43 = vmax.f32 %v6820_v36, 0.0  ;;  %v8753_v44 = vmax.f32 %v7460_v37, 0.0 }
 0x305   : > { %v7986_v45 = vmax.f32 %v5542_v41, 0.0  ;;  %v8242_v46 = vmax.f32 %v6182_v42, 0.0 }
 0x306   : > { %v9521_v47 = vpack.c.bf16 %v8497_v43, %v8497_v43  ;;  %v9777_v48 = vpack.c.bf16 %v8753_v44, %v8753_v44 }
 0x307   : > { %v9010_v49 = vpack.c.bf16 %v7986_v45, %v7986_v45  ;;  %v9266_v50 = vpack.c.bf16 %v8242_v46, %v8242_v46 }
 0x308   : > { %10546 = vst.msk [vmem:[%s14775_s10 + $0x930] sm:$0xf] %vm9957_vm3, %v9521_v47 }
 0x309   : > { %10802 = vst.msk [vmem:[%s14775_s10 + $0xd30] sm:$0xf] %vm9957_vm3, %v9777_v48  ;;  %v6821_v51 = vpop.f32.mrf.mxu2  ;;  %v7461_v52 = vpop.f32.mrf.mxu3 }
 0x30a   : > { %10035 = vst.msk [vmem:[%s14775_s10 + $0x134] sm:$0xf] %vm9957_vm3, %v9010_v49  ;;  %v6822_v55 = vadd.f32 %v15816_v8, %v6821_v51  ;;  %v7462_v56 = vadd.f32 %v15816_v8, %v7461_v52  ;;  %v5544_v57 = vpop.f32.mrf.mxu0  ;;  %v6184_v58 = vpop.f32.mrf.mxu1 }
 0x30b   : > { %10291 = vst.msk [vmem:[%s14775_s10 + $0x534] sm:$0xf] %vm9957_vm3, %v9266_v50  ;;  %v5545_v62 = vadd.f32 %v15816_v8, %v5544_v57  ;;  %v6185_v63 = vadd.f32 %v15816_v8, %v6184_v58 }
 0x30c   : > { %v8498_v0 = vmax.f32 %v6822_v55, 0.0  ;;  %v8754_v1 = vmax.f32 %v7462_v56, 0.0 }
 0x30d   : > { %v7987_v2 = vmax.f32 %v5545_v62, 0.0  ;;  %v8243_v3 = vmax.f32 %v6185_v63, 0.0  ;;  %13432 = vmatmul.msk.bf16.gmra.mxu0 %vm3796_vm2, %v13961_v53  ;;  %13560 = vmatmul.msk.bf16.gmra.mxu1 %vm3796_vm2, %v14089_v54  ;;  %v13963_v63 = vld [vmem:[%s14693_s5 + $0x188] sm:$0xff] }
 0x30e   : > { %v9522_v4 = vpack.c.bf16 %v8498_v0, %v8498_v0  ;;  %v9778_v40 = vpack.c.bf16 %v8754_v1, %v8754_v1  ;;  %13688 = vmatmul.msk.bf16.gmra.mxu2 %vm3796_vm2, %v14217_v59  ;;  %13816 = vmatmul.msk.bf16.gmra.mxu3 %vm3796_vm2, %v14345_v61  ;;  %v14091_v0 = vld [vmem:[%s14693_s5 + $0x588] sm:$0xff] }
 0x30f   : > { %v9011_v5 = vpack.c.bf16 %v7987_v2, %v7987_v2  ;;  %v9267_v6 = vpack.c.bf16 %v8243_v3, %v8243_v3 }
 0x310   : > { %10547 = vst.msk [vmem:[%s14775_s10 + $0x934] sm:$0xf] %vm9957_vm3, %v9522_v4 }
 0x311   : > { %10803 = vst.msk [vmem:[%s14775_s10 + $0xd34] sm:$0xf] %vm9957_vm3, %v9778_v40  ;;  %v6824_v60 = vpop.f32.mrf.mxu2  ;;  %v7464_v7 = vpop.f32.mrf.mxu3  ;;  %v14219_v40 = vld [vmem:[%s14693_s5 + $0x988] sm:$0xff] }
 0x312   : > { %10036 = vst.msk [vmem:[%s14775_s10 + $0x138] sm:$0xf] %vm9957_vm3, %v9011_v5  ;;  %v6825_v9 = vadd.f32 %v15816_v8, %v6824_v60  ;;  %v7465_v10 = vadd.f32 %v15816_v8, %v7464_v7  ;;  %v5546_v11 = vpop.f32.mrf.mxu0  ;;  %v6186_v12 = vpop.f32.mrf.mxu1  ;;  %v14347_v5 = vld [vmem:[%s14693_s5 + $0xd88] sm:$0xff] }
 0x313   : > { %10292 = vst.msk [vmem:[%s14775_s10 + $0x538] sm:$0xf] %vm9957_vm3, %v9267_v6  ;;  %v5547_v13 = vadd.f32 %v15816_v8, %v5546_v11  ;;  %v6187_v14 = vadd.f32 %v15816_v8, %v6186_v12 }
 0x314   : > { %v8499_v15 = vmax.f32 %v6825_v9, 0.0  ;;  %v8755_v16 = vmax.f32 %v7465_v10, 0.0 }
 0x315   : > { %v7988_v17 = vmax.f32 %v5547_v13, 0.0  ;;  %v8244_v18 = vmax.f32 %v6187_v14, 0.0 }
 0x316   : > { %v9523_v19 = vpack.c.bf16 %v8499_v15, %v8499_v15  ;;  %v9779_v20 = vpack.c.bf16 %v8755_v16, %v8755_v16 }
 0x317   : > { %v9012_v21 = vpack.c.bf16 %v7988_v17, %v7988_v17  ;;  %v9268_v22 = vpack.c.bf16 %v8244_v18, %v8244_v18 }
 0x318   : > { %10548 = vst.msk [vmem:[%s14775_s10 + $0x938] sm:$0xf] %vm9957_vm3, %v9523_v19 }
 0x319   : > { %10804 = vst.msk [vmem:[%s14775_s10 + $0xd38] sm:$0xf] %vm9957_vm3, %v9779_v20  ;;  %v6826_v23 = vpop.f32.mrf.mxu2  ;;  %v7466_v24 = vpop.f32.mrf.mxu3 }
 0x31a   : > { %10037 = vst.msk [vmem:[%s14775_s10 + $0x13c] sm:$0xf] %vm9957_vm3, %v9012_v21  ;;  %v6827_v27 = vadd.f32 %v15816_v8, %v6826_v23  ;;  %v7467_v28 = vadd.f32 %v15816_v8, %v7466_v24  ;;  %v5549_v29 = vpop.f32.mrf.mxu0  ;;  %v6189_v30 = vpop.f32.mrf.mxu1 }
 0x31b   : > { %10293 = vst.msk [vmem:[%s14775_s10 + $0x53c] sm:$0xf] %vm9957_vm3, %v9268_v22  ;;  %v5550_v33 = vadd.f32 %v15816_v8, %v5549_v29  ;;  %v6190_v34 = vadd.f32 %v15816_v8, %v6189_v30 }
 0x31c   : > { %v8500_v35 = vmax.f32 %v6827_v27, 0.0  ;;  %v8756_v36 = vmax.f32 %v7467_v28, 0.0 }
 0x31d   : > { %v7989_v37 = vmax.f32 %v5550_v33, 0.0  ;;  %v8245_v38 = vmax.f32 %v6190_v34, 0.0  ;;  %13433 = vmatmul.msk.bf16.gmra.mxu0 %vm3796_vm2, %v13962_v25  ;;  %13561 = vmatmul.msk.bf16.gmra.mxu1 %vm3796_vm2, %v14090_v26  ;;  %v13964_v34 = vld [vmem:[%s14693_s5 + $0x190] sm:$0xff] }
 0x31e   : > { %v9524_v39 = vpack.c.bf16 %v8500_v35, %v8500_v35  ;;  %v9780_v41 = vpack.c.bf16 %v8756_v36, %v8756_v36  ;;  %13689 = vmatmul.msk.bf16.gmra.mxu2 %vm3796_vm2, %v14218_v31  ;;  %13817 = vmatmul.msk.bf16.gmra.mxu3 %vm3796_vm2, %v14346_v32  ;;  %v14092_v35 = vld [vmem:[%s14693_s5 + $0x590] sm:$0xff] }
 0x31f   : > { %v9013_v42 = vpack.c.bf16 %v7989_v37, %v7989_v37  ;;  %v9269_v43 = vpack.c.bf16 %v8245_v38, %v8245_v38 }
 0x320   : > { %10549 = vst.msk [vmem:[%s14775_s10 + $0x93c] sm:$0xf] %vm9957_vm3, %v9524_v39 }
 0x321   : > { %10805 = vst.msk [vmem:[%s14775_s10 + $0xd3c] sm:$0xf] %vm9957_vm3, %v9780_v41  ;;  %v6829_v44 = vpop.f32.mrf.mxu2  ;;  %v7469_v45 = vpop.f32.mrf.mxu3  ;;  %v14220_v41 = vld [vmem:[%s14693_s5 + $0x990] sm:$0xff] }
 0x322   : > { %10038 = vst.msk [vmem:[%s14775_s10 + $0x140] sm:$0xf] %vm9957_vm3, %v9013_v42  ;;  %v6830_v46 = vadd.f32 %v15816_v8, %v6829_v44  ;;  %v7470_v47 = vadd.f32 %v15816_v8, %v7469_v45  ;;  %v5551_v48 = vpop.f32.mrf.mxu0  ;;  %v6191_v49 = vpop.f32.mrf.mxu1  ;;  %v14348_v42 = vld [vmem:[%s14693_s5 + $0xd90] sm:$0xff] }
 0x323   : > { %10294 = vst.msk [vmem:[%s14775_s10 + $0x540] sm:$0xf] %vm9957_vm3, %v9269_v43  ;;  %v5552_v50 = vadd.f32 %v15816_v8, %v5551_v48  ;;  %v6192_v51 = vadd.f32 %v15816_v8, %v6191_v49 }
 0x324   : > { %v8501_v52 = vmax.f32 %v6830_v46, 0.0  ;;  %v8757_v53 = vmax.f32 %v7470_v47, 0.0 }
 0x325   : > { %v7990_v54 = vmax.f32 %v5552_v50, 0.0  ;;  %v8246_v55 = vmax.f32 %v6192_v51, 0.0 }
 0x326   : > { %v9525_v56 = vpack.c.bf16 %v8501_v52, %v8501_v52  ;;  %v9781_v57 = vpack.c.bf16 %v8757_v53, %v8757_v53 }
 0x327   : > { %v9014_v58 = vpack.c.bf16 %v7990_v54, %v7990_v54  ;;  %v9270_v59 = vpack.c.bf16 %v8246_v55, %v8246_v55 }
 0x328   : > { %10550 = vst.msk [vmem:[%s14775_s10 + $0x940] sm:$0xf] %vm9957_vm3, %v9525_v56 }
 0x329   : > { %10806 = vst.msk [vmem:[%s14775_s10 + $0xd40] sm:$0xf] %vm9957_vm3, %v9781_v57  ;;  %v6831_v61 = vpop.f32.mrf.mxu2  ;;  %v7471_v62 = vpop.f32.mrf.mxu3 }
 0x32a   : > { %10039 = vst.msk [vmem:[%s14775_s10 + $0x144] sm:$0xf] %vm9957_vm3, %v9014_v58  ;;  %v6832_v1 = vadd.f32 %v15816_v8, %v6831_v61  ;;  %v7472_v2 = vadd.f32 %v15816_v8, %v7471_v62  ;;  %v5554_v3 = vpop.f32.mrf.mxu0  ;;  %v6194_v4 = vpop.f32.mrf.mxu1 }
 0x32b   : > { %10295 = vst.msk [vmem:[%s14775_s10 + $0x544] sm:$0xf] %vm9957_vm3, %v9270_v59  ;;  %v5555_v6 = vadd.f32 %v15816_v8, %v5554_v3  ;;  %v6195_v60 = vadd.f32 %v15816_v8, %v6194_v4 }
 0x32c   : > { %v8502_v7 = vmax.f32 %v6832_v1, 0.0  ;;  %v8758_v9 = vmax.f32 %v7472_v2, 0.0 }
 0x32d   : > { %v7991_v10 = vmax.f32 %v5555_v6, 0.0  ;;  %v8247_v11 = vmax.f32 %v6195_v60, 0.0  ;;  %13434 = vmatmul.msk.bf16.gmra.mxu0 %vm3796_vm2, %v13963_v63  ;;  %13562 = vmatmul.msk.bf16.gmra.mxu1 %vm3796_vm2, %v14091_v0  ;;  %v13965_v60 = vld [vmem:[%s14693_s5 + $0x198] sm:$0xff] }
 0x32e   : > { %v9526_v12 = vpack.c.bf16 %v8502_v7, %v8502_v7  ;;  %v9782_v13 = vpack.c.bf16 %v8758_v9, %v8758_v9  ;;  %13690 = vmatmul.msk.bf16.gmra.mxu2 %vm3796_vm2, %v14219_v40  ;;  %13818 = vmatmul.msk.bf16.gmra.mxu3 %vm3796_vm2, %v14347_v5  ;;  %v14093_v7 = vld [vmem:[%s14693_s5 + $0x598] sm:$0xff] }
 0x32f   : > { %v9015_v14 = vpack.c.bf16 %v7991_v10, %v7991_v10  ;;  %v9271_v15 = vpack.c.bf16 %v8247_v11, %v8247_v11 }
 0x330   : > { %10551 = vst.msk [vmem:[%s14775_s10 + $0x944] sm:$0xf] %vm9957_vm3, %v9526_v12 }
 0x331   : > { %10807 = vst.msk [vmem:[%s14775_s10 + $0xd44] sm:$0xf] %vm9957_vm3, %v9782_v13  ;;  %v6834_v16 = vpop.f32.mrf.mxu2  ;;  %v7474_v17 = vpop.f32.mrf.mxu3  ;;  %v14221_v13 = vld [vmem:[%s14693_s5 + $0x998] sm:$0xff] }
 0x332   : > { %10040 = vst.msk [vmem:[%s14775_s10 + $0x148] sm:$0xf] %vm9957_vm3, %v9015_v14  ;;  %v6835_v18 = vadd.f32 %v15816_v8, %v6834_v16  ;;  %v7475_v19 = vadd.f32 %v15816_v8, %v7474_v17  ;;  %v5556_v20 = vpop.f32.mrf.mxu0  ;;  %v6196_v21 = vpop.f32.mrf.mxu1  ;;  %v14349_v14 = vld [vmem:[%s14693_s5 + $0xd98] sm:$0xff] }
 0x333   : > { %10296 = vst.msk [vmem:[%s14775_s10 + $0x548] sm:$0xf] %vm9957_vm3, %v9271_v15  ;;  %v5557_v22 = vadd.f32 %v15816_v8, %v5556_v20  ;;  %v6197_v23 = vadd.f32 %v15816_v8, %v6196_v21 }
 0x334   : > { %v8503_v24 = vmax.f32 %v6835_v18, 0.0  ;;  %v8759_v25 = vmax.f32 %v7475_v19, 0.0 }
 0x335   : > { %v7992_v26 = vmax.f32 %v5557_v22, 0.0  ;;  %v8248_v27 = vmax.f32 %v6197_v23, 0.0 }
 0x336   : > { %v9527_v28 = vpack.c.bf16 %v8503_v24, %v8503_v24  ;;  %v9783_v29 = vpack.c.bf16 %v8759_v25, %v8759_v25 }
 0x337   : > { %v9016_v30 = vpack.c.bf16 %v7992_v26, %v7992_v26  ;;  %v9272_v31 = vpack.c.bf16 %v8248_v27, %v8248_v27  ;;  %v16173_v26 = vld [vmem:[%s18998_s2] ss:$0 sm:$0xff] }
 0x338   : > { %10552 = vst.msk [vmem:[%s14775_s10 + $0x948] sm:$0xf] %vm9957_vm3, %v9527_v28 }
 0x339   : > { %10808 = vst.msk [vmem:[%s14775_s10 + $0xd48] sm:$0xf] %vm9957_vm3, %v9783_v29  ;;  %v6836_v32 = vpop.f32.mrf.mxu2  ;;  %v7476_v33 = vpop.f32.mrf.mxu3 }
 0x33a   : > { %10041 = vst.msk [vmem:[%s14775_s10 + $0x14c] sm:$0xf] %vm9957_vm3, %v9016_v30  ;;  %v6837_v36 = vadd.f32 %v15816_v8, %v6836_v32  ;;  %v7477_v37 = vadd.f32 %v15816_v8, %v7476_v33  ;;  %v5559_v38 = vpop.f32.mrf.mxu0  ;;  %v6199_v39 = vpop.f32.mrf.mxu1 }
 0x33b   : > { %10297 = vst.msk [vmem:[%s14775_s10 + $0x54c] sm:$0xf] %vm9957_vm3, %v9272_v31  ;;  %v5560_v43 = vadd.f32 %v15816_v8, %v5559_v38  ;;  %v6200_v44 = vadd.f32 %v15816_v8, %v6199_v39 }
 0x33c   : > { %v8504_v45 = vmax.f32 %v6837_v36, 0.0  ;;  %v8760_v46 = vmax.f32 %v7477_v37, 0.0 }
 0x33d   : > { %v7993_v47 = vmax.f32 %v5560_v43, 0.0  ;;  %v8249_v48 = vmax.f32 %v6200_v44, 0.0  ;;  %13435 = vmatmul.msk.bf16.gmra.mxu0 %vm3796_vm2, %v13964_v34  ;;  %13563 = vmatmul.msk.bf16.gmra.mxu1 %vm3796_vm2, %v14092_v35  ;;  %v13966_v44 = vld [vmem:[%s14693_s5 + $0x1a0] sm:$0xff] }
 0x33e   : > { %v9528_v49 = vpack.c.bf16 %v8504_v45, %v8504_v45  ;;  %v9784_v50 = vpack.c.bf16 %v8760_v46, %v8760_v46  ;;  %13691 = vmatmul.msk.bf16.gmra.mxu2 %vm3796_vm2, %v14220_v41  ;;  %13819 = vmatmul.msk.bf16.gmra.mxu3 %vm3796_vm2, %v14348_v42  ;;  %v14094_v45 = vld [vmem:[%s14693_s5 + $0x5a0] sm:$0xff] }
 0x33f   : > { %v9017_v51 = vpack.c.bf16 %v7993_v47, %v7993_v47  ;;  %v9273_v52 = vpack.c.bf16 %v8249_v48, %v8249_v48 }
 0x340   : > { %10553 = vst.msk [vmem:[%s14775_s10 + $0x94c] sm:$0xf] %vm9957_vm3, %v9528_v49 }
 0x341   : > { %10809 = vst.msk [vmem:[%s14775_s10 + $0xd4c] sm:$0xf] %vm9957_vm3, %v9784_v50  ;;  %v6839_v53 = vpop.f32.mrf.mxu2  ;;  %v7479_v54 = vpop.f32.mrf.mxu3  ;;  %v14222_v50 = vld [vmem:[%s14693_s5 + $0x9a0] sm:$0xff] }
 0x342   : > { %10042 = vst.msk [vmem:[%s14775_s10 + $0x150] sm:$0xf] %vm9957_vm3, %v9017_v51  ;;  %v6840_v55 = vadd.f32 %v15816_v8, %v6839_v53  ;;  %v7480_v56 = vadd.f32 %v15816_v8, %v7479_v54  ;;  %v5561_v57 = vpop.f32.mrf.mxu0  ;;  %v6201_v58 = vpop.f32.mrf.mxu1  ;;  %v14350_v51 = vld [vmem:[%s14693_s5 + $0xda0] sm:$0xff] }
 0x343   : > { %10298 = vst.msk [vmem:[%s14775_s10 + $0x550] sm:$0xf] %vm9957_vm3, %v9273_v52  ;;  %v5562_v59 = vadd.f32 %v15816_v8, %v5561_v57  ;;  %v6202_v61 = vadd.f32 %v15816_v8, %v6201_v58 }
 0x344   : > { %v8505_v62 = vmax.f32 %v6840_v55, 0.0  ;;  %v8761_v63 = vmax.f32 %v7480_v56, 0.0 }
 0x345   : > { %v7994_v0 = vmax.f32 %v5562_v59, 0.0  ;;  %v8250_v1 = vmax.f32 %v6202_v61, 0.0 }
 0x346   : > { %v9529_v2 = vpack.c.bf16 %v8505_v62, %v8505_v62  ;;  %v9785_v3 = vpack.c.bf16 %v8761_v63, %v8761_v63 }
 0x347   : > { %v9018_v4 = vpack.c.bf16 %v7994_v0, %v7994_v0  ;;  %v9274_v40 = vpack.c.bf16 %v8250_v1, %v8250_v1 }
 0x348   : > { %10554 = vst.msk [vmem:[%s14775_s10 + $0x950] sm:$0xf] %vm9957_vm3, %v9529_v2 }
 0x349   : > { %10810 = vst.msk [vmem:[%s14775_s10 + $0xd50] sm:$0xf] %vm9957_vm3, %v9785_v3  ;;  %v6841_v5 = vpop.f32.mrf.mxu2  ;;  %v7481_v6 = vpop.f32.mrf.mxu3 }
 0x34a   : > { %10043 = vst.msk [vmem:[%s14775_s10 + $0x154] sm:$0xf] %vm9957_vm3, %v9018_v4  ;;  %v6842_v9 = vadd.f32 %v15816_v8, %v6841_v5  ;;  %v7482_v10 = vadd.f32 %v15816_v8, %v7481_v6  ;;  %v5564_v11 = vpop.f32.mrf.mxu0  ;;  %v6204_v12 = vpop.f32.mrf.mxu1 }
 0x34b   : > { %10299 = vst.msk [vmem:[%s14775_s10 + $0x554] sm:$0xf] %vm9957_vm3, %v9274_v40  ;;  %v5565_v15 = vadd.f32 %v15816_v8, %v5564_v11  ;;  %v6205_v16 = vadd.f32 %v15816_v8, %v6204_v12 }
 0x34c   : > { %v8506_v17 = vmax.f32 %v6842_v9, 0.0  ;;  %v8762_v18 = vmax.f32 %v7482_v10, 0.0 }
 0x34d   : > { %v7995_v19 = vmax.f32 %v5565_v15, 0.0  ;;  %v8251_v20 = vmax.f32 %v6205_v16, 0.0  ;;  %13436 = vmatmul.msk.bf16.gmra.mxu0 %vm3796_vm2, %v13965_v60  ;;  %13564 = vmatmul.msk.bf16.gmra.mxu1 %vm3796_vm2, %v14093_v7  ;;  %v13967_v16 = vld [vmem:[%s14693_s5 + $0x1a8] sm:$0xff] }
 0x34e   : > { %v9530_v21 = vpack.c.bf16 %v8506_v17, %v8506_v17  ;;  %v9786_v22 = vpack.c.bf16 %v8762_v18, %v8762_v18  ;;  %13692 = vmatmul.msk.bf16.gmra.mxu2 %vm3796_vm2, %v14221_v13  ;;  %13820 = vmatmul.msk.bf16.gmra.mxu3 %vm3796_vm2, %v14349_v14  ;;  %v14095_v17 = vld [vmem:[%s14693_s5 + $0x5a8] sm:$0xff] }
 0x34f   : > { %v9019_v23 = vpack.c.bf16 %v7995_v19, %v7995_v19  ;;  %v9275_v24 = vpack.c.bf16 %v8251_v20, %v8251_v20 }
 0x350   : > { %10555 = vst.msk [vmem:[%s14775_s10 + $0x954] sm:$0xf] %vm9957_vm3, %v9530_v21 }
 0x351   : > { %10811 = vst.msk [vmem:[%s14775_s10 + $0xd54] sm:$0xf] %vm9957_vm3, %v9786_v22  ;;  %v6844_v8 = vpop.f32.mrf.mxu2  ;;  %v7484_v25 = vpop.f32.mrf.mxu3  ;;  %v14223_v22 = vld [vmem:[%s14693_s5 + $0x9a8] sm:$0xff] }
 0x352   : > { %10044 = vst.msk [vmem:[%s14775_s10 + $0x158] sm:$0xf] %vm9957_vm3, %v9019_v23  ;;  %v6845_v27 = vadd.f32 %v16173_v26, %v6844_v8  ;;  %v7485_v28 = vadd.f32 %v16173_v26, %v7484_v25  ;;  %v5566_v29 = vpop.f32.mrf.mxu0  ;;  %v6206_v30 = vpop.f32.mrf.mxu1  ;;  %v14351_v23 = vld [vmem:[%s14693_s5 + $0xda8] sm:$0xff] }
 0x353   : > { %10300 = vst.msk [vmem:[%s14775_s10 + $0x558] sm:$0xf] %vm9957_vm3, %v9275_v24  ;;  %v5567_v31 = vadd.f32 %v16173_v26, %v5566_v29  ;;  %v6207_v32 = vadd.f32 %v16173_v26, %v6206_v30 }
 0x354   : > { %v8507_v33 = vmax.f32 %v6845_v27, 0.0  ;;  %v8763_v34 = vmax.f32 %v7485_v28, 0.0 }
 0x355   : > { %v7996_v35 = vmax.f32 %v5567_v31, 0.0  ;;  %v8252_v36 = vmax.f32 %v6207_v32, 0.0 }
 0x356   : > { %v9531_v37 = vpack.c.bf16 %v8507_v33, %v8507_v33  ;;  %v9787_v38 = vpack.c.bf16 %v8763_v34, %v8763_v34 }
 0x357   : > { %v9020_v39 = vpack.c.bf16 %v7996_v35, %v7996_v35  ;;  %v9276_v41 = vpack.c.bf16 %v8252_v36, %v8252_v36 }
 0x358   : > { %10556 = vst.msk [vmem:[%s14775_s10 + $0x958] sm:$0xf] %vm9957_vm3, %v9531_v37 }
 0x359   : > { %10812 = vst.msk [vmem:[%s14775_s10 + $0xd58] sm:$0xf] %vm9957_vm3, %v9787_v38  ;;  %v6846_v42 = vpop.f32.mrf.mxu2  ;;  %v7486_v43 = vpop.f32.mrf.mxu3 }
 0x35a   : > { %10045 = vst.msk [vmem:[%s14775_s10 + $0x15c] sm:$0xf] %vm9957_vm3, %v9020_v39  ;;  %v6847_v46 = vadd.f32 %v16173_v26, %v6846_v42  ;;  %v7487_v47 = vadd.f32 %v16173_v26, %v7486_v43  ;;  %v5569_v48 = vpop.f32.mrf.mxu0  ;;  %v6209_v49 = vpop.f32.mrf.mxu1 }
 0x35b   : > { %10301 = vst.msk [vmem:[%s14775_s10 + $0x55c] sm:$0xf] %vm9957_vm3, %v9276_v41  ;;  %v5570_v52 = vadd.f32 %v16173_v26, %v5569_v48  ;;  %v6210_v53 = vadd.f32 %v16173_v26, %v6209_v49 }
 0x35c   : > { %v8508_v54 = vmax.f32 %v6847_v46, 0.0  ;;  %v8764_v55 = vmax.f32 %v7487_v47, 0.0 }
 0x35d   : > { %v7997_v56 = vmax.f32 %v5570_v52, 0.0  ;;  %v8253_v57 = vmax.f32 %v6210_v53, 0.0  ;;  %13437 = vmatmul.msk.bf16.gmra.mxu0 %vm3796_vm2, %v13966_v44  ;;  %13565 = vmatmul.msk.bf16.gmra.mxu1 %vm3796_vm2, %v14094_v45  ;;  %v13968_v53 = vld [vmem:[%s14693_s5 + $0x1b0] sm:$0xff] }
 0x35e   : > { %v9532_v58 = vpack.c.bf16 %v8508_v54, %v8508_v54  ;;  %v9788_v59 = vpack.c.bf16 %v8764_v55, %v8764_v55  ;;  %13693 = vmatmul.msk.bf16.gmra.mxu2 %vm3796_vm2, %v14222_v50  ;;  %13821 = vmatmul.msk.bf16.gmra.mxu3 %vm3796_vm2, %v14350_v51  ;;  %v14096_v54 = vld [vmem:[%s14693_s5 + $0x5b0] sm:$0xff] }
 0x35f   : > { %v9021_v61 = vpack.c.bf16 %v7997_v56, %v7997_v56  ;;  %v9277_v62 = vpack.c.bf16 %v8253_v57, %v8253_v57 }
 0x360   : > { %10557 = vst.msk [vmem:[%s14775_s10 + $0x95c] sm:$0xf] %vm9957_vm3, %v9532_v58 }
 0x361   : > { %10813 = vst.msk [vmem:[%s14775_s10 + $0xd5c] sm:$0xf] %vm9957_vm3, %v9788_v59  ;;  %v6849_v63 = vpop.f32.mrf.mxu2  ;;  %v7489_v0 = vpop.f32.mrf.mxu3  ;;  %v14224_v59 = vld [vmem:[%s14693_s5 + $0x9b0] sm:$0xff] }
 0x362   : > { %10046 = vst.msk [vmem:[%s14775_s10 + $0x160] sm:$0xf] %vm9957_vm3, %v9021_v61  ;;  %v6850_v1 = vadd.f32 %v16173_v26, %v6849_v63  ;;  %v7490_v2 = vadd.f32 %v16173_v26, %v7489_v0  ;;  %v5571_v3 = vpop.f32.mrf.mxu0  ;;  %v6211_v4 = vpop.f32.mrf.mxu1  ;;  %v14352_v61 = vld [vmem:[%s14693_s5 + $0xdb0] sm:$0xff] }
 0x363   : > { %10302 = vst.msk [vmem:[%s14775_s10 + $0x560] sm:$0xf] %vm9957_vm3, %v9277_v62  ;;  %v5572_v40 = vadd.f32 %v16173_v26, %v5571_v3  ;;  %v6212_v5 = vadd.f32 %v16173_v26, %v6211_v4 }
 0x364   : > { %v8509_v6 = vmax.f32 %v6850_v1, 0.0  ;;  %v8765_v60 = vmax.f32 %v7490_v2, 0.0 }
 0x365   : > { %v7998_v7 = vmax.f32 %v5572_v40, 0.0  ;;  %v8254_v9 = vmax.f32 %v6212_v5, 0.0 }
 0x366   : > { %v9533_v10 = vpack.c.bf16 %v8509_v6, %v8509_v6  ;;  %v9789_v11 = vpack.c.bf16 %v8765_v60, %v8765_v60 }
 0x367   : > { %v9022_v12 = vpack.c.bf16 %v7998_v7, %v7998_v7  ;;  %v9278_v13 = vpack.c.bf16 %v8254_v9, %v8254_v9 }
 0x368   : > { %10558 = vst.msk [vmem:[%s14775_s10 + $0x960] sm:$0xf] %vm9957_vm3, %v9533_v10 }
 0x369   : > { %10814 = vst.msk [vmem:[%s14775_s10 + $0xd60] sm:$0xf] %vm9957_vm3, %v9789_v11  ;;  %v6851_v14 = vpop.f32.mrf.mxu2  ;;  %v7491_v15 = vpop.f32.mrf.mxu3 }
 0x36a   : > { %10047 = vst.msk [vmem:[%s14775_s10 + $0x164] sm:$0xf] %vm9957_vm3, %v9022_v12  ;;  %v6852_v18 = vadd.f32 %v16173_v26, %v6851_v14  ;;  %v7492_v19 = vadd.f32 %v16173_v26, %v7491_v15  ;;  %v5574_v20 = vpop.f32.mrf.mxu0  ;;  %v6214_v21 = vpop.f32.mrf.mxu1 }
 0x36b   : > { %10303 = vst.msk [vmem:[%s14775_s10 + $0x564] sm:$0xf] %vm9957_vm3, %v9278_v13  ;;  %v5575_v24 = vadd.f32 %v16173_v26, %v5574_v20  ;;  %v6215_v8 = vadd.f32 %v16173_v26, %v6214_v21 }
 0x36c   : > { %v8510_v25 = vmax.f32 %v6852_v18, 0.0  ;;  %v8766_v27 = vmax.f32 %v7492_v19, 0.0 }
 0x36d   : > { %v7999_v28 = vmax.f32 %v5575_v24, 0.0  ;;  %v8255_v29 = vmax.f32 %v6215_v8, 0.0  ;;  %13438 = vmatmul.msk.bf16.gmra.mxu0 %vm3796_vm2, %v13967_v16  ;;  %13566 = vmatmul.msk.bf16.gmra.mxu1 %vm3796_vm2, %v14095_v17  ;;  %v13969_v8 = vld [vmem:[%s14693_s5 + $0x1b8] sm:$0xff] }
 0x36e   : > { %v9534_v30 = vpack.c.bf16 %v8510_v25, %v8510_v25  ;;  %v9790_v31 = vpack.c.bf16 %v8766_v27, %v8766_v27  ;;  %13694 = vmatmul.msk.bf16.gmra.mxu2 %vm3796_vm2, %v14223_v22  ;;  %13822 = vmatmul.msk.bf16.gmra.mxu3 %vm3796_vm2, %v14351_v23  ;;  %v14097_v25 = vld [vmem:[%s14693_s5 + $0x5b8] sm:$0xff] }
 0x36f   : > { %v9023_v32 = vpack.c.bf16 %v7999_v28, %v7999_v28  ;;  %v9279_v33 = vpack.c.bf16 %v8255_v29, %v8255_v29 }
 0x370   : > { %10559 = vst.msk [vmem:[%s14775_s10 + $0x964] sm:$0xf] %vm9957_vm3, %v9534_v30 }
 0x371   : > { %10815 = vst.msk [vmem:[%s14775_s10 + $0xd64] sm:$0xf] %vm9957_vm3, %v9790_v31  ;;  %v6854_v34 = vpop.f32.mrf.mxu2  ;;  %v7494_v35 = vpop.f32.mrf.mxu3  ;;  %v14225_v31 = vld [vmem:[%s14693_s5 + $0x9b8] sm:$0xff] }
 0x372   : > { %10048 = vst.msk [vmem:[%s14775_s10 + $0x168] sm:$0xf] %vm9957_vm3, %v9023_v32  ;;  %v6855_v36 = vadd.f32 %v16173_v26, %v6854_v34  ;;  %v7495_v37 = vadd.f32 %v16173_v26, %v7494_v35  ;;  %v5576_v38 = vpop.f32.mrf.mxu0  ;;  %v6216_v39 = vpop.f32.mrf.mxu1  ;;  %v14353_v32 = vld [vmem:[%s14693_s5 + $0xdb8] sm:$0xff] }
 0x373   : > { %10304 = vst.msk [vmem:[%s14775_s10 + $0x568] sm:$0xf] %vm9957_vm3, %v9279_v33  ;;  %v5577_v41 = vadd.f32 %v16173_v26, %v5576_v38  ;;  %v6217_v42 = vadd.f32 %v16173_v26, %v6216_v39 }
 0x374   : > { %v8511_v43 = vmax.f32 %v6855_v36, 0.0  ;;  %v8767_v44 = vmax.f32 %v7495_v37, 0.0 }
 0x375   : > { %v8000_v45 = vmax.f32 %v5577_v41, 0.0  ;;  %v8256_v46 = vmax.f32 %v6217_v42, 0.0 }
 0x376   : > { %v9535_v47 = vpack.c.bf16 %v8511_v43, %v8511_v43  ;;  %v9791_v48 = vpack.c.bf16 %v8767_v44, %v8767_v44 }
 0x377   : > { %v9024_v49 = vpack.c.bf16 %v8000_v45, %v8000_v45  ;;  %v9280_v50 = vpack.c.bf16 %v8256_v46, %v8256_v46 }
 0x378   : > { %10560 = vst.msk [vmem:[%s14775_s10 + $0x968] sm:$0xf] %vm9957_vm3, %v9535_v47 }
 0x379   : > { %10816 = vst.msk [vmem:[%s14775_s10 + $0xd68] sm:$0xf] %vm9957_vm3, %v9791_v48  ;;  %v6856_v51 = vpop.f32.mrf.mxu2  ;;  %v7496_v52 = vpop.f32.mrf.mxu3 }
 0x37a   : > { %10049 = vst.msk [vmem:[%s14775_s10 + $0x16c] sm:$0xf] %vm9957_vm3, %v9024_v49  ;;  %v6857_v55 = vadd.f32 %v16173_v26, %v6856_v51  ;;  %v7497_v56 = vadd.f32 %v16173_v26, %v7496_v52  ;;  %v5579_v57 = vpop.f32.mrf.mxu0  ;;  %v6219_v58 = vpop.f32.mrf.mxu1 }
 0x37b   : > { %10305 = vst.msk [vmem:[%s14775_s10 + $0x56c] sm:$0xf] %vm9957_vm3, %v9280_v50  ;;  %v5580_v62 = vadd.f32 %v16173_v26, %v5579_v57  ;;  %v6220_v63 = vadd.f32 %v16173_v26, %v6219_v58 }
 0x37c   : > { %v8512_v0 = vmax.f32 %v6857_v55, 0.0  ;;  %v8768_v1 = vmax.f32 %v7497_v56, 0.0 }
 0x37d   : > { %v8001_v2 = vmax.f32 %v5580_v62, 0.0  ;;  %v8257_v3 = vmax.f32 %v6220_v63, 0.0  ;;  %13439 = vmatmul.msk.bf16.gmra.mxu0 %vm3796_vm2, %v13968_v53  ;;  %13567 = vmatmul.msk.bf16.gmra.mxu1 %vm3796_vm2, %v14096_v54  ;;  %v13970_v63 = vld [vmem:[%s14693_s5 + $0x1c0] sm:$0xff] }
 0x37e   : > { %v9536_v4 = vpack.c.bf16 %v8512_v0, %v8512_v0  ;;  %v9792_v40 = vpack.c.bf16 %v8768_v1, %v8768_v1  ;;  %13695 = vmatmul.msk.bf16.gmra.mxu2 %vm3796_vm2, %v14224_v59  ;;  %13823 = vmatmul.msk.bf16.gmra.mxu3 %vm3796_vm2, %v14352_v61  ;;  %v14098_v0 = vld [vmem:[%s14693_s5 + $0x5c0] sm:$0xff] }
 0x37f   : > { %v9025_v5 = vpack.c.bf16 %v8001_v2, %v8001_v2  ;;  %v9281_v6 = vpack.c.bf16 %v8257_v3, %v8257_v3 }
 0x380   : > { %10561 = vst.msk [vmem:[%s14775_s10 + $0x96c] sm:$0xf] %vm9957_vm3, %v9536_v4 }
 0x381   : > { %10817 = vst.msk [vmem:[%s14775_s10 + $0xd6c] sm:$0xf] %vm9957_vm3, %v9792_v40  ;;  %v6859_v60 = vpop.f32.mrf.mxu2  ;;  %v7499_v7 = vpop.f32.mrf.mxu3  ;;  %v14226_v40 = vld [vmem:[%s14693_s5 + $0x9c0] sm:$0xff] }
 0x382   : > { %10050 = vst.msk [vmem:[%s14775_s10 + $0x170] sm:$0xf] %vm9957_vm3, %v9025_v5  ;;  %v6860_v9 = vadd.f32 %v16173_v26, %v6859_v60  ;;  %v7500_v10 = vadd.f32 %v16173_v26, %v7499_v7  ;;  %v5581_v11 = vpop.f32.mrf.mxu0  ;;  %v6221_v12 = vpop.f32.mrf.mxu1  ;;  %v14354_v5 = vld [vmem:[%s14693_s5 + $0xdc0] sm:$0xff] }
 0x383   : > { %10306 = vst.msk [vmem:[%s14775_s10 + $0x570] sm:$0xf] %vm9957_vm3, %v9281_v6  ;;  %v5582_v13 = vadd.f32 %v16173_v26, %v5581_v11  ;;  %v6222_v14 = vadd.f32 %v16173_v26, %v6221_v12 }
 0x384   : > { %v8513_v15 = vmax.f32 %v6860_v9, 0.0  ;;  %v8769_v16 = vmax.f32 %v7500_v10, 0.0 }
 0x385   : > { %v8002_v17 = vmax.f32 %v5582_v13, 0.0  ;;  %v8258_v18 = vmax.f32 %v6222_v14, 0.0 }
 0x386   : > { %v9537_v19 = vpack.c.bf16 %v8513_v15, %v8513_v15  ;;  %v9793_v20 = vpack.c.bf16 %v8769_v16, %v8769_v16 }
 0x387   : > { %v9026_v21 = vpack.c.bf16 %v8002_v17, %v8002_v17  ;;  %v9282_v22 = vpack.c.bf16 %v8258_v18, %v8258_v18 }
 0x388   : > { %10562 = vst.msk [vmem:[%s14775_s10 + $0x970] sm:$0xf] %vm9957_vm3, %v9537_v19 }
 0x389   : > { %10818 = vst.msk [vmem:[%s14775_s10 + $0xd70] sm:$0xf] %vm9957_vm3, %v9793_v20  ;;  %v6861_v23 = vpop.f32.mrf.mxu2  ;;  %v7501_v24 = vpop.f32.mrf.mxu3 }
 0x38a   : > { %10051 = vst.msk [vmem:[%s14775_s10 + $0x174] sm:$0xf] %vm9957_vm3, %v9026_v21  ;;  %v6862_v27 = vadd.f32 %v16173_v26, %v6861_v23  ;;  %v7502_v28 = vadd.f32 %v16173_v26, %v7501_v24  ;;  %v5584_v29 = vpop.f32.mrf.mxu0  ;;  %v6224_v30 = vpop.f32.mrf.mxu1 }
 0x38b   : > { %10307 = vst.msk [vmem:[%s14775_s10 + $0x574] sm:$0xf] %vm9957_vm3, %v9282_v22  ;;  %v5585_v33 = vadd.f32 %v16173_v26, %v5584_v29  ;;  %v6225_v34 = vadd.f32 %v16173_v26, %v6224_v30 }
 0x38c   : > { %v8514_v35 = vmax.f32 %v6862_v27, 0.0  ;;  %v8770_v36 = vmax.f32 %v7502_v28, 0.0 }
 0x38d   : > { %v8003_v37 = vmax.f32 %v5585_v33, 0.0  ;;  %v8259_v38 = vmax.f32 %v6225_v34, 0.0  ;;  %13440 = vmatmul.msk.bf16.gmra.mxu0 %vm3796_vm2, %v13969_v8  ;;  %13568 = vmatmul.msk.bf16.gmra.mxu1 %vm3796_vm2, %v14097_v25  ;;  %v13971_v34 = vld [vmem:[%s14693_s5 + $0x1c8] sm:$0xff] }
 0x38e   : > { %v9538_v39 = vpack.c.bf16 %v8514_v35, %v8514_v35  ;;  %v9794_v41 = vpack.c.bf16 %v8770_v36, %v8770_v36  ;;  %13696 = vmatmul.msk.bf16.gmra.mxu2 %vm3796_vm2, %v14225_v31  ;;  %13824 = vmatmul.msk.bf16.gmra.mxu3 %vm3796_vm2, %v14353_v32  ;;  %v14099_v35 = vld [vmem:[%s14693_s5 + $0x5c8] sm:$0xff] }
 0x38f   : > { %v9027_v42 = vpack.c.bf16 %v8003_v37, %v8003_v37  ;;  %v9283_v43 = vpack.c.bf16 %v8259_v38, %v8259_v38 }
 0x390   : > { %10563 = vst.msk [vmem:[%s14775_s10 + $0x974] sm:$0xf] %vm9957_vm3, %v9538_v39 }
 0x391   : > { %10819 = vst.msk [vmem:[%s14775_s10 + $0xd74] sm:$0xf] %vm9957_vm3, %v9794_v41  ;;  %v6864_v44 = vpop.f32.mrf.mxu2  ;;  %v7504_v45 = vpop.f32.mrf.mxu3  ;;  %v14227_v41 = vld [vmem:[%s14693_s5 + $0x9c8] sm:$0xff] }
 0x392   : > { %10052 = vst.msk [vmem:[%s14775_s10 + $0x178] sm:$0xf] %vm9957_vm3, %v9027_v42  ;;  %v6865_v46 = vadd.f32 %v16173_v26, %v6864_v44  ;;  %v7505_v47 = vadd.f32 %v16173_v26, %v7504_v45  ;;  %v5586_v48 = vpop.f32.mrf.mxu0  ;;  %v6226_v49 = vpop.f32.mrf.mxu1  ;;  %v14355_v42 = vld [vmem:[%s14693_s5 + $0xdc8] sm:$0xff] }
 0x393   : > { %10308 = vst.msk [vmem:[%s14775_s10 + $0x578] sm:$0xf] %vm9957_vm3, %v9283_v43  ;;  %v5587_v50 = vadd.f32 %v16173_v26, %v5586_v48  ;;  %v6227_v51 = vadd.f32 %v16173_v26, %v6226_v49 }
 0x394   : > { %v8515_v52 = vmax.f32 %v6865_v46, 0.0  ;;  %v8771_v53 = vmax.f32 %v7505_v47, 0.0 }
 0x395   : > { %v8004_v54 = vmax.f32 %v5587_v50, 0.0  ;;  %v8260_v55 = vmax.f32 %v6227_v51, 0.0 }
 0x396   : > { %v9539_v56 = vpack.c.bf16 %v8515_v52, %v8515_v52  ;;  %v9795_v57 = vpack.c.bf16 %v8771_v53, %v8771_v53 }
 0x397   : > { %v9028_v58 = vpack.c.bf16 %v8004_v54, %v8004_v54  ;;  %v9284_v59 = vpack.c.bf16 %v8260_v55, %v8260_v55 }
 0x398   : > { %10564 = vst.msk [vmem:[%s14775_s10 + $0x978] sm:$0xf] %vm9957_vm3, %v9539_v56 }
 0x399   : > { %10820 = vst.msk [vmem:[%s14775_s10 + $0xd78] sm:$0xf] %vm9957_vm3, %v9795_v57  ;;  %v6866_v61 = vpop.f32.mrf.mxu2  ;;  %v7506_v62 = vpop.f32.mrf.mxu3 }
 0x39a   : > { %10053 = vst.msk [vmem:[%s14775_s10 + $0x17c] sm:$0xf] %vm9957_vm3, %v9028_v58  ;;  %v6867_v1 = vadd.f32 %v16173_v26, %v6866_v61  ;;  %v7507_v2 = vadd.f32 %v16173_v26, %v7506_v62  ;;  %v5589_v3 = vpop.f32.mrf.mxu0  ;;  %v6229_v4 = vpop.f32.mrf.mxu1 }
 0x39b   : > { %10309 = vst.msk [vmem:[%s14775_s10 + $0x57c] sm:$0xf] %vm9957_vm3, %v9284_v59  ;;  %v5590_v6 = vadd.f32 %v16173_v26, %v5589_v3  ;;  %v6230_v60 = vadd.f32 %v16173_v26, %v6229_v4 }
 0x39c   : > { %v8516_v7 = vmax.f32 %v6867_v1, 0.0  ;;  %v8772_v9 = vmax.f32 %v7507_v2, 0.0 }
 0x39d   : > { %v8005_v10 = vmax.f32 %v5590_v6, 0.0  ;;  %v8261_v11 = vmax.f32 %v6230_v60, 0.0  ;;  %13441 = vmatmul.msk.bf16.gmra.mxu0 %vm3796_vm2, %v13970_v63  ;;  %13569 = vmatmul.msk.bf16.gmra.mxu1 %vm3796_vm2, %v14098_v0  ;;  %v13972_v60 = vld [vmem:[%s14693_s5 + $0x1d0] sm:$0xff] }
 0x39e   : > { %v9540_v12 = vpack.c.bf16 %v8516_v7, %v8516_v7  ;;  %v9796_v13 = vpack.c.bf16 %v8772_v9, %v8772_v9  ;;  %13697 = vmatmul.msk.bf16.gmra.mxu2 %vm3796_vm2, %v14226_v40  ;;  %13825 = vmatmul.msk.bf16.gmra.mxu3 %vm3796_vm2, %v14354_v5  ;;  %v14100_v7 = vld [vmem:[%s14693_s5 + $0x5d0] sm:$0xff] }
 0x39f   : > { %v9029_v14 = vpack.c.bf16 %v8005_v10, %v8005_v10  ;;  %v9285_v15 = vpack.c.bf16 %v8261_v11, %v8261_v11 }
 0x3a0   : > { %10565 = vst.msk [vmem:[%s14775_s10 + $0x97c] sm:$0xf] %vm9957_vm3, %v9540_v12 }
 0x3a1   : > { %10821 = vst.msk [vmem:[%s14775_s10 + $0xd7c] sm:$0xf] %vm9957_vm3, %v9796_v13  ;;  %v6869_v16 = vpop.f32.mrf.mxu2  ;;  %v7509_v17 = vpop.f32.mrf.mxu3  ;;  %v14228_v13 = vld [vmem:[%s14693_s5 + $0x9d0] sm:$0xff] }
 0x3a2   : > { %10054 = vst.msk [vmem:[%s14775_s10 + $0x180] sm:$0xf] %vm9957_vm3, %v9029_v14  ;;  %v6870_v18 = vadd.f32 %v16173_v26, %v6869_v16  ;;  %v7510_v19 = vadd.f32 %v16173_v26, %v7509_v17  ;;  %v5591_v20 = vpop.f32.mrf.mxu0  ;;  %v6231_v21 = vpop.f32.mrf.mxu1  ;;  %v14356_v14 = vld [vmem:[%s14693_s5 + $0xdd0] sm:$0xff] }
 0x3a3   : > { %10310 = vst.msk [vmem:[%s14775_s10 + $0x580] sm:$0xf] %vm9957_vm3, %v9285_v15  ;;  %v5592_v22 = vadd.f32 %v16173_v26, %v5591_v20  ;;  %v6232_v23 = vadd.f32 %v16173_v26, %v6231_v21 }
 0x3a4   : > { %v8517_v24 = vmax.f32 %v6870_v18, 0.0  ;;  %v8773_v8 = vmax.f32 %v7510_v19, 0.0 }
 0x3a5   : > { %v8006_v25 = vmax.f32 %v5592_v22, 0.0  ;;  %v8262_v27 = vmax.f32 %v6232_v23, 0.0 }
 0x3a6   : > { %v9541_v28 = vpack.c.bf16 %v8517_v24, %v8517_v24  ;;  %v9797_v29 = vpack.c.bf16 %v8773_v8, %v8773_v8 }
 0x3a7   : > { %v9030_v30 = vpack.c.bf16 %v8006_v25, %v8006_v25  ;;  %v9286_v31 = vpack.c.bf16 %v8262_v27, %v8262_v27 }
 0x3a8   : > { %10566 = vst.msk [vmem:[%s14775_s10 + $0x980] sm:$0xf] %vm9957_vm3, %v9541_v28 }
 0x3a9   : > { %10822 = vst.msk [vmem:[%s14775_s10 + $0xd80] sm:$0xf] %vm9957_vm3, %v9797_v29  ;;  %v6871_v32 = vpop.f32.mrf.mxu2  ;;  %v7511_v33 = vpop.f32.mrf.mxu3 }
 0x3aa   : > { %10055 = vst.msk [vmem:[%s14775_s10 + $0x184] sm:$0xf] %vm9957_vm3, %v9030_v30  ;;  %v6872_v36 = vadd.f32 %v16173_v26, %v6871_v32  ;;  %v7512_v37 = vadd.f32 %v16173_v26, %v7511_v33  ;;  %v5594_v38 = vpop.f32.mrf.mxu0  ;;  %v6234_v39 = vpop.f32.mrf.mxu1 }
 0x3ab   : > { %10311 = vst.msk [vmem:[%s14775_s10 + $0x584] sm:$0xf] %vm9957_vm3, %v9286_v31  ;;  %v5595_v43 = vadd.f32 %v16173_v26, %v5594_v38  ;;  %v6235_v44 = vadd.f32 %v16173_v26, %v6234_v39 }
 0x3ac   : > { %v8518_v45 = vmax.f32 %v6872_v36, 0.0  ;;  %v8774_v46 = vmax.f32 %v7512_v37, 0.0 }
 0x3ad   : > { %v8007_v47 = vmax.f32 %v5595_v43, 0.0  ;;  %v8263_v48 = vmax.f32 %v6235_v44, 0.0  ;;  %13442 = vmatmul.msk.bf16.gmra.mxu0 %vm3796_vm2, %v13971_v34  ;;  %13570 = vmatmul.msk.bf16.gmra.mxu1 %vm3796_vm2, %v14099_v35  ;;  %v13973_v44 = vld [vmem:[%s14693_s5 + $0x1d8] sm:$0xff] }
 0x3ae   : > { %v9542_v49 = vpack.c.bf16 %v8518_v45, %v8518_v45  ;;  %v9798_v50 = vpack.c.bf16 %v8774_v46, %v8774_v46  ;;  %13698 = vmatmul.msk.bf16.gmra.mxu2 %vm3796_vm2, %v14227_v41  ;;  %13826 = vmatmul.msk.bf16.gmra.mxu3 %vm3796_vm2, %v14355_v42  ;;  %v14101_v45 = vld [vmem:[%s14693_s5 + $0x5d8] sm:$0xff] }
 0x3af   : > { %v9031_v51 = vpack.c.bf16 %v8007_v47, %v8007_v47  ;;  %v9287_v52 = vpack.c.bf16 %v8263_v48, %v8263_v48 }
 0x3b0   : > { %10567 = vst.msk [vmem:[%s14775_s10 + $0x984] sm:$0xf] %vm9957_vm3, %v9542_v49 }
 0x3b1   : > { %10823 = vst.msk [vmem:[%s14775_s10 + $0xd84] sm:$0xf] %vm9957_vm3, %v9798_v50  ;;  %v6874_v53 = vpop.f32.mrf.mxu2  ;;  %v7514_v54 = vpop.f32.mrf.mxu3  ;;  %v14229_v50 = vld [vmem:[%s14693_s5 + $0x9d8] sm:$0xff] }
 0x3b2   : > { %10056 = vst.msk [vmem:[%s14775_s10 + $0x188] sm:$0xf] %vm9957_vm3, %v9031_v51  ;;  %v6875_v55 = vadd.f32 %v16173_v26, %v6874_v53  ;;  %v7515_v56 = vadd.f32 %v16173_v26, %v7514_v54  ;;  %v5596_v57 = vpop.f32.mrf.mxu0  ;;  %v6236_v58 = vpop.f32.mrf.mxu1  ;;  %v14357_v51 = vld [vmem:[%s14693_s5 + $0xdd8] sm:$0xff] }
 0x3b3   : > { %10312 = vst.msk [vmem:[%s14775_s10 + $0x588] sm:$0xf] %vm9957_vm3, %v9287_v52  ;;  %v5597_v59 = vadd.f32 %v16173_v26, %v5596_v57  ;;  %v6237_v61 = vadd.f32 %v16173_v26, %v6236_v58 }
 0x3b4   : > { %v8519_v62 = vmax.f32 %v6875_v55, 0.0  ;;  %v8775_v63 = vmax.f32 %v7515_v56, 0.0 }
 0x3b5   : > { %v8008_v0 = vmax.f32 %v5597_v59, 0.0  ;;  %v8264_v1 = vmax.f32 %v6237_v61, 0.0 }
 0x3b6   : > { %v9543_v2 = vpack.c.bf16 %v8519_v62, %v8519_v62  ;;  %v9799_v3 = vpack.c.bf16 %v8775_v63, %v8775_v63 }
 0x3b7   : > { %v9032_v4 = vpack.c.bf16 %v8008_v0, %v8008_v0  ;;  %v9288_v40 = vpack.c.bf16 %v8264_v1, %v8264_v1 }
 0x3b8   : > { %10568 = vst.msk [vmem:[%s14775_s10 + $0x988] sm:$0xf] %vm9957_vm3, %v9543_v2 }
 0x3b9   : > { %10824 = vst.msk [vmem:[%s14775_s10 + $0xd88] sm:$0xf] %vm9957_vm3, %v9799_v3  ;;  %v6876_v5 = vpop.f32.mrf.mxu2  ;;  %v7516_v6 = vpop.f32.mrf.mxu3 }
 0x3ba   : > { %10057 = vst.msk [vmem:[%s14775_s10 + $0x18c] sm:$0xf] %vm9957_vm3, %v9032_v4  ;;  %v6877_v9 = vadd.f32 %v16173_v26, %v6876_v5  ;;  %v7517_v10 = vadd.f32 %v16173_v26, %v7516_v6  ;;  %v5599_v11 = vpop.f32.mrf.mxu0  ;;  %v6239_v12 = vpop.f32.mrf.mxu1 }
 0x3bb   : > { %10313 = vst.msk [vmem:[%s14775_s10 + $0x58c] sm:$0xf] %vm9957_vm3, %v9288_v40  ;;  %v5600_v15 = vadd.f32 %v16173_v26, %v5599_v11  ;;  %v6240_v16 = vadd.f32 %v16173_v26, %v6239_v12 }
 0x3bc   : > { %v8520_v17 = vmax.f32 %v6877_v9, 0.0  ;;  %v8776_v18 = vmax.f32 %v7517_v10, 0.0 }
 0x3bd   : > { %v8009_v19 = vmax.f32 %v5600_v15, 0.0  ;;  %v8265_v20 = vmax.f32 %v6240_v16, 0.0  ;;  %13443 = vmatmul.msk.bf16.gmra.mxu0 %vm3796_vm2, %v13972_v60  ;;  %13571 = vmatmul.msk.bf16.gmra.mxu1 %vm3796_vm2, %v14100_v7  ;;  %v13974_v16 = vld [vmem:[%s14693_s5 + $0x1e0] sm:$0xff] }
 0x3be   : > { %v9544_v21 = vpack.c.bf16 %v8520_v17, %v8520_v17  ;;  %v9800_v22 = vpack.c.bf16 %v8776_v18, %v8776_v18  ;;  %13699 = vmatmul.msk.bf16.gmra.mxu2 %vm3796_vm2, %v14228_v13  ;;  %13827 = vmatmul.msk.bf16.gmra.mxu3 %vm3796_vm2, %v14356_v14  ;;  %v14102_v17 = vld [vmem:[%s14693_s5 + $0x5e0] sm:$0xff] }
 0x3bf   : > { %v9033_v23 = vpack.c.bf16 %v8009_v19, %v8009_v19  ;;  %v9289_v24 = vpack.c.bf16 %v8265_v20, %v8265_v20 }
 0x3c0   : > { %10569 = vst.msk [vmem:[%s14775_s10 + $0x98c] sm:$0xf] %vm9957_vm3, %v9544_v21 }
 0x3c1   : > { %10825 = vst.msk [vmem:[%s14775_s10 + $0xd8c] sm:$0xf] %vm9957_vm3, %v9800_v22  ;;  %v6879_v8 = vpop.f32.mrf.mxu2  ;;  %v7519_v25 = vpop.f32.mrf.mxu3  ;;  %v14230_v22 = vld [vmem:[%s14693_s5 + $0x9e0] sm:$0xff] }
 0x3c2   : > { %10058 = vst.msk [vmem:[%s14775_s10 + $0x190] sm:$0xf] %vm9957_vm3, %v9033_v23  ;;  %v6880_v27 = vadd.f32 %v16173_v26, %v6879_v8  ;;  %v7520_v28 = vadd.f32 %v16173_v26, %v7519_v25  ;;  %v5601_v29 = vpop.f32.mrf.mxu0  ;;  %v6241_v30 = vpop.f32.mrf.mxu1  ;;  %v14358_v23 = vld [vmem:[%s14693_s5 + $0xde0] sm:$0xff] }
 0x3c3   : > { %10314 = vst.msk [vmem:[%s14775_s10 + $0x590] sm:$0xf] %vm9957_vm3, %v9289_v24  ;;  %v5602_v31 = vadd.f32 %v16173_v26, %v5601_v29  ;;  %v6242_v32 = vadd.f32 %v16173_v26, %v6241_v30 }
 0x3c4   : > { %v8521_v33 = vmax.f32 %v6880_v27, 0.0  ;;  %v8777_v34 = vmax.f32 %v7520_v28, 0.0 }
 0x3c5   : > { %v8010_v35 = vmax.f32 %v5602_v31, 0.0  ;;  %v8266_v36 = vmax.f32 %v6242_v32, 0.0 }
 0x3c6   : > { %v9545_v37 = vpack.c.bf16 %v8521_v33, %v8521_v33  ;;  %v9801_v38 = vpack.c.bf16 %v8777_v34, %v8777_v34 }
 0x3c7   : > { %v9034_v39 = vpack.c.bf16 %v8010_v35, %v8010_v35  ;;  %v9290_v41 = vpack.c.bf16 %v8266_v36, %v8266_v36 }
 0x3c8   : > { %10570 = vst.msk [vmem:[%s14775_s10 + $0x990] sm:$0xf] %vm9957_vm3, %v9545_v37 }
 0x3c9   : > { %10826 = vst.msk [vmem:[%s14775_s10 + $0xd90] sm:$0xf] %vm9957_vm3, %v9801_v38  ;;  %v6881_v42 = vpop.f32.mrf.mxu2  ;;  %v7521_v43 = vpop.f32.mrf.mxu3 }
 0x3ca   : > { %10059 = vst.msk [vmem:[%s14775_s10 + $0x194] sm:$0xf] %vm9957_vm3, %v9034_v39  ;;  %v6882_v46 = vadd.f32 %v16173_v26, %v6881_v42  ;;  %v7522_v47 = vadd.f32 %v16173_v26, %v7521_v43  ;;  %v5604_v48 = vpop.f32.mrf.mxu0  ;;  %v6244_v49 = vpop.f32.mrf.mxu1 }
 0x3cb   : > { %10315 = vst.msk [vmem:[%s14775_s10 + $0x594] sm:$0xf] %vm9957_vm3, %v9290_v41  ;;  %v5605_v52 = vadd.f32 %v16173_v26, %v5604_v48  ;;  %v6245_v53 = vadd.f32 %v16173_v26, %v6244_v49 }
 0x3cc   : > { %v8522_v54 = vmax.f32 %v6882_v46, 0.0  ;;  %v8778_v55 = vmax.f32 %v7522_v47, 0.0 }
 0x3cd   : > { %v8011_v56 = vmax.f32 %v5605_v52, 0.0  ;;  %v8267_v57 = vmax.f32 %v6245_v53, 0.0  ;;  %13444 = vmatmul.msk.bf16.gmra.mxu0 %vm3796_vm2, %v13973_v44  ;;  %13572 = vmatmul.msk.bf16.gmra.mxu1 %vm3796_vm2, %v14101_v45  ;;  %v13975_v53 = vld [vmem:[%s14693_s5 + $0x1e8] sm:$0xff] }
 0x3ce   : > { %v9546_v58 = vpack.c.bf16 %v8522_v54, %v8522_v54  ;;  %v9802_v59 = vpack.c.bf16 %v8778_v55, %v8778_v55  ;;  %13700 = vmatmul.msk.bf16.gmra.mxu2 %vm3796_vm2, %v14229_v50  ;;  %13828 = vmatmul.msk.bf16.gmra.mxu3 %vm3796_vm2, %v14357_v51  ;;  %v14103_v54 = vld [vmem:[%s14693_s5 + $0x5e8] sm:$0xff] }
 0x3cf   : > { %v9035_v61 = vpack.c.bf16 %v8011_v56, %v8011_v56  ;;  %v9291_v62 = vpack.c.bf16 %v8267_v57, %v8267_v57 }
 0x3d0   : > { %10571 = vst.msk [vmem:[%s14775_s10 + $0x994] sm:$0xf] %vm9957_vm3, %v9546_v58 }
 0x3d1   : > { %10827 = vst.msk [vmem:[%s14775_s10 + $0xd94] sm:$0xf] %vm9957_vm3, %v9802_v59  ;;  %v6884_v63 = vpop.f32.mrf.mxu2  ;;  %v7524_v0 = vpop.f32.mrf.mxu3  ;;  %v14231_v59 = vld [vmem:[%s14693_s5 + $0x9e8] sm:$0xff] }
 0x3d2   : > { %10060 = vst.msk [vmem:[%s14775_s10 + $0x198] sm:$0xf] %vm9957_vm3, %v9035_v61  ;;  %v6885_v1 = vadd.f32 %v16173_v26, %v6884_v63  ;;  %v7525_v2 = vadd.f32 %v16173_v26, %v7524_v0  ;;  %v5606_v3 = vpop.f32.mrf.mxu0  ;;  %v6246_v4 = vpop.f32.mrf.mxu1  ;;  %v14359_v61 = vld [vmem:[%s14693_s5 + $0xde8] sm:$0xff] }
 0x3d3   : > { %10316 = vst.msk [vmem:[%s14775_s10 + $0x598] sm:$0xf] %vm9957_vm3, %v9291_v62  ;;  %v5607_v40 = vadd.f32 %v16173_v26, %v5606_v3  ;;  %v6247_v5 = vadd.f32 %v16173_v26, %v6246_v4 }
 0x3d4   : > { %v8523_v6 = vmax.f32 %v6885_v1, 0.0  ;;  %v8779_v60 = vmax.f32 %v7525_v2, 0.0 }
 0x3d5   : > { %v8012_v7 = vmax.f32 %v5607_v40, 0.0  ;;  %v8268_v9 = vmax.f32 %v6247_v5, 0.0 }
 0x3d6   : > { %v9547_v10 = vpack.c.bf16 %v8523_v6, %v8523_v6  ;;  %v9803_v11 = vpack.c.bf16 %v8779_v60, %v8779_v60 }
 0x3d7   : > { %v9036_v12 = vpack.c.bf16 %v8012_v7, %v8012_v7  ;;  %v9292_v13 = vpack.c.bf16 %v8268_v9, %v8268_v9 }
 0x3d8   : > { %10572 = vst.msk [vmem:[%s14775_s10 + $0x998] sm:$0xf] %vm9957_vm3, %v9547_v10 }
 0x3d9   : > { %10828 = vst.msk [vmem:[%s14775_s10 + $0xd98] sm:$0xf] %vm9957_vm3, %v9803_v11  ;;  %v6886_v14 = vpop.f32.mrf.mxu2  ;;  %v7526_v15 = vpop.f32.mrf.mxu3 }
 0x3da   : > { %10061 = vst.msk [vmem:[%s14775_s10 + $0x19c] sm:$0xf] %vm9957_vm3, %v9036_v12  ;;  %v6887_v18 = vadd.f32 %v16173_v26, %v6886_v14  ;;  %v7527_v19 = vadd.f32 %v16173_v26, %v7526_v15  ;;  %v5609_v20 = vpop.f32.mrf.mxu0  ;;  %v6249_v21 = vpop.f32.mrf.mxu1 }
 0x3db   : > { %10317 = vst.msk [vmem:[%s14775_s10 + $0x59c] sm:$0xf] %vm9957_vm3, %v9292_v13  ;;  %v5610_v24 = vadd.f32 %v16173_v26, %v5609_v20  ;;  %v6250_v8 = vadd.f32 %v16173_v26, %v6249_v21 }
 0x3dc   : > { %v8524_v25 = vmax.f32 %v6887_v18, 0.0  ;;  %v8780_v27 = vmax.f32 %v7527_v19, 0.0 }
 0x3dd   : > { %v8013_v28 = vmax.f32 %v5610_v24, 0.0  ;;  %v8269_v29 = vmax.f32 %v6250_v8, 0.0  ;;  %13445 = vmatmul.msk.bf16.gmra.mxu0 %vm3796_vm2, %v13974_v16  ;;  %13573 = vmatmul.msk.bf16.gmra.mxu1 %vm3796_vm2, %v14102_v17  ;;  %v13976_v8 = vld [vmem:[%s14693_s5 + $0x1f0] sm:$0xff] }
 0x3de   : > { %v9548_v30 = vpack.c.bf16 %v8524_v25, %v8524_v25  ;;  %v9804_v31 = vpack.c.bf16 %v8780_v27, %v8780_v27  ;;  %13701 = vmatmul.msk.bf16.gmra.mxu2 %vm3796_vm2, %v14230_v22  ;;  %13829 = vmatmul.msk.bf16.gmra.mxu3 %vm3796_vm2, %v14358_v23  ;;  %v14104_v25 = vld [vmem:[%s14693_s5 + $0x5f0] sm:$0xff] }
 0x3df   : > { %v9037_v32 = vpack.c.bf16 %v8013_v28, %v8013_v28  ;;  %v9293_v33 = vpack.c.bf16 %v8269_v29, %v8269_v29 }
 0x3e0   : > { %10573 = vst.msk [vmem:[%s14775_s10 + $0x99c] sm:$0xf] %vm9957_vm3, %v9548_v30 }
 0x3e1   : > { %10829 = vst.msk [vmem:[%s14775_s10 + $0xd9c] sm:$0xf] %vm9957_vm3, %v9804_v31  ;;  %v6889_v34 = vpop.f32.mrf.mxu2  ;;  %v7529_v35 = vpop.f32.mrf.mxu3  ;;  %v14232_v31 = vld [vmem:[%s14693_s5 + $0x9f0] sm:$0xff] }
 0x3e2   : > { %10062 = vst.msk [vmem:[%s14775_s10 + $0x1a0] sm:$0xf] %vm9957_vm3, %v9037_v32  ;;  %v6890_v36 = vadd.f32 %v16173_v26, %v6889_v34  ;;  %v7530_v37 = vadd.f32 %v16173_v26, %v7529_v35  ;;  %v5611_v38 = vpop.f32.mrf.mxu0  ;;  %v6251_v39 = vpop.f32.mrf.mxu1  ;;  %v14360_v32 = vld [vmem:[%s14693_s5 + $0xdf0] sm:$0xff] }
 0x3e3   : > { %10318 = vst.msk [vmem:[%s14775_s10 + $0x5a0] sm:$0xf] %vm9957_vm3, %v9293_v33  ;;  %v5612_v41 = vadd.f32 %v16173_v26, %v5611_v38  ;;  %v6252_v42 = vadd.f32 %v16173_v26, %v6251_v39 }
 0x3e4   : > { %v8525_v43 = vmax.f32 %v6890_v36, 0.0  ;;  %v8781_v44 = vmax.f32 %v7530_v37, 0.0 }
 0x3e5   : > { %v8014_v45 = vmax.f32 %v5612_v41, 0.0  ;;  %v8270_v46 = vmax.f32 %v6252_v42, 0.0 }
 0x3e6   : > { %v9549_v47 = vpack.c.bf16 %v8525_v43, %v8525_v43  ;;  %v9805_v48 = vpack.c.bf16 %v8781_v44, %v8781_v44 }
 0x3e7   : > { %v9038_v49 = vpack.c.bf16 %v8014_v45, %v8014_v45  ;;  %v9294_v50 = vpack.c.bf16 %v8270_v46, %v8270_v46  ;;  %v16530_v45 = vld [vmem:[%s18998_s2] ss:$0 sm:$0xff] }
 0x3e8   : > { %10574 = vst.msk [vmem:[%s14775_s10 + $0x9a0] sm:$0xf] %vm9957_vm3, %v9549_v47 }
 0x3e9   : > { %10830 = vst.msk [vmem:[%s14775_s10 + $0xda0] sm:$0xf] %vm9957_vm3, %v9805_v48  ;;  %v6891_v51 = vpop.f32.mrf.mxu2  ;;  %v7531_v52 = vpop.f32.mrf.mxu3 }
 0x3ea   : > { %10063 = vst.msk [vmem:[%s14775_s10 + $0x1a4] sm:$0xf] %vm9957_vm3, %v9038_v49  ;;  %v6892_v55 = vadd.f32 %v16173_v26, %v6891_v51  ;;  %v7532_v56 = vadd.f32 %v16173_v26, %v7531_v52  ;;  %v5614_v57 = vpop.f32.mrf.mxu0  ;;  %v6254_v58 = vpop.f32.mrf.mxu1 }
 0x3eb   : > { %10319 = vst.msk [vmem:[%s14775_s10 + $0x5a4] sm:$0xf] %vm9957_vm3, %v9294_v50  ;;  %v5615_v62 = vadd.f32 %v16173_v26, %v5614_v57  ;;  %v6255_v63 = vadd.f32 %v16173_v26, %v6254_v58 }
 0x3ec   : > { %v8526_v0 = vmax.f32 %v6892_v55, 0.0  ;;  %v8782_v1 = vmax.f32 %v7532_v56, 0.0 }
 0x3ed   : > { %v8015_v2 = vmax.f32 %v5615_v62, 0.0  ;;  %v8271_v3 = vmax.f32 %v6255_v63, 0.0  ;;  %13446 = vmatmul.msk.bf16.gmra.mxu0 %vm3796_vm2, %v13975_v53  ;;  %13574 = vmatmul.msk.bf16.gmra.mxu1 %vm3796_vm2, %v14103_v54  ;;  %v13977_v63 = vld [vmem:[%s14693_s5 + $0x1f8] sm:$0xff] }
 0x3ee   : > { %v9550_v4 = vpack.c.bf16 %v8526_v0, %v8526_v0  ;;  %v9806_v40 = vpack.c.bf16 %v8782_v1, %v8782_v1  ;;  %13702 = vmatmul.msk.bf16.gmra.mxu2 %vm3796_vm2, %v14231_v59  ;;  %13830 = vmatmul.msk.bf16.gmra.mxu3 %vm3796_vm2, %v14359_v61  ;;  %v14105_v0 = vld [vmem:[%s14693_s5 + $0x5f8] sm:$0xff] }
 0x3ef   : > { %v9039_v5 = vpack.c.bf16 %v8015_v2, %v8015_v2  ;;  %v9295_v6 = vpack.c.bf16 %v8271_v3, %v8271_v3 }
 0x3f0   : > { %10575 = vst.msk [vmem:[%s14775_s10 + $0x9a4] sm:$0xf] %vm9957_vm3, %v9550_v4 }
 0x3f1   : > { %10831 = vst.msk [vmem:[%s14775_s10 + $0xda4] sm:$0xf] %vm9957_vm3, %v9806_v40  ;;  %v6894_v60 = vpop.f32.mrf.mxu2  ;;  %v7534_v7 = vpop.f32.mrf.mxu3  ;;  %v14233_v40 = vld [vmem:[%s14693_s5 + $0x9f8] sm:$0xff] }
 0x3f2   : > { %10064 = vst.msk [vmem:[%s14775_s10 + $0x1a8] sm:$0xf] %vm9957_vm3, %v9039_v5  ;;  %v6895_v9 = vadd.f32 %v16173_v26, %v6894_v60  ;;  %v7535_v10 = vadd.f32 %v16173_v26, %v7534_v7  ;;  %v5616_v11 = vpop.f32.mrf.mxu0  ;;  %v6256_v12 = vpop.f32.mrf.mxu1  ;;  %v14361_v5 = vld [vmem:[%s14693_s5 + $0xdf8] sm:$0xff] }
 0x3f3   : > { %10320 = vst.msk [vmem:[%s14775_s10 + $0x5a8] sm:$0xf] %vm9957_vm3, %v9295_v6  ;;  %v5617_v13 = vadd.f32 %v16173_v26, %v5616_v11  ;;  %v6257_v14 = vadd.f32 %v16173_v26, %v6256_v12 }
 0x3f4   : > { %v8527_v15 = vmax.f32 %v6895_v9, 0.0  ;;  %v8783_v16 = vmax.f32 %v7535_v10, 0.0 }
 0x3f5   : > { %v8016_v17 = vmax.f32 %v5617_v13, 0.0  ;;  %v8272_v18 = vmax.f32 %v6257_v14, 0.0 }
 0x3f6   : > { %v9551_v19 = vpack.c.bf16 %v8527_v15, %v8527_v15  ;;  %v9807_v20 = vpack.c.bf16 %v8783_v16, %v8783_v16 }
 0x3f7   : > { %v9040_v21 = vpack.c.bf16 %v8016_v17, %v8016_v17  ;;  %v9296_v22 = vpack.c.bf16 %v8272_v18, %v8272_v18 }
 0x3f8   : > { %10576 = vst.msk [vmem:[%s14775_s10 + $0x9a8] sm:$0xf] %vm9957_vm3, %v9551_v19 }
 0x3f9   : > { %10832 = vst.msk [vmem:[%s14775_s10 + $0xda8] sm:$0xf] %vm9957_vm3, %v9807_v20  ;;  %v6896_v23 = vpop.f32.mrf.mxu2  ;;  %v7536_v24 = vpop.f32.mrf.mxu3 }
 0x3fa   : > { %10065 = vst.msk [vmem:[%s14775_s10 + $0x1ac] sm:$0xf] %vm9957_vm3, %v9040_v21  ;;  %v6897_v27 = vadd.f32 %v16173_v26, %v6896_v23  ;;  %v7537_v28 = vadd.f32 %v16173_v26, %v7536_v24  ;;  %v5619_v29 = vpop.f32.mrf.mxu0  ;;  %v6259_v30 = vpop.f32.mrf.mxu1 }
 0x3fb   : > { %10321 = vst.msk [vmem:[%s14775_s10 + $0x5ac] sm:$0xf] %vm9957_vm3, %v9296_v22  ;;  %v5620_v33 = vadd.f32 %v16173_v26, %v5619_v29  ;;  %v6260_v34 = vadd.f32 %v16173_v26, %v6259_v30 }
 0x3fc   : > { %v8528_v35 = vmax.f32 %v6897_v27, 0.0  ;;  %v8784_v36 = vmax.f32 %v7537_v28, 0.0 }
 0x3fd   : > { %v8017_v37 = vmax.f32 %v5620_v33, 0.0  ;;  %v8273_v38 = vmax.f32 %v6260_v34, 0.0  ;;  %13447 = vmatmul.msk.bf16.gmra.mxu0 %vm3796_vm2, %v13976_v8  ;;  %13575 = vmatmul.msk.bf16.gmra.mxu1 %vm3796_vm2, %v14104_v25  ;;  %v13978_v34 = vld [vmem:[%s14693_s5 + $0x200] sm:$0xff] }
 0x3fe   : > { %v9552_v39 = vpack.c.bf16 %v8528_v35, %v8528_v35  ;;  %v9808_v41 = vpack.c.bf16 %v8784_v36, %v8784_v36  ;;  %13703 = vmatmul.msk.bf16.gmra.mxu2 %vm3796_vm2, %v14232_v31  ;;  %13831 = vmatmul.msk.bf16.gmra.mxu3 %vm3796_vm2, %v14360_v32  ;;  %v14106_v35 = vld [vmem:[%s14693_s5 + $0x600] sm:$0xff] }
 0x3ff   : > { %v9041_v42 = vpack.c.bf16 %v8017_v37, %v8017_v37  ;;  %v9297_v43 = vpack.c.bf16 %v8273_v38, %v8273_v38 }
 0x400   : > { %10577 = vst.msk [vmem:[%s14775_s10 + $0x9ac] sm:$0xf] %vm9957_vm3, %v9552_v39 }
 0x401   : > { %10833 = vst.msk [vmem:[%s14775_s10 + $0xdac] sm:$0xf] %vm9957_vm3, %v9808_v41  ;;  %v6899_v26 = vpop.f32.mrf.mxu2  ;;  %v7539_v44 = vpop.f32.mrf.mxu3  ;;  %v14234_v41 = vld [vmem:[%s14693_s5 + $0xa00] sm:$0xff] }
 0x402   : > { %10066 = vst.msk [vmem:[%s14775_s10 + $0x1b0] sm:$0xf] %vm9957_vm3, %v9041_v42  ;;  %v6900_v46 = vadd.f32 %v16530_v45, %v6899_v26  ;;  %v7540_v47 = vadd.f32 %v16530_v45, %v7539_v44  ;;  %v5621_v48 = vpop.f32.mrf.mxu0  ;;  %v6261_v49 = vpop.f32.mrf.mxu1  ;;  %v14362_v42 = vld [vmem:[%s14693_s5 + $0xe00] sm:$0xff] }
 0x403   : > { %10322 = vst.msk [vmem:[%s14775_s10 + $0x5b0] sm:$0xf] %vm9957_vm3, %v9297_v43  ;;  %v5622_v50 = vadd.f32 %v16530_v45, %v5621_v48  ;;  %v6262_v51 = vadd.f32 %v16530_v45, %v6261_v49 }
 0x404   : > { %v8529_v52 = vmax.f32 %v6900_v46, 0.0  ;;  %v8785_v53 = vmax.f32 %v7540_v47, 0.0 }
 0x405   : > { %v8018_v54 = vmax.f32 %v5622_v50, 0.0  ;;  %v8274_v55 = vmax.f32 %v6262_v51, 0.0 }
 0x406   : > { %v9553_v56 = vpack.c.bf16 %v8529_v52, %v8529_v52  ;;  %v9809_v57 = vpack.c.bf16 %v8785_v53, %v8785_v53 }
 0x407   : > { %v9042_v58 = vpack.c.bf16 %v8018_v54, %v8018_v54  ;;  %v9298_v59 = vpack.c.bf16 %v8274_v55, %v8274_v55 }
 0x408   : > { %10578 = vst.msk [vmem:[%s14775_s10 + $0x9b0] sm:$0xf] %vm9957_vm3, %v9553_v56 }
 0x409   : > { %10834 = vst.msk [vmem:[%s14775_s10 + $0xdb0] sm:$0xf] %vm9957_vm3, %v9809_v57  ;;  %v6901_v61 = vpop.f32.mrf.mxu2  ;;  %v7541_v62 = vpop.f32.mrf.mxu3 }
 0x40a   : > { %10067 = vst.msk [vmem:[%s14775_s10 + $0x1b4] sm:$0xf] %vm9957_vm3, %v9042_v58  ;;  %v6902_v1 = vadd.f32 %v16530_v45, %v6901_v61  ;;  %v7542_v2 = vadd.f32 %v16530_v45, %v7541_v62  ;;  %v5624_v3 = vpop.f32.mrf.mxu0  ;;  %v6264_v4 = vpop.f32.mrf.mxu1 }
 0x40b   : > { %10323 = vst.msk [vmem:[%s14775_s10 + $0x5b4] sm:$0xf] %vm9957_vm3, %v9298_v59  ;;  %v5625_v6 = vadd.f32 %v16530_v45, %v5624_v3  ;;  %v6265_v60 = vadd.f32 %v16530_v45, %v6264_v4 }
 0x40c   : > { %v8530_v7 = vmax.f32 %v6902_v1, 0.0  ;;  %v8786_v9 = vmax.f32 %v7542_v2, 0.0 }
 0x40d   : > { %v8019_v10 = vmax.f32 %v5625_v6, 0.0  ;;  %v8275_v11 = vmax.f32 %v6265_v60, 0.0  ;;  %13448 = vmatmul.msk.bf16.gmra.mxu0 %vm3796_vm2, %v13977_v63  ;;  %13576 = vmatmul.msk.bf16.gmra.mxu1 %vm3796_vm2, %v14105_v0  ;;  %v13979_v60 = vld [vmem:[%s14693_s5 + $0x208] sm:$0xff] }
 0x40e   : > { %v9554_v12 = vpack.c.bf16 %v8530_v7, %v8530_v7  ;;  %v9810_v13 = vpack.c.bf16 %v8786_v9, %v8786_v9  ;;  %13704 = vmatmul.msk.bf16.gmra.mxu2 %vm3796_vm2, %v14233_v40  ;;  %13832 = vmatmul.msk.bf16.gmra.mxu3 %vm3796_vm2, %v14361_v5  ;;  %v14107_v7 = vld [vmem:[%s14693_s5 + $0x608] sm:$0xff] }
 0x40f   : > { %v9043_v14 = vpack.c.bf16 %v8019_v10, %v8019_v10  ;;  %v9299_v15 = vpack.c.bf16 %v8275_v11, %v8275_v11 }
 0x410   : > { %10579 = vst.msk [vmem:[%s14775_s10 + $0x9b4] sm:$0xf] %vm9957_vm3, %v9554_v12 }
 0x411   : > { %10835 = vst.msk [vmem:[%s14775_s10 + $0xdb4] sm:$0xf] %vm9957_vm3, %v9810_v13  ;;  %v6904_v16 = vpop.f32.mrf.mxu2  ;;  %v7544_v17 = vpop.f32.mrf.mxu3  ;;  %v14235_v13 = vld [vmem:[%s14693_s5 + $0xa08] sm:$0xff] }
 0x412   : > { %10068 = vst.msk [vmem:[%s14775_s10 + $0x1b8] sm:$0xf] %vm9957_vm3, %v9043_v14  ;;  %v6905_v18 = vadd.f32 %v16530_v45, %v6904_v16  ;;  %v7545_v19 = vadd.f32 %v16530_v45, %v7544_v17  ;;  %v5626_v20 = vpop.f32.mrf.mxu0  ;;  %v6266_v21 = vpop.f32.mrf.mxu1  ;;  %v14363_v14 = vld [vmem:[%s14693_s5 + $0xe08] sm:$0xff] }
 0x413   : > { %10324 = vst.msk [vmem:[%s14775_s10 + $0x5b8] sm:$0xf] %vm9957_vm3, %v9299_v15  ;;  %v5627_v22 = vadd.f32 %v16530_v45, %v5626_v20  ;;  %v6267_v23 = vadd.f32 %v16530_v45, %v6266_v21 }
 0x414   : > { %v8531_v24 = vmax.f32 %v6905_v18, 0.0  ;;  %v8787_v8 = vmax.f32 %v7545_v19, 0.0 }
 0x415   : > { %v8020_v25 = vmax.f32 %v5627_v22, 0.0  ;;  %v8276_v27 = vmax.f32 %v6267_v23, 0.0 }
 0x416   : > { %v9555_v28 = vpack.c.bf16 %v8531_v24, %v8531_v24  ;;  %v9811_v29 = vpack.c.bf16 %v8787_v8, %v8787_v8 }
 0x417   : > { %v9044_v30 = vpack.c.bf16 %v8020_v25, %v8020_v25  ;;  %v9300_v31 = vpack.c.bf16 %v8276_v27, %v8276_v27 }
 0x418   : > { %10580 = vst.msk [vmem:[%s14775_s10 + $0x9b8] sm:$0xf] %vm9957_vm3, %v9555_v28 }
 0x419   : > { %10836 = vst.msk [vmem:[%s14775_s10 + $0xdb8] sm:$0xf] %vm9957_vm3, %v9811_v29  ;;  %v6906_v32 = vpop.f32.mrf.mxu2  ;;  %v7546_v33 = vpop.f32.mrf.mxu3 }
 0x41a   : > { %10069 = vst.msk [vmem:[%s14775_s10 + $0x1bc] sm:$0xf] %vm9957_vm3, %v9044_v30  ;;  %v6907_v36 = vadd.f32 %v16530_v45, %v6906_v32  ;;  %v7547_v37 = vadd.f32 %v16530_v45, %v7546_v33  ;;  %v5629_v38 = vpop.f32.mrf.mxu0  ;;  %v6269_v39 = vpop.f32.mrf.mxu1 }
 0x41b   : > { %10325 = vst.msk [vmem:[%s14775_s10 + $0x5bc] sm:$0xf] %vm9957_vm3, %v9300_v31  ;;  %v5630_v43 = vadd.f32 %v16530_v45, %v5629_v38  ;;  %v6270_v26 = vadd.f32 %v16530_v45, %v6269_v39 }
 0x41c   : > { %v8532_v44 = vmax.f32 %v6907_v36, 0.0  ;;  %v8788_v46 = vmax.f32 %v7547_v37, 0.0 }
 0x41d   : > { %v8021_v47 = vmax.f32 %v5630_v43, 0.0  ;;  %v8277_v48 = vmax.f32 %v6270_v26, 0.0  ;;  %13449 = vmatmul.msk.bf16.gmra.mxu0 %vm3796_vm2, %v13978_v34  ;;  %13577 = vmatmul.msk.bf16.gmra.mxu1 %vm3796_vm2, %v14106_v35  ;;  %v13980_v26 = vld [vmem:[%s14693_s5 + $0x210] sm:$0xff] }
 0x41e   : > { %v9556_v49 = vpack.c.bf16 %v8532_v44, %v8532_v44  ;;  %v9812_v50 = vpack.c.bf16 %v8788_v46, %v8788_v46  ;;  %13705 = vmatmul.msk.bf16.gmra.mxu2 %vm3796_vm2, %v14234_v41  ;;  %13833 = vmatmul.msk.bf16.gmra.mxu3 %vm3796_vm2, %v14362_v42  ;;  %v14108_v44 = vld [vmem:[%s14693_s5 + $0x610] sm:$0xff] }
 0x41f   : > { %v9045_v51 = vpack.c.bf16 %v8021_v47, %v8021_v47  ;;  %v9301_v52 = vpack.c.bf16 %v8277_v48, %v8277_v48 }
 0x420   : > { %10581 = vst.msk [vmem:[%s14775_s10 + $0x9bc] sm:$0xf] %vm9957_vm3, %v9556_v49 }
 0x421   : > { %10837 = vst.msk [vmem:[%s14775_s10 + $0xdbc] sm:$0xf] %vm9957_vm3, %v9812_v50  ;;  %v6909_v53 = vpop.f32.mrf.mxu2  ;;  %v7549_v54 = vpop.f32.mrf.mxu3  ;;  %v14236_v50 = vld [vmem:[%s14693_s5 + $0xa10] sm:$0xff] }
 0x422   : > { %10070 = vst.msk [vmem:[%s14775_s10 + $0x1c0] sm:$0xf] %vm9957_vm3, %v9045_v51  ;;  %v6910_v55 = vadd.f32 %v16530_v45, %v6909_v53  ;;  %v7550_v56 = vadd.f32 %v16530_v45, %v7549_v54  ;;  %v5631_v57 = vpop.f32.mrf.mxu0  ;;  %v6271_v58 = vpop.f32.mrf.mxu1  ;;  %v14364_v51 = vld [vmem:[%s14693_s5 + $0xe10] sm:$0xff] }
 0x423   : > { %10326 = vst.msk [vmem:[%s14775_s10 + $0x5c0] sm:$0xf] %vm9957_vm3, %v9301_v52  ;;  %v5632_v59 = vadd.f32 %v16530_v45, %v5631_v57  ;;  %v6272_v61 = vadd.f32 %v16530_v45, %v6271_v58 }
 0x424   : > { %v8533_v62 = vmax.f32 %v6910_v55, 0.0  ;;  %v8789_v63 = vmax.f32 %v7550_v56, 0.0 }
 0x425   : > { %v8022_v0 = vmax.f32 %v5632_v59, 0.0  ;;  %v8278_v1 = vmax.f32 %v6272_v61, 0.0 }
 0x426   : > { %v9557_v2 = vpack.c.bf16 %v8533_v62, %v8533_v62  ;;  %v9813_v3 = vpack.c.bf16 %v8789_v63, %v8789_v63 }
 0x427   : > { %v9046_v4 = vpack.c.bf16 %v8022_v0, %v8022_v0  ;;  %v9302_v40 = vpack.c.bf16 %v8278_v1, %v8278_v1 }
 0x428   : > { %10582 = vst.msk [vmem:[%s14775_s10 + $0x9c0] sm:$0xf] %vm9957_vm3, %v9557_v2 }
 0x429   : > { %10838 = vst.msk [vmem:[%s14775_s10 + $0xdc0] sm:$0xf] %vm9957_vm3, %v9813_v3  ;;  %v6911_v5 = vpop.f32.mrf.mxu2  ;;  %v7551_v6 = vpop.f32.mrf.mxu3 }
 0x42a   : > { %10071 = vst.msk [vmem:[%s14775_s10 + $0x1c4] sm:$0xf] %vm9957_vm3, %v9046_v4  ;;  %v6912_v9 = vadd.f32 %v16530_v45, %v6911_v5  ;;  %v7552_v10 = vadd.f32 %v16530_v45, %v7551_v6  ;;  %v5634_v11 = vpop.f32.mrf.mxu0  ;;  %v6274_v12 = vpop.f32.mrf.mxu1 }
 0x42b   : > { %10327 = vst.msk [vmem:[%s14775_s10 + $0x5c4] sm:$0xf] %vm9957_vm3, %v9302_v40  ;;  %v5635_v15 = vadd.f32 %v16530_v45, %v5634_v11  ;;  %v6275_v16 = vadd.f32 %v16530_v45, %v6274_v12 }
 0x42c   : > { %v8534_v17 = vmax.f32 %v6912_v9, 0.0  ;;  %v8790_v18 = vmax.f32 %v7552_v10, 0.0 }
 0x42d   : > { %v8023_v19 = vmax.f32 %v5635_v15, 0.0  ;;  %v8279_v20 = vmax.f32 %v6275_v16, 0.0  ;;  %13450 = vmatmul.msk.bf16.gmra.mxu0 %vm3796_vm2, %v13979_v60  ;;  %13578 = vmatmul.msk.bf16.gmra.mxu1 %vm3796_vm2, %v14107_v7  ;;  %v13981_v16 = vld [vmem:[%s14693_s5 + $0x218] sm:$0xff] }
 0x42e   : > { %v9558_v21 = vpack.c.bf16 %v8534_v17, %v8534_v17  ;;  %v9814_v22 = vpack.c.bf16 %v8790_v18, %v8790_v18  ;;  %13706 = vmatmul.msk.bf16.gmra.mxu2 %vm3796_vm2, %v14235_v13  ;;  %13834 = vmatmul.msk.bf16.gmra.mxu3 %vm3796_vm2, %v14363_v14  ;;  %v14109_v17 = vld [vmem:[%s14693_s5 + $0x618] sm:$0xff] }
 0x42f   : > { %v9047_v23 = vpack.c.bf16 %v8023_v19, %v8023_v19  ;;  %v9303_v24 = vpack.c.bf16 %v8279_v20, %v8279_v20 }
 0x430   : > { %10583 = vst.msk [vmem:[%s14775_s10 + $0x9c4] sm:$0xf] %vm9957_vm3, %v9558_v21 }
 0x431   : > { %10839 = vst.msk [vmem:[%s14775_s10 + $0xdc4] sm:$0xf] %vm9957_vm3, %v9814_v22  ;;  %v6914_v8 = vpop.f32.mrf.mxu2  ;;  %v7554_v25 = vpop.f32.mrf.mxu3  ;;  %v14237_v22 = vld [vmem:[%s14693_s5 + $0xa18] sm:$0xff] }
 0x432   : > { %10072 = vst.msk [vmem:[%s14775_s10 + $0x1c8] sm:$0xf] %vm9957_vm3, %v9047_v23  ;;  %v6915_v27 = vadd.f32 %v16530_v45, %v6914_v8  ;;  %v7555_v28 = vadd.f32 %v16530_v45, %v7554_v25  ;;  %v5636_v29 = vpop.f32.mrf.mxu0  ;;  %v6276_v30 = vpop.f32.mrf.mxu1  ;;  %v14365_v23 = vld [vmem:[%s14693_s5 + $0xe18] sm:$0xff] }
 0x433   : > { %10328 = vst.msk [vmem:[%s14775_s10 + $0x5c8] sm:$0xf] %vm9957_vm3, %v9303_v24  ;;  %v5637_v31 = vadd.f32 %v16530_v45, %v5636_v29  ;;  %v6277_v32 = vadd.f32 %v16530_v45, %v6276_v30 }
 0x434   : > { %v8535_v33 = vmax.f32 %v6915_v27, 0.0  ;;  %v8791_v34 = vmax.f32 %v7555_v28, 0.0 }
 0x435   : > { %v8024_v35 = vmax.f32 %v5637_v31, 0.0  ;;  %v8280_v36 = vmax.f32 %v6277_v32, 0.0 }
 0x436   : > { %v9559_v37 = vpack.c.bf16 %v8535_v33, %v8535_v33  ;;  %v9815_v38 = vpack.c.bf16 %v8791_v34, %v8791_v34 }
 0x437   : > { %v9048_v39 = vpack.c.bf16 %v8024_v35, %v8024_v35  ;;  %v9304_v41 = vpack.c.bf16 %v8280_v36, %v8280_v36 }
 0x438   : > { %10584 = vst.msk [vmem:[%s14775_s10 + $0x9c8] sm:$0xf] %vm9957_vm3, %v9559_v37 }
 0x439   : > { %10840 = vst.msk [vmem:[%s14775_s10 + $0xdc8] sm:$0xf] %vm9957_vm3, %v9815_v38  ;;  %v6916_v42 = vpop.f32.mrf.mxu2  ;;  %v7556_v43 = vpop.f32.mrf.mxu3 }
 0x43a   : > { %10073 = vst.msk [vmem:[%s14775_s10 + $0x1cc] sm:$0xf] %vm9957_vm3, %v9048_v39  ;;  %v6917_v46 = vadd.f32 %v16530_v45, %v6916_v42  ;;  %v7557_v47 = vadd.f32 %v16530_v45, %v7556_v43  ;;  %v5639_v48 = vpop.f32.mrf.mxu0  ;;  %v6279_v49 = vpop.f32.mrf.mxu1 }
 0x43b   : > { %10329 = vst.msk [vmem:[%s14775_s10 + $0x5cc] sm:$0xf] %vm9957_vm3, %v9304_v41  ;;  %v5640_v52 = vadd.f32 %v16530_v45, %v5639_v48  ;;  %v6280_v53 = vadd.f32 %v16530_v45, %v6279_v49 }
 0x43c   : > { %v8536_v54 = vmax.f32 %v6917_v46, 0.0  ;;  %v8792_v55 = vmax.f32 %v7557_v47, 0.0 }
 0x43d   : > { %v8025_v56 = vmax.f32 %v5640_v52, 0.0  ;;  %v8281_v57 = vmax.f32 %v6280_v53, 0.0  ;;  %13451 = vmatmul.msk.bf16.gmra.mxu0 %vm3796_vm2, %v13980_v26  ;;  %13579 = vmatmul.msk.bf16.gmra.mxu1 %vm3796_vm2, %v14108_v44  ;;  %v13982_v53 = vld [vmem:[%s14693_s5 + $0x220] sm:$0xff] }
 0x43e   : > { %v9560_v58 = vpack.c.bf16 %v8536_v54, %v8536_v54  ;;  %v9816_v59 = vpack.c.bf16 %v8792_v55, %v8792_v55  ;;  %13707 = vmatmul.msk.bf16.gmra.mxu2 %vm3796_vm2, %v14236_v50  ;;  %13835 = vmatmul.msk.bf16.gmra.mxu3 %vm3796_vm2, %v14364_v51  ;;  %v14110_v54 = vld [vmem:[%s14693_s5 + $0x620] sm:$0xff] }
 0x43f   : > { %v9049_v61 = vpack.c.bf16 %v8025_v56, %v8025_v56  ;;  %v9305_v62 = vpack.c.bf16 %v8281_v57, %v8281_v57 }
 0x440   : > { %10585 = vst.msk [vmem:[%s14775_s10 + $0x9cc] sm:$0xf] %vm9957_vm3, %v9560_v58 }
 0x441   : > { %10841 = vst.msk [vmem:[%s14775_s10 + $0xdcc] sm:$0xf] %vm9957_vm3, %v9816_v59  ;;  %v6919_v63 = vpop.f32.mrf.mxu2  ;;  %v7559_v0 = vpop.f32.mrf.mxu3  ;;  %v14238_v59 = vld [vmem:[%s14693_s5 + $0xa20] sm:$0xff] }
 0x442   : > { %10074 = vst.msk [vmem:[%s14775_s10 + $0x1d0] sm:$0xf] %vm9957_vm3, %v9049_v61  ;;  %v6920_v1 = vadd.f32 %v16530_v45, %v6919_v63  ;;  %v7560_v2 = vadd.f32 %v16530_v45, %v7559_v0  ;;  %v5641_v3 = vpop.f32.mrf.mxu0  ;;  %v6281_v4 = vpop.f32.mrf.mxu1  ;;  %v14366_v61 = vld [vmem:[%s14693_s5 + $0xe20] sm:$0xff] }
 0x443   : > { %10330 = vst.msk [vmem:[%s14775_s10 + $0x5d0] sm:$0xf] %vm9957_vm3, %v9305_v62  ;;  %v5642_v40 = vadd.f32 %v16530_v45, %v5641_v3  ;;  %v6282_v5 = vadd.f32 %v16530_v45, %v6281_v4 }
 0x444   : > { %v8537_v6 = vmax.f32 %v6920_v1, 0.0  ;;  %v8793_v60 = vmax.f32 %v7560_v2, 0.0 }
 0x445   : > { %v8026_v7 = vmax.f32 %v5642_v40, 0.0  ;;  %v8282_v9 = vmax.f32 %v6282_v5, 0.0 }
 0x446   : > { %v9561_v10 = vpack.c.bf16 %v8537_v6, %v8537_v6  ;;  %v9817_v11 = vpack.c.bf16 %v8793_v60, %v8793_v60 }
 0x447   : > { %v9050_v12 = vpack.c.bf16 %v8026_v7, %v8026_v7  ;;  %v9306_v13 = vpack.c.bf16 %v8282_v9, %v8282_v9 }
 0x448   : > { %10586 = vst.msk [vmem:[%s14775_s10 + $0x9d0] sm:$0xf] %vm9957_vm3, %v9561_v10 }
 0x449   : > { %10842 = vst.msk [vmem:[%s14775_s10 + $0xdd0] sm:$0xf] %vm9957_vm3, %v9817_v11  ;;  %v6921_v14 = vpop.f32.mrf.mxu2  ;;  %v7561_v15 = vpop.f32.mrf.mxu3 }
 0x44a   : > { %10075 = vst.msk [vmem:[%s14775_s10 + $0x1d4] sm:$0xf] %vm9957_vm3, %v9050_v12  ;;  %v6922_v18 = vadd.f32 %v16530_v45, %v6921_v14  ;;  %v7562_v19 = vadd.f32 %v16530_v45, %v7561_v15  ;;  %v5644_v20 = vpop.f32.mrf.mxu0  ;;  %v6284_v21 = vpop.f32.mrf.mxu1 }
 0x44b   : > { %10331 = vst.msk [vmem:[%s14775_s10 + $0x5d4] sm:$0xf] %vm9957_vm3, %v9306_v13  ;;  %v5645_v24 = vadd.f32 %v16530_v45, %v5644_v20  ;;  %v6285_v8 = vadd.f32 %v16530_v45, %v6284_v21 }
 0x44c   : > { %v8538_v25 = vmax.f32 %v6922_v18, 0.0  ;;  %v8794_v27 = vmax.f32 %v7562_v19, 0.0 }
 0x44d   : > { %v8027_v28 = vmax.f32 %v5645_v24, 0.0  ;;  %v8283_v29 = vmax.f32 %v6285_v8, 0.0  ;;  %13452 = vmatmul.msk.bf16.gmra.mxu0 %vm3796_vm2, %v13981_v16  ;;  %13580 = vmatmul.msk.bf16.gmra.mxu1 %vm3796_vm2, %v14109_v17  ;;  %v13983_v8 = vld [vmem:[%s14693_s5 + $0x228] sm:$0xff] }
 0x44e   : > { %v9562_v30 = vpack.c.bf16 %v8538_v25, %v8538_v25  ;;  %v9818_v31 = vpack.c.bf16 %v8794_v27, %v8794_v27  ;;  %13708 = vmatmul.msk.bf16.gmra.mxu2 %vm3796_vm2, %v14237_v22  ;;  %13836 = vmatmul.msk.bf16.gmra.mxu3 %vm3796_vm2, %v14365_v23  ;;  %v14111_v25 = vld [vmem:[%s14693_s5 + $0x628] sm:$0xff] }
 0x44f   : > { %v9051_v32 = vpack.c.bf16 %v8027_v28, %v8027_v28  ;;  %v9307_v33 = vpack.c.bf16 %v8283_v29, %v8283_v29 }
 0x450   : > { %10587 = vst.msk [vmem:[%s14775_s10 + $0x9d4] sm:$0xf] %vm9957_vm3, %v9562_v30 }
 0x451   : > { %10843 = vst.msk [vmem:[%s14775_s10 + $0xdd4] sm:$0xf] %vm9957_vm3, %v9818_v31  ;;  %v6924_v34 = vpop.f32.mrf.mxu2  ;;  %v7564_v35 = vpop.f32.mrf.mxu3  ;;  %v14239_v31 = vld [vmem:[%s14693_s5 + $0xa28] sm:$0xff] }
 0x452   : > { %10076 = vst.msk [vmem:[%s14775_s10 + $0x1d8] sm:$0xf] %vm9957_vm3, %v9051_v32  ;;  %v6925_v36 = vadd.f32 %v16530_v45, %v6924_v34  ;;  %v7565_v37 = vadd.f32 %v16530_v45, %v7564_v35  ;;  %v5646_v38 = vpop.f32.mrf.mxu0  ;;  %v6286_v39 = vpop.f32.mrf.mxu1  ;;  %v14367_v32 = vld [vmem:[%s14693_s5 + $0xe28] sm:$0xff] }
 0x453   : > { %10332 = vst.msk [vmem:[%s14775_s10 + $0x5d8] sm:$0xf] %vm9957_vm3, %v9307_v33  ;;  %v5647_v41 = vadd.f32 %v16530_v45, %v5646_v38  ;;  %v6287_v42 = vadd.f32 %v16530_v45, %v6286_v39 }
 0x454   : > { %v8539_v43 = vmax.f32 %v6925_v36, 0.0  ;;  %v8795_v26 = vmax.f32 %v7565_v37, 0.0 }
 0x455   : > { %v8028_v44 = vmax.f32 %v5647_v41, 0.0  ;;  %v8284_v46 = vmax.f32 %v6287_v42, 0.0 }
 0x456   : > { %v9563_v47 = vpack.c.bf16 %v8539_v43, %v8539_v43  ;;  %v9819_v48 = vpack.c.bf16 %v8795_v26, %v8795_v26 }
 0x457   : > { %v9052_v49 = vpack.c.bf16 %v8028_v44, %v8028_v44  ;;  %v9308_v50 = vpack.c.bf16 %v8284_v46, %v8284_v46 }
 0x458   : > { %10588 = vst.msk [vmem:[%s14775_s10 + $0x9d8] sm:$0xf] %vm9957_vm3, %v9563_v47 }
 0x459   : > { %10844 = vst.msk [vmem:[%s14775_s10 + $0xdd8] sm:$0xf] %vm9957_vm3, %v9819_v48  ;;  %v6926_v51 = vpop.f32.mrf.mxu2  ;;  %v7566_v52 = vpop.f32.mrf.mxu3 }
 0x45a   : > { %10077 = vst.msk [vmem:[%s14775_s10 + $0x1dc] sm:$0xf] %vm9957_vm3, %v9052_v49  ;;  %v6927_v55 = vadd.f32 %v16530_v45, %v6926_v51  ;;  %v7567_v56 = vadd.f32 %v16530_v45, %v7566_v52  ;;  %v5649_v57 = vpop.f32.mrf.mxu0  ;;  %v6289_v58 = vpop.f32.mrf.mxu1 }
 0x45b   : > { %10333 = vst.msk [vmem:[%s14775_s10 + $0x5dc] sm:$0xf] %vm9957_vm3, %v9308_v50  ;;  %v5650_v62 = vadd.f32 %v16530_v45, %v5649_v57  ;;  %v6290_v63 = vadd.f32 %v16530_v45, %v6289_v58 }
 0x45c   : > { %v8540_v0 = vmax.f32 %v6927_v55, 0.0  ;;  %v8796_v1 = vmax.f32 %v7567_v56, 0.0 }
 0x45d   : > { %v8029_v2 = vmax.f32 %v5650_v62, 0.0  ;;  %v8285_v3 = vmax.f32 %v6290_v63, 0.0  ;;  %13453 = vmatmul.msk.bf16.gmra.mxu0 %vm3796_vm2, %v13982_v53  ;;  %13581 = vmatmul.msk.bf16.gmra.mxu1 %vm3796_vm2, %v14110_v54  ;;  %v13984_v63 = vld [vmem:[%s14693_s5 + $0x230] sm:$0xff] }
 0x45e   : > { %v9564_v4 = vpack.c.bf16 %v8540_v0, %v8540_v0  ;;  %v9820_v40 = vpack.c.bf16 %v8796_v1, %v8796_v1  ;;  %13709 = vmatmul.msk.bf16.gmra.mxu2 %vm3796_vm2, %v14238_v59  ;;  %13837 = vmatmul.msk.bf16.gmra.mxu3 %vm3796_vm2, %v14366_v61  ;;  %v14112_v0 = vld [vmem:[%s14693_s5 + $0x630] sm:$0xff] }
 0x45f   : > { %v9053_v5 = vpack.c.bf16 %v8029_v2, %v8029_v2  ;;  %v9309_v6 = vpack.c.bf16 %v8285_v3, %v8285_v3 }
 0x460   : > { %10589 = vst.msk [vmem:[%s14775_s10 + $0x9dc] sm:$0xf] %vm9957_vm3, %v9564_v4 }
 0x461   : > { %10845 = vst.msk [vmem:[%s14775_s10 + $0xddc] sm:$0xf] %vm9957_vm3, %v9820_v40  ;;  %v6929_v60 = vpop.f32.mrf.mxu2  ;;  %v7569_v7 = vpop.f32.mrf.mxu3  ;;  %v14240_v40 = vld [vmem:[%s14693_s5 + $0xa30] sm:$0xff] }
 0x462   : > { %10078 = vst.msk [vmem:[%s14775_s10 + $0x1e0] sm:$0xf] %vm9957_vm3, %v9053_v5  ;;  %v6930_v9 = vadd.f32 %v16530_v45, %v6929_v60  ;;  %v7570_v10 = vadd.f32 %v16530_v45, %v7569_v7  ;;  %v5651_v11 = vpop.f32.mrf.mxu0  ;;  %v6291_v12 = vpop.f32.mrf.mxu1  ;;  %v14368_v5 = vld [vmem:[%s14693_s5 + $0xe30] sm:$0xff] }
 0x463   : > { %10334 = vst.msk [vmem:[%s14775_s10 + $0x5e0] sm:$0xf] %vm9957_vm3, %v9309_v6  ;;  %v5652_v13 = vadd.f32 %v16530_v45, %v5651_v11  ;;  %v6292_v14 = vadd.f32 %v16530_v45, %v6291_v12 }
 0x464   : > { %v8541_v15 = vmax.f32 %v6930_v9, 0.0  ;;  %v8797_v16 = vmax.f32 %v7570_v10, 0.0 }
 0x465   : > { %v8030_v17 = vmax.f32 %v5652_v13, 0.0  ;;  %v8286_v18 = vmax.f32 %v6292_v14, 0.0 }
 0x466   : > { %v9565_v19 = vpack.c.bf16 %v8541_v15, %v8541_v15  ;;  %v9821_v20 = vpack.c.bf16 %v8797_v16, %v8797_v16 }
 0x467   : > { %v9054_v21 = vpack.c.bf16 %v8030_v17, %v8030_v17  ;;  %v9310_v22 = vpack.c.bf16 %v8286_v18, %v8286_v18 }
 0x468   : > { %10590 = vst.msk [vmem:[%s14775_s10 + $0x9e0] sm:$0xf] %vm9957_vm3, %v9565_v19 }
 0x469   : > { %10846 = vst.msk [vmem:[%s14775_s10 + $0xde0] sm:$0xf] %vm9957_vm3, %v9821_v20  ;;  %v6931_v23 = vpop.f32.mrf.mxu2  ;;  %v7571_v24 = vpop.f32.mrf.mxu3 }
 0x46a   : > { %10079 = vst.msk [vmem:[%s14775_s10 + $0x1e4] sm:$0xf] %vm9957_vm3, %v9054_v21  ;;  %v6932_v27 = vadd.f32 %v16530_v45, %v6931_v23  ;;  %v7572_v28 = vadd.f32 %v16530_v45, %v7571_v24  ;;  %v5654_v29 = vpop.f32.mrf.mxu0  ;;  %v6294_v30 = vpop.f32.mrf.mxu1 }
 0x46b   : > { %10335 = vst.msk [vmem:[%s14775_s10 + $0x5e4] sm:$0xf] %vm9957_vm3, %v9310_v22  ;;  %v5655_v33 = vadd.f32 %v16530_v45, %v5654_v29  ;;  %v6295_v34 = vadd.f32 %v16530_v45, %v6294_v30 }
 0x46c   : > { %v8542_v35 = vmax.f32 %v6932_v27, 0.0  ;;  %v8798_v36 = vmax.f32 %v7572_v28, 0.0 }
 0x46d   : > { %v8031_v37 = vmax.f32 %v5655_v33, 0.0  ;;  %v8287_v38 = vmax.f32 %v6295_v34, 0.0  ;;  %13454 = vmatmul.msk.bf16.gmra.mxu0 %vm3796_vm2, %v13983_v8  ;;  %13582 = vmatmul.msk.bf16.gmra.mxu1 %vm3796_vm2, %v14111_v25  ;;  %v13985_v34 = vld [vmem:[%s14693_s5 + $0x238] sm:$0xff] }
 0x46e   : > { %v9566_v39 = vpack.c.bf16 %v8542_v35, %v8542_v35  ;;  %v9822_v41 = vpack.c.bf16 %v8798_v36, %v8798_v36  ;;  %13710 = vmatmul.msk.bf16.gmra.mxu2 %vm3796_vm2, %v14239_v31  ;;  %13838 = vmatmul.msk.bf16.gmra.mxu3 %vm3796_vm2, %v14367_v32  ;;  %v14113_v35 = vld [vmem:[%s14693_s5 + $0x638] sm:$0xff] }
 0x46f   : > { %v9055_v42 = vpack.c.bf16 %v8031_v37, %v8031_v37  ;;  %v9311_v43 = vpack.c.bf16 %v8287_v38, %v8287_v38 }
 0x470   : > { %10591 = vst.msk [vmem:[%s14775_s10 + $0x9e4] sm:$0xf] %vm9957_vm3, %v9566_v39 }
 0x471   : > { %10847 = vst.msk [vmem:[%s14775_s10 + $0xde4] sm:$0xf] %vm9957_vm3, %v9822_v41  ;;  %v6934_v26 = vpop.f32.mrf.mxu2  ;;  %v7574_v44 = vpop.f32.mrf.mxu3  ;;  %v14241_v41 = vld [vmem:[%s14693_s5 + $0xa38] sm:$0xff] }
 0x472   : > { %10080 = vst.msk [vmem:[%s14775_s10 + $0x1e8] sm:$0xf] %vm9957_vm3, %v9055_v42  ;;  %v6935_v46 = vadd.f32 %v16530_v45, %v6934_v26  ;;  %v7575_v47 = vadd.f32 %v16530_v45, %v7574_v44  ;;  %v5656_v48 = vpop.f32.mrf.mxu0  ;;  %v6296_v49 = vpop.f32.mrf.mxu1  ;;  %v14369_v42 = vld [vmem:[%s14693_s5 + $0xe38] sm:$0xff] }
 0x473   : > { %10336 = vst.msk [vmem:[%s14775_s10 + $0x5e8] sm:$0xf] %vm9957_vm3, %v9311_v43  ;;  %v5657_v50 = vadd.f32 %v16530_v45, %v5656_v48  ;;  %v6297_v51 = vadd.f32 %v16530_v45, %v6296_v49 }
 0x474   : > { %v8543_v52 = vmax.f32 %v6935_v46, 0.0  ;;  %v8799_v53 = vmax.f32 %v7575_v47, 0.0 }
 0x475   : > { %v8032_v54 = vmax.f32 %v5657_v50, 0.0  ;;  %v8288_v55 = vmax.f32 %v6297_v51, 0.0 }
 0x476   : > { %v9567_v56 = vpack.c.bf16 %v8543_v52, %v8543_v52  ;;  %v9823_v57 = vpack.c.bf16 %v8799_v53, %v8799_v53 }
 0x477   : > { %v9056_v58 = vpack.c.bf16 %v8032_v54, %v8032_v54  ;;  %v9312_v59 = vpack.c.bf16 %v8288_v55, %v8288_v55 }
 0x478   : > { %10592 = vst.msk [vmem:[%s14775_s10 + $0x9e8] sm:$0xf] %vm9957_vm3, %v9567_v56 }
 0x479   : > { %10848 = vst.msk [vmem:[%s14775_s10 + $0xde8] sm:$0xf] %vm9957_vm3, %v9823_v57  ;;  %v6936_v61 = vpop.f32.mrf.mxu2  ;;  %v7576_v62 = vpop.f32.mrf.mxu3 }
 0x47a   : > { %10081 = vst.msk [vmem:[%s14775_s10 + $0x1ec] sm:$0xf] %vm9957_vm3, %v9056_v58  ;;  %v6937_v1 = vadd.f32 %v16530_v45, %v6936_v61  ;;  %v7577_v2 = vadd.f32 %v16530_v45, %v7576_v62  ;;  %v5659_v3 = vpop.f32.mrf.mxu0  ;;  %v6299_v4 = vpop.f32.mrf.mxu1 }
 0x47b   : > { %10337 = vst.msk [vmem:[%s14775_s10 + $0x5ec] sm:$0xf] %vm9957_vm3, %v9312_v59  ;;  %v5660_v6 = vadd.f32 %v16530_v45, %v5659_v3  ;;  %v6300_v60 = vadd.f32 %v16530_v45, %v6299_v4 }
 0x47c   : > { %v8544_v7 = vmax.f32 %v6937_v1, 0.0  ;;  %v8800_v9 = vmax.f32 %v7577_v2, 0.0 }
 0x47d   : > { %v8033_v10 = vmax.f32 %v5660_v6, 0.0  ;;  %v8289_v11 = vmax.f32 %v6300_v60, 0.0  ;;  %13455 = vmatmul.msk.bf16.gmra.mxu0 %vm3796_vm2, %v13984_v63  ;;  %13583 = vmatmul.msk.bf16.gmra.mxu1 %vm3796_vm2, %v14112_v0  ;;  %v13986_v60 = vld [vmem:[%s14693_s5 + $0x240] sm:$0xff] }
 0x47e   : > { %v9568_v12 = vpack.c.bf16 %v8544_v7, %v8544_v7  ;;  %v9824_v13 = vpack.c.bf16 %v8800_v9, %v8800_v9  ;;  %13711 = vmatmul.msk.bf16.gmra.mxu2 %vm3796_vm2, %v14240_v40  ;;  %13839 = vmatmul.msk.bf16.gmra.mxu3 %vm3796_vm2, %v14368_v5  ;;  %v14114_v7 = vld [vmem:[%s14693_s5 + $0x640] sm:$0xff] }
 0x47f   : > { %v9057_v14 = vpack.c.bf16 %v8033_v10, %v8033_v10  ;;  %v9313_v15 = vpack.c.bf16 %v8289_v11, %v8289_v11 }
 0x480   : > { %10593 = vst.msk [vmem:[%s14775_s10 + $0x9ec] sm:$0xf] %vm9957_vm3, %v9568_v12 }
 0x481   : > { %10849 = vst.msk [vmem:[%s14775_s10 + $0xdec] sm:$0xf] %vm9957_vm3, %v9824_v13  ;;  %v6939_v16 = vpop.f32.mrf.mxu2  ;;  %v7579_v17 = vpop.f32.mrf.mxu3  ;;  %v14242_v13 = vld [vmem:[%s14693_s5 + $0xa40] sm:$0xff] }
 0x482   : > { %10082 = vst.msk [vmem:[%s14775_s10 + $0x1f0] sm:$0xf] %vm9957_vm3, %v9057_v14  ;;  %v6940_v18 = vadd.f32 %v16530_v45, %v6939_v16  ;;  %v7580_v19 = vadd.f32 %v16530_v45, %v7579_v17  ;;  %v5661_v20 = vpop.f32.mrf.mxu0  ;;  %v6301_v21 = vpop.f32.mrf.mxu1  ;;  %v14370_v14 = vld [vmem:[%s14693_s5 + $0xe40] sm:$0xff] }
 0x483   : > { %10338 = vst.msk [vmem:[%s14775_s10 + $0x5f0] sm:$0xf] %vm9957_vm3, %v9313_v15  ;;  %v5662_v22 = vadd.f32 %v16530_v45, %v5661_v20  ;;  %v6302_v23 = vadd.f32 %v16530_v45, %v6301_v21 }
 0x484   : > { %v8545_v24 = vmax.f32 %v6940_v18, 0.0  ;;  %v8801_v8 = vmax.f32 %v7580_v19, 0.0 }
 0x485   : > { %v8034_v25 = vmax.f32 %v5662_v22, 0.0  ;;  %v8290_v27 = vmax.f32 %v6302_v23, 0.0 }
 0x486   : > { %v9569_v28 = vpack.c.bf16 %v8545_v24, %v8545_v24  ;;  %v9825_v29 = vpack.c.bf16 %v8801_v8, %v8801_v8 }
 0x487   : > { %v9058_v30 = vpack.c.bf16 %v8034_v25, %v8034_v25  ;;  %v9314_v31 = vpack.c.bf16 %v8290_v27, %v8290_v27 }
 0x488   : > { %10594 = vst.msk [vmem:[%s14775_s10 + $0x9f0] sm:$0xf] %vm9957_vm3, %v9569_v28 }
 0x489   : > { %10850 = vst.msk [vmem:[%s14775_s10 + $0xdf0] sm:$0xf] %vm9957_vm3, %v9825_v29  ;;  %v6941_v32 = vpop.f32.mrf.mxu2  ;;  %v7581_v33 = vpop.f32.mrf.mxu3 }
 0x48a   : > { %10083 = vst.msk [vmem:[%s14775_s10 + $0x1f4] sm:$0xf] %vm9957_vm3, %v9058_v30  ;;  %v6942_v36 = vadd.f32 %v16530_v45, %v6941_v32  ;;  %v7582_v37 = vadd.f32 %v16530_v45, %v7581_v33  ;;  %v5664_v38 = vpop.f32.mrf.mxu0  ;;  %v6304_v39 = vpop.f32.mrf.mxu1 }
 0x48b   : > { %10339 = vst.msk [vmem:[%s14775_s10 + $0x5f4] sm:$0xf] %vm9957_vm3, %v9314_v31  ;;  %v5665_v43 = vadd.f32 %v16530_v45, %v5664_v38  ;;  %v6305_v26 = vadd.f32 %v16530_v45, %v6304_v39 }
 0x48c   : > { %v8546_v44 = vmax.f32 %v6942_v36, 0.0  ;;  %v8802_v46 = vmax.f32 %v7582_v37, 0.0 }
 0x48d   : > { %v8035_v47 = vmax.f32 %v5665_v43, 0.0  ;;  %v8291_v48 = vmax.f32 %v6305_v26, 0.0  ;;  %13456 = vmatmul.msk.bf16.gmra.mxu0 %vm3796_vm2, %v13985_v34  ;;  %13584 = vmatmul.msk.bf16.gmra.mxu1 %vm3796_vm2, %v14113_v35  ;;  %v13987_v26 = vld [vmem:[%s14693_s5 + $0x248] sm:$0xff] }
 0x48e   : > { %v9570_v49 = vpack.c.bf16 %v8546_v44, %v8546_v44  ;;  %v9826_v50 = vpack.c.bf16 %v8802_v46, %v8802_v46  ;;  %13712 = vmatmul.msk.bf16.gmra.mxu2 %vm3796_vm2, %v14241_v41  ;;  %13840 = vmatmul.msk.bf16.gmra.mxu3 %vm3796_vm2, %v14369_v42  ;;  %v14115_v44 = vld [vmem:[%s14693_s5 + $0x648] sm:$0xff] }
 0x48f   : > { %v9059_v51 = vpack.c.bf16 %v8035_v47, %v8035_v47  ;;  %v9315_v52 = vpack.c.bf16 %v8291_v48, %v8291_v48 }
 0x490   : > { %10595 = vst.msk [vmem:[%s14775_s10 + $0x9f4] sm:$0xf] %vm9957_vm3, %v9570_v49 }
 0x491   : > { %10851 = vst.msk [vmem:[%s14775_s10 + $0xdf4] sm:$0xf] %vm9957_vm3, %v9826_v50  ;;  %v6944_v53 = vpop.f32.mrf.mxu2  ;;  %v7584_v54 = vpop.f32.mrf.mxu3  ;;  %v14243_v50 = vld [vmem:[%s14693_s5 + $0xa48] sm:$0xff] }
 0x492   : > { %10084 = vst.msk [vmem:[%s14775_s10 + $0x1f8] sm:$0xf] %vm9957_vm3, %v9059_v51  ;;  %v6945_v55 = vadd.f32 %v16530_v45, %v6944_v53  ;;  %v7585_v56 = vadd.f32 %v16530_v45, %v7584_v54  ;;  %v5666_v57 = vpop.f32.mrf.mxu0  ;;  %v6306_v58 = vpop.f32.mrf.mxu1  ;;  %v14371_v51 = vld [vmem:[%s14693_s5 + $0xe48] sm:$0xff] }
 0x493   : > { %10340 = vst.msk [vmem:[%s14775_s10 + $0x5f8] sm:$0xf] %vm9957_vm3, %v9315_v52  ;;  %v5667_v59 = vadd.f32 %v16530_v45, %v5666_v57  ;;  %v6307_v61 = vadd.f32 %v16530_v45, %v6306_v58 }
 0x494   : > { %v8547_v62 = vmax.f32 %v6945_v55, 0.0  ;;  %v8803_v63 = vmax.f32 %v7585_v56, 0.0 }
 0x495   : > { %v8036_v0 = vmax.f32 %v5667_v59, 0.0  ;;  %v8292_v1 = vmax.f32 %v6307_v61, 0.0 }
 0x496   : > { %v9571_v2 = vpack.c.bf16 %v8547_v62, %v8547_v62  ;;  %v9827_v3 = vpack.c.bf16 %v8803_v63, %v8803_v63 }
 0x497   : > { %v9060_v4 = vpack.c.bf16 %v8036_v0, %v8036_v0  ;;  %v9316_v40 = vpack.c.bf16 %v8292_v1, %v8292_v1  ;;  %v16887_v0 = vld [vmem:[%s18998_s2] ss:$0 sm:$0xff] }
 0x498   : > { %10596 = vst.msk [vmem:[%s14775_s10 + $0x9f8] sm:$0xf] %vm9957_vm3, %v9571_v2 }
 0x499   : > { %10852 = vst.msk [vmem:[%s14775_s10 + $0xdf8] sm:$0xf] %vm9957_vm3, %v9827_v3  ;;  %v6946_v5 = vpop.f32.mrf.mxu2  ;;  %v7586_v6 = vpop.f32.mrf.mxu3 }
 0x49a   : > { %10085 = vst.msk [vmem:[%s14775_s10 + $0x1fc] sm:$0xf] %vm9957_vm3, %v9060_v4  ;;  %v6947_v9 = vadd.f32 %v16530_v45, %v6946_v5  ;;  %v7587_v10 = vadd.f32 %v16530_v45, %v7586_v6  ;;  %v5669_v11 = vpop.f32.mrf.mxu0  ;;  %v6309_v12 = vpop.f32.mrf.mxu1 }
 0x49b   : > { %10341 = vst.msk [vmem:[%s14775_s10 + $0x5fc] sm:$0xf] %vm9957_vm3, %v9316_v40  ;;  %v5670_v15 = vadd.f32 %v16530_v45, %v5669_v11  ;;  %v6310_v16 = vadd.f32 %v16530_v45, %v6309_v12 }
 0x49c   : > { %v8548_v17 = vmax.f32 %v6947_v9, 0.0  ;;  %v8804_v18 = vmax.f32 %v7587_v10, 0.0 }
 0x49d   : > { %v8037_v19 = vmax.f32 %v5670_v15, 0.0  ;;  %v8293_v20 = vmax.f32 %v6310_v16, 0.0  ;;  %13457 = vmatmul.msk.bf16.gmra.mxu0 %vm3796_vm2, %v13986_v60  ;;  %13585 = vmatmul.msk.bf16.gmra.mxu1 %vm3796_vm2, %v14114_v7  ;;  %v13988_v16 = vld [vmem:[%s14693_s5 + $0x250] sm:$0xff] }
 0x49e   : > { %v9572_v21 = vpack.c.bf16 %v8548_v17, %v8548_v17  ;;  %v9828_v22 = vpack.c.bf16 %v8804_v18, %v8804_v18  ;;  %13713 = vmatmul.msk.bf16.gmra.mxu2 %vm3796_vm2, %v14242_v13  ;;  %13841 = vmatmul.msk.bf16.gmra.mxu3 %vm3796_vm2, %v14370_v14  ;;  %v14116_v17 = vld [vmem:[%s14693_s5 + $0x650] sm:$0xff] }
 0x49f   : > { %v9061_v23 = vpack.c.bf16 %v8037_v19, %v8037_v19  ;;  %v9317_v24 = vpack.c.bf16 %v8293_v20, %v8293_v20 }
 0x4a0   : > { %10597 = vst.msk [vmem:[%s14775_s10 + $0x9fc] sm:$0xf] %vm9957_vm3, %v9572_v21 }
 0x4a1   : > { %10853 = vst.msk [vmem:[%s14775_s10 + $0xdfc] sm:$0xf] %vm9957_vm3, %v9828_v22  ;;  %v6949_v8 = vpop.f32.mrf.mxu2  ;;  %v7589_v25 = vpop.f32.mrf.mxu3  ;;  %v14244_v22 = vld [vmem:[%s14693_s5 + $0xa50] sm:$0xff] }
 0x4a2   : > { %10086 = vst.msk [vmem:[%s14775_s10 + $0x200] sm:$0xf] %vm9957_vm3, %v9061_v23  ;;  %v6950_v27 = vadd.f32 %v16530_v45, %v6949_v8  ;;  %v7590_v28 = vadd.f32 %v16530_v45, %v7589_v25  ;;  %v5671_v29 = vpop.f32.mrf.mxu0  ;;  %v6311_v30 = vpop.f32.mrf.mxu1  ;;  %v14372_v23 = vld [vmem:[%s14693_s5 + $0xe50] sm:$0xff] }
 0x4a3   : > { %10342 = vst.msk [vmem:[%s14775_s10 + $0x600] sm:$0xf] %vm9957_vm3, %v9317_v24  ;;  %v5672_v31 = vadd.f32 %v16530_v45, %v5671_v29  ;;  %v6312_v32 = vadd.f32 %v16530_v45, %v6311_v30 }
 0x4a4   : > { %v8549_v33 = vmax.f32 %v6950_v27, 0.0  ;;  %v8805_v34 = vmax.f32 %v7590_v28, 0.0 }
 0x4a5   : > { %v8038_v35 = vmax.f32 %v5672_v31, 0.0  ;;  %v8294_v36 = vmax.f32 %v6312_v32, 0.0 }
 0x4a6   : > { %v9573_v37 = vpack.c.bf16 %v8549_v33, %v8549_v33  ;;  %v9829_v38 = vpack.c.bf16 %v8805_v34, %v8805_v34 }
 0x4a7   : > { %v9062_v39 = vpack.c.bf16 %v8038_v35, %v8038_v35  ;;  %v9318_v41 = vpack.c.bf16 %v8294_v36, %v8294_v36 }
 0x4a8   : > { %10598 = vst.msk [vmem:[%s14775_s10 + $0xa00] sm:$0xf] %vm9957_vm3, %v9573_v37 }
 0x4a9   : > { %10854 = vst.msk [vmem:[%s14775_s10 + $0xe00] sm:$0xf] %vm9957_vm3, %v9829_v38  ;;  %v6951_v42 = vpop.f32.mrf.mxu2  ;;  %v7591_v43 = vpop.f32.mrf.mxu3 }
 0x4aa   : > { %10087 = vst.msk [vmem:[%s14775_s10 + $0x204] sm:$0xf] %vm9957_vm3, %v9062_v39  ;;  %v6952_v46 = vadd.f32 %v16530_v45, %v6951_v42  ;;  %v7592_v47 = vadd.f32 %v16530_v45, %v7591_v43  ;;  %v5674_v48 = vpop.f32.mrf.mxu0  ;;  %v6314_v49 = vpop.f32.mrf.mxu1 }
 0x4ab   : > { %10343 = vst.msk [vmem:[%s14775_s10 + $0x604] sm:$0xf] %vm9957_vm3, %v9318_v41  ;;  %v5675_v52 = vadd.f32 %v16530_v45, %v5674_v48  ;;  %v6315_v53 = vadd.f32 %v16530_v45, %v6314_v49 }
 0x4ac   : > { %v8550_v54 = vmax.f32 %v6952_v46, 0.0  ;;  %v8806_v55 = vmax.f32 %v7592_v47, 0.0 }
 0x4ad   : > { %v8039_v56 = vmax.f32 %v5675_v52, 0.0  ;;  %v8295_v57 = vmax.f32 %v6315_v53, 0.0  ;;  %13458 = vmatmul.msk.bf16.gmra.mxu0 %vm3796_vm2, %v13987_v26  ;;  %13586 = vmatmul.msk.bf16.gmra.mxu1 %vm3796_vm2, %v14115_v44  ;;  %v13989_v53 = vld [vmem:[%s14693_s5 + $0x258] sm:$0xff] }
 0x4ae   : > { %v9574_v58 = vpack.c.bf16 %v8550_v54, %v8550_v54  ;;  %v9830_v59 = vpack.c.bf16 %v8806_v55, %v8806_v55  ;;  %13714 = vmatmul.msk.bf16.gmra.mxu2 %vm3796_vm2, %v14243_v50  ;;  %13842 = vmatmul.msk.bf16.gmra.mxu3 %vm3796_vm2, %v14371_v51  ;;  %v14117_v54 = vld [vmem:[%s14693_s5 + $0x658] sm:$0xff] }
 0x4af   : > { %v9063_v61 = vpack.c.bf16 %v8039_v56, %v8039_v56  ;;  %v9319_v62 = vpack.c.bf16 %v8295_v57, %v8295_v57 }
 0x4b0   : > { %10599 = vst.msk [vmem:[%s14775_s10 + $0xa04] sm:$0xf] %vm9957_vm3, %v9574_v58 }
 0x4b1   : > { %10855 = vst.msk [vmem:[%s14775_s10 + $0xe04] sm:$0xf] %vm9957_vm3, %v9830_v59  ;;  %v6954_v45 = vpop.f32.mrf.mxu2  ;;  %v7594_v63 = vpop.f32.mrf.mxu3  ;;  %v14245_v59 = vld [vmem:[%s14693_s5 + $0xa58] sm:$0xff] }
 0x4b2   : > { %10088 = vst.msk [vmem:[%s14775_s10 + $0x208] sm:$0xf] %vm9957_vm3, %v9063_v61  ;;  %v6955_v1 = vadd.f32 %v16887_v0, %v6954_v45  ;;  %v7595_v2 = vadd.f32 %v16887_v0, %v7594_v63  ;;  %v5676_v3 = vpop.f32.mrf.mxu0  ;;  %v6316_v4 = vpop.f32.mrf.mxu1  ;;  %v14373_v61 = vld [vmem:[%s14693_s5 + $0xe58] sm:$0xff] }
 0x4b3   : > { %10344 = vst.msk [vmem:[%s14775_s10 + $0x608] sm:$0xf] %vm9957_vm3, %v9319_v62  ;;  %v5677_v40 = vadd.f32 %v16887_v0, %v5676_v3  ;;  %v6317_v5 = vadd.f32 %v16887_v0, %v6316_v4 }
 0x4b4   : > { %v8551_v6 = vmax.f32 %v6955_v1, 0.0  ;;  %v8807_v60 = vmax.f32 %v7595_v2, 0.0 }
 0x4b5   : > { %v8040_v7 = vmax.f32 %v5677_v40, 0.0  ;;  %v8296_v9 = vmax.f32 %v6317_v5, 0.0 }
 0x4b6   : > { %v9575_v10 = vpack.c.bf16 %v8551_v6, %v8551_v6  ;;  %v9831_v11 = vpack.c.bf16 %v8807_v60, %v8807_v60 }
 0x4b7   : > { %v9064_v12 = vpack.c.bf16 %v8040_v7, %v8040_v7  ;;  %v9320_v13 = vpack.c.bf16 %v8296_v9, %v8296_v9 }
 0x4b8   : > { %10600 = vst.msk [vmem:[%s14775_s10 + $0xa08] sm:$0xf] %vm9957_vm3, %v9575_v10 }
 0x4b9   : > { %10856 = vst.msk [vmem:[%s14775_s10 + $0xe08] sm:$0xf] %vm9957_vm3, %v9831_v11  ;;  %v6956_v14 = vpop.f32.mrf.mxu2  ;;  %v7596_v15 = vpop.f32.mrf.mxu3 }
 0x4ba   : > { %10089 = vst.msk [vmem:[%s14775_s10 + $0x20c] sm:$0xf] %vm9957_vm3, %v9064_v12  ;;  %v6957_v18 = vadd.f32 %v16887_v0, %v6956_v14  ;;  %v7597_v19 = vadd.f32 %v16887_v0, %v7596_v15  ;;  %v5679_v20 = vpop.f32.mrf.mxu0  ;;  %v6319_v21 = vpop.f32.mrf.mxu1 }
 0x4bb   : > { %10345 = vst.msk [vmem:[%s14775_s10 + $0x60c] sm:$0xf] %vm9957_vm3, %v9320_v13  ;;  %v5680_v24 = vadd.f32 %v16887_v0, %v5679_v20  ;;  %v6320_v8 = vadd.f32 %v16887_v0, %v6319_v21 }
 0x4bc   : > { %v8552_v25 = vmax.f32 %v6957_v18, 0.0  ;;  %v8808_v27 = vmax.f32 %v7597_v19, 0.0 }
 0x4bd   : > { %v8041_v28 = vmax.f32 %v5680_v24, 0.0  ;;  %v8297_v29 = vmax.f32 %v6320_v8, 0.0  ;;  %13459 = vmatmul.msk.bf16.gmra.mxu0 %vm3796_vm2, %v13988_v16  ;;  %13587 = vmatmul.msk.bf16.gmra.mxu1 %vm3796_vm2, %v14116_v17  ;;  %v13990_v8 = vld [vmem:[%s14693_s5 + $0x260] sm:$0xff] }
 0x4be   : > { %v9576_v30 = vpack.c.bf16 %v8552_v25, %v8552_v25  ;;  %v9832_v31 = vpack.c.bf16 %v8808_v27, %v8808_v27  ;;  %13715 = vmatmul.msk.bf16.gmra.mxu2 %vm3796_vm2, %v14244_v22  ;;  %13843 = vmatmul.msk.bf16.gmra.mxu3 %vm3796_vm2, %v14372_v23  ;;  %v14118_v25 = vld [vmem:[%s14693_s5 + $0x660] sm:$0xff] }
 0x4bf   : > { %v9065_v32 = vpack.c.bf16 %v8041_v28, %v8041_v28  ;;  %v9321_v33 = vpack.c.bf16 %v8297_v29, %v8297_v29 }
 0x4c0   : > { %10601 = vst.msk [vmem:[%s14775_s10 + $0xa0c] sm:$0xf] %vm9957_vm3, %v9576_v30 }
 0x4c1   : > { %10857 = vst.msk [vmem:[%s14775_s10 + $0xe0c] sm:$0xf] %vm9957_vm3, %v9832_v31  ;;  %v6959_v34 = vpop.f32.mrf.mxu2  ;;  %v7599_v35 = vpop.f32.mrf.mxu3  ;;  %v14246_v31 = vld [vmem:[%s14693_s5 + $0xa60] sm:$0xff] }
 0x4c2   : > { %10090 = vst.msk [vmem:[%s14775_s10 + $0x210] sm:$0xf] %vm9957_vm3, %v9065_v32  ;;  %v6960_v36 = vadd.f32 %v16887_v0, %v6959_v34  ;;  %v7600_v37 = vadd.f32 %v16887_v0, %v7599_v35  ;;  %v5681_v38 = vpop.f32.mrf.mxu0  ;;  %v6321_v39 = vpop.f32.mrf.mxu1  ;;  %v14374_v32 = vld [vmem:[%s14693_s5 + $0xe60] sm:$0xff] }
 0x4c3   : > { %10346 = vst.msk [vmem:[%s14775_s10 + $0x610] sm:$0xf] %vm9957_vm3, %v9321_v33  ;;  %v5682_v41 = vadd.f32 %v16887_v0, %v5681_v38  ;;  %v6322_v42 = vadd.f32 %v16887_v0, %v6321_v39 }
 0x4c4   : > { %v8553_v43 = vmax.f32 %v6960_v36, 0.0  ;;  %v8809_v26 = vmax.f32 %v7600_v37, 0.0 }
 0x4c5   : > { %v8042_v44 = vmax.f32 %v5682_v41, 0.0  ;;  %v8298_v46 = vmax.f32 %v6322_v42, 0.0 }
 0x4c6   : > { %v9577_v47 = vpack.c.bf16 %v8553_v43, %v8553_v43  ;;  %v9833_v48 = vpack.c.bf16 %v8809_v26, %v8809_v26 }
 0x4c7   : > { %v9066_v49 = vpack.c.bf16 %v8042_v44, %v8042_v44  ;;  %v9322_v50 = vpack.c.bf16 %v8298_v46, %v8298_v46 }
 0x4c8   : > { %10602 = vst.msk [vmem:[%s14775_s10 + $0xa10] sm:$0xf] %vm9957_vm3, %v9577_v47 }
 0x4c9   : > { %10858 = vst.msk [vmem:[%s14775_s10 + $0xe10] sm:$0xf] %vm9957_vm3, %v9833_v48  ;;  %v6961_v51 = vpop.f32.mrf.mxu2  ;;  %v7601_v52 = vpop.f32.mrf.mxu3 }
 0x4ca   : > { %10091 = vst.msk [vmem:[%s14775_s10 + $0x214] sm:$0xf] %vm9957_vm3, %v9066_v49  ;;  %v6962_v55 = vadd.f32 %v16887_v0, %v6961_v51  ;;  %v7602_v56 = vadd.f32 %v16887_v0, %v7601_v52  ;;  %v5684_v57 = vpop.f32.mrf.mxu0  ;;  %v6324_v58 = vpop.f32.mrf.mxu1 }
 0x4cb   : > { %10347 = vst.msk [vmem:[%s14775_s10 + $0x614] sm:$0xf] %vm9957_vm3, %v9322_v50  ;;  %v5685_v62 = vadd.f32 %v16887_v0, %v5684_v57  ;;  %v6325_v45 = vadd.f32 %v16887_v0, %v6324_v58 }
 0x4cc   : > { %v8554_v63 = vmax.f32 %v6962_v55, 0.0  ;;  %v8810_v1 = vmax.f32 %v7602_v56, 0.0 }
 0x4cd   : > { %v8043_v2 = vmax.f32 %v5685_v62, 0.0  ;;  %v8299_v3 = vmax.f32 %v6325_v45, 0.0  ;;  %13460 = vmatmul.msk.bf16.gmra.mxu0 %vm3796_vm2, %v13989_v53  ;;  %13588 = vmatmul.msk.bf16.gmra.mxu1 %vm3796_vm2, %v14117_v54  ;;  %v13991_v45 = vld [vmem:[%s14693_s5 + $0x268] sm:$0xff] }
 0x4ce   : > { %v9578_v4 = vpack.c.bf16 %v8554_v63, %v8554_v63  ;;  %v9834_v40 = vpack.c.bf16 %v8810_v1, %v8810_v1  ;;  %13716 = vmatmul.msk.bf16.gmra.mxu2 %vm3796_vm2, %v14245_v59  ;;  %13844 = vmatmul.msk.bf16.gmra.mxu3 %vm3796_vm2, %v14373_v61  ;;  %v14119_v63 = vld [vmem:[%s14693_s5 + $0x668] sm:$0xff] }
 0x4cf   : > { %v9067_v5 = vpack.c.bf16 %v8043_v2, %v8043_v2  ;;  %v9323_v6 = vpack.c.bf16 %v8299_v3, %v8299_v3 }
 0x4d0   : > { %10603 = vst.msk [vmem:[%s14775_s10 + $0xa14] sm:$0xf] %vm9957_vm3, %v9578_v4 }
 0x4d1   : > { %10859 = vst.msk [vmem:[%s14775_s10 + $0xe14] sm:$0xf] %vm9957_vm3, %v9834_v40  ;;  %v6964_v60 = vpop.f32.mrf.mxu2  ;;  %v7604_v7 = vpop.f32.mrf.mxu3  ;;  %v14247_v40 = vld [vmem:[%s14693_s5 + $0xa68] sm:$0xff] }
 0x4d2   : > { %10092 = vst.msk [vmem:[%s14775_s10 + $0x218] sm:$0xf] %vm9957_vm3, %v9067_v5  ;;  %v6965_v9 = vadd.f32 %v16887_v0, %v6964_v60  ;;  %v7605_v10 = vadd.f32 %v16887_v0, %v7604_v7  ;;  %v5686_v11 = vpop.f32.mrf.mxu0  ;;  %v6326_v12 = vpop.f32.mrf.mxu1  ;;  %v14375_v5 = vld [vmem:[%s14693_s5 + $0xe68] sm:$0xff] }
 0x4d3   : > { %10348 = vst.msk [vmem:[%s14775_s10 + $0x618] sm:$0xf] %vm9957_vm3, %v9323_v6  ;;  %v5687_v13 = vadd.f32 %v16887_v0, %v5686_v11  ;;  %v6327_v14 = vadd.f32 %v16887_v0, %v6326_v12 }
 0x4d4   : > { %v8555_v15 = vmax.f32 %v6965_v9, 0.0  ;;  %v8811_v16 = vmax.f32 %v7605_v10, 0.0 }
 0x4d5   : > { %v8044_v17 = vmax.f32 %v5687_v13, 0.0  ;;  %v8300_v18 = vmax.f32 %v6327_v14, 0.0 }
 0x4d6   : > { %v9579_v19 = vpack.c.bf16 %v8555_v15, %v8555_v15  ;;  %v9835_v20 = vpack.c.bf16 %v8811_v16, %v8811_v16 }
 0x4d7   : > { %v9068_v21 = vpack.c.bf16 %v8044_v17, %v8044_v17  ;;  %v9324_v22 = vpack.c.bf16 %v8300_v18, %v8300_v18 }
 0x4d8   : > { %10604 = vst.msk [vmem:[%s14775_s10 + $0xa18] sm:$0xf] %vm9957_vm3, %v9579_v19 }
 0x4d9   : > { %10860 = vst.msk [vmem:[%s14775_s10 + $0xe18] sm:$0xf] %vm9957_vm3, %v9835_v20  ;;  %v6966_v23 = vpop.f32.mrf.mxu2  ;;  %v7606_v24 = vpop.f32.mrf.mxu3 }
 0x4da   : > { %10093 = vst.msk [vmem:[%s14775_s10 + $0x21c] sm:$0xf] %vm9957_vm3, %v9068_v21  ;;  %v6967_v27 = vadd.f32 %v16887_v0, %v6966_v23  ;;  %v7607_v28 = vadd.f32 %v16887_v0, %v7606_v24  ;;  %v5689_v29 = vpop.f32.mrf.mxu0  ;;  %v6329_v30 = vpop.f32.mrf.mxu1 }
 0x4db   : > { %10349 = vst.msk [vmem:[%s14775_s10 + $0x61c] sm:$0xf] %vm9957_vm3, %v9324_v22  ;;  %v5690_v33 = vadd.f32 %v16887_v0, %v5689_v29  ;;  %v6330_v34 = vadd.f32 %v16887_v0, %v6329_v30 }
 0x4dc   : > { %v8556_v35 = vmax.f32 %v6967_v27, 0.0  ;;  %v8812_v36 = vmax.f32 %v7607_v28, 0.0 }
 0x4dd   : > { %v8045_v37 = vmax.f32 %v5690_v33, 0.0  ;;  %v8301_v38 = vmax.f32 %v6330_v34, 0.0  ;;  %13461 = vmatmul.msk.bf16.gmra.mxu0 %vm3796_vm2, %v13990_v8  ;;  %13589 = vmatmul.msk.bf16.gmra.mxu1 %vm3796_vm2, %v14118_v25  ;;  %v13992_v34 = vld [vmem:[%s14693_s5 + $0x270] sm:$0xff] }
 0x4de   : > { %v9580_v39 = vpack.c.bf16 %v8556_v35, %v8556_v35  ;;  %v9836_v41 = vpack.c.bf16 %v8812_v36, %v8812_v36  ;;  %13717 = vmatmul.msk.bf16.gmra.mxu2 %vm3796_vm2, %v14246_v31  ;;  %13845 = vmatmul.msk.bf16.gmra.mxu3 %vm3796_vm2, %v14374_v32  ;;  %v14120_v35 = vld [vmem:[%s14693_s5 + $0x670] sm:$0xff] }
 0x4df   : > { %v9069_v42 = vpack.c.bf16 %v8045_v37, %v8045_v37  ;;  %v9325_v43 = vpack.c.bf16 %v8301_v38, %v8301_v38 }
 0x4e0   : > { %10605 = vst.msk [vmem:[%s14775_s10 + $0xa1c] sm:$0xf] %vm9957_vm3, %v9580_v39 }
 0x4e1   : > { %10861 = vst.msk [vmem:[%s14775_s10 + $0xe1c] sm:$0xf] %vm9957_vm3, %v9836_v41  ;;  %v6969_v26 = vpop.f32.mrf.mxu2  ;;  %v7609_v44 = vpop.f32.mrf.mxu3  ;;  %v14248_v41 = vld [vmem:[%s14693_s5 + $0xa70] sm:$0xff] }
 0x4e2   : > { %10094 = vst.msk [vmem:[%s14775_s10 + $0x220] sm:$0xf] %vm9957_vm3, %v9069_v42  ;;  %v6970_v46 = vadd.f32 %v16887_v0, %v6969_v26  ;;  %v7610_v47 = vadd.f32 %v16887_v0, %v7609_v44  ;;  %v5691_v48 = vpop.f32.mrf.mxu0  ;;  %v6331_v49 = vpop.f32.mrf.mxu1  ;;  %v14376_v42 = vld [vmem:[%s14693_s5 + $0xe70] sm:$0xff] }
 0x4e3   : > { %10350 = vst.msk [vmem:[%s14775_s10 + $0x620] sm:$0xf] %vm9957_vm3, %v9325_v43  ;;  %v5692_v50 = vadd.f32 %v16887_v0, %v5691_v48  ;;  %v6332_v51 = vadd.f32 %v16887_v0, %v6331_v49 }
 0x4e4   : > { %v8557_v52 = vmax.f32 %v6970_v46, 0.0  ;;  %v8813_v53 = vmax.f32 %v7610_v47, 0.0 }
 0x4e5   : > { %v8046_v54 = vmax.f32 %v5692_v50, 0.0  ;;  %v8302_v55 = vmax.f32 %v6332_v51, 0.0 }
 0x4e6   : > { %v9581_v56 = vpack.c.bf16 %v8557_v52, %v8557_v52  ;;  %v9837_v57 = vpack.c.bf16 %v8813_v53, %v8813_v53 }
 0x4e7   : > { %v9070_v58 = vpack.c.bf16 %v8046_v54, %v8046_v54  ;;  %v9326_v59 = vpack.c.bf16 %v8302_v55, %v8302_v55 }
 0x4e8   : > { %10606 = vst.msk [vmem:[%s14775_s10 + $0xa20] sm:$0xf] %vm9957_vm3, %v9581_v56 }
 0x4e9   : > { %10862 = vst.msk [vmem:[%s14775_s10 + $0xe20] sm:$0xf] %vm9957_vm3, %v9837_v57  ;;  %v6971_v61 = vpop.f32.mrf.mxu2  ;;  %v7611_v62 = vpop.f32.mrf.mxu3 }
 0x4ea   : > { %10095 = vst.msk [vmem:[%s14775_s10 + $0x224] sm:$0xf] %vm9957_vm3, %v9070_v58  ;;  %v6972_v1 = vadd.f32 %v16887_v0, %v6971_v61  ;;  %v7612_v2 = vadd.f32 %v16887_v0, %v7611_v62  ;;  %v5694_v3 = vpop.f32.mrf.mxu0  ;;  %v6334_v4 = vpop.f32.mrf.mxu1 }
 0x4eb   : > { %10351 = vst.msk [vmem:[%s14775_s10 + $0x624] sm:$0xf] %vm9957_vm3, %v9326_v59  ;;  %v5695_v6 = vadd.f32 %v16887_v0, %v5694_v3  ;;  %v6335_v60 = vadd.f32 %v16887_v0, %v6334_v4 }
 0x4ec   : > { %v8558_v7 = vmax.f32 %v6972_v1, 0.0  ;;  %v8814_v9 = vmax.f32 %v7612_v2, 0.0 }
 0x4ed   : > { %v8047_v10 = vmax.f32 %v5695_v6, 0.0  ;;  %v8303_v11 = vmax.f32 %v6335_v60, 0.0  ;;  %13462 = vmatmul.msk.bf16.gmra.mxu0 %vm3796_vm2, %v13991_v45  ;;  %13590 = vmatmul.msk.bf16.gmra.mxu1 %vm3796_vm2, %v14119_v63  ;;  %v13993_v60 = vld [vmem:[%s14693_s5 + $0x278] sm:$0xff] }
 0x4ee   : > { %v9582_v12 = vpack.c.bf16 %v8558_v7, %v8558_v7  ;;  %v9838_v13 = vpack.c.bf16 %v8814_v9, %v8814_v9  ;;  %13718 = vmatmul.msk.bf16.gmra.mxu2 %vm3796_vm2, %v14247_v40  ;;  %13846 = vmatmul.msk.bf16.gmra.mxu3 %vm3796_vm2, %v14375_v5  ;;  %v14121_v7 = vld [vmem:[%s14693_s5 + $0x678] sm:$0xff] }
 0x4ef   : > { %v9071_v14 = vpack.c.bf16 %v8047_v10, %v8047_v10  ;;  %v9327_v15 = vpack.c.bf16 %v8303_v11, %v8303_v11 }
 0x4f0   : > { %10607 = vst.msk [vmem:[%s14775_s10 + $0xa24] sm:$0xf] %vm9957_vm3, %v9582_v12 }
 0x4f1   : > { %10863 = vst.msk [vmem:[%s14775_s10 + $0xe24] sm:$0xf] %vm9957_vm3, %v9838_v13  ;;  %v6974_v16 = vpop.f32.mrf.mxu2  ;;  %v7614_v17 = vpop.f32.mrf.mxu3  ;;  %v14249_v13 = vld [vmem:[%s14693_s5 + $0xa78] sm:$0xff] }
 0x4f2   : > { %10096 = vst.msk [vmem:[%s14775_s10 + $0x228] sm:$0xf] %vm9957_vm3, %v9071_v14  ;;  %v6975_v18 = vadd.f32 %v16887_v0, %v6974_v16  ;;  %v7615_v19 = vadd.f32 %v16887_v0, %v7614_v17  ;;  %v5696_v20 = vpop.f32.mrf.mxu0  ;;  %v6336_v21 = vpop.f32.mrf.mxu1  ;;  %v14377_v14 = vld [vmem:[%s14693_s5 + $0xe78] sm:$0xff] }
 0x4f3   : > { %10352 = vst.msk [vmem:[%s14775_s10 + $0x628] sm:$0xf] %vm9957_vm3, %v9327_v15  ;;  %v5697_v22 = vadd.f32 %v16887_v0, %v5696_v20  ;;  %v6337_v23 = vadd.f32 %v16887_v0, %v6336_v21 }
 0x4f4   : > { %v8559_v24 = vmax.f32 %v6975_v18, 0.0  ;;  %v8815_v8 = vmax.f32 %v7615_v19, 0.0 }
 0x4f5   : > { %v8048_v25 = vmax.f32 %v5697_v22, 0.0  ;;  %v8304_v27 = vmax.f32 %v6337_v23, 0.0 }
 0x4f6   : > { %v9583_v28 = vpack.c.bf16 %v8559_v24, %v8559_v24  ;;  %v9839_v29 = vpack.c.bf16 %v8815_v8, %v8815_v8 }
 0x4f7   : > { %v9072_v30 = vpack.c.bf16 %v8048_v25, %v8048_v25  ;;  %v9328_v31 = vpack.c.bf16 %v8304_v27, %v8304_v27 }
 0x4f8   : > { %10608 = vst.msk [vmem:[%s14775_s10 + $0xa28] sm:$0xf] %vm9957_vm3, %v9583_v28 }
 0x4f9   : > { %10864 = vst.msk [vmem:[%s14775_s10 + $0xe28] sm:$0xf] %vm9957_vm3, %v9839_v29  ;;  %v6976_v32 = vpop.f32.mrf.mxu2  ;;  %v7616_v33 = vpop.f32.mrf.mxu3 }
 0x4fa   : > { %10097 = vst.msk [vmem:[%s14775_s10 + $0x22c] sm:$0xf] %vm9957_vm3, %v9072_v30  ;;  %v6977_v36 = vadd.f32 %v16887_v0, %v6976_v32  ;;  %v7617_v37 = vadd.f32 %v16887_v0, %v7616_v33  ;;  %v5699_v38 = vpop.f32.mrf.mxu0  ;;  %v6339_v39 = vpop.f32.mrf.mxu1 }
 0x4fb   : > { %10353 = vst.msk [vmem:[%s14775_s10 + $0x62c] sm:$0xf] %vm9957_vm3, %v9328_v31  ;;  %v5700_v43 = vadd.f32 %v16887_v0, %v5699_v38  ;;  %v6340_v26 = vadd.f32 %v16887_v0, %v6339_v39 }
 0x4fc   : > { %v8560_v44 = vmax.f32 %v6977_v36, 0.0  ;;  %v8816_v46 = vmax.f32 %v7617_v37, 0.0 }
 0x4fd   : > { %v8049_v47 = vmax.f32 %v5700_v43, 0.0  ;;  %v8305_v48 = vmax.f32 %v6340_v26, 0.0  ;;  %13463 = vmatmul.msk.bf16.gmra.mxu0 %vm3796_vm2, %v13992_v34  ;;  %13591 = vmatmul.msk.bf16.gmra.mxu1 %vm3796_vm2, %v14120_v35  ;;  %v13994_v26 = vld [vmem:[%s14693_s5 + $0x280] sm:$0xff] }
 0x4fe   : > { %v9584_v49 = vpack.c.bf16 %v8560_v44, %v8560_v44  ;;  %v9840_v50 = vpack.c.bf16 %v8816_v46, %v8816_v46  ;;  %13719 = vmatmul.msk.bf16.gmra.mxu2 %vm3796_vm2, %v14248_v41  ;;  %13847 = vmatmul.msk.bf16.gmra.mxu3 %vm3796_vm2, %v14376_v42  ;;  %v14122_v44 = vld [vmem:[%s14693_s5 + $0x680] sm:$0xff] }
 0x4ff   : > { %v9073_v51 = vpack.c.bf16 %v8049_v47, %v8049_v47  ;;  %v9329_v52 = vpack.c.bf16 %v8305_v48, %v8305_v48 }
 0x500   : > { %10609 = vst.msk [vmem:[%s14775_s10 + $0xa2c] sm:$0xf] %vm9957_vm3, %v9584_v49 }
 0x501   : > { %10865 = vst.msk [vmem:[%s14775_s10 + $0xe2c] sm:$0xf] %vm9957_vm3, %v9840_v50  ;;  %v6979_v53 = vpop.f32.mrf.mxu2  ;;  %v7619_v54 = vpop.f32.mrf.mxu3  ;;  %v14250_v50 = vld [vmem:[%s14693_s5 + $0xa80] sm:$0xff] }
 0x502   : > { %10098 = vst.msk [vmem:[%s14775_s10 + $0x230] sm:$0xf] %vm9957_vm3, %v9073_v51  ;;  %v6980_v55 = vadd.f32 %v16887_v0, %v6979_v53  ;;  %v7620_v56 = vadd.f32 %v16887_v0, %v7619_v54  ;;  %v5701_v57 = vpop.f32.mrf.mxu0  ;;  %v6341_v58 = vpop.f32.mrf.mxu1  ;;  %v14378_v51 = vld [vmem:[%s14693_s5 + $0xe80] sm:$0xff] }
 0x503   : > { %10354 = vst.msk [vmem:[%s14775_s10 + $0x630] sm:$0xf] %vm9957_vm3, %v9329_v52  ;;  %v5702_v59 = vadd.f32 %v16887_v0, %v5701_v57  ;;  %v6342_v61 = vadd.f32 %v16887_v0, %v6341_v58 }
 0x504   : > { %v8561_v62 = vmax.f32 %v6980_v55, 0.0  ;;  %v8817_v45 = vmax.f32 %v7620_v56, 0.0 }
 0x505   : > { %v8050_v63 = vmax.f32 %v5702_v59, 0.0  ;;  %v8306_v1 = vmax.f32 %v6342_v61, 0.0 }
 0x506   : > { %v9585_v2 = vpack.c.bf16 %v8561_v62, %v8561_v62  ;;  %v9841_v3 = vpack.c.bf16 %v8817_v45, %v8817_v45 }
 0x507   : > { %v9074_v4 = vpack.c.bf16 %v8050_v63, %v8050_v63  ;;  %v9330_v40 = vpack.c.bf16 %v8306_v1, %v8306_v1 }
 0x508   : > { %10610 = vst.msk [vmem:[%s14775_s10 + $0xa30] sm:$0xf] %vm9957_vm3, %v9585_v2 }
 0x509   : > { %10866 = vst.msk [vmem:[%s14775_s10 + $0xe30] sm:$0xf] %vm9957_vm3, %v9841_v3  ;;  %v6981_v5 = vpop.f32.mrf.mxu2  ;;  %v7621_v6 = vpop.f32.mrf.mxu3 }
 0x50a   : > { %10099 = vst.msk [vmem:[%s14775_s10 + $0x234] sm:$0xf] %vm9957_vm3, %v9074_v4  ;;  %v6982_v9 = vadd.f32 %v16887_v0, %v6981_v5  ;;  %v7622_v10 = vadd.f32 %v16887_v0, %v7621_v6  ;;  %v5704_v11 = vpop.f32.mrf.mxu0  ;;  %v6344_v12 = vpop.f32.mrf.mxu1 }
 0x50b   : > { %10355 = vst.msk [vmem:[%s14775_s10 + $0x634] sm:$0xf] %vm9957_vm3, %v9330_v40  ;;  %v5705_v15 = vadd.f32 %v16887_v0, %v5704_v11  ;;  %v6345_v16 = vadd.f32 %v16887_v0, %v6344_v12 }
 0x50c   : > { %v8562_v17 = vmax.f32 %v6982_v9, 0.0  ;;  %v8818_v18 = vmax.f32 %v7622_v10, 0.0 }
 0x50d   : > { %v8051_v19 = vmax.f32 %v5705_v15, 0.0  ;;  %v8307_v20 = vmax.f32 %v6345_v16, 0.0  ;;  %13464 = vmatmul.msk.bf16.gmra.mxu0 %vm3796_vm2, %v13993_v60  ;;  %13592 = vmatmul.msk.bf16.gmra.mxu1 %vm3796_vm2, %v14121_v7  ;;  %v13995_v16 = vld [vmem:[%s14693_s5 + $0x288] sm:$0xff] }
 0x50e   : > { %v9586_v21 = vpack.c.bf16 %v8562_v17, %v8562_v17  ;;  %v9842_v22 = vpack.c.bf16 %v8818_v18, %v8818_v18  ;;  %13720 = vmatmul.msk.bf16.gmra.mxu2 %vm3796_vm2, %v14249_v13  ;;  %13848 = vmatmul.msk.bf16.gmra.mxu3 %vm3796_vm2, %v14377_v14  ;;  %v14123_v17 = vld [vmem:[%s14693_s5 + $0x688] sm:$0xff] }
 0x50f   : > { %v9075_v23 = vpack.c.bf16 %v8051_v19, %v8051_v19  ;;  %v9331_v24 = vpack.c.bf16 %v8307_v20, %v8307_v20 }
 0x510   : > { %10611 = vst.msk [vmem:[%s14775_s10 + $0xa34] sm:$0xf] %vm9957_vm3, %v9586_v21 }
 0x511   : > { %10867 = vst.msk [vmem:[%s14775_s10 + $0xe34] sm:$0xf] %vm9957_vm3, %v9842_v22  ;;  %v6984_v8 = vpop.f32.mrf.mxu2  ;;  %v7624_v25 = vpop.f32.mrf.mxu3  ;;  %v14251_v22 = vld [vmem:[%s14693_s5 + $0xa88] sm:$0xff] }
 0x512   : > { %10100 = vst.msk [vmem:[%s14775_s10 + $0x238] sm:$0xf] %vm9957_vm3, %v9075_v23  ;;  %v6985_v27 = vadd.f32 %v16887_v0, %v6984_v8  ;;  %v7625_v28 = vadd.f32 %v16887_v0, %v7624_v25  ;;  %v5706_v29 = vpop.f32.mrf.mxu0  ;;  %v6346_v30 = vpop.f32.mrf.mxu1  ;;  %v14379_v23 = vld [vmem:[%s14693_s5 + $0xe88] sm:$0xff] }
 0x513   : > { %10356 = vst.msk [vmem:[%s14775_s10 + $0x638] sm:$0xf] %vm9957_vm3, %v9331_v24  ;;  %v5707_v31 = vadd.f32 %v16887_v0, %v5706_v29  ;;  %v6347_v32 = vadd.f32 %v16887_v0, %v6346_v30 }
 0x514   : > { %v8563_v33 = vmax.f32 %v6985_v27, 0.0  ;;  %v8819_v34 = vmax.f32 %v7625_v28, 0.0 }
 0x515   : > { %v8052_v35 = vmax.f32 %v5707_v31, 0.0  ;;  %v8308_v36 = vmax.f32 %v6347_v32, 0.0 }
 0x516   : > { %v9587_v37 = vpack.c.bf16 %v8563_v33, %v8563_v33  ;;  %v9843_v38 = vpack.c.bf16 %v8819_v34, %v8819_v34 }
 0x517   : > { %v9076_v39 = vpack.c.bf16 %v8052_v35, %v8052_v35  ;;  %v9332_v41 = vpack.c.bf16 %v8308_v36, %v8308_v36 }
 0x518   : > { %10612 = vst.msk [vmem:[%s14775_s10 + $0xa38] sm:$0xf] %vm9957_vm3, %v9587_v37 }
 0x519   : > { %10868 = vst.msk [vmem:[%s14775_s10 + $0xe38] sm:$0xf] %vm9957_vm3, %v9843_v38  ;;  %v6986_v42 = vpop.f32.mrf.mxu2  ;;  %v7626_v43 = vpop.f32.mrf.mxu3 }
 0x51a   : > { %10101 = vst.msk [vmem:[%s14775_s10 + $0x23c] sm:$0xf] %vm9957_vm3, %v9076_v39  ;;  %v6987_v46 = vadd.f32 %v16887_v0, %v6986_v42  ;;  %v7627_v47 = vadd.f32 %v16887_v0, %v7626_v43  ;;  %v5709_v48 = vpop.f32.mrf.mxu0  ;;  %v6349_v49 = vpop.f32.mrf.mxu1 }
 0x51b   : > { %10357 = vst.msk [vmem:[%s14775_s10 + $0x63c] sm:$0xf] %vm9957_vm3, %v9332_v41  ;;  %v5710_v52 = vadd.f32 %v16887_v0, %v5709_v48  ;;  %v6350_v53 = vadd.f32 %v16887_v0, %v6349_v49 }
 0x51c   : > { %v8564_v54 = vmax.f32 %v6987_v46, 0.0  ;;  %v8820_v55 = vmax.f32 %v7627_v47, 0.0 }
 0x51d   : > { %v8053_v56 = vmax.f32 %v5710_v52, 0.0  ;;  %v8309_v57 = vmax.f32 %v6350_v53, 0.0  ;;  %13465 = vmatmul.msk.bf16.gmra.mxu0 %vm3796_vm2, %v13994_v26  ;;  %13593 = vmatmul.msk.bf16.gmra.mxu1 %vm3796_vm2, %v14122_v44  ;;  %v13996_v53 = vld [vmem:[%s14693_s5 + $0x290] sm:$0xff] }
 0x51e   : > { %v9588_v58 = vpack.c.bf16 %v8564_v54, %v8564_v54  ;;  %v9844_v59 = vpack.c.bf16 %v8820_v55, %v8820_v55  ;;  %13721 = vmatmul.msk.bf16.gmra.mxu2 %vm3796_vm2, %v14250_v50  ;;  %13849 = vmatmul.msk.bf16.gmra.mxu3 %vm3796_vm2, %v14378_v51  ;;  %v14124_v54 = vld [vmem:[%s14693_s5 + $0x690] sm:$0xff] }
 0x51f   : > { %v9077_v61 = vpack.c.bf16 %v8053_v56, %v8053_v56  ;;  %v9333_v62 = vpack.c.bf16 %v8309_v57, %v8309_v57 }
 0x520   : > { %10613 = vst.msk [vmem:[%s14775_s10 + $0xa3c] sm:$0xf] %vm9957_vm3, %v9588_v58 }
 0x521   : > { %10869 = vst.msk [vmem:[%s14775_s10 + $0xe3c] sm:$0xf] %vm9957_vm3, %v9844_v59  ;;  %v6989_v45 = vpop.f32.mrf.mxu2  ;;  %v7629_v63 = vpop.f32.mrf.mxu3  ;;  %v14252_v59 = vld [vmem:[%s14693_s5 + $0xa90] sm:$0xff] }
 0x522   : > { %10102 = vst.msk [vmem:[%s14775_s10 + $0x240] sm:$0xf] %vm9957_vm3, %v9077_v61  ;;  %v6990_v1 = vadd.f32 %v16887_v0, %v6989_v45  ;;  %v7630_v2 = vadd.f32 %v16887_v0, %v7629_v63  ;;  %v5711_v3 = vpop.f32.mrf.mxu0  ;;  %v6351_v4 = vpop.f32.mrf.mxu1  ;;  %v14380_v61 = vld [vmem:[%s14693_s5 + $0xe90] sm:$0xff] }
 0x523   : > { %10358 = vst.msk [vmem:[%s14775_s10 + $0x640] sm:$0xf] %vm9957_vm3, %v9333_v62  ;;  %v5712_v40 = vadd.f32 %v16887_v0, %v5711_v3  ;;  %v6352_v5 = vadd.f32 %v16887_v0, %v6351_v4 }
 0x524   : > { %v8565_v6 = vmax.f32 %v6990_v1, 0.0  ;;  %v8821_v60 = vmax.f32 %v7630_v2, 0.0 }
 0x525   : > { %v8054_v7 = vmax.f32 %v5712_v40, 0.0  ;;  %v8310_v9 = vmax.f32 %v6352_v5, 0.0 }
 0x526   : > { %v9589_v10 = vpack.c.bf16 %v8565_v6, %v8565_v6  ;;  %v9845_v11 = vpack.c.bf16 %v8821_v60, %v8821_v60 }
 0x527   : > { %v9078_v12 = vpack.c.bf16 %v8054_v7, %v8054_v7  ;;  %v9334_v13 = vpack.c.bf16 %v8310_v9, %v8310_v9 }
 0x528   : > { %10614 = vst.msk [vmem:[%s14775_s10 + $0xa40] sm:$0xf] %vm9957_vm3, %v9589_v10 }
 0x529   : > { %10870 = vst.msk [vmem:[%s14775_s10 + $0xe40] sm:$0xf] %vm9957_vm3, %v9845_v11  ;;  %v6991_v14 = vpop.f32.mrf.mxu2  ;;  %v7631_v15 = vpop.f32.mrf.mxu3 }
 0x52a   : > { %10103 = vst.msk [vmem:[%s14775_s10 + $0x244] sm:$0xf] %vm9957_vm3, %v9078_v12  ;;  %v6992_v18 = vadd.f32 %v16887_v0, %v6991_v14  ;;  %v7632_v19 = vadd.f32 %v16887_v0, %v7631_v15  ;;  %v5714_v20 = vpop.f32.mrf.mxu0  ;;  %v6354_v21 = vpop.f32.mrf.mxu1 }
 0x52b   : > { %10359 = vst.msk [vmem:[%s14775_s10 + $0x644] sm:$0xf] %vm9957_vm3, %v9334_v13  ;;  %v5715_v24 = vadd.f32 %v16887_v0, %v5714_v20  ;;  %v6355_v8 = vadd.f32 %v16887_v0, %v6354_v21 }
 0x52c   : > { %v8566_v25 = vmax.f32 %v6992_v18, 0.0  ;;  %v8822_v27 = vmax.f32 %v7632_v19, 0.0 }
 0x52d   : > { %v8055_v28 = vmax.f32 %v5715_v24, 0.0  ;;  %v8311_v29 = vmax.f32 %v6355_v8, 0.0  ;;  %13466 = vmatmul.msk.bf16.gmra.mxu0 %vm3796_vm2, %v13995_v16  ;;  %13594 = vmatmul.msk.bf16.gmra.mxu1 %vm3796_vm2, %v14123_v17  ;;  %v13997_v8 = vld [vmem:[%s14693_s5 + $0x298] sm:$0xff] }
 0x52e   : > { %v9590_v30 = vpack.c.bf16 %v8566_v25, %v8566_v25  ;;  %v9846_v31 = vpack.c.bf16 %v8822_v27, %v8822_v27  ;;  %13722 = vmatmul.msk.bf16.gmra.mxu2 %vm3796_vm2, %v14251_v22  ;;  %13850 = vmatmul.msk.bf16.gmra.mxu3 %vm3796_vm2, %v14379_v23  ;;  %v14125_v25 = vld [vmem:[%s14693_s5 + $0x698] sm:$0xff] }
 0x52f   : > { %v9079_v32 = vpack.c.bf16 %v8055_v28, %v8055_v28  ;;  %v9335_v33 = vpack.c.bf16 %v8311_v29, %v8311_v29 }
 0x530   : > { %10615 = vst.msk [vmem:[%s14775_s10 + $0xa44] sm:$0xf] %vm9957_vm3, %v9590_v30 }
 0x531   : > { %10871 = vst.msk [vmem:[%s14775_s10 + $0xe44] sm:$0xf] %vm9957_vm3, %v9846_v31  ;;  %v6994_v34 = vpop.f32.mrf.mxu2  ;;  %v7634_v35 = vpop.f32.mrf.mxu3  ;;  %v14253_v31 = vld [vmem:[%s14693_s5 + $0xa98] sm:$0xff] }
 0x532   : > { %10104 = vst.msk [vmem:[%s14775_s10 + $0x248] sm:$0xf] %vm9957_vm3, %v9079_v32  ;;  %v6995_v36 = vadd.f32 %v16887_v0, %v6994_v34  ;;  %v7635_v37 = vadd.f32 %v16887_v0, %v7634_v35  ;;  %v5716_v38 = vpop.f32.mrf.mxu0  ;;  %v6356_v39 = vpop.f32.mrf.mxu1  ;;  %v14381_v32 = vld [vmem:[%s14693_s5 + $0xe98] sm:$0xff] }
 0x533   : > { %10360 = vst.msk [vmem:[%s14775_s10 + $0x648] sm:$0xf] %vm9957_vm3, %v9335_v33  ;;  %v5717_v41 = vadd.f32 %v16887_v0, %v5716_v38  ;;  %v6357_v42 = vadd.f32 %v16887_v0, %v6356_v39 }
 0x534   : > { %v8567_v43 = vmax.f32 %v6995_v36, 0.0  ;;  %v8823_v26 = vmax.f32 %v7635_v37, 0.0 }
 0x535   : > { %v8056_v44 = vmax.f32 %v5717_v41, 0.0  ;;  %v8312_v46 = vmax.f32 %v6357_v42, 0.0 }
 0x536   : > { %v9591_v47 = vpack.c.bf16 %v8567_v43, %v8567_v43  ;;  %v9847_v48 = vpack.c.bf16 %v8823_v26, %v8823_v26 }
 0x537   : > { %v9080_v49 = vpack.c.bf16 %v8056_v44, %v8056_v44  ;;  %v9336_v50 = vpack.c.bf16 %v8312_v46, %v8312_v46 }
 0x538   : > { %10616 = vst.msk [vmem:[%s14775_s10 + $0xa48] sm:$0xf] %vm9957_vm3, %v9591_v47 }
 0x539   : > { %10872 = vst.msk [vmem:[%s14775_s10 + $0xe48] sm:$0xf] %vm9957_vm3, %v9847_v48  ;;  %v6996_v51 = vpop.f32.mrf.mxu2  ;;  %v7636_v52 = vpop.f32.mrf.mxu3 }
 0x53a   : > { %10105 = vst.msk [vmem:[%s14775_s10 + $0x24c] sm:$0xf] %vm9957_vm3, %v9080_v49  ;;  %v6997_v55 = vadd.f32 %v16887_v0, %v6996_v51  ;;  %v7637_v56 = vadd.f32 %v16887_v0, %v7636_v52  ;;  %v5719_v57 = vpop.f32.mrf.mxu0  ;;  %v6359_v58 = vpop.f32.mrf.mxu1 }
 0x53b   : > { %10361 = vst.msk [vmem:[%s14775_s10 + $0x64c] sm:$0xf] %vm9957_vm3, %v9336_v50  ;;  %v5720_v62 = vadd.f32 %v16887_v0, %v5719_v57  ;;  %v6360_v45 = vadd.f32 %v16887_v0, %v6359_v58 }
 0x53c   : > { %v8568_v63 = vmax.f32 %v6997_v55, 0.0  ;;  %v8824_v1 = vmax.f32 %v7637_v56, 0.0 }
 0x53d   : > { %v8057_v2 = vmax.f32 %v5720_v62, 0.0  ;;  %v8313_v3 = vmax.f32 %v6360_v45, 0.0  ;;  %13467 = vmatmul.msk.bf16.gmra.mxu0 %vm3796_vm2, %v13996_v53  ;;  %13595 = vmatmul.msk.bf16.gmra.mxu1 %vm3796_vm2, %v14124_v54  ;;  %v13998_v45 = vld [vmem:[%s14693_s5 + $0x2a0] sm:$0xff] }
 0x53e   : > { %v9592_v4 = vpack.c.bf16 %v8568_v63, %v8568_v63  ;;  %v9848_v40 = vpack.c.bf16 %v8824_v1, %v8824_v1  ;;  %13723 = vmatmul.msk.bf16.gmra.mxu2 %vm3796_vm2, %v14252_v59  ;;  %13851 = vmatmul.msk.bf16.gmra.mxu3 %vm3796_vm2, %v14380_v61  ;;  %v14126_v63 = vld [vmem:[%s14693_s5 + $0x6a0] sm:$0xff] }
 0x53f   : > { %v9081_v5 = vpack.c.bf16 %v8057_v2, %v8057_v2  ;;  %v9337_v6 = vpack.c.bf16 %v8313_v3, %v8313_v3 }
 0x540   : > { %10617 = vst.msk [vmem:[%s14775_s10 + $0xa4c] sm:$0xf] %vm9957_vm3, %v9592_v4 }
 0x541   : > { %10873 = vst.msk [vmem:[%s14775_s10 + $0xe4c] sm:$0xf] %vm9957_vm3, %v9848_v40  ;;  %v6999_v60 = vpop.f32.mrf.mxu2  ;;  %v7639_v7 = vpop.f32.mrf.mxu3  ;;  %v14254_v40 = vld [vmem:[%s14693_s5 + $0xaa0] sm:$0xff] }
 0x542   : > { %10106 = vst.msk [vmem:[%s14775_s10 + $0x250] sm:$0xf] %vm9957_vm3, %v9081_v5  ;;  %v7000_v9 = vadd.f32 %v16887_v0, %v6999_v60  ;;  %v7640_v10 = vadd.f32 %v16887_v0, %v7639_v7  ;;  %v5721_v11 = vpop.f32.mrf.mxu0  ;;  %v6361_v12 = vpop.f32.mrf.mxu1  ;;  %v14382_v5 = vld [vmem:[%s14693_s5 + $0xea0] sm:$0xff] }
 0x543   : > { %10362 = vst.msk [vmem:[%s14775_s10 + $0x650] sm:$0xf] %vm9957_vm3, %v9337_v6  ;;  %v5722_v13 = vadd.f32 %v16887_v0, %v5721_v11  ;;  %v6362_v14 = vadd.f32 %v16887_v0, %v6361_v12 }
 0x544   : > { %v8569_v15 = vmax.f32 %v7000_v9, 0.0  ;;  %v8825_v16 = vmax.f32 %v7640_v10, 0.0 }
 0x545   : > { %v8058_v17 = vmax.f32 %v5722_v13, 0.0  ;;  %v8314_v18 = vmax.f32 %v6362_v14, 0.0 }
 0x546   : > { %v9593_v19 = vpack.c.bf16 %v8569_v15, %v8569_v15  ;;  %v9849_v20 = vpack.c.bf16 %v8825_v16, %v8825_v16 }
 0x547   : > { %v9082_v21 = vpack.c.bf16 %v8058_v17, %v8058_v17  ;;  %v9338_v22 = vpack.c.bf16 %v8314_v18, %v8314_v18  ;;  %v17244_v17 = vld [vmem:[%s18998_s2] ss:$0 sm:$0xff] }
 0x548   : > { %10618 = vst.msk [vmem:[%s14775_s10 + $0xa50] sm:$0xf] %vm9957_vm3, %v9593_v19 }
 0x549   : > { %10874 = vst.msk [vmem:[%s14775_s10 + $0xe50] sm:$0xf] %vm9957_vm3, %v9849_v20  ;;  %v7001_v23 = vpop.f32.mrf.mxu2  ;;  %v7641_v24 = vpop.f32.mrf.mxu3 }
 0x54a   : > { %10107 = vst.msk [vmem:[%s14775_s10 + $0x254] sm:$0xf] %vm9957_vm3, %v9082_v21  ;;  %v7002_v27 = vadd.f32 %v16887_v0, %v7001_v23  ;;  %v7642_v28 = vadd.f32 %v16887_v0, %v7641_v24  ;;  %v5724_v29 = vpop.f32.mrf.mxu0  ;;  %v6364_v30 = vpop.f32.mrf.mxu1 }
 0x54b   : > { %10363 = vst.msk [vmem:[%s14775_s10 + $0x654] sm:$0xf] %vm9957_vm3, %v9338_v22  ;;  %v5725_v33 = vadd.f32 %v16887_v0, %v5724_v29  ;;  %v6365_v34 = vadd.f32 %v16887_v0, %v6364_v30 }
 0x54c   : > { %v8570_v35 = vmax.f32 %v7002_v27, 0.0  ;;  %v8826_v36 = vmax.f32 %v7642_v28, 0.0 }
 0x54d   : > { %v8059_v37 = vmax.f32 %v5725_v33, 0.0  ;;  %v8315_v38 = vmax.f32 %v6365_v34, 0.0  ;;  %13468 = vmatmul.msk.bf16.gmra.mxu0 %vm3796_vm2, %v13997_v8  ;;  %13596 = vmatmul.msk.bf16.gmra.mxu1 %vm3796_vm2, %v14125_v25  ;;  %v13999_v34 = vld [vmem:[%s14693_s5 + $0x2a8] sm:$0xff] }
 0x54e   : > { %v9594_v39 = vpack.c.bf16 %v8570_v35, %v8570_v35  ;;  %v9850_v41 = vpack.c.bf16 %v8826_v36, %v8826_v36  ;;  %13724 = vmatmul.msk.bf16.gmra.mxu2 %vm3796_vm2, %v14253_v31  ;;  %13852 = vmatmul.msk.bf16.gmra.mxu3 %vm3796_vm2, %v14381_v32  ;;  %v14127_v35 = vld [vmem:[%s14693_s5 + $0x6a8] sm:$0xff] }
 0x54f   : > { %v9083_v42 = vpack.c.bf16 %v8059_v37, %v8059_v37  ;;  %v9339_v43 = vpack.c.bf16 %v8315_v38, %v8315_v38 }
 0x550   : > { %10619 = vst.msk [vmem:[%s14775_s10 + $0xa54] sm:$0xf] %vm9957_vm3, %v9594_v39 }
 0x551   : > { %10875 = vst.msk [vmem:[%s14775_s10 + $0xe54] sm:$0xf] %vm9957_vm3, %v9850_v41  ;;  %v7004_v26 = vpop.f32.mrf.mxu2  ;;  %v7644_v44 = vpop.f32.mrf.mxu3  ;;  %v14255_v41 = vld [vmem:[%s14693_s5 + $0xaa8] sm:$0xff] }
 0x552   : > { %10108 = vst.msk [vmem:[%s14775_s10 + $0x258] sm:$0xf] %vm9957_vm3, %v9083_v42  ;;  %v7005_v46 = vadd.f32 %v16887_v0, %v7004_v26  ;;  %v7645_v47 = vadd.f32 %v16887_v0, %v7644_v44  ;;  %v5726_v48 = vpop.f32.mrf.mxu0  ;;  %v6366_v49 = vpop.f32.mrf.mxu1  ;;  %v14383_v42 = vld [vmem:[%s14693_s5 + $0xea8] sm:$0xff] }
 0x553   : > { %10364 = vst.msk [vmem:[%s14775_s10 + $0x658] sm:$0xf] %vm9957_vm3, %v9339_v43  ;;  %v5727_v50 = vadd.f32 %v16887_v0, %v5726_v48  ;;  %v6367_v51 = vadd.f32 %v16887_v0, %v6366_v49 }
 0x554   : > { %v8571_v52 = vmax.f32 %v7005_v46, 0.0  ;;  %v8827_v53 = vmax.f32 %v7645_v47, 0.0 }
 0x555   : > { %v8060_v54 = vmax.f32 %v5727_v50, 0.0  ;;  %v8316_v55 = vmax.f32 %v6367_v51, 0.0 }
 0x556   : > { %v9595_v56 = vpack.c.bf16 %v8571_v52, %v8571_v52  ;;  %v9851_v57 = vpack.c.bf16 %v8827_v53, %v8827_v53 }
 0x557   : > { %v9084_v58 = vpack.c.bf16 %v8060_v54, %v8060_v54  ;;  %v9340_v59 = vpack.c.bf16 %v8316_v55, %v8316_v55 }
 0x558   : > { %10620 = vst.msk [vmem:[%s14775_s10 + $0xa58] sm:$0xf] %vm9957_vm3, %v9595_v56 }
 0x559   : > { %10876 = vst.msk [vmem:[%s14775_s10 + $0xe58] sm:$0xf] %vm9957_vm3, %v9851_v57  ;;  %v7006_v61 = vpop.f32.mrf.mxu2  ;;  %v7646_v62 = vpop.f32.mrf.mxu3 }
 0x55a   : > { %10109 = vst.msk [vmem:[%s14775_s10 + $0x25c] sm:$0xf] %vm9957_vm3, %v9084_v58  ;;  %v7007_v1 = vadd.f32 %v16887_v0, %v7006_v61  ;;  %v7647_v2 = vadd.f32 %v16887_v0, %v7646_v62  ;;  %v5729_v3 = vpop.f32.mrf.mxu0  ;;  %v6369_v4 = vpop.f32.mrf.mxu1 }
 0x55b   : > { %10365 = vst.msk [vmem:[%s14775_s10 + $0x65c] sm:$0xf] %vm9957_vm3, %v9340_v59  ;;  %v5730_v6 = vadd.f32 %v16887_v0, %v5729_v3  ;;  %v6370_v60 = vadd.f32 %v16887_v0, %v6369_v4 }
 0x55c   : > { %v8572_v7 = vmax.f32 %v7007_v1, 0.0  ;;  %v8828_v9 = vmax.f32 %v7647_v2, 0.0 }
 0x55d   : > { %v8061_v10 = vmax.f32 %v5730_v6, 0.0  ;;  %v8317_v11 = vmax.f32 %v6370_v60, 0.0  ;;  %13469 = vmatmul.msk.bf16.gmra.mxu0 %vm3796_vm2, %v13998_v45  ;;  %13597 = vmatmul.msk.bf16.gmra.mxu1 %vm3796_vm2, %v14126_v63  ;;  %v14000_v60 = vld [vmem:[%s14693_s5 + $0x2b0] sm:$0xff] }
 0x55e   : > { %v9596_v12 = vpack.c.bf16 %v8572_v7, %v8572_v7  ;;  %v9852_v13 = vpack.c.bf16 %v8828_v9, %v8828_v9  ;;  %13725 = vmatmul.msk.bf16.gmra.mxu2 %vm3796_vm2, %v14254_v40  ;;  %13853 = vmatmul.msk.bf16.gmra.mxu3 %vm3796_vm2, %v14382_v5  ;;  %v14128_v7 = vld [vmem:[%s14693_s5 + $0x6b0] sm:$0xff] }
 0x55f   : > { %v9085_v14 = vpack.c.bf16 %v8061_v10, %v8061_v10  ;;  %v9341_v15 = vpack.c.bf16 %v8317_v11, %v8317_v11 }
 0x560   : > { %10621 = vst.msk [vmem:[%s14775_s10 + $0xa5c] sm:$0xf] %vm9957_vm3, %v9596_v12 }
 0x561   : > { %10877 = vst.msk [vmem:[%s14775_s10 + $0xe5c] sm:$0xf] %vm9957_vm3, %v9852_v13  ;;  %v7009_v0 = vpop.f32.mrf.mxu2  ;;  %v7649_v16 = vpop.f32.mrf.mxu3  ;;  %v14256_v13 = vld [vmem:[%s14693_s5 + $0xab0] sm:$0xff] }
 0x562   : > { %10110 = vst.msk [vmem:[%s14775_s10 + $0x260] sm:$0xf] %vm9957_vm3, %v9085_v14  ;;  %v7010_v18 = vadd.f32 %v17244_v17, %v7009_v0  ;;  %v7650_v19 = vadd.f32 %v17244_v17, %v7649_v16  ;;  %v5731_v20 = vpop.f32.mrf.mxu0  ;;  %v6371_v21 = vpop.f32.mrf.mxu1  ;;  %v14384_v14 = vld [vmem:[%s14693_s5 + $0xeb0] sm:$0xff] }
 0x563   : > { %10366 = vst.msk [vmem:[%s14775_s10 + $0x660] sm:$0xf] %vm9957_vm3, %v9341_v15  ;;  %v5732_v22 = vadd.f32 %v17244_v17, %v5731_v20  ;;  %v6372_v23 = vadd.f32 %v17244_v17, %v6371_v21 }
 0x564   : > { %v8573_v24 = vmax.f32 %v7010_v18, 0.0  ;;  %v8829_v8 = vmax.f32 %v7650_v19, 0.0 }
 0x565   : > { %v8062_v25 = vmax.f32 %v5732_v22, 0.0  ;;  %v8318_v27 = vmax.f32 %v6372_v23, 0.0 }
 0x566   : > { %v9597_v28 = vpack.c.bf16 %v8573_v24, %v8573_v24  ;;  %v9853_v29 = vpack.c.bf16 %v8829_v8, %v8829_v8 }
 0x567   : > { %v9086_v30 = vpack.c.bf16 %v8062_v25, %v8062_v25  ;;  %v9342_v31 = vpack.c.bf16 %v8318_v27, %v8318_v27 }
 0x568   : > { %10622 = vst.msk [vmem:[%s14775_s10 + $0xa60] sm:$0xf] %vm9957_vm3, %v9597_v28 }
 0x569   : > { %10878 = vst.msk [vmem:[%s14775_s10 + $0xe60] sm:$0xf] %vm9957_vm3, %v9853_v29  ;;  %v7011_v32 = vpop.f32.mrf.mxu2  ;;  %v7651_v33 = vpop.f32.mrf.mxu3 }
 0x56a   : > { %10111 = vst.msk [vmem:[%s14775_s10 + $0x264] sm:$0xf] %vm9957_vm3, %v9086_v30  ;;  %v7012_v36 = vadd.f32 %v17244_v17, %v7011_v32  ;;  %v7652_v37 = vadd.f32 %v17244_v17, %v7651_v33  ;;  %v5734_v38 = vpop.f32.mrf.mxu0  ;;  %v6374_v39 = vpop.f32.mrf.mxu1 }
 0x56b   : > { %10367 = vst.msk [vmem:[%s14775_s10 + $0x664] sm:$0xf] %vm9957_vm3, %v9342_v31  ;;  %v5735_v43 = vadd.f32 %v17244_v17, %v5734_v38  ;;  %v6375_v26 = vadd.f32 %v17244_v17, %v6374_v39 }
 0x56c   : > { %v8574_v44 = vmax.f32 %v7012_v36, 0.0  ;;  %v8830_v46 = vmax.f32 %v7652_v37, 0.0 }
 0x56d   : > { %v8063_v47 = vmax.f32 %v5735_v43, 0.0  ;;  %v8319_v48 = vmax.f32 %v6375_v26, 0.0  ;;  %13470 = vmatmul.msk.bf16.gmra.mxu0 %vm3796_vm2, %v13999_v34  ;;  %13598 = vmatmul.msk.bf16.gmra.mxu1 %vm3796_vm2, %v14127_v35  ;;  %v14001_v26 = vld [vmem:[%s14693_s5 + $0x2b8] sm:$0xff] }
 0x56e   : > { %v9598_v49 = vpack.c.bf16 %v8574_v44, %v8574_v44  ;;  %v9854_v50 = vpack.c.bf16 %v8830_v46, %v8830_v46  ;;  %13726 = vmatmul.msk.bf16.gmra.mxu2 %vm3796_vm2, %v14255_v41  ;;  %13854 = vmatmul.msk.bf16.gmra.mxu3 %vm3796_vm2, %v14383_v42  ;;  %v14129_v44 = vld [vmem:[%s14693_s5 + $0x6b8] sm:$0xff] }
 0x56f   : > { %v9087_v51 = vpack.c.bf16 %v8063_v47, %v8063_v47  ;;  %v9343_v52 = vpack.c.bf16 %v8319_v48, %v8319_v48 }
 0x570   : > { %10623 = vst.msk [vmem:[%s14775_s10 + $0xa64] sm:$0xf] %vm9957_vm3, %v9598_v49 }
 0x571   : > { %10879 = vst.msk [vmem:[%s14775_s10 + $0xe64] sm:$0xf] %vm9957_vm3, %v9854_v50  ;;  %v7014_v53 = vpop.f32.mrf.mxu2  ;;  %v7654_v54 = vpop.f32.mrf.mxu3  ;;  %v14257_v50 = vld [vmem:[%s14693_s5 + $0xab8] sm:$0xff] }
 0x572   : > { %10112 = vst.msk [vmem:[%s14775_s10 + $0x268] sm:$0xf] %vm9957_vm3, %v9087_v51  ;;  %v7015_v55 = vadd.f32 %v17244_v17, %v7014_v53  ;;  %v7655_v56 = vadd.f32 %v17244_v17, %v7654_v54  ;;  %v5736_v57 = vpop.f32.mrf.mxu0  ;;  %v6376_v58 = vpop.f32.mrf.mxu1  ;;  %v14385_v51 = vld [vmem:[%s14693_s5 + $0xeb8] sm:$0xff] }
 0x573   : > { %10368 = vst.msk [vmem:[%s14775_s10 + $0x668] sm:$0xf] %vm9957_vm3, %v9343_v52  ;;  %v5737_v59 = vadd.f32 %v17244_v17, %v5736_v57  ;;  %v6377_v61 = vadd.f32 %v17244_v17, %v6376_v58 }
 0x574   : > { %v8575_v62 = vmax.f32 %v7015_v55, 0.0  ;;  %v8831_v45 = vmax.f32 %v7655_v56, 0.0 }
 0x575   : > { %v8064_v63 = vmax.f32 %v5737_v59, 0.0  ;;  %v8320_v1 = vmax.f32 %v6377_v61, 0.0 }
 0x576   : > { %v9599_v2 = vpack.c.bf16 %v8575_v62, %v8575_v62  ;;  %v9855_v3 = vpack.c.bf16 %v8831_v45, %v8831_v45 }
 0x577   : > { %v9088_v4 = vpack.c.bf16 %v8064_v63, %v8064_v63  ;;  %v9344_v40 = vpack.c.bf16 %v8320_v1, %v8320_v1 }
 0x578   : > { %10624 = vst.msk [vmem:[%s14775_s10 + $0xa68] sm:$0xf] %vm9957_vm3, %v9599_v2 }
 0x579   : > { %10880 = vst.msk [vmem:[%s14775_s10 + $0xe68] sm:$0xf] %vm9957_vm3, %v9855_v3  ;;  %v7016_v5 = vpop.f32.mrf.mxu2  ;;  %v7656_v6 = vpop.f32.mrf.mxu3 }
 0x57a   : > { %10113 = vst.msk [vmem:[%s14775_s10 + $0x26c] sm:$0xf] %vm9957_vm3, %v9088_v4  ;;  %v7017_v9 = vadd.f32 %v17244_v17, %v7016_v5  ;;  %v7657_v10 = vadd.f32 %v17244_v17, %v7656_v6  ;;  %v5739_v11 = vpop.f32.mrf.mxu0  ;;  %v6379_v12 = vpop.f32.mrf.mxu1 }
 0x57b   : > { %10369 = vst.msk [vmem:[%s14775_s10 + $0x66c] sm:$0xf] %vm9957_vm3, %v9344_v40  ;;  %v5740_v15 = vadd.f32 %v17244_v17, %v5739_v11  ;;  %v6380_v0 = vadd.f32 %v17244_v17, %v6379_v12 }
 0x57c   : > { %v8576_v16 = vmax.f32 %v7017_v9, 0.0  ;;  %v8832_v18 = vmax.f32 %v7657_v10, 0.0 }
 0x57d   : > { %v8065_v19 = vmax.f32 %v5740_v15, 0.0  ;;  %v8321_v20 = vmax.f32 %v6380_v0, 0.0  ;;  %13471 = vmatmul.msk.bf16.gmra.mxu0 %vm3796_vm2, %v14000_v60  ;;  %13599 = vmatmul.msk.bf16.gmra.mxu1 %vm3796_vm2, %v14128_v7  ;;  %v14002_v0 = vld [vmem:[%s14693_s5 + $0x2c0] sm:$0xff] }
 0x57e   : > { %v9600_v21 = vpack.c.bf16 %v8576_v16, %v8576_v16  ;;  %v9856_v22 = vpack.c.bf16 %v8832_v18, %v8832_v18  ;;  %13727 = vmatmul.msk.bf16.gmra.mxu2 %vm3796_vm2, %v14256_v13  ;;  %13855 = vmatmul.msk.bf16.gmra.mxu3 %vm3796_vm2, %v14384_v14  ;;  %v14130_v16 = vld [vmem:[%s14693_s5 + $0x6c0] sm:$0xff] }
 0x57f   : > { %v9089_v23 = vpack.c.bf16 %v8065_v19, %v8065_v19  ;;  %v9345_v24 = vpack.c.bf16 %v8321_v20, %v8321_v20 }
 0x580   : > { %10625 = vst.msk [vmem:[%s14775_s10 + $0xa6c] sm:$0xf] %vm9957_vm3, %v9600_v21 }
 0x581   : > { %10881 = vst.msk [vmem:[%s14775_s10 + $0xe6c] sm:$0xf] %vm9957_vm3, %v9856_v22  ;;  %v7019_v8 = vpop.f32.mrf.mxu2  ;;  %v7659_v25 = vpop.f32.mrf.mxu3  ;;  %v14258_v22 = vld [vmem:[%s14693_s5 + $0xac0] sm:$0xff] }
 0x582   : > { %10114 = vst.msk [vmem:[%s14775_s10 + $0x270] sm:$0xf] %vm9957_vm3, %v9089_v23  ;;  %v7020_v27 = vadd.f32 %v17244_v17, %v7019_v8  ;;  %v7660_v28 = vadd.f32 %v17244_v17, %v7659_v25  ;;  %v5741_v29 = vpop.f32.mrf.mxu0  ;;  %v6381_v30 = vpop.f32.mrf.mxu1  ;;  %v14386_v23 = vld [vmem:[%s14693_s5 + $0xec0] sm:$0xff] }
 0x583   : > { %10370 = vst.msk [vmem:[%s14775_s10 + $0x670] sm:$0xf] %vm9957_vm3, %v9345_v24  ;;  %v5742_v31 = vadd.f32 %v17244_v17, %v5741_v29  ;;  %v6382_v32 = vadd.f32 %v17244_v17, %v6381_v30 }
 0x584   : > { %v8577_v33 = vmax.f32 %v7020_v27, 0.0  ;;  %v8833_v34 = vmax.f32 %v7660_v28, 0.0 }
 0x585   : > { %v8066_v35 = vmax.f32 %v5742_v31, 0.0  ;;  %v8322_v36 = vmax.f32 %v6382_v32, 0.0 }
 0x586   : > { %v9601_v37 = vpack.c.bf16 %v8577_v33, %v8577_v33  ;;  %v9857_v38 = vpack.c.bf16 %v8833_v34, %v8833_v34 }
 0x587   : > { %v9090_v39 = vpack.c.bf16 %v8066_v35, %v8066_v35  ;;  %v9346_v41 = vpack.c.bf16 %v8322_v36, %v8322_v36 }
 0x588   : > { %10626 = vst.msk [vmem:[%s14775_s10 + $0xa70] sm:$0xf] %vm9957_vm3, %v9601_v37 }
 0x589   : > { %10882 = vst.msk [vmem:[%s14775_s10 + $0xe70] sm:$0xf] %vm9957_vm3, %v9857_v38  ;;  %v7021_v42 = vpop.f32.mrf.mxu2  ;;  %v7661_v43 = vpop.f32.mrf.mxu3 }
 0x58a   : > { %10115 = vst.msk [vmem:[%s14775_s10 + $0x274] sm:$0xf] %vm9957_vm3, %v9090_v39  ;;  %v7022_v46 = vadd.f32 %v17244_v17, %v7021_v42  ;;  %v7662_v47 = vadd.f32 %v17244_v17, %v7661_v43  ;;  %v5744_v48 = vpop.f32.mrf.mxu0  ;;  %v6384_v49 = vpop.f32.mrf.mxu1 }
 0x58b   : > { %10371 = vst.msk [vmem:[%s14775_s10 + $0x674] sm:$0xf] %vm9957_vm3, %v9346_v41  ;;  %v5745_v52 = vadd.f32 %v17244_v17, %v5744_v48  ;;  %v6385_v53 = vadd.f32 %v17244_v17, %v6384_v49 }
 0x58c   : > { %v8578_v54 = vmax.f32 %v7022_v46, 0.0  ;;  %v8834_v55 = vmax.f32 %v7662_v47, 0.0 }
 0x58d   : > { %v8067_v56 = vmax.f32 %v5745_v52, 0.0  ;;  %v8323_v57 = vmax.f32 %v6385_v53, 0.0  ;;  %13472 = vmatmul.msk.bf16.gmra.mxu0 %vm3796_vm2, %v14001_v26  ;;  %13600 = vmatmul.msk.bf16.gmra.mxu1 %vm3796_vm2, %v14129_v44  ;;  %v14003_v53 = vld [vmem:[%s14693_s5 + $0x2c8] sm:$0xff] }
 0x58e   : > { %v9602_v58 = vpack.c.bf16 %v8578_v54, %v8578_v54  ;;  %v9858_v59 = vpack.c.bf16 %v8834_v55, %v8834_v55  ;;  %13728 = vmatmul.msk.bf16.gmra.mxu2 %vm3796_vm2, %v14257_v50  ;;  %13856 = vmatmul.msk.bf16.gmra.mxu3 %vm3796_vm2, %v14385_v51  ;;  %v14131_v54 = vld [vmem:[%s14693_s5 + $0x6c8] sm:$0xff] }
 0x58f   : > { %v9091_v61 = vpack.c.bf16 %v8067_v56, %v8067_v56  ;;  %v9347_v62 = vpack.c.bf16 %v8323_v57, %v8323_v57 }
 0x590   : > { %10627 = vst.msk [vmem:[%s14775_s10 + $0xa74] sm:$0xf] %vm9957_vm3, %v9602_v58 }
 0x591   : > { %10883 = vst.msk [vmem:[%s14775_s10 + $0xe74] sm:$0xf] %vm9957_vm3, %v9858_v59  ;;  %v7024_v45 = vpop.f32.mrf.mxu2  ;;  %v7664_v63 = vpop.f32.mrf.mxu3  ;;  %v14259_v59 = vld [vmem:[%s14693_s5 + $0xac8] sm:$0xff] }
 0x592   : > { %10116 = vst.msk [vmem:[%s14775_s10 + $0x278] sm:$0xf] %vm9957_vm3, %v9091_v61  ;;  %v7025_v1 = vadd.f32 %v17244_v17, %v7024_v45  ;;  %v7665_v2 = vadd.f32 %v17244_v17, %v7664_v63  ;;  %v5746_v3 = vpop.f32.mrf.mxu0  ;;  %v6386_v4 = vpop.f32.mrf.mxu1  ;;  %v14387_v61 = vld [vmem:[%s14693_s5 + $0xec8] sm:$0xff] }
 0x593   : > { %10372 = vst.msk [vmem:[%s14775_s10 + $0x678] sm:$0xf] %vm9957_vm3, %v9347_v62  ;;  %v5747_v40 = vadd.f32 %v17244_v17, %v5746_v3  ;;  %v6387_v5 = vadd.f32 %v17244_v17, %v6386_v4 }
 0x594   : > { %v8579_v6 = vmax.f32 %v7025_v1, 0.0  ;;  %v8835_v60 = vmax.f32 %v7665_v2, 0.0 }
 0x595   : > { %v8068_v7 = vmax.f32 %v5747_v40, 0.0  ;;  %v8324_v9 = vmax.f32 %v6387_v5, 0.0 }
 0x596   : > { %v9603_v10 = vpack.c.bf16 %v8579_v6, %v8579_v6  ;;  %v9859_v11 = vpack.c.bf16 %v8835_v60, %v8835_v60 }
 0x597   : > { %v9092_v12 = vpack.c.bf16 %v8068_v7, %v8068_v7  ;;  %v9348_v13 = vpack.c.bf16 %v8324_v9, %v8324_v9 }
 0x598   : > { %10628 = vst.msk [vmem:[%s14775_s10 + $0xa78] sm:$0xf] %vm9957_vm3, %v9603_v10 }
 0x599   : > { %10884 = vst.msk [vmem:[%s14775_s10 + $0xe78] sm:$0xf] %vm9957_vm3, %v9859_v11  ;;  %v7026_v14 = vpop.f32.mrf.mxu2  ;;  %v7666_v15 = vpop.f32.mrf.mxu3 }
 0x59a   : > { %10117 = vst.msk [vmem:[%s14775_s10 + $0x27c] sm:$0xf] %vm9957_vm3, %v9092_v12  ;;  %v7027_v18 = vadd.f32 %v17244_v17, %v7026_v14  ;;  %v7667_v19 = vadd.f32 %v17244_v17, %v7666_v15  ;;  %v5749_v20 = vpop.f32.mrf.mxu0  ;;  %v6389_v21 = vpop.f32.mrf.mxu1 }
 0x59b   : > { %10373 = vst.msk [vmem:[%s14775_s10 + $0x67c] sm:$0xf] %vm9957_vm3, %v9348_v13  ;;  %v5750_v24 = vadd.f32 %v17244_v17, %v5749_v20  ;;  %v6390_v8 = vadd.f32 %v17244_v17, %v6389_v21 }
 0x59c   : > { %v8580_v25 = vmax.f32 %v7027_v18, 0.0  ;;  %v8836_v27 = vmax.f32 %v7667_v19, 0.0 }
 0x59d   : > { %v8069_v28 = vmax.f32 %v5750_v24, 0.0  ;;  %v8325_v29 = vmax.f32 %v6390_v8, 0.0  ;;  %13473 = vmatmul.msk.bf16.gmra.mxu0 %vm3796_vm2, %v14002_v0  ;;  %13601 = vmatmul.msk.bf16.gmra.mxu1 %vm3796_vm2, %v14130_v16  ;;  %v14004_v8 = vld [vmem:[%s14693_s5 + $0x2d0] sm:$0xff] }
 0x59e   : > { %v9604_v30 = vpack.c.bf16 %v8580_v25, %v8580_v25  ;;  %v9860_v31 = vpack.c.bf16 %v8836_v27, %v8836_v27  ;;  %13729 = vmatmul.msk.bf16.gmra.mxu2 %vm3796_vm2, %v14258_v22  ;;  %13857 = vmatmul.msk.bf16.gmra.mxu3 %vm3796_vm2, %v14386_v23  ;;  %v14132_v25 = vld [vmem:[%s14693_s5 + $0x6d0] sm:$0xff] }
 0x59f   : > { %v9093_v32 = vpack.c.bf16 %v8069_v28, %v8069_v28  ;;  %v9349_v33 = vpack.c.bf16 %v8325_v29, %v8325_v29 }
 0x5a0   : > { %10629 = vst.msk [vmem:[%s14775_s10 + $0xa7c] sm:$0xf] %vm9957_vm3, %v9604_v30 }
 0x5a1   : > { %10885 = vst.msk [vmem:[%s14775_s10 + $0xe7c] sm:$0xf] %vm9957_vm3, %v9860_v31  ;;  %v7029_v34 = vpop.f32.mrf.mxu2  ;;  %v7669_v35 = vpop.f32.mrf.mxu3  ;;  %v14260_v31 = vld [vmem:[%s14693_s5 + $0xad0] sm:$0xff] }
 0x5a2   : > { %10118 = vst.msk [vmem:[%s14775_s10 + $0x280] sm:$0xf] %vm9957_vm3, %v9093_v32  ;;  %v7030_v36 = vadd.f32 %v17244_v17, %v7029_v34  ;;  %v7670_v37 = vadd.f32 %v17244_v17, %v7669_v35  ;;  %v5751_v38 = vpop.f32.mrf.mxu0  ;;  %v6391_v39 = vpop.f32.mrf.mxu1  ;;  %v14388_v32 = vld [vmem:[%s14693_s5 + $0xed0] sm:$0xff] }
 0x5a3   : > { %10374 = vst.msk [vmem:[%s14775_s10 + $0x680] sm:$0xf] %vm9957_vm3, %v9349_v33  ;;  %v5752_v41 = vadd.f32 %v17244_v17, %v5751_v38  ;;  %v6392_v42 = vadd.f32 %v17244_v17, %v6391_v39 }
 0x5a4   : > { %v8581_v43 = vmax.f32 %v7030_v36, 0.0  ;;  %v8837_v26 = vmax.f32 %v7670_v37, 0.0 }
 0x5a5   : > { %v8070_v44 = vmax.f32 %v5752_v41, 0.0  ;;  %v8326_v46 = vmax.f32 %v6392_v42, 0.0 }
 0x5a6   : > { %v9605_v47 = vpack.c.bf16 %v8581_v43, %v8581_v43  ;;  %v9861_v48 = vpack.c.bf16 %v8837_v26, %v8837_v26 }
 0x5a7   : > { %v9094_v49 = vpack.c.bf16 %v8070_v44, %v8070_v44  ;;  %v9350_v50 = vpack.c.bf16 %v8326_v46, %v8326_v46 }
 0x5a8   : > { %10630 = vst.msk [vmem:[%s14775_s10 + $0xa80] sm:$0xf] %vm9957_vm3, %v9605_v47 }
 0x5a9   : > { %10886 = vst.msk [vmem:[%s14775_s10 + $0xe80] sm:$0xf] %vm9957_vm3, %v9861_v48  ;;  %v7031_v51 = vpop.f32.mrf.mxu2  ;;  %v7671_v52 = vpop.f32.mrf.mxu3 }
 0x5aa   : > { %10119 = vst.msk [vmem:[%s14775_s10 + $0x284] sm:$0xf] %vm9957_vm3, %v9094_v49  ;;  %v7032_v55 = vadd.f32 %v17244_v17, %v7031_v51  ;;  %v7672_v56 = vadd.f32 %v17244_v17, %v7671_v52  ;;  %v5754_v57 = vpop.f32.mrf.mxu0  ;;  %v6394_v58 = vpop.f32.mrf.mxu1 }
 0x5ab   : > { %10375 = vst.msk [vmem:[%s14775_s10 + $0x684] sm:$0xf] %vm9957_vm3, %v9350_v50  ;;  %v5755_v62 = vadd.f32 %v17244_v17, %v5754_v57  ;;  %v6395_v45 = vadd.f32 %v17244_v17, %v6394_v58 }
 0x5ac   : > { %v8582_v63 = vmax.f32 %v7032_v55, 0.0  ;;  %v8838_v1 = vmax.f32 %v7672_v56, 0.0 }
 0x5ad   : > { %v8071_v2 = vmax.f32 %v5755_v62, 0.0  ;;  %v8327_v3 = vmax.f32 %v6395_v45, 0.0  ;;  %13474 = vmatmul.msk.bf16.gmra.mxu0 %vm3796_vm2, %v14003_v53  ;;  %13602 = vmatmul.msk.bf16.gmra.mxu1 %vm3796_vm2, %v14131_v54  ;;  %v14005_v45 = vld [vmem:[%s14693_s5 + $0x2d8] sm:$0xff] }
 0x5ae   : > { %v9606_v4 = vpack.c.bf16 %v8582_v63, %v8582_v63  ;;  %v9862_v40 = vpack.c.bf16 %v8838_v1, %v8838_v1  ;;  %13730 = vmatmul.msk.bf16.gmra.mxu2 %vm3796_vm2, %v14259_v59  ;;  %13858 = vmatmul.msk.bf16.gmra.mxu3 %vm3796_vm2, %v14387_v61  ;;  %v14133_v63 = vld [vmem:[%s14693_s5 + $0x6d8] sm:$0xff] }
 0x5af   : > { %v9095_v5 = vpack.c.bf16 %v8071_v2, %v8071_v2  ;;  %v9351_v6 = vpack.c.bf16 %v8327_v3, %v8327_v3 }
 0x5b0   : > { %10631 = vst.msk [vmem:[%s14775_s10 + $0xa84] sm:$0xf] %vm9957_vm3, %v9606_v4 }
 0x5b1   : > { %10887 = vst.msk [vmem:[%s14775_s10 + $0xe84] sm:$0xf] %vm9957_vm3, %v9862_v40  ;;  %v7034_v60 = vpop.f32.mrf.mxu2  ;;  %v7674_v7 = vpop.f32.mrf.mxu3  ;;  %v14261_v40 = vld [vmem:[%s14693_s5 + $0xad8] sm:$0xff] }
 0x5b2   : > { %10120 = vst.msk [vmem:[%s14775_s10 + $0x288] sm:$0xf] %vm9957_vm3, %v9095_v5  ;;  %v7035_v9 = vadd.f32 %v17244_v17, %v7034_v60  ;;  %v7675_v10 = vadd.f32 %v17244_v17, %v7674_v7  ;;  %v5756_v11 = vpop.f32.mrf.mxu0  ;;  %v6396_v12 = vpop.f32.mrf.mxu1  ;;  %v14389_v5 = vld [vmem:[%s14693_s5 + $0xed8] sm:$0xff] }
 0x5b3   : > { %10376 = vst.msk [vmem:[%s14775_s10 + $0x688] sm:$0xf] %vm9957_vm3, %v9351_v6  ;;  %v5757_v13 = vadd.f32 %v17244_v17, %v5756_v11  ;;  %v6397_v14 = vadd.f32 %v17244_v17, %v6396_v12 }
 0x5b4   : > { %v8583_v15 = vmax.f32 %v7035_v9, 0.0  ;;  %v8839_v0 = vmax.f32 %v7675_v10, 0.0 }
 0x5b5   : > { %v8072_v16 = vmax.f32 %v5757_v13, 0.0  ;;  %v8328_v18 = vmax.f32 %v6397_v14, 0.0 }
 0x5b6   : > { %v9607_v19 = vpack.c.bf16 %v8583_v15, %v8583_v15  ;;  %v9863_v20 = vpack.c.bf16 %v8839_v0, %v8839_v0 }
 0x5b7   : > { %v9096_v21 = vpack.c.bf16 %v8072_v16, %v8072_v16  ;;  %v9352_v22 = vpack.c.bf16 %v8328_v18, %v8328_v18 }
 0x5b8   : > { %10632 = vst.msk [vmem:[%s14775_s10 + $0xa88] sm:$0xf] %vm9957_vm3, %v9607_v19 }
 0x5b9   : > { %10888 = vst.msk [vmem:[%s14775_s10 + $0xe88] sm:$0xf] %vm9957_vm3, %v9863_v20  ;;  %v7036_v23 = vpop.f32.mrf.mxu2  ;;  %v7676_v24 = vpop.f32.mrf.mxu3 }
 0x5ba   : > { %10121 = vst.msk [vmem:[%s14775_s10 + $0x28c] sm:$0xf] %vm9957_vm3, %v9096_v21  ;;  %v7037_v27 = vadd.f32 %v17244_v17, %v7036_v23  ;;  %v7677_v28 = vadd.f32 %v17244_v17, %v7676_v24  ;;  %v5759_v29 = vpop.f32.mrf.mxu0  ;;  %v6399_v30 = vpop.f32.mrf.mxu1 }
 0x5bb   : > { %10377 = vst.msk [vmem:[%s14775_s10 + $0x68c] sm:$0xf] %vm9957_vm3, %v9352_v22  ;;  %v5760_v33 = vadd.f32 %v17244_v17, %v5759_v29  ;;  %v6400_v34 = vadd.f32 %v17244_v17, %v6399_v30 }
 0x5bc   : > { %v8584_v35 = vmax.f32 %v7037_v27, 0.0  ;;  %v8840_v36 = vmax.f32 %v7677_v28, 0.0 }
 0x5bd   : > { %v8073_v37 = vmax.f32 %v5760_v33, 0.0  ;;  %v8329_v38 = vmax.f32 %v6400_v34, 0.0  ;;  %13475 = vmatmul.msk.bf16.gmra.mxu0 %vm3796_vm2, %v14004_v8  ;;  %13603 = vmatmul.msk.bf16.gmra.mxu1 %vm3796_vm2, %v14132_v25  ;;  %v14006_v34 = vld [vmem:[%s14693_s5 + $0x2e0] sm:$0xff] }
 0x5be   : > { %v9608_v39 = vpack.c.bf16 %v8584_v35, %v8584_v35  ;;  %v9864_v41 = vpack.c.bf16 %v8840_v36, %v8840_v36  ;;  %13731 = vmatmul.msk.bf16.gmra.mxu2 %vm3796_vm2, %v14260_v31  ;;  %13859 = vmatmul.msk.bf16.gmra.mxu3 %vm3796_vm2, %v14388_v32  ;;  %v14134_v35 = vld [vmem:[%s14693_s5 + $0x6e0] sm:$0xff] }
 0x5bf   : > { %v9097_v42 = vpack.c.bf16 %v8073_v37, %v8073_v37  ;;  %v9353_v43 = vpack.c.bf16 %v8329_v38, %v8329_v38 }
 0x5c0   : > { %10633 = vst.msk [vmem:[%s14775_s10 + $0xa8c] sm:$0xf] %vm9957_vm3, %v9608_v39 }
 0x5c1   : > { %10889 = vst.msk [vmem:[%s14775_s10 + $0xe8c] sm:$0xf] %vm9957_vm3, %v9864_v41  ;;  %v7039_v26 = vpop.f32.mrf.mxu2  ;;  %v7679_v44 = vpop.f32.mrf.mxu3  ;;  %v14262_v41 = vld [vmem:[%s14693_s5 + $0xae0] sm:$0xff] }
 0x5c2   : > { %10122 = vst.msk [vmem:[%s14775_s10 + $0x290] sm:$0xf] %vm9957_vm3, %v9097_v42  ;;  %v7040_v46 = vadd.f32 %v17244_v17, %v7039_v26  ;;  %v7680_v47 = vadd.f32 %v17244_v17, %v7679_v44  ;;  %v5761_v48 = vpop.f32.mrf.mxu0  ;;  %v6401_v49 = vpop.f32.mrf.mxu1  ;;  %v14390_v42 = vld [vmem:[%s14693_s5 + $0xee0] sm:$0xff] }
 0x5c3   : > { %10378 = vst.msk [vmem:[%s14775_s10 + $0x690] sm:$0xf] %vm9957_vm3, %v9353_v43  ;;  %v5762_v50 = vadd.f32 %v17244_v17, %v5761_v48  ;;  %v6402_v51 = vadd.f32 %v17244_v17, %v6401_v49 }
 0x5c4   : > { %v8585_v52 = vmax.f32 %v7040_v46, 0.0  ;;  %v8841_v53 = vmax.f32 %v7680_v47, 0.0 }
 0x5c5   : > { %v8074_v54 = vmax.f32 %v5762_v50, 0.0  ;;  %v8330_v55 = vmax.f32 %v6402_v51, 0.0 }
 0x5c6   : > { %v9609_v56 = vpack.c.bf16 %v8585_v52, %v8585_v52  ;;  %v9865_v57 = vpack.c.bf16 %v8841_v53, %v8841_v53 }
 0x5c7   : > { %v9098_v58 = vpack.c.bf16 %v8074_v54, %v8074_v54  ;;  %v9354_v59 = vpack.c.bf16 %v8330_v55, %v8330_v55 }
 0x5c8   : > { %10634 = vst.msk [vmem:[%s14775_s10 + $0xa90] sm:$0xf] %vm9957_vm3, %v9609_v56 }
 0x5c9   : > { %10890 = vst.msk [vmem:[%s14775_s10 + $0xe90] sm:$0xf] %vm9957_vm3, %v9865_v57  ;;  %v7041_v61 = vpop.f32.mrf.mxu2  ;;  %v7681_v62 = vpop.f32.mrf.mxu3 }
 0x5ca   : > { %10123 = vst.msk [vmem:[%s14775_s10 + $0x294] sm:$0xf] %vm9957_vm3, %v9098_v58  ;;  %v7042_v1 = vadd.f32 %v17244_v17, %v7041_v61  ;;  %v7682_v2 = vadd.f32 %v17244_v17, %v7681_v62  ;;  %v5764_v3 = vpop.f32.mrf.mxu0  ;;  %v6404_v4 = vpop.f32.mrf.mxu1 }
 0x5cb   : > { %10379 = vst.msk [vmem:[%s14775_s10 + $0x694] sm:$0xf] %vm9957_vm3, %v9354_v59  ;;  %v5765_v6 = vadd.f32 %v17244_v17, %v5764_v3  ;;  %v6405_v60 = vadd.f32 %v17244_v17, %v6404_v4 }
 0x5cc   : > { %v8586_v7 = vmax.f32 %v7042_v1, 0.0  ;;  %v8842_v9 = vmax.f32 %v7682_v2, 0.0 }
 0x5cd   : > { %v8075_v10 = vmax.f32 %v5765_v6, 0.0  ;;  %v8331_v11 = vmax.f32 %v6405_v60, 0.0  ;;  %13476 = vmatmul.msk.bf16.gmra.mxu0 %vm3796_vm2, %v14005_v45  ;;  %13604 = vmatmul.msk.bf16.gmra.mxu1 %vm3796_vm2, %v14133_v63  ;;  %v14007_v60 = vld [vmem:[%s14693_s5 + $0x2e8] sm:$0xff] }
 0x5ce   : > { %v9610_v12 = vpack.c.bf16 %v8586_v7, %v8586_v7  ;;  %v9866_v13 = vpack.c.bf16 %v8842_v9, %v8842_v9  ;;  %13732 = vmatmul.msk.bf16.gmra.mxu2 %vm3796_vm2, %v14261_v40  ;;  %13860 = vmatmul.msk.bf16.gmra.mxu3 %vm3796_vm2, %v14389_v5  ;;  %v14135_v7 = vld [vmem:[%s14693_s5 + $0x6e8] sm:$0xff] }
 0x5cf   : > { %v9099_v14 = vpack.c.bf16 %v8075_v10, %v8075_v10  ;;  %v9355_v15 = vpack.c.bf16 %v8331_v11, %v8331_v11 }
 0x5d0   : > { %10635 = vst.msk [vmem:[%s14775_s10 + $0xa94] sm:$0xf] %vm9957_vm3, %v9610_v12 }
 0x5d1   : > { %10891 = vst.msk [vmem:[%s14775_s10 + $0xe94] sm:$0xf] %vm9957_vm3, %v9866_v13  ;;  %v7044_v0 = vpop.f32.mrf.mxu2  ;;  %v7684_v16 = vpop.f32.mrf.mxu3  ;;  %v14263_v13 = vld [vmem:[%s14693_s5 + $0xae8] sm:$0xff] }
 0x5d2   : > { %10124 = vst.msk [vmem:[%s14775_s10 + $0x298] sm:$0xf] %vm9957_vm3, %v9099_v14  ;;  %v7045_v18 = vadd.f32 %v17244_v17, %v7044_v0  ;;  %v7685_v19 = vadd.f32 %v17244_v17, %v7684_v16  ;;  %v5766_v20 = vpop.f32.mrf.mxu0  ;;  %v6406_v21 = vpop.f32.mrf.mxu1  ;;  %v14391_v14 = vld [vmem:[%s14693_s5 + $0xee8] sm:$0xff] }
 0x5d3   : > { %10380 = vst.msk [vmem:[%s14775_s10 + $0x698] sm:$0xf] %vm9957_vm3, %v9355_v15  ;;  %v5767_v22 = vadd.f32 %v17244_v17, %v5766_v20  ;;  %v6407_v23 = vadd.f32 %v17244_v17, %v6406_v21 }
 0x5d4   : > { %v8587_v24 = vmax.f32 %v7045_v18, 0.0  ;;  %v8843_v8 = vmax.f32 %v7685_v19, 0.0 }
 0x5d5   : > { %v8076_v25 = vmax.f32 %v5767_v22, 0.0  ;;  %v8332_v27 = vmax.f32 %v6407_v23, 0.0 }
 0x5d6   : > { %v9611_v28 = vpack.c.bf16 %v8587_v24, %v8587_v24  ;;  %v9867_v29 = vpack.c.bf16 %v8843_v8, %v8843_v8 }
 0x5d7   : > { %v9100_v30 = vpack.c.bf16 %v8076_v25, %v8076_v25  ;;  %v9356_v31 = vpack.c.bf16 %v8332_v27, %v8332_v27 }
 0x5d8   : > { %10636 = vst.msk [vmem:[%s14775_s10 + $0xa98] sm:$0xf] %vm9957_vm3, %v9611_v28 }
 0x5d9   : > { %10892 = vst.msk [vmem:[%s14775_s10 + $0xe98] sm:$0xf] %vm9957_vm3, %v9867_v29  ;;  %v7046_v32 = vpop.f32.mrf.mxu2  ;;  %v7686_v33 = vpop.f32.mrf.mxu3 }
 0x5da   : > { %10125 = vst.msk [vmem:[%s14775_s10 + $0x29c] sm:$0xf] %vm9957_vm3, %v9100_v30  ;;  %v7047_v36 = vadd.f32 %v17244_v17, %v7046_v32  ;;  %v7687_v37 = vadd.f32 %v17244_v17, %v7686_v33  ;;  %v5769_v38 = vpop.f32.mrf.mxu0  ;;  %v6409_v39 = vpop.f32.mrf.mxu1 }
 0x5db   : > { %10381 = vst.msk [vmem:[%s14775_s10 + $0x69c] sm:$0xf] %vm9957_vm3, %v9356_v31  ;;  %v5770_v43 = vadd.f32 %v17244_v17, %v5769_v38  ;;  %v6410_v26 = vadd.f32 %v17244_v17, %v6409_v39 }
 0x5dc   : > { %v8588_v44 = vmax.f32 %v7047_v36, 0.0  ;;  %v8844_v46 = vmax.f32 %v7687_v37, 0.0 }
 0x5dd   : > { %v8077_v47 = vmax.f32 %v5770_v43, 0.0  ;;  %v8333_v48 = vmax.f32 %v6410_v26, 0.0  ;;  %13477 = vmatmul.msk.bf16.gmra.mxu0 %vm3796_vm2, %v14006_v34  ;;  %13605 = vmatmul.msk.bf16.gmra.mxu1 %vm3796_vm2, %v14134_v35  ;;  %v14008_v26 = vld [vmem:[%s14693_s5 + $0x2f0] sm:$0xff] }
 0x5de   : > { %v9612_v49 = vpack.c.bf16 %v8588_v44, %v8588_v44  ;;  %v9868_v50 = vpack.c.bf16 %v8844_v46, %v8844_v46  ;;  %13733 = vmatmul.msk.bf16.gmra.mxu2 %vm3796_vm2, %v14262_v41  ;;  %13861 = vmatmul.msk.bf16.gmra.mxu3 %vm3796_vm2, %v14390_v42  ;;  %v14136_v44 = vld [vmem:[%s14693_s5 + $0x6f0] sm:$0xff] }
 0x5df   : > { %v9101_v51 = vpack.c.bf16 %v8077_v47, %v8077_v47  ;;  %v9357_v52 = vpack.c.bf16 %v8333_v48, %v8333_v48 }
 0x5e0   : > { %10637 = vst.msk [vmem:[%s14775_s10 + $0xa9c] sm:$0xf] %vm9957_vm3, %v9612_v49 }
 0x5e1   : > { %10893 = vst.msk [vmem:[%s14775_s10 + $0xe9c] sm:$0xf] %vm9957_vm3, %v9868_v50  ;;  %v7049_v53 = vpop.f32.mrf.mxu2  ;;  %v7689_v54 = vpop.f32.mrf.mxu3  ;;  %v14264_v50 = vld [vmem:[%s14693_s5 + $0xaf0] sm:$0xff] }
 0x5e2   : > { %10126 = vst.msk [vmem:[%s14775_s10 + $0x2a0] sm:$0xf] %vm9957_vm3, %v9101_v51  ;;  %v7050_v55 = vadd.f32 %v17244_v17, %v7049_v53  ;;  %v7690_v56 = vadd.f32 %v17244_v17, %v7689_v54  ;;  %v5771_v57 = vpop.f32.mrf.mxu0  ;;  %v6411_v58 = vpop.f32.mrf.mxu1  ;;  %v14392_v51 = vld [vmem:[%s14693_s5 + $0xef0] sm:$0xff] }
 0x5e3   : > { %10382 = vst.msk [vmem:[%s14775_s10 + $0x6a0] sm:$0xf] %vm9957_vm3, %v9357_v52  ;;  %v5772_v59 = vadd.f32 %v17244_v17, %v5771_v57  ;;  %v6412_v61 = vadd.f32 %v17244_v17, %v6411_v58 }
 0x5e4   : > { %v8589_v62 = vmax.f32 %v7050_v55, 0.0  ;;  %v8845_v45 = vmax.f32 %v7690_v56, 0.0 }
 0x5e5   : > { %v8078_v63 = vmax.f32 %v5772_v59, 0.0  ;;  %v8334_v1 = vmax.f32 %v6412_v61, 0.0 }
 0x5e6   : > { %v9613_v2 = vpack.c.bf16 %v8589_v62, %v8589_v62  ;;  %v9869_v3 = vpack.c.bf16 %v8845_v45, %v8845_v45 }
 0x5e7   : > { %v9102_v4 = vpack.c.bf16 %v8078_v63, %v8078_v63  ;;  %v9358_v40 = vpack.c.bf16 %v8334_v1, %v8334_v1 }
 0x5e8   : > { %10638 = vst.msk [vmem:[%s14775_s10 + $0xaa0] sm:$0xf] %vm9957_vm3, %v9613_v2 }
 0x5e9   : > { %10894 = vst.msk [vmem:[%s14775_s10 + $0xea0] sm:$0xf] %vm9957_vm3, %v9869_v3  ;;  %v7051_v5 = vpop.f32.mrf.mxu2  ;;  %v7691_v6 = vpop.f32.mrf.mxu3 }
 0x5ea   : > { %10127 = vst.msk [vmem:[%s14775_s10 + $0x2a4] sm:$0xf] %vm9957_vm3, %v9102_v4  ;;  %v7052_v9 = vadd.f32 %v17244_v17, %v7051_v5  ;;  %v7692_v10 = vadd.f32 %v17244_v17, %v7691_v6  ;;  %v5774_v11 = vpop.f32.mrf.mxu0  ;;  %v6414_v12 = vpop.f32.mrf.mxu1 }
 0x5eb   : > { %10383 = vst.msk [vmem:[%s14775_s10 + $0x6a4] sm:$0xf] %vm9957_vm3, %v9358_v40  ;;  %v5775_v15 = vadd.f32 %v17244_v17, %v5774_v11  ;;  %v6415_v0 = vadd.f32 %v17244_v17, %v6414_v12 }
 0x5ec   : > { %v8590_v16 = vmax.f32 %v7052_v9, 0.0  ;;  %v8846_v18 = vmax.f32 %v7692_v10, 0.0 }
 0x5ed   : > { %v8079_v19 = vmax.f32 %v5775_v15, 0.0  ;;  %v8335_v20 = vmax.f32 %v6415_v0, 0.0  ;;  %13478 = vmatmul.msk.bf16.gmra.mxu0 %vm3796_vm2, %v14007_v60  ;;  %13606 = vmatmul.msk.bf16.gmra.mxu1 %vm3796_vm2, %v14135_v7  ;;  %v14009_v0 = vld [vmem:[%s14693_s5 + $0x2f8] sm:$0xff] }
 0x5ee   : > { %v9614_v21 = vpack.c.bf16 %v8590_v16, %v8590_v16  ;;  %v9870_v22 = vpack.c.bf16 %v8846_v18, %v8846_v18  ;;  %13734 = vmatmul.msk.bf16.gmra.mxu2 %vm3796_vm2, %v14263_v13  ;;  %13862 = vmatmul.msk.bf16.gmra.mxu3 %vm3796_vm2, %v14391_v14  ;;  %v14137_v16 = vld [vmem:[%s14693_s5 + $0x6f8] sm:$0xff] }
 0x5ef   : > { %v9103_v23 = vpack.c.bf16 %v8079_v19, %v8079_v19  ;;  %v9359_v24 = vpack.c.bf16 %v8335_v20, %v8335_v20 }
 0x5f0   : > { %10639 = vst.msk [vmem:[%s14775_s10 + $0xaa4] sm:$0xf] %vm9957_vm3, %v9614_v21 }
 0x5f1   : > { %10895 = vst.msk [vmem:[%s14775_s10 + $0xea4] sm:$0xf] %vm9957_vm3, %v9870_v22  ;;  %v7054_v8 = vpop.f32.mrf.mxu2  ;;  %v7694_v25 = vpop.f32.mrf.mxu3  ;;  %v14265_v22 = vld [vmem:[%s14693_s5 + $0xaf8] sm:$0xff] }
 0x5f2   : > { %10128 = vst.msk [vmem:[%s14775_s10 + $0x2a8] sm:$0xf] %vm9957_vm3, %v9103_v23  ;;  %v7055_v27 = vadd.f32 %v17244_v17, %v7054_v8  ;;  %v7695_v28 = vadd.f32 %v17244_v17, %v7694_v25  ;;  %v5776_v29 = vpop.f32.mrf.mxu0  ;;  %v6416_v30 = vpop.f32.mrf.mxu1  ;;  %v14393_v23 = vld [vmem:[%s14693_s5 + $0xef8] sm:$0xff] }
 0x5f3   : > { %10384 = vst.msk [vmem:[%s14775_s10 + $0x6a8] sm:$0xf] %vm9957_vm3, %v9359_v24  ;;  %v5777_v31 = vadd.f32 %v17244_v17, %v5776_v29  ;;  %v6417_v32 = vadd.f32 %v17244_v17, %v6416_v30 }
 0x5f4   : > { %v8591_v33 = vmax.f32 %v7055_v27, 0.0  ;;  %v8847_v34 = vmax.f32 %v7695_v28, 0.0 }
 0x5f5   : > { %v8080_v35 = vmax.f32 %v5777_v31, 0.0  ;;  %v8336_v36 = vmax.f32 %v6417_v32, 0.0 }
 0x5f6   : > { %v9615_v37 = vpack.c.bf16 %v8591_v33, %v8591_v33  ;;  %v9871_v38 = vpack.c.bf16 %v8847_v34, %v8847_v34 }
 0x5f7   : > { %v9104_v39 = vpack.c.bf16 %v8080_v35, %v8080_v35  ;;  %v9360_v41 = vpack.c.bf16 %v8336_v36, %v8336_v36  ;;  %v17601_v35 = vld [vmem:[%s18998_s2] ss:$0 sm:$0xff] }
 0x5f8   : > { %10640 = vst.msk [vmem:[%s14775_s10 + $0xaa8] sm:$0xf] %vm9957_vm3, %v9615_v37 }
 0x5f9   : > { %10896 = vst.msk [vmem:[%s14775_s10 + $0xea8] sm:$0xf] %vm9957_vm3, %v9871_v38  ;;  %v7056_v42 = vpop.f32.mrf.mxu2  ;;  %v7696_v43 = vpop.f32.mrf.mxu3 }
 0x5fa   : > { %10129 = vst.msk [vmem:[%s14775_s10 + $0x2ac] sm:$0xf] %vm9957_vm3, %v9104_v39  ;;  %v7057_v46 = vadd.f32 %v17244_v17, %v7056_v42  ;;  %v7697_v47 = vadd.f32 %v17244_v17, %v7696_v43  ;;  %v5779_v48 = vpop.f32.mrf.mxu0  ;;  %v6419_v49 = vpop.f32.mrf.mxu1 }
 0x5fb   : > { %10385 = vst.msk [vmem:[%s14775_s10 + $0x6ac] sm:$0xf] %vm9957_vm3, %v9360_v41  ;;  %v5780_v52 = vadd.f32 %v17244_v17, %v5779_v48  ;;  %v6420_v53 = vadd.f32 %v17244_v17, %v6419_v49 }
 0x5fc   : > { %v8592_v54 = vmax.f32 %v7057_v46, 0.0  ;;  %v8848_v55 = vmax.f32 %v7697_v47, 0.0 }
 0x5fd   : > { %v8081_v56 = vmax.f32 %v5780_v52, 0.0  ;;  %v8337_v57 = vmax.f32 %v6420_v53, 0.0  ;;  %13479 = vmatmul.msk.bf16.gmra.mxu0 %vm3796_vm2, %v14008_v26  ;;  %13607 = vmatmul.msk.bf16.gmra.mxu1 %vm3796_vm2, %v14136_v44  ;;  %v14010_v53 = vld [vmem:[%s14693_s5 + $0x300] sm:$0xff] }
 0x5fe   : > { %v9616_v58 = vpack.c.bf16 %v8592_v54, %v8592_v54  ;;  %v9872_v59 = vpack.c.bf16 %v8848_v55, %v8848_v55  ;;  %13735 = vmatmul.msk.bf16.gmra.mxu2 %vm3796_vm2, %v14264_v50  ;;  %13863 = vmatmul.msk.bf16.gmra.mxu3 %vm3796_vm2, %v14392_v51  ;;  %v14138_v54 = vld [vmem:[%s14693_s5 + $0x700] sm:$0xff] }
 0x5ff   : > { %v9105_v61 = vpack.c.bf16 %v8081_v56, %v8081_v56  ;;  %v9361_v62 = vpack.c.bf16 %v8337_v57, %v8337_v57 }
 0x600   : > { %10641 = vst.msk [vmem:[%s14775_s10 + $0xaac] sm:$0xf] %vm9957_vm3, %v9616_v58 }
 0x601   : > { %10897 = vst.msk [vmem:[%s14775_s10 + $0xeac] sm:$0xf] %vm9957_vm3, %v9872_v59  ;;  %v7059_v45 = vpop.f32.mrf.mxu2  ;;  %v7699_v63 = vpop.f32.mrf.mxu3  ;;  %v14266_v59 = vld [vmem:[%s14693_s5 + $0xb00] sm:$0xff] }
 0x602   : > { %10130 = vst.msk [vmem:[%s14775_s10 + $0x2b0] sm:$0xf] %vm9957_vm3, %v9105_v61  ;;  %v7060_v1 = vadd.f32 %v17244_v17, %v7059_v45  ;;  %v7700_v2 = vadd.f32 %v17244_v17, %v7699_v63  ;;  %v5781_v3 = vpop.f32.mrf.mxu0  ;;  %v6421_v4 = vpop.f32.mrf.mxu1  ;;  %v14394_v61 = vld [vmem:[%s14693_s5 + $0xf00] sm:$0xff] }
 0x603   : > { %10386 = vst.msk [vmem:[%s14775_s10 + $0x6b0] sm:$0xf] %vm9957_vm3, %v9361_v62  ;;  %v5782_v40 = vadd.f32 %v17244_v17, %v5781_v3  ;;  %v6422_v5 = vadd.f32 %v17244_v17, %v6421_v4 }
 0x604   : > { %v8593_v6 = vmax.f32 %v7060_v1, 0.0  ;;  %v8849_v60 = vmax.f32 %v7700_v2, 0.0 }
 0x605   : > { %v8082_v7 = vmax.f32 %v5782_v40, 0.0  ;;  %v8338_v9 = vmax.f32 %v6422_v5, 0.0 }
 0x606   : > { %v9617_v10 = vpack.c.bf16 %v8593_v6, %v8593_v6  ;;  %v9873_v11 = vpack.c.bf16 %v8849_v60, %v8849_v60 }
 0x607   : > { %v9106_v12 = vpack.c.bf16 %v8082_v7, %v8082_v7  ;;  %v9362_v13 = vpack.c.bf16 %v8338_v9, %v8338_v9 }
 0x608   : > { %10642 = vst.msk [vmem:[%s14775_s10 + $0xab0] sm:$0xf] %vm9957_vm3, %v9617_v10 }
 0x609   : > { %10898 = vst.msk [vmem:[%s14775_s10 + $0xeb0] sm:$0xf] %vm9957_vm3, %v9873_v11  ;;  %v7061_v14 = vpop.f32.mrf.mxu2  ;;  %v7701_v15 = vpop.f32.mrf.mxu3 }
 0x60a   : > { %10131 = vst.msk [vmem:[%s14775_s10 + $0x2b4] sm:$0xf] %vm9957_vm3, %v9106_v12  ;;  %v7062_v18 = vadd.f32 %v17244_v17, %v7061_v14  ;;  %v7702_v19 = vadd.f32 %v17244_v17, %v7701_v15  ;;  %v5784_v20 = vpop.f32.mrf.mxu0  ;;  %v6424_v21 = vpop.f32.mrf.mxu1 }
 0x60b   : > { %10387 = vst.msk [vmem:[%s14775_s10 + $0x6b4] sm:$0xf] %vm9957_vm3, %v9362_v13  ;;  %v5785_v24 = vadd.f32 %v17244_v17, %v5784_v20  ;;  %v6425_v8 = vadd.f32 %v17244_v17, %v6424_v21 }
 0x60c   : > { %v8594_v25 = vmax.f32 %v7062_v18, 0.0  ;;  %v8850_v27 = vmax.f32 %v7702_v19, 0.0 }
 0x60d   : > { %v8083_v28 = vmax.f32 %v5785_v24, 0.0  ;;  %v8339_v29 = vmax.f32 %v6425_v8, 0.0  ;;  %13480 = vmatmul.msk.bf16.gmra.mxu0 %vm3796_vm2, %v14009_v0  ;;  %13608 = vmatmul.msk.bf16.gmra.mxu1 %vm3796_vm2, %v14137_v16  ;;  %v14011_v8 = vld [vmem:[%s14693_s5 + $0x308] sm:$0xff] }
 0x60e   : > { %v9618_v30 = vpack.c.bf16 %v8594_v25, %v8594_v25  ;;  %v9874_v31 = vpack.c.bf16 %v8850_v27, %v8850_v27  ;;  %13736 = vmatmul.msk.bf16.gmra.mxu2 %vm3796_vm2, %v14265_v22  ;;  %13864 = vmatmul.msk.bf16.gmra.mxu3 %vm3796_vm2, %v14393_v23  ;;  %v14139_v25 = vld [vmem:[%s14693_s5 + $0x708] sm:$0xff] }
 0x60f   : > { %v9107_v32 = vpack.c.bf16 %v8083_v28, %v8083_v28  ;;  %v9363_v33 = vpack.c.bf16 %v8339_v29, %v8339_v29 }
 0x610   : > { %10643 = vst.msk [vmem:[%s14775_s10 + $0xab4] sm:$0xf] %vm9957_vm3, %v9618_v30 }
 0x611   : > { %10899 = vst.msk [vmem:[%s14775_s10 + $0xeb4] sm:$0xf] %vm9957_vm3, %v9874_v31  ;;  %v7064_v17 = vpop.f32.mrf.mxu2  ;;  %v7704_v34 = vpop.f32.mrf.mxu3  ;;  %v14267_v31 = vld [vmem:[%s14693_s5 + $0xb08] sm:$0xff] }
 0x612   : > { %10132 = vst.msk [vmem:[%s14775_s10 + $0x2b8] sm:$0xf] %vm9957_vm3, %v9107_v32  ;;  %v7065_v36 = vadd.f32 %v17601_v35, %v7064_v17  ;;  %v7705_v37 = vadd.f32 %v17601_v35, %v7704_v34  ;;  %v5786_v38 = vpop.f32.mrf.mxu0  ;;  %v6426_v39 = vpop.f32.mrf.mxu1  ;;  %v14395_v32 = vld [vmem:[%s14693_s5 + $0xf08] sm:$0xff] }
 0x613   : > { %10388 = vst.msk [vmem:[%s14775_s10 + $0x6b8] sm:$0xf] %vm9957_vm3, %v9363_v33  ;;  %v5787_v41 = vadd.f32 %v17601_v35, %v5786_v38  ;;  %v6427_v42 = vadd.f32 %v17601_v35, %v6426_v39 }
 0x614   : > { %v8595_v43 = vmax.f32 %v7065_v36, 0.0  ;;  %v8851_v26 = vmax.f32 %v7705_v37, 0.0 }
 0x615   : > { %v8084_v44 = vmax.f32 %v5787_v41, 0.0  ;;  %v8340_v46 = vmax.f32 %v6427_v42, 0.0 }
 0x616   : > { %v9619_v47 = vpack.c.bf16 %v8595_v43, %v8595_v43  ;;  %v9875_v48 = vpack.c.bf16 %v8851_v26, %v8851_v26 }
 0x617   : > { %v9108_v49 = vpack.c.bf16 %v8084_v44, %v8084_v44  ;;  %v9364_v50 = vpack.c.bf16 %v8340_v46, %v8340_v46 }
 0x618   : > { %10644 = vst.msk [vmem:[%s14775_s10 + $0xab8] sm:$0xf] %vm9957_vm3, %v9619_v47 }
 0x619   : > { %10900 = vst.msk [vmem:[%s14775_s10 + $0xeb8] sm:$0xf] %vm9957_vm3, %v9875_v48  ;;  %v7066_v51 = vpop.f32.mrf.mxu2  ;;  %v7706_v52 = vpop.f32.mrf.mxu3 }
 0x61a   : > { %10133 = vst.msk [vmem:[%s14775_s10 + $0x2bc] sm:$0xf] %vm9957_vm3, %v9108_v49  ;;  %v7067_v55 = vadd.f32 %v17601_v35, %v7066_v51  ;;  %v7707_v56 = vadd.f32 %v17601_v35, %v7706_v52  ;;  %v5789_v57 = vpop.f32.mrf.mxu0  ;;  %v6429_v58 = vpop.f32.mrf.mxu1 }
 0x61b   : > { %10389 = vst.msk [vmem:[%s14775_s10 + $0x6bc] sm:$0xf] %vm9957_vm3, %v9364_v50  ;;  %v5790_v62 = vadd.f32 %v17601_v35, %v5789_v57  ;;  %v6430_v45 = vadd.f32 %v17601_v35, %v6429_v58 }
 0x61c   : > { %v8596_v63 = vmax.f32 %v7067_v55, 0.0  ;;  %v8852_v1 = vmax.f32 %v7707_v56, 0.0 }
 0x61d   : > { %v8085_v2 = vmax.f32 %v5790_v62, 0.0  ;;  %v8341_v3 = vmax.f32 %v6430_v45, 0.0  ;;  %13481 = vmatmul.msk.bf16.gmra.mxu0 %vm3796_vm2, %v14010_v53  ;;  %13609 = vmatmul.msk.bf16.gmra.mxu1 %vm3796_vm2, %v14138_v54  ;;  %v14012_v45 = vld [vmem:[%s14693_s5 + $0x310] sm:$0xff] }
 0x61e   : > { %v9620_v4 = vpack.c.bf16 %v8596_v63, %v8596_v63  ;;  %v9876_v40 = vpack.c.bf16 %v8852_v1, %v8852_v1  ;;  %13737 = vmatmul.msk.bf16.gmra.mxu2 %vm3796_vm2, %v14266_v59  ;;  %13865 = vmatmul.msk.bf16.gmra.mxu3 %vm3796_vm2, %v14394_v61  ;;  %v14140_v63 = vld [vmem:[%s14693_s5 + $0x710] sm:$0xff] }
 0x61f   : > { %v9109_v5 = vpack.c.bf16 %v8085_v2, %v8085_v2  ;;  %v9365_v6 = vpack.c.bf16 %v8341_v3, %v8341_v3 }
 0x620   : > { %10645 = vst.msk [vmem:[%s14775_s10 + $0xabc] sm:$0xf] %vm9957_vm3, %v9620_v4 }
 0x621   : > { %10901 = vst.msk [vmem:[%s14775_s10 + $0xebc] sm:$0xf] %vm9957_vm3, %v9876_v40  ;;  %v7069_v60 = vpop.f32.mrf.mxu2  ;;  %v7709_v7 = vpop.f32.mrf.mxu3  ;;  %v14268_v40 = vld [vmem:[%s14693_s5 + $0xb10] sm:$0xff] }
 0x622   : > { %10134 = vst.msk [vmem:[%s14775_s10 + $0x2c0] sm:$0xf] %vm9957_vm3, %v9109_v5  ;;  %v7070_v9 = vadd.f32 %v17601_v35, %v7069_v60  ;;  %v7710_v10 = vadd.f32 %v17601_v35, %v7709_v7  ;;  %v5791_v11 = vpop.f32.mrf.mxu0  ;;  %v6431_v12 = vpop.f32.mrf.mxu1  ;;  %v14396_v5 = vld [vmem:[%s14693_s5 + $0xf10] sm:$0xff] }
 0x623   : > { %10390 = vst.msk [vmem:[%s14775_s10 + $0x6c0] sm:$0xf] %vm9957_vm3, %v9365_v6  ;;  %v5792_v13 = vadd.f32 %v17601_v35, %v5791_v11  ;;  %v6432_v14 = vadd.f32 %v17601_v35, %v6431_v12 }
 0x624   : > { %v8597_v15 = vmax.f32 %v7070_v9, 0.0  ;;  %v8853_v0 = vmax.f32 %v7710_v10, 0.0 }
 0x625   : > { %v8086_v16 = vmax.f32 %v5792_v13, 0.0  ;;  %v8342_v18 = vmax.f32 %v6432_v14, 0.0 }
 0x626   : > { %v9621_v19 = vpack.c.bf16 %v8597_v15, %v8597_v15  ;;  %v9877_v20 = vpack.c.bf16 %v8853_v0, %v8853_v0 }
 0x627   : > { %v9110_v21 = vpack.c.bf16 %v8086_v16, %v8086_v16  ;;  %v9366_v22 = vpack.c.bf16 %v8342_v18, %v8342_v18 }
 0x628   : > { %10646 = vst.msk [vmem:[%s14775_s10 + $0xac0] sm:$0xf] %vm9957_vm3, %v9621_v19 }
 0x629   : > { %10902 = vst.msk [vmem:[%s14775_s10 + $0xec0] sm:$0xf] %vm9957_vm3, %v9877_v20  ;;  %v7071_v23 = vpop.f32.mrf.mxu2  ;;  %v7711_v24 = vpop.f32.mrf.mxu3 }
 0x62a   : > { %10135 = vst.msk [vmem:[%s14775_s10 + $0x2c4] sm:$0xf] %vm9957_vm3, %v9110_v21  ;;  %v7072_v27 = vadd.f32 %v17601_v35, %v7071_v23  ;;  %v7712_v28 = vadd.f32 %v17601_v35, %v7711_v24  ;;  %v5794_v29 = vpop.f32.mrf.mxu0  ;;  %v6434_v30 = vpop.f32.mrf.mxu1 }
 0x62b   : > { %10391 = vst.msk [vmem:[%s14775_s10 + $0x6c4] sm:$0xf] %vm9957_vm3, %v9366_v22  ;;  %v5795_v33 = vadd.f32 %v17601_v35, %v5794_v29  ;;  %v6435_v17 = vadd.f32 %v17601_v35, %v6434_v30 }
 0x62c   : > { %v8598_v34 = vmax.f32 %v7072_v27, 0.0  ;;  %v8854_v36 = vmax.f32 %v7712_v28, 0.0 }
 0x62d   : > { %v8087_v37 = vmax.f32 %v5795_v33, 0.0  ;;  %v8343_v38 = vmax.f32 %v6435_v17, 0.0  ;;  %13482 = vmatmul.msk.bf16.gmra.mxu0 %vm3796_vm2, %v14011_v8  ;;  %13610 = vmatmul.msk.bf16.gmra.mxu1 %vm3796_vm2, %v14139_v25  ;;  %v14013_v17 = vld [vmem:[%s14693_s5 + $0x318] sm:$0xff] }
 0x62e   : > { %v9622_v39 = vpack.c.bf16 %v8598_v34, %v8598_v34  ;;  %v9878_v41 = vpack.c.bf16 %v8854_v36, %v8854_v36  ;;  %13738 = vmatmul.msk.bf16.gmra.mxu2 %vm3796_vm2, %v14267_v31  ;;  %13866 = vmatmul.msk.bf16.gmra.mxu3 %vm3796_vm2, %v14395_v32  ;;  %v14141_v34 = vld [vmem:[%s14693_s5 + $0x718] sm:$0xff] }
 0x62f   : > { %v9111_v42 = vpack.c.bf16 %v8087_v37, %v8087_v37  ;;  %v9367_v43 = vpack.c.bf16 %v8343_v38, %v8343_v38 }
 0x630   : > { %10647 = vst.msk [vmem:[%s14775_s10 + $0xac4] sm:$0xf] %vm9957_vm3, %v9622_v39 }
 0x631   : > { %10903 = vst.msk [vmem:[%s14775_s10 + $0xec4] sm:$0xf] %vm9957_vm3, %v9878_v41  ;;  %v7074_v26 = vpop.f32.mrf.mxu2  ;;  %v7714_v44 = vpop.f32.mrf.mxu3  ;;  %v14269_v41 = vld [vmem:[%s14693_s5 + $0xb18] sm:$0xff] }
 0x632   : > { %10136 = vst.msk [vmem:[%s14775_s10 + $0x2c8] sm:$0xf] %vm9957_vm3, %v9111_v42  ;;  %v7075_v46 = vadd.f32 %v17601_v35, %v7074_v26  ;;  %v7715_v47 = vadd.f32 %v17601_v35, %v7714_v44  ;;  %v5796_v48 = vpop.f32.mrf.mxu0  ;;  %v6436_v49 = vpop.f32.mrf.mxu1  ;;  %v14397_v42 = vld [vmem:[%s14693_s5 + $0xf18] sm:$0xff] }
 0x633   : > { %10392 = vst.msk [vmem:[%s14775_s10 + $0x6c8] sm:$0xf] %vm9957_vm3, %v9367_v43  ;;  %v5797_v50 = vadd.f32 %v17601_v35, %v5796_v48  ;;  %v6437_v51 = vadd.f32 %v17601_v35, %v6436_v49 }
 0x634   : > { %v8599_v52 = vmax.f32 %v7075_v46, 0.0  ;;  %v8855_v53 = vmax.f32 %v7715_v47, 0.0 }
 0x635   : > { %v8088_v54 = vmax.f32 %v5797_v50, 0.0  ;;  %v8344_v55 = vmax.f32 %v6437_v51, 0.0 }
 0x636   : > { %v9623_v56 = vpack.c.bf16 %v8599_v52, %v8599_v52  ;;  %v9879_v57 = vpack.c.bf16 %v8855_v53, %v8855_v53 }
 0x637   : > { %v9112_v58 = vpack.c.bf16 %v8088_v54, %v8088_v54  ;;  %v9368_v59 = vpack.c.bf16 %v8344_v55, %v8344_v55 }
 0x638   : > { %10648 = vst.msk [vmem:[%s14775_s10 + $0xac8] sm:$0xf] %vm9957_vm3, %v9623_v56 }
 0x639   : > { %10904 = vst.msk [vmem:[%s14775_s10 + $0xec8] sm:$0xf] %vm9957_vm3, %v9879_v57  ;;  %v7076_v61 = vpop.f32.mrf.mxu2  ;;  %v7716_v62 = vpop.f32.mrf.mxu3 }
 0x63a   : > { %10137 = vst.msk [vmem:[%s14775_s10 + $0x2cc] sm:$0xf] %vm9957_vm3, %v9112_v58  ;;  %v7077_v1 = vadd.f32 %v17601_v35, %v7076_v61  ;;  %v7717_v2 = vadd.f32 %v17601_v35, %v7716_v62  ;;  %v5799_v3 = vpop.f32.mrf.mxu0  ;;  %v6439_v4 = vpop.f32.mrf.mxu1 }
 0x63b   : > { %10393 = vst.msk [vmem:[%s14775_s10 + $0x6cc] sm:$0xf] %vm9957_vm3, %v9368_v59  ;;  %v5800_v6 = vadd.f32 %v17601_v35, %v5799_v3  ;;  %v6440_v60 = vadd.f32 %v17601_v35, %v6439_v4 }
 0x63c   : > { %v8600_v7 = vmax.f32 %v7077_v1, 0.0  ;;  %v8856_v9 = vmax.f32 %v7717_v2, 0.0 }
 0x63d   : > { %v8089_v10 = vmax.f32 %v5800_v6, 0.0  ;;  %v8345_v11 = vmax.f32 %v6440_v60, 0.0  ;;  %13483 = vmatmul.msk.bf16.gmra.mxu0 %vm3796_vm2, %v14012_v45  ;;  %13611 = vmatmul.msk.bf16.gmra.mxu1 %vm3796_vm2, %v14140_v63  ;;  %v14014_v60 = vld [vmem:[%s14693_s5 + $0x320] sm:$0xff] }
 0x63e   : > { %v9624_v12 = vpack.c.bf16 %v8600_v7, %v8600_v7  ;;  %v9880_v13 = vpack.c.bf16 %v8856_v9, %v8856_v9  ;;  %13739 = vmatmul.msk.bf16.gmra.mxu2 %vm3796_vm2, %v14268_v40  ;;  %13867 = vmatmul.msk.bf16.gmra.mxu3 %vm3796_vm2, %v14396_v5  ;;  %v14142_v7 = vld [vmem:[%s14693_s5 + $0x720] sm:$0xff] }
 0x63f   : > { %v9113_v14 = vpack.c.bf16 %v8089_v10, %v8089_v10  ;;  %v9369_v15 = vpack.c.bf16 %v8345_v11, %v8345_v11 }
 0x640   : > { %10649 = vst.msk [vmem:[%s14775_s10 + $0xacc] sm:$0xf] %vm9957_vm3, %v9624_v12 }
 0x641   : > { %10905 = vst.msk [vmem:[%s14775_s10 + $0xecc] sm:$0xf] %vm9957_vm3, %v9880_v13  ;;  %v7079_v0 = vpop.f32.mrf.mxu2  ;;  %v7719_v16 = vpop.f32.mrf.mxu3  ;;  %v14270_v13 = vld [vmem:[%s14693_s5 + $0xb20] sm:$0xff] }
 0x642   : > { %10138 = vst.msk [vmem:[%s14775_s10 + $0x2d0] sm:$0xf] %vm9957_vm3, %v9113_v14  ;;  %v7080_v18 = vadd.f32 %v17601_v35, %v7079_v0  ;;  %v7720_v19 = vadd.f32 %v17601_v35, %v7719_v16  ;;  %v5801_v20 = vpop.f32.mrf.mxu0  ;;  %v6441_v21 = vpop.f32.mrf.mxu1  ;;  %v14398_v14 = vld [vmem:[%s14693_s5 + $0xf20] sm:$0xff] }
 0x643   : > { %10394 = vst.msk [vmem:[%s14775_s10 + $0x6d0] sm:$0xf] %vm9957_vm3, %v9369_v15  ;;  %v5802_v22 = vadd.f32 %v17601_v35, %v5801_v20  ;;  %v6442_v23 = vadd.f32 %v17601_v35, %v6441_v21 }
 0x644   : > { %v8601_v24 = vmax.f32 %v7080_v18, 0.0  ;;  %v8857_v8 = vmax.f32 %v7720_v19, 0.0 }
 0x645   : > { %v8090_v25 = vmax.f32 %v5802_v22, 0.0  ;;  %v8346_v27 = vmax.f32 %v6442_v23, 0.0 }
 0x646   : > { %v9625_v28 = vpack.c.bf16 %v8601_v24, %v8601_v24  ;;  %v9881_v29 = vpack.c.bf16 %v8857_v8, %v8857_v8 }
 0x647   : > { %v9114_v30 = vpack.c.bf16 %v8090_v25, %v8090_v25  ;;  %v9370_v31 = vpack.c.bf16 %v8346_v27, %v8346_v27 }
 0x648   : > { %10650 = vst.msk [vmem:[%s14775_s10 + $0xad0] sm:$0xf] %vm9957_vm3, %v9625_v28 }
 0x649   : > { %10906 = vst.msk [vmem:[%s14775_s10 + $0xed0] sm:$0xf] %vm9957_vm3, %v9881_v29  ;;  %v7081_v32 = vpop.f32.mrf.mxu2  ;;  %v7721_v33 = vpop.f32.mrf.mxu3 }
 0x64a   : > { %10139 = vst.msk [vmem:[%s14775_s10 + $0x2d4] sm:$0xf] %vm9957_vm3, %v9114_v30  ;;  %v7082_v36 = vadd.f32 %v17601_v35, %v7081_v32  ;;  %v7722_v37 = vadd.f32 %v17601_v35, %v7721_v33  ;;  %v5804_v38 = vpop.f32.mrf.mxu0  ;;  %v6444_v39 = vpop.f32.mrf.mxu1 }
 0x64b   : > { %10395 = vst.msk [vmem:[%s14775_s10 + $0x6d4] sm:$0xf] %vm9957_vm3, %v9370_v31  ;;  %v5805_v43 = vadd.f32 %v17601_v35, %v5804_v38  ;;  %v6445_v26 = vadd.f32 %v17601_v35, %v6444_v39 }
 0x64c   : > { %v8602_v44 = vmax.f32 %v7082_v36, 0.0  ;;  %v8858_v46 = vmax.f32 %v7722_v37, 0.0 }
 0x64d   : > { %v8091_v47 = vmax.f32 %v5805_v43, 0.0  ;;  %v8347_v48 = vmax.f32 %v6445_v26, 0.0  ;;  %13484 = vmatmul.msk.bf16.gmra.mxu0 %vm3796_vm2, %v14013_v17  ;;  %13612 = vmatmul.msk.bf16.gmra.mxu1 %vm3796_vm2, %v14141_v34  ;;  %v14015_v26 = vld [vmem:[%s14693_s5 + $0x328] sm:$0xff] }
 0x64e   : > { %v9626_v49 = vpack.c.bf16 %v8602_v44, %v8602_v44  ;;  %v9882_v50 = vpack.c.bf16 %v8858_v46, %v8858_v46  ;;  %13740 = vmatmul.msk.bf16.gmra.mxu2 %vm3796_vm2, %v14269_v41  ;;  %13868 = vmatmul.msk.bf16.gmra.mxu3 %vm3796_vm2, %v14397_v42  ;;  %v14143_v44 = vld [vmem:[%s14693_s5 + $0x728] sm:$0xff] }
 0x64f   : > { %v9115_v51 = vpack.c.bf16 %v8091_v47, %v8091_v47  ;;  %v9371_v52 = vpack.c.bf16 %v8347_v48, %v8347_v48 }
 0x650   : > { %10651 = vst.msk [vmem:[%s14775_s10 + $0xad4] sm:$0xf] %vm9957_vm3, %v9626_v49 }
 0x651   : > { %10907 = vst.msk [vmem:[%s14775_s10 + $0xed4] sm:$0xf] %vm9957_vm3, %v9882_v50  ;;  %v7084_v53 = vpop.f32.mrf.mxu2  ;;  %v7724_v54 = vpop.f32.mrf.mxu3  ;;  %v14271_v50 = vld [vmem:[%s14693_s5 + $0xb28] sm:$0xff] }
 0x652   : > { %10140 = vst.msk [vmem:[%s14775_s10 + $0x2d8] sm:$0xf] %vm9957_vm3, %v9115_v51  ;;  %v7085_v55 = vadd.f32 %v17601_v35, %v7084_v53  ;;  %v7725_v56 = vadd.f32 %v17601_v35, %v7724_v54  ;;  %v5806_v57 = vpop.f32.mrf.mxu0  ;;  %v6446_v58 = vpop.f32.mrf.mxu1  ;;  %v14399_v51 = vld [vmem:[%s14693_s5 + $0xf28] sm:$0xff] }
 0x653   : > { %10396 = vst.msk [vmem:[%s14775_s10 + $0x6d8] sm:$0xf] %vm9957_vm3, %v9371_v52  ;;  %v5807_v59 = vadd.f32 %v17601_v35, %v5806_v57  ;;  %v6447_v61 = vadd.f32 %v17601_v35, %v6446_v58 }
 0x654   : > { %v8603_v62 = vmax.f32 %v7085_v55, 0.0  ;;  %v8859_v45 = vmax.f32 %v7725_v56, 0.0 }
 0x655   : > { %v8092_v63 = vmax.f32 %v5807_v59, 0.0  ;;  %v8348_v1 = vmax.f32 %v6447_v61, 0.0 }
 0x656   : > { %v9627_v2 = vpack.c.bf16 %v8603_v62, %v8603_v62  ;;  %v9883_v3 = vpack.c.bf16 %v8859_v45, %v8859_v45 }
 0x657   : > { %v9116_v4 = vpack.c.bf16 %v8092_v63, %v8092_v63  ;;  %v9372_v40 = vpack.c.bf16 %v8348_v1, %v8348_v1 }
 0x658   : > { %10652 = vst.msk [vmem:[%s14775_s10 + $0xad8] sm:$0xf] %vm9957_vm3, %v9627_v2 }
 0x659   : > { %10908 = vst.msk [vmem:[%s14775_s10 + $0xed8] sm:$0xf] %vm9957_vm3, %v9883_v3  ;;  %v7086_v5 = vpop.f32.mrf.mxu2  ;;  %v7726_v6 = vpop.f32.mrf.mxu3 }
 0x65a   : > { %10141 = vst.msk [vmem:[%s14775_s10 + $0x2dc] sm:$0xf] %vm9957_vm3, %v9116_v4  ;;  %v7087_v9 = vadd.f32 %v17601_v35, %v7086_v5  ;;  %v7727_v10 = vadd.f32 %v17601_v35, %v7726_v6  ;;  %v5809_v11 = vpop.f32.mrf.mxu0  ;;  %v6449_v12 = vpop.f32.mrf.mxu1 }
 0x65b   : > { %10397 = vst.msk [vmem:[%s14775_s10 + $0x6dc] sm:$0xf] %vm9957_vm3, %v9372_v40  ;;  %v5810_v15 = vadd.f32 %v17601_v35, %v5809_v11  ;;  %v6450_v0 = vadd.f32 %v17601_v35, %v6449_v12 }
 0x65c   : > { %v8604_v16 = vmax.f32 %v7087_v9, 0.0  ;;  %v8860_v18 = vmax.f32 %v7727_v10, 0.0 }
 0x65d   : > { %v8093_v19 = vmax.f32 %v5810_v15, 0.0  ;;  %v8349_v20 = vmax.f32 %v6450_v0, 0.0  ;;  %13485 = vmatmul.msk.bf16.gmra.mxu0 %vm3796_vm2, %v14014_v60  ;;  %13613 = vmatmul.msk.bf16.gmra.mxu1 %vm3796_vm2, %v14142_v7  ;;  %v14016_v0 = vld [vmem:[%s14693_s5 + $0x330] sm:$0xff] }
 0x65e   : > { %v9628_v21 = vpack.c.bf16 %v8604_v16, %v8604_v16  ;;  %v9884_v22 = vpack.c.bf16 %v8860_v18, %v8860_v18  ;;  %13741 = vmatmul.msk.bf16.gmra.mxu2 %vm3796_vm2, %v14270_v13  ;;  %13869 = vmatmul.msk.bf16.gmra.mxu3 %vm3796_vm2, %v14398_v14  ;;  %v14144_v16 = vld [vmem:[%s14693_s5 + $0x730] sm:$0xff] }
 0x65f   : > { %v9117_v23 = vpack.c.bf16 %v8093_v19, %v8093_v19  ;;  %v9373_v24 = vpack.c.bf16 %v8349_v20, %v8349_v20 }
 0x660   : > { %10653 = vst.msk [vmem:[%s14775_s10 + $0xadc] sm:$0xf] %vm9957_vm3, %v9628_v21 }
 0x661   : > { %10909 = vst.msk [vmem:[%s14775_s10 + $0xedc] sm:$0xf] %vm9957_vm3, %v9884_v22  ;;  %v7089_v8 = vpop.f32.mrf.mxu2  ;;  %v7729_v25 = vpop.f32.mrf.mxu3  ;;  %v14272_v22 = vld [vmem:[%s14693_s5 + $0xb30] sm:$0xff] }
 0x662   : > { %10142 = vst.msk [vmem:[%s14775_s10 + $0x2e0] sm:$0xf] %vm9957_vm3, %v9117_v23  ;;  %v7090_v27 = vadd.f32 %v17601_v35, %v7089_v8  ;;  %v7730_v28 = vadd.f32 %v17601_v35, %v7729_v25  ;;  %v5811_v29 = vpop.f32.mrf.mxu0  ;;  %v6451_v30 = vpop.f32.mrf.mxu1  ;;  %v14400_v23 = vld [vmem:[%s14693_s5 + $0xf30] sm:$0xff] }
 0x663   : > { %10398 = vst.msk [vmem:[%s14775_s10 + $0x6e0] sm:$0xf] %vm9957_vm3, %v9373_v24  ;;  %v5812_v31 = vadd.f32 %v17601_v35, %v5811_v29  ;;  %v6452_v32 = vadd.f32 %v17601_v35, %v6451_v30 }
 0x664   : > { %v8605_v33 = vmax.f32 %v7090_v27, 0.0  ;;  %v8861_v17 = vmax.f32 %v7730_v28, 0.0 }
 0x665   : > { %v8094_v34 = vmax.f32 %v5812_v31, 0.0  ;;  %v8350_v36 = vmax.f32 %v6452_v32, 0.0 }
 0x666   : > { %v9629_v37 = vpack.c.bf16 %v8605_v33, %v8605_v33  ;;  %v9885_v38 = vpack.c.bf16 %v8861_v17, %v8861_v17 }
 0x667   : > { %v9118_v39 = vpack.c.bf16 %v8094_v34, %v8094_v34  ;;  %v9374_v41 = vpack.c.bf16 %v8350_v36, %v8350_v36 }
 0x668   : > { %10654 = vst.msk [vmem:[%s14775_s10 + $0xae0] sm:$0xf] %vm9957_vm3, %v9629_v37 }
 0x669   : > { %10910 = vst.msk [vmem:[%s14775_s10 + $0xee0] sm:$0xf] %vm9957_vm3, %v9885_v38  ;;  %v7091_v42 = vpop.f32.mrf.mxu2  ;;  %v7731_v43 = vpop.f32.mrf.mxu3 }
 0x66a   : > { %10143 = vst.msk [vmem:[%s14775_s10 + $0x2e4] sm:$0xf] %vm9957_vm3, %v9118_v39  ;;  %v7092_v46 = vadd.f32 %v17601_v35, %v7091_v42  ;;  %v7732_v47 = vadd.f32 %v17601_v35, %v7731_v43  ;;  %v5814_v48 = vpop.f32.mrf.mxu0  ;;  %v6454_v49 = vpop.f32.mrf.mxu1 }
 0x66b   : > { %10399 = vst.msk [vmem:[%s14775_s10 + $0x6e4] sm:$0xf] %vm9957_vm3, %v9374_v41  ;;  %v5815_v52 = vadd.f32 %v17601_v35, %v5814_v48  ;;  %v6455_v53 = vadd.f32 %v17601_v35, %v6454_v49 }
 0x66c   : > { %v8606_v54 = vmax.f32 %v7092_v46, 0.0  ;;  %v8862_v55 = vmax.f32 %v7732_v47, 0.0 }
 0x66d   : > { %v8095_v56 = vmax.f32 %v5815_v52, 0.0  ;;  %v8351_v57 = vmax.f32 %v6455_v53, 0.0  ;;  %13486 = vmatmul.msk.bf16.gmra.mxu0 %vm3796_vm2, %v14015_v26  ;;  %13614 = vmatmul.msk.bf16.gmra.mxu1 %vm3796_vm2, %v14143_v44  ;;  %v14017_v53 = vld [vmem:[%s14693_s5 + $0x338] sm:$0xff] }
 0x66e   : > { %v9630_v58 = vpack.c.bf16 %v8606_v54, %v8606_v54  ;;  %v9886_v59 = vpack.c.bf16 %v8862_v55, %v8862_v55  ;;  %13742 = vmatmul.msk.bf16.gmra.mxu2 %vm3796_vm2, %v14271_v50  ;;  %13870 = vmatmul.msk.bf16.gmra.mxu3 %vm3796_vm2, %v14399_v51  ;;  %v14145_v54 = vld [vmem:[%s14693_s5 + $0x738] sm:$0xff] }
 0x66f   : > { %v9119_v61 = vpack.c.bf16 %v8095_v56, %v8095_v56  ;;  %v9375_v62 = vpack.c.bf16 %v8351_v57, %v8351_v57 }
 0x670   : > { %10655 = vst.msk [vmem:[%s14775_s10 + $0xae4] sm:$0xf] %vm9957_vm3, %v9630_v58 }
 0x671   : > { %10911 = vst.msk [vmem:[%s14775_s10 + $0xee4] sm:$0xf] %vm9957_vm3, %v9886_v59  ;;  %v7094_v45 = vpop.f32.mrf.mxu2  ;;  %v7734_v63 = vpop.f32.mrf.mxu3  ;;  %v14273_v59 = vld [vmem:[%s14693_s5 + $0xb38] sm:$0xff] }
 0x672   : > { %10144 = vst.msk [vmem:[%s14775_s10 + $0x2e8] sm:$0xf] %vm9957_vm3, %v9119_v61  ;;  %v7095_v1 = vadd.f32 %v17601_v35, %v7094_v45  ;;  %v7735_v2 = vadd.f32 %v17601_v35, %v7734_v63  ;;  %v5816_v3 = vpop.f32.mrf.mxu0  ;;  %v6456_v4 = vpop.f32.mrf.mxu1  ;;  %v14401_v61 = vld [vmem:[%s14693_s5 + $0xf38] sm:$0xff] }
 0x673   : > { %10400 = vst.msk [vmem:[%s14775_s10 + $0x6e8] sm:$0xf] %vm9957_vm3, %v9375_v62  ;;  %v5817_v40 = vadd.f32 %v17601_v35, %v5816_v3  ;;  %v6457_v5 = vadd.f32 %v17601_v35, %v6456_v4 }
 0x674   : > { %v8607_v6 = vmax.f32 %v7095_v1, 0.0  ;;  %v8863_v60 = vmax.f32 %v7735_v2, 0.0 }
 0x675   : > { %v8096_v7 = vmax.f32 %v5817_v40, 0.0  ;;  %v8352_v9 = vmax.f32 %v6457_v5, 0.0 }
 0x676   : > { %v9631_v10 = vpack.c.bf16 %v8607_v6, %v8607_v6  ;;  %v9887_v11 = vpack.c.bf16 %v8863_v60, %v8863_v60 }
 0x677   : > { %v9120_v12 = vpack.c.bf16 %v8096_v7, %v8096_v7  ;;  %v9376_v13 = vpack.c.bf16 %v8352_v9, %v8352_v9 }
 0x678   : > { %10656 = vst.msk [vmem:[%s14775_s10 + $0xae8] sm:$0xf] %vm9957_vm3, %v9631_v10 }
 0x679   : > { %10912 = vst.msk [vmem:[%s14775_s10 + $0xee8] sm:$0xf] %vm9957_vm3, %v9887_v11  ;;  %v7096_v14 = vpop.f32.mrf.mxu2  ;;  %v7736_v15 = vpop.f32.mrf.mxu3 }
 0x67a   : > { %10145 = vst.msk [vmem:[%s14775_s10 + $0x2ec] sm:$0xf] %vm9957_vm3, %v9120_v12  ;;  %v7097_v18 = vadd.f32 %v17601_v35, %v7096_v14  ;;  %v7737_v19 = vadd.f32 %v17601_v35, %v7736_v15  ;;  %v5819_v20 = vpop.f32.mrf.mxu0  ;;  %v6459_v21 = vpop.f32.mrf.mxu1 }
 0x67b   : > { %10401 = vst.msk [vmem:[%s14775_s10 + $0x6ec] sm:$0xf] %vm9957_vm3, %v9376_v13  ;;  %v5820_v24 = vadd.f32 %v17601_v35, %v5819_v20  ;;  %v6460_v8 = vadd.f32 %v17601_v35, %v6459_v21 }
 0x67c   : > { %v8608_v25 = vmax.f32 %v7097_v18, 0.0  ;;  %v8864_v27 = vmax.f32 %v7737_v19, 0.0 }
 0x67d   : > { %v8097_v28 = vmax.f32 %v5820_v24, 0.0  ;;  %v8353_v29 = vmax.f32 %v6460_v8, 0.0  ;;  %13487 = vmatmul.msk.bf16.gmra.mxu0 %vm3796_vm2, %v14016_v0  ;;  %13615 = vmatmul.msk.bf16.gmra.mxu1 %vm3796_vm2, %v14144_v16  ;;  %v14018_v8 = vld [vmem:[%s14693_s5 + $0x340] sm:$0xff] }
 0x67e   : > { %v9632_v30 = vpack.c.bf16 %v8608_v25, %v8608_v25  ;;  %v9888_v31 = vpack.c.bf16 %v8864_v27, %v8864_v27  ;;  %13743 = vmatmul.msk.bf16.gmra.mxu2 %vm3796_vm2, %v14272_v22  ;;  %13871 = vmatmul.msk.bf16.gmra.mxu3 %vm3796_vm2, %v14400_v23  ;;  %v14146_v25 = vld [vmem:[%s14693_s5 + $0x740] sm:$0xff] }
 0x67f   : > { %v9121_v32 = vpack.c.bf16 %v8097_v28, %v8097_v28  ;;  %v9377_v33 = vpack.c.bf16 %v8353_v29, %v8353_v29 }
 0x680   : > { %10657 = vst.msk [vmem:[%s14775_s10 + $0xaec] sm:$0xf] %vm9957_vm3, %v9632_v30 }
 0x681   : > { %10913 = vst.msk [vmem:[%s14775_s10 + $0xeec] sm:$0xf] %vm9957_vm3, %v9888_v31  ;;  %v7099_v17 = vpop.f32.mrf.mxu2  ;;  %v7739_v34 = vpop.f32.mrf.mxu3  ;;  %v14274_v31 = vld [vmem:[%s14693_s5 + $0xb40] sm:$0xff] }
 0x682   : > { %10146 = vst.msk [vmem:[%s14775_s10 + $0x2f0] sm:$0xf] %vm9957_vm3, %v9121_v32  ;;  %v7100_v36 = vadd.f32 %v17601_v35, %v7099_v17  ;;  %v7740_v37 = vadd.f32 %v17601_v35, %v7739_v34  ;;  %v5821_v38 = vpop.f32.mrf.mxu0  ;;  %v6461_v39 = vpop.f32.mrf.mxu1  ;;  %v14402_v32 = vld [vmem:[%s14693_s5 + $0xf40] sm:$0xff] }
 0x683   : > { %10402 = vst.msk [vmem:[%s14775_s10 + $0x6f0] sm:$0xf] %vm9957_vm3, %v9377_v33  ;;  %v5822_v41 = vadd.f32 %v17601_v35, %v5821_v38  ;;  %v6462_v42 = vadd.f32 %v17601_v35, %v6461_v39 }
 0x684   : > { %v8609_v43 = vmax.f32 %v7100_v36, 0.0  ;;  %v8865_v26 = vmax.f32 %v7740_v37, 0.0 }
 0x685   : > { %v8098_v44 = vmax.f32 %v5822_v41, 0.0  ;;  %v8354_v46 = vmax.f32 %v6462_v42, 0.0 }
 0x686   : > { %v9633_v47 = vpack.c.bf16 %v8609_v43, %v8609_v43  ;;  %v9889_v48 = vpack.c.bf16 %v8865_v26, %v8865_v26 }
 0x687   : > { %v9122_v49 = vpack.c.bf16 %v8098_v44, %v8098_v44  ;;  %v9378_v50 = vpack.c.bf16 %v8354_v46, %v8354_v46 }
 0x688   : > { %10658 = vst.msk [vmem:[%s14775_s10 + $0xaf0] sm:$0xf] %vm9957_vm3, %v9633_v47 }
 0x689   : > { %10914 = vst.msk [vmem:[%s14775_s10 + $0xef0] sm:$0xf] %vm9957_vm3, %v9889_v48  ;;  %v7101_v51 = vpop.f32.mrf.mxu2  ;;  %v7741_v52 = vpop.f32.mrf.mxu3 }
 0x68a   : > { %10147 = vst.msk [vmem:[%s14775_s10 + $0x2f4] sm:$0xf] %vm9957_vm3, %v9122_v49  ;;  %v7102_v55 = vadd.f32 %v17601_v35, %v7101_v51  ;;  %v7742_v56 = vadd.f32 %v17601_v35, %v7741_v52  ;;  %v5824_v57 = vpop.f32.mrf.mxu0  ;;  %v6464_v58 = vpop.f32.mrf.mxu1 }
 0x68b   : > { %10403 = vst.msk [vmem:[%s14775_s10 + $0x6f4] sm:$0xf] %vm9957_vm3, %v9378_v50  ;;  %v5825_v62 = vadd.f32 %v17601_v35, %v5824_v57  ;;  %v6465_v45 = vadd.f32 %v17601_v35, %v6464_v58 }
 0x68c   : > { %v8610_v63 = vmax.f32 %v7102_v55, 0.0  ;;  %v8866_v1 = vmax.f32 %v7742_v56, 0.0 }
 0x68d   : > { %v8099_v2 = vmax.f32 %v5825_v62, 0.0  ;;  %v8355_v3 = vmax.f32 %v6465_v45, 0.0  ;;  %13488 = vmatmul.msk.bf16.gmra.mxu0 %vm3796_vm2, %v14017_v53  ;;  %13616 = vmatmul.msk.bf16.gmra.mxu1 %vm3796_vm2, %v14145_v54  ;;  %v14019_v45 = vld [vmem:[%s14693_s5 + $0x348] sm:$0xff] }
 0x68e   : > { %v9634_v4 = vpack.c.bf16 %v8610_v63, %v8610_v63  ;;  %v9890_v40 = vpack.c.bf16 %v8866_v1, %v8866_v1  ;;  %13744 = vmatmul.msk.bf16.gmra.mxu2 %vm3796_vm2, %v14273_v59  ;;  %13872 = vmatmul.msk.bf16.gmra.mxu3 %vm3796_vm2, %v14401_v61  ;;  %v14147_v63 = vld [vmem:[%s14693_s5 + $0x748] sm:$0xff] }
 0x68f   : > { %v9123_v5 = vpack.c.bf16 %v8099_v2, %v8099_v2  ;;  %v9379_v6 = vpack.c.bf16 %v8355_v3, %v8355_v3 }
 0x690   : > { %10659 = vst.msk [vmem:[%s14775_s10 + $0xaf4] sm:$0xf] %vm9957_vm3, %v9634_v4 }
 0x691   : > { %10915 = vst.msk [vmem:[%s14775_s10 + $0xef4] sm:$0xf] %vm9957_vm3, %v9890_v40  ;;  %v7104_v60 = vpop.f32.mrf.mxu2  ;;  %v7744_v7 = vpop.f32.mrf.mxu3  ;;  %v14275_v40 = vld [vmem:[%s14693_s5 + $0xb48] sm:$0xff] }
 0x692   : > { %10148 = vst.msk [vmem:[%s14775_s10 + $0x2f8] sm:$0xf] %vm9957_vm3, %v9123_v5  ;;  %v7105_v9 = vadd.f32 %v17601_v35, %v7104_v60  ;;  %v7745_v10 = vadd.f32 %v17601_v35, %v7744_v7  ;;  %v5826_v11 = vpop.f32.mrf.mxu0  ;;  %v6466_v12 = vpop.f32.mrf.mxu1  ;;  %v14403_v5 = vld [vmem:[%s14693_s5 + $0xf48] sm:$0xff] }
 0x693   : > { %10404 = vst.msk [vmem:[%s14775_s10 + $0x6f8] sm:$0xf] %vm9957_vm3, %v9379_v6  ;;  %v5827_v13 = vadd.f32 %v17601_v35, %v5826_v11  ;;  %v6467_v14 = vadd.f32 %v17601_v35, %v6466_v12 }
 0x694   : > { %v8611_v15 = vmax.f32 %v7105_v9, 0.0  ;;  %v8867_v0 = vmax.f32 %v7745_v10, 0.0 }
 0x695   : > { %v8100_v16 = vmax.f32 %v5827_v13, 0.0  ;;  %v8356_v18 = vmax.f32 %v6467_v14, 0.0 }
 0x696   : > { %v9635_v19 = vpack.c.bf16 %v8611_v15, %v8611_v15  ;;  %v9891_v20 = vpack.c.bf16 %v8867_v0, %v8867_v0 }
 0x697   : > { %v9124_v21 = vpack.c.bf16 %v8100_v16, %v8100_v16  ;;  %v9380_v22 = vpack.c.bf16 %v8356_v18, %v8356_v18 }
 0x698   : > { %10660 = vst.msk [vmem:[%s14775_s10 + $0xaf8] sm:$0xf] %vm9957_vm3, %v9635_v19 }
 0x699   : > { %10916 = vst.msk [vmem:[%s14775_s10 + $0xef8] sm:$0xf] %vm9957_vm3, %v9891_v20  ;;  %v7106_v23 = vpop.f32.mrf.mxu2  ;;  %v7746_v24 = vpop.f32.mrf.mxu3 }
 0x69a   : > { %10149 = vst.msk [vmem:[%s14775_s10 + $0x2fc] sm:$0xf] %vm9957_vm3, %v9124_v21  ;;  %v7107_v27 = vadd.f32 %v17601_v35, %v7106_v23  ;;  %v7747_v28 = vadd.f32 %v17601_v35, %v7746_v24  ;;  %v5829_v29 = vpop.f32.mrf.mxu0  ;;  %v6469_v30 = vpop.f32.mrf.mxu1 }
 0x69b   : > { %10405 = vst.msk [vmem:[%s14775_s10 + $0x6fc] sm:$0xf] %vm9957_vm3, %v9380_v22  ;;  %v5830_v33 = vadd.f32 %v17601_v35, %v5829_v29  ;;  %v6470_v17 = vadd.f32 %v17601_v35, %v6469_v30 }
 0x69c   : > { %v8612_v34 = vmax.f32 %v7107_v27, 0.0  ;;  %v8868_v36 = vmax.f32 %v7747_v28, 0.0 }
 0x69d   : > { %v8101_v37 = vmax.f32 %v5830_v33, 0.0  ;;  %v8357_v38 = vmax.f32 %v6470_v17, 0.0  ;;  %13489 = vmatmul.msk.bf16.gmra.mxu0 %vm3796_vm2, %v14018_v8  ;;  %13617 = vmatmul.msk.bf16.gmra.mxu1 %vm3796_vm2, %v14146_v25  ;;  %v14020_v17 = vld [vmem:[%s14693_s5 + $0x350] sm:$0xff] }
 0x69e   : > { %v9636_v39 = vpack.c.bf16 %v8612_v34, %v8612_v34  ;;  %v9892_v41 = vpack.c.bf16 %v8868_v36, %v8868_v36  ;;  %13745 = vmatmul.msk.bf16.gmra.mxu2 %vm3796_vm2, %v14274_v31  ;;  %13873 = vmatmul.msk.bf16.gmra.mxu3 %vm3796_vm2, %v14402_v32  ;;  %v14148_v34 = vld [vmem:[%s14693_s5 + $0x750] sm:$0xff] }
 0x69f   : > { %v9125_v42 = vpack.c.bf16 %v8101_v37, %v8101_v37  ;;  %v9381_v43 = vpack.c.bf16 %v8357_v38, %v8357_v38 }
 0x6a0   : > { %10661 = vst.msk [vmem:[%s14775_s10 + $0xafc] sm:$0xf] %vm9957_vm3, %v9636_v39 }
 0x6a1   : > { %10917 = vst.msk [vmem:[%s14775_s10 + $0xefc] sm:$0xf] %vm9957_vm3, %v9892_v41  ;;  %v7109_v26 = vpop.f32.mrf.mxu2  ;;  %v7749_v44 = vpop.f32.mrf.mxu3  ;;  %v14276_v41 = vld [vmem:[%s14693_s5 + $0xb50] sm:$0xff] }
 0x6a2   : > { %10150 = vst.msk [vmem:[%s14775_s10 + $0x300] sm:$0xf] %vm9957_vm3, %v9125_v42  ;;  %v7110_v46 = vadd.f32 %v17601_v35, %v7109_v26  ;;  %v7750_v47 = vadd.f32 %v17601_v35, %v7749_v44  ;;  %v5831_v48 = vpop.f32.mrf.mxu0  ;;  %v6471_v49 = vpop.f32.mrf.mxu1  ;;  %v14404_v42 = vld [vmem:[%s14693_s5 + $0xf50] sm:$0xff] }
 0x6a3   : > { %10406 = vst.msk [vmem:[%s14775_s10 + $0x700] sm:$0xf] %vm9957_vm3, %v9381_v43  ;;  %v5832_v50 = vadd.f32 %v17601_v35, %v5831_v48  ;;  %v6472_v51 = vadd.f32 %v17601_v35, %v6471_v49 }
 0x6a4   : > { %v8613_v52 = vmax.f32 %v7110_v46, 0.0  ;;  %v8869_v53 = vmax.f32 %v7750_v47, 0.0 }
 0x6a5   : > { %v8102_v54 = vmax.f32 %v5832_v50, 0.0  ;;  %v8358_v55 = vmax.f32 %v6472_v51, 0.0 }
 0x6a6   : > { %v9637_v56 = vpack.c.bf16 %v8613_v52, %v8613_v52  ;;  %v9893_v57 = vpack.c.bf16 %v8869_v53, %v8869_v53 }
 0x6a7   : > { %v9126_v58 = vpack.c.bf16 %v8102_v54, %v8102_v54  ;;  %v9382_v59 = vpack.c.bf16 %v8358_v55, %v8358_v55  ;;  %v17958_v54 = vld [vmem:[%s18998_s2] ss:$0 sm:$0xff] }
 0x6a8   : > { %10662 = vst.msk [vmem:[%s14775_s10 + $0xb00] sm:$0xf] %vm9957_vm3, %v9637_v56 }
 0x6a9   : > { %10918 = vst.msk [vmem:[%s14775_s10 + $0xf00] sm:$0xf] %vm9957_vm3, %v9893_v57  ;;  %v7111_v61 = vpop.f32.mrf.mxu2  ;;  %v7751_v62 = vpop.f32.mrf.mxu3 }
 0x6aa   : > { %10151 = vst.msk [vmem:[%s14775_s10 + $0x304] sm:$0xf] %vm9957_vm3, %v9126_v58  ;;  %v7112_v1 = vadd.f32 %v17601_v35, %v7111_v61  ;;  %v7752_v2 = vadd.f32 %v17601_v35, %v7751_v62  ;;  %v5834_v3 = vpop.f32.mrf.mxu0  ;;  %v6474_v4 = vpop.f32.mrf.mxu1 }
 0x6ab   : > { %10407 = vst.msk [vmem:[%s14775_s10 + $0x704] sm:$0xf] %vm9957_vm3, %v9382_v59  ;;  %v5835_v6 = vadd.f32 %v17601_v35, %v5834_v3  ;;  %v6475_v60 = vadd.f32 %v17601_v35, %v6474_v4 }
 0x6ac   : > { %v8614_v7 = vmax.f32 %v7112_v1, 0.0  ;;  %v8870_v9 = vmax.f32 %v7752_v2, 0.0 }
 0x6ad   : > { %v8103_v10 = vmax.f32 %v5835_v6, 0.0  ;;  %v8359_v11 = vmax.f32 %v6475_v60, 0.0  ;;  %13490 = vmatmul.msk.bf16.gmra.mxu0 %vm3796_vm2, %v14019_v45  ;;  %13618 = vmatmul.msk.bf16.gmra.mxu1 %vm3796_vm2, %v14147_v63  ;;  %v14021_v60 = vld [vmem:[%s14693_s5 + $0x358] sm:$0xff] }
 0x6ae   : > { %v9638_v12 = vpack.c.bf16 %v8614_v7, %v8614_v7  ;;  %v9894_v13 = vpack.c.bf16 %v8870_v9, %v8870_v9  ;;  %13746 = vmatmul.msk.bf16.gmra.mxu2 %vm3796_vm2, %v14275_v40  ;;  %13874 = vmatmul.msk.bf16.gmra.mxu3 %vm3796_vm2, %v14403_v5  ;;  %v14149_v7 = vld [vmem:[%s14693_s5 + $0x758] sm:$0xff] }
 0x6af   : > { %v9127_v14 = vpack.c.bf16 %v8103_v10, %v8103_v10  ;;  %v9383_v15 = vpack.c.bf16 %v8359_v11, %v8359_v11 }
 0x6b0   : > { %10663 = vst.msk [vmem:[%s14775_s10 + $0xb04] sm:$0xf] %vm9957_vm3, %v9638_v12 }
 0x6b1   : > { %10919 = vst.msk [vmem:[%s14775_s10 + $0xf04] sm:$0xf] %vm9957_vm3, %v9894_v13  ;;  %v7114_v0 = vpop.f32.mrf.mxu2  ;;  %v7754_v16 = vpop.f32.mrf.mxu3  ;;  %v14277_v13 = vld [vmem:[%s14693_s5 + $0xb58] sm:$0xff] }
 0x6b2   : > { %10152 = vst.msk [vmem:[%s14775_s10 + $0x308] sm:$0xf] %vm9957_vm3, %v9127_v14  ;;  %v7115_v18 = vadd.f32 %v17601_v35, %v7114_v0  ;;  %v7755_v19 = vadd.f32 %v17601_v35, %v7754_v16  ;;  %v5836_v20 = vpop.f32.mrf.mxu0  ;;  %v6476_v21 = vpop.f32.mrf.mxu1  ;;  %v14405_v14 = vld [vmem:[%s14693_s5 + $0xf58] sm:$0xff] }
 0x6b3   : > { %10408 = vst.msk [vmem:[%s14775_s10 + $0x708] sm:$0xf] %vm9957_vm3, %v9383_v15  ;;  %v5837_v22 = vadd.f32 %v17601_v35, %v5836_v20  ;;  %v6477_v23 = vadd.f32 %v17601_v35, %v6476_v21 }
 0x6b4   : > { %v8615_v24 = vmax.f32 %v7115_v18, 0.0  ;;  %v8871_v8 = vmax.f32 %v7755_v19, 0.0 }
 0x6b5   : > { %v8104_v25 = vmax.f32 %v5837_v22, 0.0  ;;  %v8360_v27 = vmax.f32 %v6477_v23, 0.0 }
 0x6b6   : > { %v9639_v28 = vpack.c.bf16 %v8615_v24, %v8615_v24  ;;  %v9895_v29 = vpack.c.bf16 %v8871_v8, %v8871_v8 }
 0x6b7   : > { %v9128_v30 = vpack.c.bf16 %v8104_v25, %v8104_v25  ;;  %v9384_v31 = vpack.c.bf16 %v8360_v27, %v8360_v27 }
 0x6b8   : > { %10664 = vst.msk [vmem:[%s14775_s10 + $0xb08] sm:$0xf] %vm9957_vm3, %v9639_v28 }
 0x6b9   : > { %10920 = vst.msk [vmem:[%s14775_s10 + $0xf08] sm:$0xf] %vm9957_vm3, %v9895_v29  ;;  %v7116_v32 = vpop.f32.mrf.mxu2  ;;  %v7756_v33 = vpop.f32.mrf.mxu3 }
 0x6ba   : > { %10153 = vst.msk [vmem:[%s14775_s10 + $0x30c] sm:$0xf] %vm9957_vm3, %v9128_v30  ;;  %v7117_v36 = vadd.f32 %v17601_v35, %v7116_v32  ;;  %v7757_v37 = vadd.f32 %v17601_v35, %v7756_v33  ;;  %v5839_v38 = vpop.f32.mrf.mxu0  ;;  %v6479_v39 = vpop.f32.mrf.mxu1 }
 0x6bb   : > { %10409 = vst.msk [vmem:[%s14775_s10 + $0x70c] sm:$0xf] %vm9957_vm3, %v9384_v31  ;;  %v5840_v43 = vadd.f32 %v17601_v35, %v5839_v38  ;;  %v6480_v26 = vadd.f32 %v17601_v35, %v6479_v39 }
 0x6bc   : > { %v8616_v44 = vmax.f32 %v7117_v36, 0.0  ;;  %v8872_v46 = vmax.f32 %v7757_v37, 0.0 }
 0x6bd   : > { %v8105_v47 = vmax.f32 %v5840_v43, 0.0  ;;  %v8361_v48 = vmax.f32 %v6480_v26, 0.0  ;;  %13491 = vmatmul.msk.bf16.gmra.mxu0 %vm3796_vm2, %v14020_v17  ;;  %13619 = vmatmul.msk.bf16.gmra.mxu1 %vm3796_vm2, %v14148_v34  ;;  %v14022_v26 = vld [vmem:[%s14693_s5 + $0x360] sm:$0xff] }
 0x6be   : > { %v9640_v49 = vpack.c.bf16 %v8616_v44, %v8616_v44  ;;  %v9896_v50 = vpack.c.bf16 %v8872_v46, %v8872_v46  ;;  %13747 = vmatmul.msk.bf16.gmra.mxu2 %vm3796_vm2, %v14276_v41  ;;  %13875 = vmatmul.msk.bf16.gmra.mxu3 %vm3796_vm2, %v14404_v42  ;;  %v14150_v44 = vld [vmem:[%s14693_s5 + $0x760] sm:$0xff] }
 0x6bf   : > { %v9129_v51 = vpack.c.bf16 %v8105_v47, %v8105_v47  ;;  %v9385_v52 = vpack.c.bf16 %v8361_v48, %v8361_v48 }
 0x6c0   : > { %10665 = vst.msk [vmem:[%s14775_s10 + $0xb0c] sm:$0xf] %vm9957_vm3, %v9640_v49 }
 0x6c1   : > { %10921 = vst.msk [vmem:[%s14775_s10 + $0xf0c] sm:$0xf] %vm9957_vm3, %v9896_v50  ;;  %v7119_v35 = vpop.f32.mrf.mxu2  ;;  %v7759_v53 = vpop.f32.mrf.mxu3  ;;  %v14278_v50 = vld [vmem:[%s14693_s5 + $0xb60] sm:$0xff] }
 0x6c2   : > { %10154 = vst.msk [vmem:[%s14775_s10 + $0x310] sm:$0xf] %vm9957_vm3, %v9129_v51  ;;  %v7120_v55 = vadd.f32 %v17958_v54, %v7119_v35  ;;  %v7760_v56 = vadd.f32 %v17958_v54, %v7759_v53  ;;  %v5841_v57 = vpop.f32.mrf.mxu0  ;;  %v6481_v58 = vpop.f32.mrf.mxu1  ;;  %v14406_v51 = vld [vmem:[%s14693_s5 + $0xf60] sm:$0xff] }
 0x6c3   : > { %10410 = vst.msk [vmem:[%s14775_s10 + $0x710] sm:$0xf] %vm9957_vm3, %v9385_v52  ;;  %v5842_v59 = vadd.f32 %v17958_v54, %v5841_v57  ;;  %v6482_v61 = vadd.f32 %v17958_v54, %v6481_v58 }
 0x6c4   : > { %v8617_v62 = vmax.f32 %v7120_v55, 0.0  ;;  %v8873_v45 = vmax.f32 %v7760_v56, 0.0 }
 0x6c5   : > { %v8106_v63 = vmax.f32 %v5842_v59, 0.0  ;;  %v8362_v1 = vmax.f32 %v6482_v61, 0.0 }
 0x6c6   : > { %v9641_v2 = vpack.c.bf16 %v8617_v62, %v8617_v62  ;;  %v9897_v3 = vpack.c.bf16 %v8873_v45, %v8873_v45 }
 0x6c7   : > { %v9130_v4 = vpack.c.bf16 %v8106_v63, %v8106_v63  ;;  %v9386_v40 = vpack.c.bf16 %v8362_v1, %v8362_v1 }
 0x6c8   : > { %10666 = vst.msk [vmem:[%s14775_s10 + $0xb10] sm:$0xf] %vm9957_vm3, %v9641_v2 }
 0x6c9   : > { %10922 = vst.msk [vmem:[%s14775_s10 + $0xf10] sm:$0xf] %vm9957_vm3, %v9897_v3  ;;  %v7121_v5 = vpop.f32.mrf.mxu2  ;;  %v7761_v6 = vpop.f32.mrf.mxu3 }
 0x6ca   : > { %10155 = vst.msk [vmem:[%s14775_s10 + $0x314] sm:$0xf] %vm9957_vm3, %v9130_v4  ;;  %v7122_v9 = vadd.f32 %v17958_v54, %v7121_v5  ;;  %v7762_v10 = vadd.f32 %v17958_v54, %v7761_v6  ;;  %v5844_v11 = vpop.f32.mrf.mxu0  ;;  %v6484_v12 = vpop.f32.mrf.mxu1 }
 0x6cb   : > { %10411 = vst.msk [vmem:[%s14775_s10 + $0x714] sm:$0xf] %vm9957_vm3, %v9386_v40  ;;  %v5845_v15 = vadd.f32 %v17958_v54, %v5844_v11  ;;  %v6485_v0 = vadd.f32 %v17958_v54, %v6484_v12 }
 0x6cc   : > { %v8618_v16 = vmax.f32 %v7122_v9, 0.0  ;;  %v8874_v18 = vmax.f32 %v7762_v10, 0.0 }
 0x6cd   : > { %v8107_v19 = vmax.f32 %v5845_v15, 0.0  ;;  %v8363_v20 = vmax.f32 %v6485_v0, 0.0  ;;  %13492 = vmatmul.msk.bf16.gmra.mxu0 %vm3796_vm2, %v14021_v60  ;;  %13620 = vmatmul.msk.bf16.gmra.mxu1 %vm3796_vm2, %v14149_v7  ;;  %v14023_v0 = vld [vmem:[%s14693_s5 + $0x368] sm:$0xff] }
 0x6ce   : > { %v9642_v21 = vpack.c.bf16 %v8618_v16, %v8618_v16  ;;  %v9898_v22 = vpack.c.bf16 %v8874_v18, %v8874_v18  ;;  %13748 = vmatmul.msk.bf16.gmra.mxu2 %vm3796_vm2, %v14277_v13  ;;  %13876 = vmatmul.msk.bf16.gmra.mxu3 %vm3796_vm2, %v14405_v14  ;;  %v14151_v16 = vld [vmem:[%s14693_s5 + $0x768] sm:$0xff] }
 0x6cf   : > { %v9131_v23 = vpack.c.bf16 %v8107_v19, %v8107_v19  ;;  %v9387_v24 = vpack.c.bf16 %v8363_v20, %v8363_v20 }
 0x6d0   : > { %10667 = vst.msk [vmem:[%s14775_s10 + $0xb14] sm:$0xf] %vm9957_vm3, %v9642_v21 }
 0x6d1   : > { %10923 = vst.msk [vmem:[%s14775_s10 + $0xf14] sm:$0xf] %vm9957_vm3, %v9898_v22  ;;  %v7124_v8 = vpop.f32.mrf.mxu2  ;;  %v7764_v25 = vpop.f32.mrf.mxu3  ;;  %v14279_v22 = vld [vmem:[%s14693_s5 + $0xb68] sm:$0xff] }
 0x6d2   : > { %10156 = vst.msk [vmem:[%s14775_s10 + $0x318] sm:$0xf] %vm9957_vm3, %v9131_v23  ;;  %v7125_v27 = vadd.f32 %v17958_v54, %v7124_v8  ;;  %v7765_v28 = vadd.f32 %v17958_v54, %v7764_v25  ;;  %v5846_v29 = vpop.f32.mrf.mxu0  ;;  %v6486_v30 = vpop.f32.mrf.mxu1  ;;  %v14407_v23 = vld [vmem:[%s14693_s5 + $0xf68] sm:$0xff] }
 0x6d3   : > { %10412 = vst.msk [vmem:[%s14775_s10 + $0x718] sm:$0xf] %vm9957_vm3, %v9387_v24  ;;  %v5847_v31 = vadd.f32 %v17958_v54, %v5846_v29  ;;  %v6487_v32 = vadd.f32 %v17958_v54, %v6486_v30 }
 0x6d4   : > { %v8619_v33 = vmax.f32 %v7125_v27, 0.0  ;;  %v8875_v17 = vmax.f32 %v7765_v28, 0.0 }
 0x6d5   : > { %v8108_v34 = vmax.f32 %v5847_v31, 0.0  ;;  %v8364_v36 = vmax.f32 %v6487_v32, 0.0 }
 0x6d6   : > { %v9643_v37 = vpack.c.bf16 %v8619_v33, %v8619_v33  ;;  %v9899_v38 = vpack.c.bf16 %v8875_v17, %v8875_v17 }
 0x6d7   : > { %v9132_v39 = vpack.c.bf16 %v8108_v34, %v8108_v34  ;;  %v9388_v41 = vpack.c.bf16 %v8364_v36, %v8364_v36 }
 0x6d8   : > { %10668 = vst.msk [vmem:[%s14775_s10 + $0xb18] sm:$0xf] %vm9957_vm3, %v9643_v37 }
 0x6d9   : > { %10924 = vst.msk [vmem:[%s14775_s10 + $0xf18] sm:$0xf] %vm9957_vm3, %v9899_v38  ;;  %v7126_v42 = vpop.f32.mrf.mxu2  ;;  %v7766_v43 = vpop.f32.mrf.mxu3 }
 0x6da   : > { %10157 = vst.msk [vmem:[%s14775_s10 + $0x31c] sm:$0xf] %vm9957_vm3, %v9132_v39  ;;  %v7127_v46 = vadd.f32 %v17958_v54, %v7126_v42  ;;  %v7767_v47 = vadd.f32 %v17958_v54, %v7766_v43  ;;  %v5849_v48 = vpop.f32.mrf.mxu0  ;;  %v6489_v49 = vpop.f32.mrf.mxu1 }
 0x6db   : > { %10413 = vst.msk [vmem:[%s14775_s10 + $0x71c] sm:$0xf] %vm9957_vm3, %v9388_v41  ;;  %v5850_v52 = vadd.f32 %v17958_v54, %v5849_v48  ;;  %v6490_v35 = vadd.f32 %v17958_v54, %v6489_v49 }
 0x6dc   : > { %v8620_v53 = vmax.f32 %v7127_v46, 0.0  ;;  %v8876_v55 = vmax.f32 %v7767_v47, 0.0 }
 0x6dd   : > { %v8109_v56 = vmax.f32 %v5850_v52, 0.0  ;;  %v8365_v57 = vmax.f32 %v6490_v35, 0.0  ;;  %13493 = vmatmul.msk.bf16.gmra.mxu0 %vm3796_vm2, %v14022_v26  ;;  %13621 = vmatmul.msk.bf16.gmra.mxu1 %vm3796_vm2, %v14150_v44  ;;  %v14024_v35 = vld [vmem:[%s14693_s5 + $0x370] sm:$0xff] }
 0x6de   : > { %v9644_v58 = vpack.c.bf16 %v8620_v53, %v8620_v53  ;;  %v9900_v59 = vpack.c.bf16 %v8876_v55, %v8876_v55  ;;  %13749 = vmatmul.msk.bf16.gmra.mxu2 %vm3796_vm2, %v14278_v50  ;;  %13877 = vmatmul.msk.bf16.gmra.mxu3 %vm3796_vm2, %v14406_v51  ;;  %v14152_v53 = vld [vmem:[%s14693_s5 + $0x770] sm:$0xff] }
 0x6df   : > { %v9133_v61 = vpack.c.bf16 %v8109_v56, %v8109_v56  ;;  %v9389_v62 = vpack.c.bf16 %v8365_v57, %v8365_v57 }
 0x6e0   : > { %10669 = vst.msk [vmem:[%s14775_s10 + $0xb1c] sm:$0xf] %vm9957_vm3, %v9644_v58 }
 0x6e1   : > { %10925 = vst.msk [vmem:[%s14775_s10 + $0xf1c] sm:$0xf] %vm9957_vm3, %v9900_v59  ;;  %v7129_v45 = vpop.f32.mrf.mxu2  ;;  %v7769_v63 = vpop.f32.mrf.mxu3  ;;  %v14280_v59 = vld [vmem:[%s14693_s5 + $0xb70] sm:$0xff] }
 0x6e2   : > { %10158 = vst.msk [vmem:[%s14775_s10 + $0x320] sm:$0xf] %vm9957_vm3, %v9133_v61  ;;  %v7130_v1 = vadd.f32 %v17958_v54, %v7129_v45  ;;  %v7770_v2 = vadd.f32 %v17958_v54, %v7769_v63  ;;  %v5851_v3 = vpop.f32.mrf.mxu0  ;;  %v6491_v4 = vpop.f32.mrf.mxu1  ;;  %v14408_v61 = vld [vmem:[%s14693_s5 + $0xf70] sm:$0xff] }
 0x6e3   : > { %10414 = vst.msk [vmem:[%s14775_s10 + $0x720] sm:$0xf] %vm9957_vm3, %v9389_v62  ;;  %v5852_v40 = vadd.f32 %v17958_v54, %v5851_v3  ;;  %v6492_v5 = vadd.f32 %v17958_v54, %v6491_v4 }
 0x6e4   : > { %v8621_v6 = vmax.f32 %v7130_v1, 0.0  ;;  %v8877_v60 = vmax.f32 %v7770_v2, 0.0 }
 0x6e5   : > { %v8110_v7 = vmax.f32 %v5852_v40, 0.0  ;;  %v8366_v9 = vmax.f32 %v6492_v5, 0.0 }
 0x6e6   : > { %v9645_v10 = vpack.c.bf16 %v8621_v6, %v8621_v6  ;;  %v9901_v11 = vpack.c.bf16 %v8877_v60, %v8877_v60 }
 0x6e7   : > { %v9134_v12 = vpack.c.bf16 %v8110_v7, %v8110_v7  ;;  %v9390_v13 = vpack.c.bf16 %v8366_v9, %v8366_v9 }
 0x6e8   : > { %10670 = vst.msk [vmem:[%s14775_s10 + $0xb20] sm:$0xf] %vm9957_vm3, %v9645_v10 }
 0x6e9   : > { %10926 = vst.msk [vmem:[%s14775_s10 + $0xf20] sm:$0xf] %vm9957_vm3, %v9901_v11  ;;  %v7131_v14 = vpop.f32.mrf.mxu2  ;;  %v7771_v15 = vpop.f32.mrf.mxu3 }
 0x6ea   : > { %10159 = vst.msk [vmem:[%s14775_s10 + $0x324] sm:$0xf] %vm9957_vm3, %v9134_v12  ;;  %v7132_v18 = vadd.f32 %v17958_v54, %v7131_v14  ;;  %v7772_v19 = vadd.f32 %v17958_v54, %v7771_v15  ;;  %v5854_v20 = vpop.f32.mrf.mxu0  ;;  %v6494_v21 = vpop.f32.mrf.mxu1 }
 0x6eb   : > { %10415 = vst.msk [vmem:[%s14775_s10 + $0x724] sm:$0xf] %vm9957_vm3, %v9390_v13  ;;  %v5855_v24 = vadd.f32 %v17958_v54, %v5854_v20  ;;  %v6495_v8 = vadd.f32 %v17958_v54, %v6494_v21 }
 0x6ec   : > { %v8622_v25 = vmax.f32 %v7132_v18, 0.0  ;;  %v8878_v27 = vmax.f32 %v7772_v19, 0.0 }
 0x6ed   : > { %v8111_v28 = vmax.f32 %v5855_v24, 0.0  ;;  %v8367_v29 = vmax.f32 %v6495_v8, 0.0  ;;  %13494 = vmatmul.msk.bf16.gmra.mxu0 %vm3796_vm2, %v14023_v0  ;;  %13622 = vmatmul.msk.bf16.gmra.mxu1 %vm3796_vm2, %v14151_v16  ;;  %v14025_v8 = vld [vmem:[%s14693_s5 + $0x378] sm:$0xff] }
 0x6ee   : > { %v9646_v30 = vpack.c.bf16 %v8622_v25, %v8622_v25  ;;  %v9902_v31 = vpack.c.bf16 %v8878_v27, %v8878_v27  ;;  %13750 = vmatmul.msk.bf16.gmra.mxu2 %vm3796_vm2, %v14279_v22  ;;  %13878 = vmatmul.msk.bf16.gmra.mxu3 %vm3796_vm2, %v14407_v23  ;;  %v14153_v25 = vld [vmem:[%s14693_s5 + $0x778] sm:$0xff] }
 0x6ef   : > { %v9135_v32 = vpack.c.bf16 %v8111_v28, %v8111_v28  ;;  %v9391_v33 = vpack.c.bf16 %v8367_v29, %v8367_v29 }
 0x6f0   : > { %10671 = vst.msk [vmem:[%s14775_s10 + $0xb24] sm:$0xf] %vm9957_vm3, %v9646_v30 }
 0x6f1   : > { %10927 = vst.msk [vmem:[%s14775_s10 + $0xf24] sm:$0xf] %vm9957_vm3, %v9902_v31  ;;  %v7134_v17 = vpop.f32.mrf.mxu2  ;;  %v7774_v34 = vpop.f32.mrf.mxu3  ;;  %v14281_v31 = vld [vmem:[%s14693_s5 + $0xb78] sm:$0xff] }
 0x6f2   : > { %10160 = vst.msk [vmem:[%s14775_s10 + $0x328] sm:$0xf] %vm9957_vm3, %v9135_v32  ;;  %v7135_v36 = vadd.f32 %v17958_v54, %v7134_v17  ;;  %v7775_v37 = vadd.f32 %v17958_v54, %v7774_v34  ;;  %v5856_v38 = vpop.f32.mrf.mxu0  ;;  %v6496_v39 = vpop.f32.mrf.mxu1  ;;  %v14409_v32 = vld [vmem:[%s14693_s5 + $0xf78] sm:$0xff] }
 0x6f3   : > { %10416 = vst.msk [vmem:[%s14775_s10 + $0x728] sm:$0xf] %vm9957_vm3, %v9391_v33  ;;  %v5857_v41 = vadd.f32 %v17958_v54, %v5856_v38  ;;  %v6497_v42 = vadd.f32 %v17958_v54, %v6496_v39 }
 0x6f4   : > { %v8623_v43 = vmax.f32 %v7135_v36, 0.0  ;;  %v8879_v26 = vmax.f32 %v7775_v37, 0.0 }
 0x6f5   : > { %v8112_v44 = vmax.f32 %v5857_v41, 0.0  ;;  %v8368_v46 = vmax.f32 %v6497_v42, 0.0 }
 0x6f6   : > { %v9647_v47 = vpack.c.bf16 %v8623_v43, %v8623_v43  ;;  %v9903_v48 = vpack.c.bf16 %v8879_v26, %v8879_v26 }
 0x6f7   : > { %v9136_v49 = vpack.c.bf16 %v8112_v44, %v8112_v44  ;;  %v9392_v50 = vpack.c.bf16 %v8368_v46, %v8368_v46 }
 0x6f8   : > { %10672 = vst.msk [vmem:[%s14775_s10 + $0xb28] sm:$0xf] %vm9957_vm3, %v9647_v47 }
 0x6f9   : > { %10928 = vst.msk [vmem:[%s14775_s10 + $0xf28] sm:$0xf] %vm9957_vm3, %v9903_v48  ;;  %v7136_v51 = vpop.f32.mrf.mxu2  ;;  %v7776_v52 = vpop.f32.mrf.mxu3 }
 0x6fa   : > { %10161 = vst.msk [vmem:[%s14775_s10 + $0x32c] sm:$0xf] %vm9957_vm3, %v9136_v49  ;;  %v7137_v55 = vadd.f32 %v17958_v54, %v7136_v51  ;;  %v7777_v56 = vadd.f32 %v17958_v54, %v7776_v52  ;;  %v5859_v57 = vpop.f32.mrf.mxu0  ;;  %v6499_v58 = vpop.f32.mrf.mxu1 }
 0x6fb   : > { %10417 = vst.msk [vmem:[%s14775_s10 + $0x72c] sm:$0xf] %vm9957_vm3, %v9392_v50  ;;  %v5860_v62 = vadd.f32 %v17958_v54, %v5859_v57  ;;  %v6500_v45 = vadd.f32 %v17958_v54, %v6499_v58 }
 0x6fc   : > { %v8624_v63 = vmax.f32 %v7137_v55, 0.0  ;;  %v8880_v1 = vmax.f32 %v7777_v56, 0.0 }
 0x6fd   : > { %v8113_v2 = vmax.f32 %v5860_v62, 0.0  ;;  %v8369_v3 = vmax.f32 %v6500_v45, 0.0  ;;  %13495 = vmatmul.msk.bf16.gmra.mxu0 %vm3796_vm2, %v14024_v35  ;;  %13623 = vmatmul.msk.bf16.gmra.mxu1 %vm3796_vm2, %v14152_v53  ;;  %v14026_v45 = vld [vmem:[%s14693_s5 + $0x380] sm:$0xff] }
 0x6fe   : > { %v9648_v4 = vpack.c.bf16 %v8624_v63, %v8624_v63  ;;  %v9904_v40 = vpack.c.bf16 %v8880_v1, %v8880_v1  ;;  %13751 = vmatmul.msk.bf16.gmra.mxu2 %vm3796_vm2, %v14280_v59  ;;  %13879 = vmatmul.msk.bf16.gmra.mxu3 %vm3796_vm2, %v14408_v61  ;;  %v14154_v63 = vld [vmem:[%s14693_s5 + $0x780] sm:$0xff] }
 0x6ff   : > { %v9137_v5 = vpack.c.bf16 %v8113_v2, %v8113_v2  ;;  %v9393_v6 = vpack.c.bf16 %v8369_v3, %v8369_v3 }
 0x700   : > { %10673 = vst.msk [vmem:[%s14775_s10 + $0xb2c] sm:$0xf] %vm9957_vm3, %v9648_v4 }
 0x701   : > { %10929 = vst.msk [vmem:[%s14775_s10 + $0xf2c] sm:$0xf] %vm9957_vm3, %v9904_v40  ;;  %v7139_v60 = vpop.f32.mrf.mxu2  ;;  %v7779_v7 = vpop.f32.mrf.mxu3  ;;  %v14282_v40 = vld [vmem:[%s14693_s5 + $0xb80] sm:$0xff] }
 0x702   : > { %10162 = vst.msk [vmem:[%s14775_s10 + $0x330] sm:$0xf] %vm9957_vm3, %v9137_v5  ;;  %v7140_v9 = vadd.f32 %v17958_v54, %v7139_v60  ;;  %v7780_v10 = vadd.f32 %v17958_v54, %v7779_v7  ;;  %v5861_v11 = vpop.f32.mrf.mxu0  ;;  %v6501_v12 = vpop.f32.mrf.mxu1  ;;  %v14410_v5 = vld [vmem:[%s14693_s5 + $0xf80] sm:$0xff] }
 0x703   : > { %10418 = vst.msk [vmem:[%s14775_s10 + $0x730] sm:$0xf] %vm9957_vm3, %v9393_v6  ;;  %v5862_v13 = vadd.f32 %v17958_v54, %v5861_v11  ;;  %v6502_v14 = vadd.f32 %v17958_v54, %v6501_v12 }
 0x704   : > { %v8625_v15 = vmax.f32 %v7140_v9, 0.0  ;;  %v8881_v0 = vmax.f32 %v7780_v10, 0.0 }
 0x705   : > { %v8114_v16 = vmax.f32 %v5862_v13, 0.0  ;;  %v8370_v18 = vmax.f32 %v6502_v14, 0.0 }
 0x706   : > { %v9649_v19 = vpack.c.bf16 %v8625_v15, %v8625_v15  ;;  %v9905_v20 = vpack.c.bf16 %v8881_v0, %v8881_v0 }
 0x707   : > { %v9138_v21 = vpack.c.bf16 %v8114_v16, %v8114_v16  ;;  %v9394_v22 = vpack.c.bf16 %v8370_v18, %v8370_v18 }
 0x708   : > { %10674 = vst.msk [vmem:[%s14775_s10 + $0xb30] sm:$0xf] %vm9957_vm3, %v9649_v19 }
 0x709   : > { %10930 = vst.msk [vmem:[%s14775_s10 + $0xf30] sm:$0xf] %vm9957_vm3, %v9905_v20  ;;  %v7141_v23 = vpop.f32.mrf.mxu2  ;;  %v7781_v24 = vpop.f32.mrf.mxu3 }
 0x70a   : > { %10163 = vst.msk [vmem:[%s14775_s10 + $0x334] sm:$0xf] %vm9957_vm3, %v9138_v21  ;;  %v7142_v27 = vadd.f32 %v17958_v54, %v7141_v23  ;;  %v7782_v28 = vadd.f32 %v17958_v54, %v7781_v24  ;;  %v5864_v29 = vpop.f32.mrf.mxu0  ;;  %v6504_v30 = vpop.f32.mrf.mxu1 }
 0x70b   : > { %10419 = vst.msk [vmem:[%s14775_s10 + $0x734] sm:$0xf] %vm9957_vm3, %v9394_v22  ;;  %v5865_v33 = vadd.f32 %v17958_v54, %v5864_v29  ;;  %v6505_v17 = vadd.f32 %v17958_v54, %v6504_v30 }
 0x70c   : > { %v8626_v34 = vmax.f32 %v7142_v27, 0.0  ;;  %v8882_v36 = vmax.f32 %v7782_v28, 0.0 }
 0x70d   : > { %v8115_v37 = vmax.f32 %v5865_v33, 0.0  ;;  %v8371_v38 = vmax.f32 %v6505_v17, 0.0  ;;  %13496 = vmatmul.msk.bf16.gmra.mxu0 %vm3796_vm2, %v14025_v8  ;;  %13624 = vmatmul.msk.bf16.gmra.mxu1 %vm3796_vm2, %v14153_v25  ;;  %v14027_v17 = vld [vmem:[%s14693_s5 + $0x388] sm:$0xff] }
 0x70e   : > { %v9650_v39 = vpack.c.bf16 %v8626_v34, %v8626_v34  ;;  %v9906_v41 = vpack.c.bf16 %v8882_v36, %v8882_v36  ;;  %13752 = vmatmul.msk.bf16.gmra.mxu2 %vm3796_vm2, %v14281_v31  ;;  %13880 = vmatmul.msk.bf16.gmra.mxu3 %vm3796_vm2, %v14409_v32  ;;  %v14155_v34 = vld [vmem:[%s14693_s5 + $0x788] sm:$0xff] }
 0x70f   : > { %v9139_v42 = vpack.c.bf16 %v8115_v37, %v8115_v37  ;;  %v9395_v43 = vpack.c.bf16 %v8371_v38, %v8371_v38 }
 0x710   : > { %10675 = vst.msk [vmem:[%s14775_s10 + $0xb34] sm:$0xf] %vm9957_vm3, %v9650_v39 }
 0x711   : > { %10931 = vst.msk [vmem:[%s14775_s10 + $0xf34] sm:$0xf] %vm9957_vm3, %v9906_v41  ;;  %v7144_v26 = vpop.f32.mrf.mxu2  ;;  %v7784_v44 = vpop.f32.mrf.mxu3  ;;  %v14283_v41 = vld [vmem:[%s14693_s5 + $0xb88] sm:$0xff] }
 0x712   : > { %10164 = vst.msk [vmem:[%s14775_s10 + $0x338] sm:$0xf] %vm9957_vm3, %v9139_v42  ;;  %v7145_v46 = vadd.f32 %v17958_v54, %v7144_v26  ;;  %v7785_v47 = vadd.f32 %v17958_v54, %v7784_v44  ;;  %v5866_v48 = vpop.f32.mrf.mxu0  ;;  %v6506_v49 = vpop.f32.mrf.mxu1  ;;  %v14411_v42 = vld [vmem:[%s14693_s5 + $0xf88] sm:$0xff] }
 0x713   : > { %10420 = vst.msk [vmem:[%s14775_s10 + $0x738] sm:$0xf] %vm9957_vm3, %v9395_v43  ;;  %v5867_v50 = vadd.f32 %v17958_v54, %v5866_v48  ;;  %v6507_v51 = vadd.f32 %v17958_v54, %v6506_v49 }
 0x714   : > { %v8627_v52 = vmax.f32 %v7145_v46, 0.0  ;;  %v8883_v35 = vmax.f32 %v7785_v47, 0.0 }
 0x715   : > { %v8116_v53 = vmax.f32 %v5867_v50, 0.0  ;;  %v8372_v55 = vmax.f32 %v6507_v51, 0.0 }
 0x716   : > { %v9651_v56 = vpack.c.bf16 %v8627_v52, %v8627_v52  ;;  %v9907_v57 = vpack.c.bf16 %v8883_v35, %v8883_v35 }
 0x717   : > { %v9140_v58 = vpack.c.bf16 %v8116_v53, %v8116_v53  ;;  %v9396_v59 = vpack.c.bf16 %v8372_v55, %v8372_v55 }
 0x718   : > { %10676 = vst.msk [vmem:[%s14775_s10 + $0xb38] sm:$0xf] %vm9957_vm3, %v9651_v56 }
 0x719   : > { %10932 = vst.msk [vmem:[%s14775_s10 + $0xf38] sm:$0xf] %vm9957_vm3, %v9907_v57  ;;  %v7146_v61 = vpop.f32.mrf.mxu2  ;;  %v7786_v62 = vpop.f32.mrf.mxu3 }
 0x71a   : > { %10165 = vst.msk [vmem:[%s14775_s10 + $0x33c] sm:$0xf] %vm9957_vm3, %v9140_v58  ;;  %v7147_v1 = vadd.f32 %v17958_v54, %v7146_v61  ;;  %v7787_v2 = vadd.f32 %v17958_v54, %v7786_v62  ;;  %v5869_v3 = vpop.f32.mrf.mxu0  ;;  %v6509_v4 = vpop.f32.mrf.mxu1 }
 0x71b   : > { %10421 = vst.msk [vmem:[%s14775_s10 + $0x73c] sm:$0xf] %vm9957_vm3, %v9396_v59  ;;  %v5870_v6 = vadd.f32 %v17958_v54, %v5869_v3  ;;  %v6510_v60 = vadd.f32 %v17958_v54, %v6509_v4 }
 0x71c   : > { %v8628_v7 = vmax.f32 %v7147_v1, 0.0  ;;  %v8884_v9 = vmax.f32 %v7787_v2, 0.0 }
 0x71d   : > { %v8117_v10 = vmax.f32 %v5870_v6, 0.0  ;;  %v8373_v11 = vmax.f32 %v6510_v60, 0.0  ;;  %13497 = vmatmul.msk.bf16.gmra.mxu0 %vm3796_vm2, %v14026_v45  ;;  %13625 = vmatmul.msk.bf16.gmra.mxu1 %vm3796_vm2, %v14154_v63  ;;  %v14028_v60 = vld [vmem:[%s14693_s5 + $0x390] sm:$0xff] }
 0x71e   : > { %v9652_v12 = vpack.c.bf16 %v8628_v7, %v8628_v7  ;;  %v9908_v13 = vpack.c.bf16 %v8884_v9, %v8884_v9  ;;  %13753 = vmatmul.msk.bf16.gmra.mxu2 %vm3796_vm2, %v14282_v40  ;;  %13881 = vmatmul.msk.bf16.gmra.mxu3 %vm3796_vm2, %v14410_v5  ;;  %v14156_v7 = vld [vmem:[%s14693_s5 + $0x790] sm:$0xff] }
 0x71f   : > { %v9141_v14 = vpack.c.bf16 %v8117_v10, %v8117_v10  ;;  %v9397_v15 = vpack.c.bf16 %v8373_v11, %v8373_v11 }
 0x720   : > { %10677 = vst.msk [vmem:[%s14775_s10 + $0xb3c] sm:$0xf] %vm9957_vm3, %v9652_v12 }
 0x721   : > { %10933 = vst.msk [vmem:[%s14775_s10 + $0xf3c] sm:$0xf] %vm9957_vm3, %v9908_v13  ;;  %v7149_v0 = vpop.f32.mrf.mxu2  ;;  %v7789_v16 = vpop.f32.mrf.mxu3  ;;  %v14284_v13 = vld [vmem:[%s14693_s5 + $0xb90] sm:$0xff] }
 0x722   : > { %10166 = vst.msk [vmem:[%s14775_s10 + $0x340] sm:$0xf] %vm9957_vm3, %v9141_v14  ;;  %v7150_v18 = vadd.f32 %v17958_v54, %v7149_v0  ;;  %v7790_v19 = vadd.f32 %v17958_v54, %v7789_v16  ;;  %v5871_v20 = vpop.f32.mrf.mxu0  ;;  %v6511_v21 = vpop.f32.mrf.mxu1  ;;  %v14412_v14 = vld [vmem:[%s14693_s5 + $0xf90] sm:$0xff] }
 0x723   : > { %10422 = vst.msk [vmem:[%s14775_s10 + $0x740] sm:$0xf] %vm9957_vm3, %v9397_v15  ;;  %v5872_v22 = vadd.f32 %v17958_v54, %v5871_v20  ;;  %v6512_v23 = vadd.f32 %v17958_v54, %v6511_v21 }
 0x724   : > { %v8629_v24 = vmax.f32 %v7150_v18, 0.0  ;;  %v8885_v8 = vmax.f32 %v7790_v19, 0.0 }
 0x725   : > { %v8118_v25 = vmax.f32 %v5872_v22, 0.0  ;;  %v8374_v27 = vmax.f32 %v6512_v23, 0.0 }
 0x726   : > { %v9653_v28 = vpack.c.bf16 %v8629_v24, %v8629_v24  ;;  %v9909_v29 = vpack.c.bf16 %v8885_v8, %v8885_v8 }
 0x727   : > { %v9142_v30 = vpack.c.bf16 %v8118_v25, %v8118_v25  ;;  %v9398_v31 = vpack.c.bf16 %v8374_v27, %v8374_v27 }
 0x728   : > { %10678 = vst.msk [vmem:[%s14775_s10 + $0xb40] sm:$0xf] %vm9957_vm3, %v9653_v28 }
 0x729   : > { %10934 = vst.msk [vmem:[%s14775_s10 + $0xf40] sm:$0xf] %vm9957_vm3, %v9909_v29  ;;  %v7151_v32 = vpop.f32.mrf.mxu2  ;;  %v7791_v33 = vpop.f32.mrf.mxu3 }
 0x72a   : > { %10167 = vst.msk [vmem:[%s14775_s10 + $0x344] sm:$0xf] %vm9957_vm3, %v9142_v30  ;;  %v7152_v36 = vadd.f32 %v17958_v54, %v7151_v32  ;;  %v7792_v37 = vadd.f32 %v17958_v54, %v7791_v33  ;;  %v5874_v38 = vpop.f32.mrf.mxu0  ;;  %v6514_v39 = vpop.f32.mrf.mxu1 }
 0x72b   : > { %10423 = vst.msk [vmem:[%s14775_s10 + $0x744] sm:$0xf] %vm9957_vm3, %v9398_v31  ;;  %v5875_v43 = vadd.f32 %v17958_v54, %v5874_v38  ;;  %v6515_v26 = vadd.f32 %v17958_v54, %v6514_v39 }
 0x72c   : > { %v8630_v44 = vmax.f32 %v7152_v36, 0.0  ;;  %v8886_v46 = vmax.f32 %v7792_v37, 0.0 }
 0x72d   : > { %v8119_v47 = vmax.f32 %v5875_v43, 0.0  ;;  %v8375_v48 = vmax.f32 %v6515_v26, 0.0  ;;  %13498 = vmatmul.msk.bf16.gmra.mxu0 %vm3796_vm2, %v14027_v17  ;;  %13626 = vmatmul.msk.bf16.gmra.mxu1 %vm3796_vm2, %v14155_v34  ;;  %v14029_v26 = vld [vmem:[%s14693_s5 + $0x398] sm:$0xff] }
 0x72e   : > { %v9654_v49 = vpack.c.bf16 %v8630_v44, %v8630_v44  ;;  %v9910_v50 = vpack.c.bf16 %v8886_v46, %v8886_v46  ;;  %13754 = vmatmul.msk.bf16.gmra.mxu2 %vm3796_vm2, %v14283_v41  ;;  %13882 = vmatmul.msk.bf16.gmra.mxu3 %vm3796_vm2, %v14411_v42  ;;  %v14157_v44 = vld [vmem:[%s14693_s5 + $0x798] sm:$0xff] }
 0x72f   : > { %v9143_v51 = vpack.c.bf16 %v8119_v47, %v8119_v47  ;;  %v9399_v52 = vpack.c.bf16 %v8375_v48, %v8375_v48 }
 0x730   : > { %10679 = vst.msk [vmem:[%s14775_s10 + $0xb44] sm:$0xf] %vm9957_vm3, %v9654_v49 }
 0x731   : > { %10935 = vst.msk [vmem:[%s14775_s10 + $0xf44] sm:$0xf] %vm9957_vm3, %v9910_v50  ;;  %v7154_v35 = vpop.f32.mrf.mxu2  ;;  %v7794_v53 = vpop.f32.mrf.mxu3  ;;  %v14285_v50 = vld [vmem:[%s14693_s5 + $0xb98] sm:$0xff] }
 0x732   : > { %10168 = vst.msk [vmem:[%s14775_s10 + $0x348] sm:$0xf] %vm9957_vm3, %v9143_v51  ;;  %v7155_v55 = vadd.f32 %v17958_v54, %v7154_v35  ;;  %v7795_v56 = vadd.f32 %v17958_v54, %v7794_v53  ;;  %v5876_v57 = vpop.f32.mrf.mxu0  ;;  %v6516_v58 = vpop.f32.mrf.mxu1  ;;  %v14413_v51 = vld [vmem:[%s14693_s5 + $0xf98] sm:$0xff] }
 0x733   : > { %10424 = vst.msk [vmem:[%s14775_s10 + $0x748] sm:$0xf] %vm9957_vm3, %v9399_v52  ;;  %v5877_v59 = vadd.f32 %v17958_v54, %v5876_v57  ;;  %v6517_v61 = vadd.f32 %v17958_v54, %v6516_v58 }
 0x734   : > { %v8631_v62 = vmax.f32 %v7155_v55, 0.0  ;;  %v8887_v45 = vmax.f32 %v7795_v56, 0.0 }
 0x735   : > { %v8120_v63 = vmax.f32 %v5877_v59, 0.0  ;;  %v8376_v1 = vmax.f32 %v6517_v61, 0.0 }
 0x736   : > { %v9655_v2 = vpack.c.bf16 %v8631_v62, %v8631_v62  ;;  %v9911_v3 = vpack.c.bf16 %v8887_v45, %v8887_v45 }
 0x737   : > { %v9144_v4 = vpack.c.bf16 %v8120_v63, %v8120_v63  ;;  %v9400_v40 = vpack.c.bf16 %v8376_v1, %v8376_v1 }
 0x738   : > { %10680 = vst.msk [vmem:[%s14775_s10 + $0xb48] sm:$0xf] %vm9957_vm3, %v9655_v2 }
 0x739   : > { %10936 = vst.msk [vmem:[%s14775_s10 + $0xf48] sm:$0xf] %vm9957_vm3, %v9911_v3  ;;  %v7156_v5 = vpop.f32.mrf.mxu2  ;;  %v7796_v6 = vpop.f32.mrf.mxu3 }
 0x73a   : > { %10169 = vst.msk [vmem:[%s14775_s10 + $0x34c] sm:$0xf] %vm9957_vm3, %v9144_v4  ;;  %v7157_v9 = vadd.f32 %v17958_v54, %v7156_v5  ;;  %v7797_v10 = vadd.f32 %v17958_v54, %v7796_v6  ;;  %v5879_v11 = vpop.f32.mrf.mxu0  ;;  %v6519_v12 = vpop.f32.mrf.mxu1 }
 0x73b   : > { %10425 = vst.msk [vmem:[%s14775_s10 + $0x74c] sm:$0xf] %vm9957_vm3, %v9400_v40  ;;  %v5880_v15 = vadd.f32 %v17958_v54, %v5879_v11  ;;  %v6520_v0 = vadd.f32 %v17958_v54, %v6519_v12 }
 0x73c   : > { %v8632_v16 = vmax.f32 %v7157_v9, 0.0  ;;  %v8888_v18 = vmax.f32 %v7797_v10, 0.0 }
 0x73d   : > { %v8121_v19 = vmax.f32 %v5880_v15, 0.0  ;;  %v8377_v20 = vmax.f32 %v6520_v0, 0.0  ;;  %13499 = vmatmul.msk.bf16.gmra.mxu0 %vm3796_vm2, %v14028_v60  ;;  %13627 = vmatmul.msk.bf16.gmra.mxu1 %vm3796_vm2, %v14156_v7  ;;  %v14030_v0 = vld [vmem:[%s14693_s5 + $0x3a0] sm:$0xff] }
 0x73e   : > { %v9656_v21 = vpack.c.bf16 %v8632_v16, %v8632_v16  ;;  %v9912_v22 = vpack.c.bf16 %v8888_v18, %v8888_v18  ;;  %13755 = vmatmul.msk.bf16.gmra.mxu2 %vm3796_vm2, %v14284_v13  ;;  %13883 = vmatmul.msk.bf16.gmra.mxu3 %vm3796_vm2, %v14412_v14  ;;  %v14158_v16 = vld [vmem:[%s14693_s5 + $0x7a0] sm:$0xff] }
 0x73f   : > { %v9145_v23 = vpack.c.bf16 %v8121_v19, %v8121_v19  ;;  %v9401_v24 = vpack.c.bf16 %v8377_v20, %v8377_v20 }
 0x740   : > { %10681 = vst.msk [vmem:[%s14775_s10 + $0xb4c] sm:$0xf] %vm9957_vm3, %v9656_v21 }
 0x741   : > { %10937 = vst.msk [vmem:[%s14775_s10 + $0xf4c] sm:$0xf] %vm9957_vm3, %v9912_v22  ;;  %v7159_v8 = vpop.f32.mrf.mxu2  ;;  %v7799_v25 = vpop.f32.mrf.mxu3  ;;  %v14286_v22 = vld [vmem:[%s14693_s5 + $0xba0] sm:$0xff] }
 0x742   : > { %10170 = vst.msk [vmem:[%s14775_s10 + $0x350] sm:$0xf] %vm9957_vm3, %v9145_v23  ;;  %v7160_v27 = vadd.f32 %v17958_v54, %v7159_v8  ;;  %v7800_v28 = vadd.f32 %v17958_v54, %v7799_v25  ;;  %v5881_v29 = vpop.f32.mrf.mxu0  ;;  %v6521_v30 = vpop.f32.mrf.mxu1  ;;  %v14414_v23 = vld [vmem:[%s14693_s5 + $0xfa0] sm:$0xff] }
 0x743   : > { %10426 = vst.msk [vmem:[%s14775_s10 + $0x750] sm:$0xf] %vm9957_vm3, %v9401_v24  ;;  %v5882_v31 = vadd.f32 %v17958_v54, %v5881_v29  ;;  %v6522_v32 = vadd.f32 %v17958_v54, %v6521_v30 }
 0x744   : > { %v8633_v33 = vmax.f32 %v7160_v27, 0.0  ;;  %v8889_v17 = vmax.f32 %v7800_v28, 0.0 }
 0x745   : > { %v8122_v34 = vmax.f32 %v5882_v31, 0.0  ;;  %v8378_v36 = vmax.f32 %v6522_v32, 0.0 }
 0x746   : > { %v9657_v37 = vpack.c.bf16 %v8633_v33, %v8633_v33  ;;  %v9913_v38 = vpack.c.bf16 %v8889_v17, %v8889_v17 }
 0x747   : > { %v9146_v39 = vpack.c.bf16 %v8122_v34, %v8122_v34  ;;  %v9402_v41 = vpack.c.bf16 %v8378_v36, %v8378_v36 }
 0x748   : > { %10682 = vst.msk [vmem:[%s14775_s10 + $0xb50] sm:$0xf] %vm9957_vm3, %v9657_v37 }
 0x749   : > { %10938 = vst.msk [vmem:[%s14775_s10 + $0xf50] sm:$0xf] %vm9957_vm3, %v9913_v38  ;;  %v7161_v42 = vpop.f32.mrf.mxu2  ;;  %v7801_v43 = vpop.f32.mrf.mxu3 }
 0x74a   : > { %10171 = vst.msk [vmem:[%s14775_s10 + $0x354] sm:$0xf] %vm9957_vm3, %v9146_v39  ;;  %v7162_v46 = vadd.f32 %v17958_v54, %v7161_v42  ;;  %v7802_v47 = vadd.f32 %v17958_v54, %v7801_v43  ;;  %v5884_v48 = vpop.f32.mrf.mxu0  ;;  %v6524_v49 = vpop.f32.mrf.mxu1 }
 0x74b   : > { %10427 = vst.msk [vmem:[%s14775_s10 + $0x754] sm:$0xf] %vm9957_vm3, %v9402_v41  ;;  %v5885_v52 = vadd.f32 %v17958_v54, %v5884_v48  ;;  %v6525_v35 = vadd.f32 %v17958_v54, %v6524_v49 }
 0x74c   : > { %v8634_v53 = vmax.f32 %v7162_v46, 0.0  ;;  %v8890_v55 = vmax.f32 %v7802_v47, 0.0 }
 0x74d   : > { %v8123_v56 = vmax.f32 %v5885_v52, 0.0  ;;  %v8379_v57 = vmax.f32 %v6525_v35, 0.0  ;;  %13500 = vmatmul.msk.bf16.gmra.mxu0 %vm3796_vm2, %v14029_v26  ;;  %13628 = vmatmul.msk.bf16.gmra.mxu1 %vm3796_vm2, %v14157_v44  ;;  %v14031_v35 = vld [vmem:[%s14693_s5 + $0x3a8] sm:$0xff] }
 0x74e   : > { %v9658_v58 = vpack.c.bf16 %v8634_v53, %v8634_v53  ;;  %v9914_v59 = vpack.c.bf16 %v8890_v55, %v8890_v55  ;;  %13756 = vmatmul.msk.bf16.gmra.mxu2 %vm3796_vm2, %v14285_v50  ;;  %13884 = vmatmul.msk.bf16.gmra.mxu3 %vm3796_vm2, %v14413_v51  ;;  %v14159_v53 = vld [vmem:[%s14693_s5 + $0x7a8] sm:$0xff] }
 0x74f   : > { %v9147_v61 = vpack.c.bf16 %v8123_v56, %v8123_v56  ;;  %v9403_v62 = vpack.c.bf16 %v8379_v57, %v8379_v57 }
 0x750   : > { %10683 = vst.msk [vmem:[%s14775_s10 + $0xb54] sm:$0xf] %vm9957_vm3, %v9658_v58 }
 0x751   : > { %10939 = vst.msk [vmem:[%s14775_s10 + $0xf54] sm:$0xf] %vm9957_vm3, %v9914_v59  ;;  %v7164_v45 = vpop.f32.mrf.mxu2  ;;  %v7804_v63 = vpop.f32.mrf.mxu3  ;;  %v14287_v59 = vld [vmem:[%s14693_s5 + $0xba8] sm:$0xff] }
 0x752   : > { %10172 = vst.msk [vmem:[%s14775_s10 + $0x358] sm:$0xf] %vm9957_vm3, %v9147_v61  ;;  %v7165_v1 = vadd.f32 %v17958_v54, %v7164_v45  ;;  %v7805_v2 = vadd.f32 %v17958_v54, %v7804_v63  ;;  %v5886_v3 = vpop.f32.mrf.mxu0  ;;  %v6526_v4 = vpop.f32.mrf.mxu1  ;;  %v14415_v61 = vld [vmem:[%s14693_s5 + $0xfa8] sm:$0xff] }
 0x753   : > { %10428 = vst.msk [vmem:[%s14775_s10 + $0x758] sm:$0xf] %vm9957_vm3, %v9403_v62  ;;  %v5887_v40 = vadd.f32 %v17958_v54, %v5886_v3  ;;  %v6527_v5 = vadd.f32 %v17958_v54, %v6526_v4 }
 0x754   : > { %v8635_v6 = vmax.f32 %v7165_v1, 0.0  ;;  %v8891_v60 = vmax.f32 %v7805_v2, 0.0 }
 0x755   : > { %v8124_v7 = vmax.f32 %v5887_v40, 0.0  ;;  %v8380_v9 = vmax.f32 %v6527_v5, 0.0 }
 0x756   : > { %v9659_v10 = vpack.c.bf16 %v8635_v6, %v8635_v6  ;;  %v9915_v11 = vpack.c.bf16 %v8891_v60, %v8891_v60 }
 0x757   : > { %v9148_v12 = vpack.c.bf16 %v8124_v7, %v8124_v7  ;;  %v9404_v13 = vpack.c.bf16 %v8380_v9, %v8380_v9  ;;  %v18315_v7 = vld [vmem:[%s18998_s2] ss:$0 sm:$0xff] }
 0x758   : > { %10684 = vst.msk [vmem:[%s14775_s10 + $0xb58] sm:$0xf] %vm9957_vm3, %v9659_v10 }
 0x759   : > { %10940 = vst.msk [vmem:[%s14775_s10 + $0xf58] sm:$0xf] %vm9957_vm3, %v9915_v11  ;;  %v7166_v14 = vpop.f32.mrf.mxu2  ;;  %v7806_v15 = vpop.f32.mrf.mxu3 }
 0x75a   : > { %10173 = vst.msk [vmem:[%s14775_s10 + $0x35c] sm:$0xf] %vm9957_vm3, %v9148_v12  ;;  %v7167_v18 = vadd.f32 %v17958_v54, %v7166_v14  ;;  %v7807_v19 = vadd.f32 %v17958_v54, %v7806_v15  ;;  %v5889_v20 = vpop.f32.mrf.mxu0  ;;  %v6529_v21 = vpop.f32.mrf.mxu1 }
 0x75b   : > { %10429 = vst.msk [vmem:[%s14775_s10 + $0x75c] sm:$0xf] %vm9957_vm3, %v9404_v13  ;;  %v5890_v24 = vadd.f32 %v17958_v54, %v5889_v20  ;;  %v6530_v8 = vadd.f32 %v17958_v54, %v6529_v21 }
 0x75c   : > { %v8636_v25 = vmax.f32 %v7167_v18, 0.0  ;;  %v8892_v27 = vmax.f32 %v7807_v19, 0.0 }
 0x75d   : > { %v8125_v28 = vmax.f32 %v5890_v24, 0.0  ;;  %v8381_v29 = vmax.f32 %v6530_v8, 0.0  ;;  %13501 = vmatmul.msk.bf16.gmra.mxu0 %vm3796_vm2, %v14030_v0  ;;  %13629 = vmatmul.msk.bf16.gmra.mxu1 %vm3796_vm2, %v14158_v16  ;;  %v14032_v8 = vld [vmem:[%s14693_s5 + $0x3b0] sm:$0xff] }
 0x75e   : > { %v9660_v30 = vpack.c.bf16 %v8636_v25, %v8636_v25  ;;  %v9916_v31 = vpack.c.bf16 %v8892_v27, %v8892_v27  ;;  %13757 = vmatmul.msk.bf16.gmra.mxu2 %vm3796_vm2, %v14286_v22  ;;  %13885 = vmatmul.msk.bf16.gmra.mxu3 %vm3796_vm2, %v14414_v23  ;;  %v14160_v25 = vld [vmem:[%s14693_s5 + $0x7b0] sm:$0xff] }
 0x75f   : > { %v9149_v32 = vpack.c.bf16 %v8125_v28, %v8125_v28  ;;  %v9405_v33 = vpack.c.bf16 %v8381_v29, %v8381_v29 }
 0x760   : > { %10685 = vst.msk [vmem:[%s14775_s10 + $0xb5c] sm:$0xf] %vm9957_vm3, %v9660_v30 }
 0x761   : > { %10941 = vst.msk [vmem:[%s14775_s10 + $0xf5c] sm:$0xf] %vm9957_vm3, %v9916_v31  ;;  %v7169_v17 = vpop.f32.mrf.mxu2  ;;  %v7809_v34 = vpop.f32.mrf.mxu3  ;;  %v14288_v31 = vld [vmem:[%s14693_s5 + $0xbb0] sm:$0xff] }
 0x762   : > { %10174 = vst.msk [vmem:[%s14775_s10 + $0x360] sm:$0xf] %vm9957_vm3, %v9149_v32  ;;  %v7170_v36 = vadd.f32 %v17958_v54, %v7169_v17  ;;  %v7810_v37 = vadd.f32 %v17958_v54, %v7809_v34  ;;  %v5891_v38 = vpop.f32.mrf.mxu0  ;;  %v6531_v39 = vpop.f32.mrf.mxu1  ;;  %v14416_v32 = vld [vmem:[%s14693_s5 + $0xfb0] sm:$0xff] }
 0x763   : > { %10430 = vst.msk [vmem:[%s14775_s10 + $0x760] sm:$0xf] %vm9957_vm3, %v9405_v33  ;;  %v5892_v41 = vadd.f32 %v17958_v54, %v5891_v38  ;;  %v6532_v42 = vadd.f32 %v17958_v54, %v6531_v39 }
 0x764   : > { %v8637_v43 = vmax.f32 %v7170_v36, 0.0  ;;  %v8893_v26 = vmax.f32 %v7810_v37, 0.0 }
 0x765   : > { %v8126_v44 = vmax.f32 %v5892_v41, 0.0  ;;  %v8382_v46 = vmax.f32 %v6532_v42, 0.0 }
 0x766   : > { %v9661_v47 = vpack.c.bf16 %v8637_v43, %v8637_v43  ;;  %v9917_v48 = vpack.c.bf16 %v8893_v26, %v8893_v26 }
 0x767   : > { %v9150_v49 = vpack.c.bf16 %v8126_v44, %v8126_v44  ;;  %v9406_v50 = vpack.c.bf16 %v8382_v46, %v8382_v46 }
 0x768   : > { %10686 = vst.msk [vmem:[%s14775_s10 + $0xb60] sm:$0xf] %vm9957_vm3, %v9661_v47 }
 0x769   : > { %10942 = vst.msk [vmem:[%s14775_s10 + $0xf60] sm:$0xf] %vm9957_vm3, %v9917_v48  ;;  %v7171_v51 = vpop.f32.mrf.mxu2  ;;  %v7811_v52 = vpop.f32.mrf.mxu3 }
 0x76a   : > { %10175 = vst.msk [vmem:[%s14775_s10 + $0x364] sm:$0xf] %vm9957_vm3, %v9150_v49  ;;  %v7172_v55 = vadd.f32 %v17958_v54, %v7171_v51  ;;  %v7812_v56 = vadd.f32 %v17958_v54, %v7811_v52  ;;  %v5894_v57 = vpop.f32.mrf.mxu0  ;;  %v6534_v58 = vpop.f32.mrf.mxu1 }
 0x76b   : > { %10431 = vst.msk [vmem:[%s14775_s10 + $0x764] sm:$0xf] %vm9957_vm3, %v9406_v50  ;;  %v5895_v62 = vadd.f32 %v17958_v54, %v5894_v57  ;;  %v6535_v45 = vadd.f32 %v17958_v54, %v6534_v58 }
 0x76c   : > { %v8638_v63 = vmax.f32 %v7172_v55, 0.0  ;;  %v8894_v1 = vmax.f32 %v7812_v56, 0.0 }
 0x76d   : > { %v8127_v2 = vmax.f32 %v5895_v62, 0.0  ;;  %v8383_v3 = vmax.f32 %v6535_v45, 0.0  ;;  %13502 = vmatmul.msk.bf16.gmra.mxu0 %vm3796_vm2, %v14031_v35  ;;  %13630 = vmatmul.msk.bf16.gmra.mxu1 %vm3796_vm2, %v14159_v53  ;;  %v14033_v45 = vld [vmem:[%s14693_s5 + $0x3b8] sm:$0xff] }
 0x76e   : > { %v9662_v4 = vpack.c.bf16 %v8638_v63, %v8638_v63  ;;  %v9918_v40 = vpack.c.bf16 %v8894_v1, %v8894_v1  ;;  %13758 = vmatmul.msk.bf16.gmra.mxu2 %vm3796_vm2, %v14287_v59  ;;  %13886 = vmatmul.msk.bf16.gmra.mxu3 %vm3796_vm2, %v14415_v61  ;;  %v14161_v63 = vld [vmem:[%s14693_s5 + $0x7b8] sm:$0xff] }
 0x76f   : > { %v9151_v5 = vpack.c.bf16 %v8127_v2, %v8127_v2  ;;  %v9407_v6 = vpack.c.bf16 %v8383_v3, %v8383_v3 }
 0x770   : > { %10687 = vst.msk [vmem:[%s14775_s10 + $0xb64] sm:$0xf] %vm9957_vm3, %v9662_v4 }
 0x771   : > { %10943 = vst.msk [vmem:[%s14775_s10 + $0xf64] sm:$0xf] %vm9957_vm3, %v9918_v40  ;;  %v7174_v54 = vpop.f32.mrf.mxu2  ;;  %v7814_v60 = vpop.f32.mrf.mxu3  ;;  %v14289_v40 = vld [vmem:[%s14693_s5 + $0xbb8] sm:$0xff] }
 0x772   : > { %10176 = vst.msk [vmem:[%s14775_s10 + $0x368] sm:$0xf] %vm9957_vm3, %v9151_v5  ;;  %v7175_v9 = vadd.f32 %v18315_v7, %v7174_v54  ;;  %v7815_v10 = vadd.f32 %v18315_v7, %v7814_v60  ;;  %v5896_v11 = vpop.f32.mrf.mxu0  ;;  %v6536_v12 = vpop.f32.mrf.mxu1  ;;  %v14417_v5 = vld [vmem:[%s14693_s5 + $0xfb8] sm:$0xff] }
 0x773   : > { %10432 = vst.msk [vmem:[%s14775_s10 + $0x768] sm:$0xf] %vm9957_vm3, %v9407_v6  ;;  %v5897_v13 = vadd.f32 %v18315_v7, %v5896_v11  ;;  %v6537_v14 = vadd.f32 %v18315_v7, %v6536_v12 }
 0x774   : > { %v8639_v15 = vmax.f32 %v7175_v9, 0.0  ;;  %v8895_v0 = vmax.f32 %v7815_v10, 0.0 }
 0x775   : > { %v8128_v16 = vmax.f32 %v5897_v13, 0.0  ;;  %v8384_v18 = vmax.f32 %v6537_v14, 0.0 }
 0x776   : > { %v9663_v19 = vpack.c.bf16 %v8639_v15, %v8639_v15  ;;  %v9919_v20 = vpack.c.bf16 %v8895_v0, %v8895_v0 }
 0x777   : > { %v9152_v21 = vpack.c.bf16 %v8128_v16, %v8128_v16  ;;  %v9408_v22 = vpack.c.bf16 %v8384_v18, %v8384_v18 }
 0x778   : > { %10688 = vst.msk [vmem:[%s14775_s10 + $0xb68] sm:$0xf] %vm9957_vm3, %v9663_v19 }
 0x779   : > { %10944 = vst.msk [vmem:[%s14775_s10 + $0xf68] sm:$0xf] %vm9957_vm3, %v9919_v20  ;;  %v7176_v23 = vpop.f32.mrf.mxu2  ;;  %v7816_v24 = vpop.f32.mrf.mxu3 }
 0x77a   : > { %10177 = vst.msk [vmem:[%s14775_s10 + $0x36c] sm:$0xf] %vm9957_vm3, %v9152_v21  ;;  %v7177_v27 = vadd.f32 %v18315_v7, %v7176_v23  ;;  %v7817_v28 = vadd.f32 %v18315_v7, %v7816_v24  ;;  %v5899_v29 = vpop.f32.mrf.mxu0  ;;  %v6539_v30 = vpop.f32.mrf.mxu1 }
 0x77b   : > { %10433 = vst.msk [vmem:[%s14775_s10 + $0x76c] sm:$0xf] %vm9957_vm3, %v9408_v22  ;;  %v5900_v33 = vadd.f32 %v18315_v7, %v5899_v29  ;;  %v6540_v17 = vadd.f32 %v18315_v7, %v6539_v30 }
 0x77c   : > { %v8640_v34 = vmax.f32 %v7177_v27, 0.0  ;;  %v8896_v36 = vmax.f32 %v7817_v28, 0.0 }
 0x77d   : > { %v8129_v37 = vmax.f32 %v5900_v33, 0.0  ;;  %v8385_v38 = vmax.f32 %v6540_v17, 0.0  ;;  %13503 = vmatmul.msk.bf16.gmra.mxu0 %vm3796_vm2, %v14032_v8  ;;  %13631 = vmatmul.msk.bf16.gmra.mxu1 %vm3796_vm2, %v14160_v25  ;;  %v14034_v17 = vld [vmem:[%s14693_s5 + $0x3c0] sm:$0xff] }
 0x77e   : > { %v9664_v39 = vpack.c.bf16 %v8640_v34, %v8640_v34  ;;  %v9920_v41 = vpack.c.bf16 %v8896_v36, %v8896_v36  ;;  %13759 = vmatmul.msk.bf16.gmra.mxu2 %vm3796_vm2, %v14288_v31  ;;  %13887 = vmatmul.msk.bf16.gmra.mxu3 %vm3796_vm2, %v14416_v32  ;;  %v14162_v34 = vld [vmem:[%s14693_s5 + $0x7c0] sm:$0xff] }
 0x77f   : > { %v9153_v42 = vpack.c.bf16 %v8129_v37, %v8129_v37  ;;  %v9409_v43 = vpack.c.bf16 %v8385_v38, %v8385_v38 }
 0x780   : > { %10689 = vst.msk [vmem:[%s14775_s10 + $0xb6c] sm:$0xf] %vm9957_vm3, %v9664_v39 }
 0x781   : > { %10945 = vst.msk [vmem:[%s14775_s10 + $0xf6c] sm:$0xf] %vm9957_vm3, %v9920_v41  ;;  %v7179_v26 = vpop.f32.mrf.mxu2  ;;  %v7819_v44 = vpop.f32.mrf.mxu3  ;;  %v14290_v41 = vld [vmem:[%s14693_s5 + $0xbc0] sm:$0xff] }
 0x782   : > { %10178 = vst.msk [vmem:[%s14775_s10 + $0x370] sm:$0xf] %vm9957_vm3, %v9153_v42  ;;  %v7180_v46 = vadd.f32 %v18315_v7, %v7179_v26  ;;  %v7820_v47 = vadd.f32 %v18315_v7, %v7819_v44  ;;  %v5901_v48 = vpop.f32.mrf.mxu0  ;;  %v6541_v49 = vpop.f32.mrf.mxu1  ;;  %v14418_v42 = vld [vmem:[%s14693_s5 + $0xfc0] sm:$0xff] }
 0x783   : > { %10434 = vst.msk [vmem:[%s14775_s10 + $0x770] sm:$0xf] %vm9957_vm3, %v9409_v43  ;;  %v5902_v50 = vadd.f32 %v18315_v7, %v5901_v48  ;;  %v6542_v51 = vadd.f32 %v18315_v7, %v6541_v49 }
 0x784   : > { %v8641_v52 = vmax.f32 %v7180_v46, 0.0  ;;  %v8897_v35 = vmax.f32 %v7820_v47, 0.0 }
 0x785   : > { %v8130_v53 = vmax.f32 %v5902_v50, 0.0  ;;  %v8386_v55 = vmax.f32 %v6542_v51, 0.0 }
 0x786   : > { %v9665_v56 = vpack.c.bf16 %v8641_v52, %v8641_v52  ;;  %v9921_v57 = vpack.c.bf16 %v8897_v35, %v8897_v35 }
 0x787   : > { %v9154_v58 = vpack.c.bf16 %v8130_v53, %v8130_v53  ;;  %v9410_v59 = vpack.c.bf16 %v8386_v55, %v8386_v55 }
 0x788   : > { %10690 = vst.msk [vmem:[%s14775_s10 + $0xb70] sm:$0xf] %vm9957_vm3, %v9665_v56 }
 0x789   : > { %10946 = vst.msk [vmem:[%s14775_s10 + $0xf70] sm:$0xf] %vm9957_vm3, %v9921_v57  ;;  %v7181_v61 = vpop.f32.mrf.mxu2  ;;  %v7821_v62 = vpop.f32.mrf.mxu3 }
 0x78a   : > { %10179 = vst.msk [vmem:[%s14775_s10 + $0x374] sm:$0xf] %vm9957_vm3, %v9154_v58  ;;  %v7182_v1 = vadd.f32 %v18315_v7, %v7181_v61  ;;  %v7822_v2 = vadd.f32 %v18315_v7, %v7821_v62  ;;  %v5904_v3 = vpop.f32.mrf.mxu0  ;;  %v6544_v4 = vpop.f32.mrf.mxu1 }
 0x78b   : > { %10435 = vst.msk [vmem:[%s14775_s10 + $0x774] sm:$0xf] %vm9957_vm3, %v9410_v59  ;;  %v5905_v6 = vadd.f32 %v18315_v7, %v5904_v3  ;;  %v6545_v54 = vadd.f32 %v18315_v7, %v6544_v4 }
 0x78c   : > { %v8642_v60 = vmax.f32 %v7182_v1, 0.0  ;;  %v8898_v9 = vmax.f32 %v7822_v2, 0.0 }
 0x78d   : > { %v8131_v10 = vmax.f32 %v5905_v6, 0.0  ;;  %v8387_v11 = vmax.f32 %v6545_v54, 0.0  ;;  %13504 = vmatmul.msk.bf16.gmra.mxu0 %vm3796_vm2, %v14033_v45  ;;  %13632 = vmatmul.msk.bf16.gmra.mxu1 %vm3796_vm2, %v14161_v63  ;;  %v14035_v54 = vld [vmem:[%s14693_s5 + $0x3c8] sm:$0xff] }
 0x78e   : > { %v9666_v12 = vpack.c.bf16 %v8642_v60, %v8642_v60  ;;  %v9922_v13 = vpack.c.bf16 %v8898_v9, %v8898_v9  ;;  %13760 = vmatmul.msk.bf16.gmra.mxu2 %vm3796_vm2, %v14289_v40  ;;  %13888 = vmatmul.msk.bf16.gmra.mxu3 %vm3796_vm2, %v14417_v5  ;;  %v14163_v60 = vld [vmem:[%s14693_s5 + $0x7c8] sm:$0xff] }
 0x78f   : > { %v9155_v14 = vpack.c.bf16 %v8131_v10, %v8131_v10  ;;  %v9411_v15 = vpack.c.bf16 %v8387_v11, %v8387_v11 }
 0x790   : > { %10691 = vst.msk [vmem:[%s14775_s10 + $0xb74] sm:$0xf] %vm9957_vm3, %v9666_v12 }
 0x791   : > { %10947 = vst.msk [vmem:[%s14775_s10 + $0xf74] sm:$0xf] %vm9957_vm3, %v9922_v13  ;;  %v7184_v0 = vpop.f32.mrf.mxu2  ;;  %v7824_v16 = vpop.f32.mrf.mxu3  ;;  %v14291_v13 = vld [vmem:[%s14693_s5 + $0xbc8] sm:$0xff] }
 0x792   : > { %10180 = vst.msk [vmem:[%s14775_s10 + $0x378] sm:$0xf] %vm9957_vm3, %v9155_v14  ;;  %v7185_v18 = vadd.f32 %v18315_v7, %v7184_v0  ;;  %v7825_v19 = vadd.f32 %v18315_v7, %v7824_v16  ;;  %v5906_v20 = vpop.f32.mrf.mxu0  ;;  %v6546_v21 = vpop.f32.mrf.mxu1  ;;  %v14419_v14 = vld [vmem:[%s14693_s5 + $0xfc8] sm:$0xff] }
 0x793   : > { %10436 = vst.msk [vmem:[%s14775_s10 + $0x778] sm:$0xf] %vm9957_vm3, %v9411_v15  ;;  %v5907_v22 = vadd.f32 %v18315_v7, %v5906_v20  ;;  %v6547_v23 = vadd.f32 %v18315_v7, %v6546_v21 }
 0x794   : > { %v8643_v24 = vmax.f32 %v7185_v18, 0.0  ;;  %v8899_v8 = vmax.f32 %v7825_v19, 0.0 }
 0x795   : > { %v8132_v25 = vmax.f32 %v5907_v22, 0.0  ;;  %v8388_v27 = vmax.f32 %v6547_v23, 0.0 }
 0x796   : > { %v9667_v28 = vpack.c.bf16 %v8643_v24, %v8643_v24  ;;  %v9923_v29 = vpack.c.bf16 %v8899_v8, %v8899_v8 }
 0x797   : > { %v9156_v30 = vpack.c.bf16 %v8132_v25, %v8132_v25  ;;  %v9412_v31 = vpack.c.bf16 %v8388_v27, %v8388_v27 }
 0x798   : > { %10692 = vst.msk [vmem:[%s14775_s10 + $0xb78] sm:$0xf] %vm9957_vm3, %v9667_v28 }
 0x799   : > { %10948 = vst.msk [vmem:[%s14775_s10 + $0xf78] sm:$0xf] %vm9957_vm3, %v9923_v29  ;;  %v7186_v32 = vpop.f32.mrf.mxu2  ;;  %v7826_v33 = vpop.f32.mrf.mxu3 }
 0x79a   : > { %10181 = vst.msk [vmem:[%s14775_s10 + $0x37c] sm:$0xf] %vm9957_vm3, %v9156_v30  ;;  %v7187_v36 = vadd.f32 %v18315_v7, %v7186_v32  ;;  %v7827_v37 = vadd.f32 %v18315_v7, %v7826_v33  ;;  %v5909_v38 = vpop.f32.mrf.mxu0  ;;  %v6549_v39 = vpop.f32.mrf.mxu1 }
 0x79b   : > { %10437 = vst.msk [vmem:[%s14775_s10 + $0x77c] sm:$0xf] %vm9957_vm3, %v9412_v31  ;;  %v5910_v43 = vadd.f32 %v18315_v7, %v5909_v38  ;;  %v6550_v26 = vadd.f32 %v18315_v7, %v6549_v39 }
 0x79c   : > { %v8644_v44 = vmax.f32 %v7187_v36, 0.0  ;;  %v8900_v46 = vmax.f32 %v7827_v37, 0.0 }
 0x79d   : > { %v8133_v47 = vmax.f32 %v5910_v43, 0.0  ;;  %v8389_v48 = vmax.f32 %v6550_v26, 0.0  ;;  %13505 = vmatmul.msk.bf16.gmra.mxu0 %vm3796_vm2, %v14034_v17  ;;  %13633 = vmatmul.msk.bf16.gmra.mxu1 %vm3796_vm2, %v14162_v34  ;;  %v14036_v26 = vld [vmem:[%s14693_s5 + $0x3d0] sm:$0xff] }
 0x79e   : > { %v9668_v49 = vpack.c.bf16 %v8644_v44, %v8644_v44  ;;  %v9924_v50 = vpack.c.bf16 %v8900_v46, %v8900_v46  ;;  %13761 = vmatmul.msk.bf16.gmra.mxu2 %vm3796_vm2, %v14290_v41  ;;  %13889 = vmatmul.msk.bf16.gmra.mxu3 %vm3796_vm2, %v14418_v42  ;;  %v14164_v44 = vld [vmem:[%s14693_s5 + $0x7d0] sm:$0xff] }
 0x79f   : > { %v9157_v51 = vpack.c.bf16 %v8133_v47, %v8133_v47  ;;  %v9413_v52 = vpack.c.bf16 %v8389_v48, %v8389_v48 }
 0x7a0   : > { %10693 = vst.msk [vmem:[%s14775_s10 + $0xb7c] sm:$0xf] %vm9957_vm3, %v9668_v49 }
 0x7a1   : > { %10949 = vst.msk [vmem:[%s14775_s10 + $0xf7c] sm:$0xf] %vm9957_vm3, %v9924_v50  ;;  %v7189_v35 = vpop.f32.mrf.mxu2  ;;  %v7829_v53 = vpop.f32.mrf.mxu3  ;;  %v14292_v50 = vld [vmem:[%s14693_s5 + $0xbd0] sm:$0xff] }
 0x7a2   : > { %10182 = vst.msk [vmem:[%s14775_s10 + $0x380] sm:$0xf] %vm9957_vm3, %v9157_v51  ;;  %v7190_v55 = vadd.f32 %v18315_v7, %v7189_v35  ;;  %v7830_v56 = vadd.f32 %v18315_v7, %v7829_v53  ;;  %v5911_v57 = vpop.f32.mrf.mxu0  ;;  %v6551_v58 = vpop.f32.mrf.mxu1  ;;  %v14420_v51 = vld [vmem:[%s14693_s5 + $0xfd0] sm:$0xff] }
 0x7a3   : > { %10438 = vst.msk [vmem:[%s14775_s10 + $0x780] sm:$0xf] %vm9957_vm3, %v9413_v52  ;;  %v5912_v59 = vadd.f32 %v18315_v7, %v5911_v57  ;;  %v6552_v61 = vadd.f32 %v18315_v7, %v6551_v58 }
 0x7a4   : > { %v8645_v62 = vmax.f32 %v7190_v55, 0.0  ;;  %v8901_v45 = vmax.f32 %v7830_v56, 0.0 }
 0x7a5   : > { %v8134_v63 = vmax.f32 %v5912_v59, 0.0  ;;  %v8390_v1 = vmax.f32 %v6552_v61, 0.0 }
 0x7a6   : > { %v9669_v2 = vpack.c.bf16 %v8645_v62, %v8645_v62  ;;  %v9925_v3 = vpack.c.bf16 %v8901_v45, %v8901_v45 }
 0x7a7   : > { %v9158_v4 = vpack.c.bf16 %v8134_v63, %v8134_v63  ;;  %v9414_v40 = vpack.c.bf16 %v8390_v1, %v8390_v1 }
 0x7a8   : > { %10694 = vst.msk [vmem:[%s14775_s10 + $0xb80] sm:$0xf] %vm9957_vm3, %v9669_v2 }
 0x7a9   : > { %10950 = vst.msk [vmem:[%s14775_s10 + $0xf80] sm:$0xf] %vm9957_vm3, %v9925_v3  ;;  %v7191_v5 = vpop.f32.mrf.mxu2  ;;  %v7831_v6 = vpop.f32.mrf.mxu3 }
 0x7aa   : > { %10183 = vst.msk [vmem:[%s14775_s10 + $0x384] sm:$0xf] %vm9957_vm3, %v9158_v4  ;;  %v7192_v9 = vadd.f32 %v18315_v7, %v7191_v5  ;;  %v7832_v10 = vadd.f32 %v18315_v7, %v7831_v6  ;;  %v5914_v11 = vpop.f32.mrf.mxu0  ;;  %v6554_v12 = vpop.f32.mrf.mxu1 }
 0x7ab   : > { %10439 = vst.msk [vmem:[%s14775_s10 + $0x784] sm:$0xf] %vm9957_vm3, %v9414_v40  ;;  %v5915_v15 = vadd.f32 %v18315_v7, %v5914_v11  ;;  %v6555_v0 = vadd.f32 %v18315_v7, %v6554_v12 }
 0x7ac   : > { %v8646_v16 = vmax.f32 %v7192_v9, 0.0  ;;  %v8902_v18 = vmax.f32 %v7832_v10, 0.0 }
 0x7ad   : > { %v8135_v19 = vmax.f32 %v5915_v15, 0.0  ;;  %v8391_v20 = vmax.f32 %v6555_v0, 0.0  ;;  %13506 = vmatmul.msk.bf16.gmra.mxu0 %vm3796_vm2, %v14035_v54  ;;  %13634 = vmatmul.msk.bf16.gmra.mxu1 %vm3796_vm2, %v14163_v60  ;;  %v14037_v0 = vld [vmem:[%s14693_s5 + $0x3d8] sm:$0xff] }
 0x7ae   : > { %v9670_v21 = vpack.c.bf16 %v8646_v16, %v8646_v16  ;;  %v9926_v22 = vpack.c.bf16 %v8902_v18, %v8902_v18  ;;  %13762 = vmatmul.msk.bf16.gmra.mxu2 %vm3796_vm2, %v14291_v13  ;;  %13890 = vmatmul.msk.bf16.gmra.mxu3 %vm3796_vm2, %v14419_v14  ;;  %v14165_v16 = vld [vmem:[%s14693_s5 + $0x7d8] sm:$0xff] }
 0x7af   : > { %v9159_v23 = vpack.c.bf16 %v8135_v19, %v8135_v19  ;;  %v9415_v24 = vpack.c.bf16 %v8391_v20, %v8391_v20 }
 0x7b0   : > { %10695 = vst.msk [vmem:[%s14775_s10 + $0xb84] sm:$0xf] %vm9957_vm3, %v9670_v21 }
 0x7b1   : > { %10951 = vst.msk [vmem:[%s14775_s10 + $0xf84] sm:$0xf] %vm9957_vm3, %v9926_v22  ;;  %v7194_v8 = vpop.f32.mrf.mxu2  ;;  %v7834_v25 = vpop.f32.mrf.mxu3  ;;  %v14293_v22 = vld [vmem:[%s14693_s5 + $0xbd8] sm:$0xff] }
 0x7b2   : > { %10184 = vst.msk [vmem:[%s14775_s10 + $0x388] sm:$0xf] %vm9957_vm3, %v9159_v23  ;;  %v7195_v27 = vadd.f32 %v18315_v7, %v7194_v8  ;;  %v7835_v28 = vadd.f32 %v18315_v7, %v7834_v25  ;;  %v5916_v29 = vpop.f32.mrf.mxu0  ;;  %v6556_v30 = vpop.f32.mrf.mxu1  ;;  %v14421_v23 = vld [vmem:[%s14693_s5 + $0xfd8] sm:$0xff] }
 0x7b3   : > { %10440 = vst.msk [vmem:[%s14775_s10 + $0x788] sm:$0xf] %vm9957_vm3, %v9415_v24  ;;  %v5917_v31 = vadd.f32 %v18315_v7, %v5916_v29  ;;  %v6557_v32 = vadd.f32 %v18315_v7, %v6556_v30 }
 0x7b4   : > { %v8647_v33 = vmax.f32 %v7195_v27, 0.0  ;;  %v8903_v17 = vmax.f32 %v7835_v28, 0.0 }
 0x7b5   : > { %v8136_v34 = vmax.f32 %v5917_v31, 0.0  ;;  %v8392_v36 = vmax.f32 %v6557_v32, 0.0 }
 0x7b6   : > { %v9671_v37 = vpack.c.bf16 %v8647_v33, %v8647_v33  ;;  %v9927_v38 = vpack.c.bf16 %v8903_v17, %v8903_v17 }
 0x7b7   : > { %v9160_v39 = vpack.c.bf16 %v8136_v34, %v8136_v34  ;;  %v9416_v41 = vpack.c.bf16 %v8392_v36, %v8392_v36 }
 0x7b8   : > { %10696 = vst.msk [vmem:[%s14775_s10 + $0xb88] sm:$0xf] %vm9957_vm3, %v9671_v37 }
 0x7b9   : > { %10952 = vst.msk [vmem:[%s14775_s10 + $0xf88] sm:$0xf] %vm9957_vm3, %v9927_v38  ;;  %v7196_v42 = vpop.f32.mrf.mxu2  ;;  %v7836_v43 = vpop.f32.mrf.mxu3 }
 0x7ba   : > { %10185 = vst.msk [vmem:[%s14775_s10 + $0x38c] sm:$0xf] %vm9957_vm3, %v9160_v39  ;;  %v7197_v46 = vadd.f32 %v18315_v7, %v7196_v42  ;;  %v7837_v47 = vadd.f32 %v18315_v7, %v7836_v43  ;;  %v5919_v48 = vpop.f32.mrf.mxu0  ;;  %v6559_v49 = vpop.f32.mrf.mxu1 }
 0x7bb   : > { %10441 = vst.msk [vmem:[%s14775_s10 + $0x78c] sm:$0xf] %vm9957_vm3, %v9416_v41  ;;  %v5920_v52 = vadd.f32 %v18315_v7, %v5919_v48  ;;  %v6560_v35 = vadd.f32 %v18315_v7, %v6559_v49 }
 0x7bc   : > { %v8648_v53 = vmax.f32 %v7197_v46, 0.0  ;;  %v8904_v55 = vmax.f32 %v7837_v47, 0.0 }
 0x7bd   : > { %v8137_v56 = vmax.f32 %v5920_v52, 0.0  ;;  %v8393_v57 = vmax.f32 %v6560_v35, 0.0  ;;  %13507 = vmatmul.msk.bf16.gmra.mxu0 %vm3796_vm2, %v14036_v26  ;;  %13635 = vmatmul.msk.bf16.gmra.mxu1 %vm3796_vm2, %v14164_v44  ;;  %v14038_v35 = vld [vmem:[%s14693_s5 + $0x3e0] sm:$0xff] }
 0x7be   : > { %v9672_v58 = vpack.c.bf16 %v8648_v53, %v8648_v53  ;;  %v9928_v59 = vpack.c.bf16 %v8904_v55, %v8904_v55  ;;  %13763 = vmatmul.msk.bf16.gmra.mxu2 %vm3796_vm2, %v14292_v50  ;;  %13891 = vmatmul.msk.bf16.gmra.mxu3 %vm3796_vm2, %v14420_v51  ;;  %v14166_v53 = vld [vmem:[%s14693_s5 + $0x7e0] sm:$0xff] }
 0x7bf   : > { %v9161_v61 = vpack.c.bf16 %v8137_v56, %v8137_v56  ;;  %v9417_v62 = vpack.c.bf16 %v8393_v57, %v8393_v57 }
 0x7c0   : > { %10697 = vst.msk [vmem:[%s14775_s10 + $0xb8c] sm:$0xf] %vm9957_vm3, %v9672_v58 }
 0x7c1   : > { %10953 = vst.msk [vmem:[%s14775_s10 + $0xf8c] sm:$0xf] %vm9957_vm3, %v9928_v59  ;;  %v7199_v45 = vpop.f32.mrf.mxu2  ;;  %v7839_v63 = vpop.f32.mrf.mxu3  ;;  %v14294_v59 = vld [vmem:[%s14693_s5 + $0xbe0] sm:$0xff] }
 0x7c2   : > { %10186 = vst.msk [vmem:[%s14775_s10 + $0x390] sm:$0xf] %vm9957_vm3, %v9161_v61  ;;  %v7200_v1 = vadd.f32 %v18315_v7, %v7199_v45  ;;  %v7840_v2 = vadd.f32 %v18315_v7, %v7839_v63  ;;  %v5921_v3 = vpop.f32.mrf.mxu0  ;;  %v6561_v4 = vpop.f32.mrf.mxu1  ;;  %v14422_v61 = vld [vmem:[%s14693_s5 + $0xfe0] sm:$0xff] }
 0x7c3   : > { %10442 = vst.msk [vmem:[%s14775_s10 + $0x790] sm:$0xf] %vm9957_vm3, %v9417_v62  ;;  %v5922_v40 = vadd.f32 %v18315_v7, %v5921_v3  ;;  %v6562_v5 = vadd.f32 %v18315_v7, %v6561_v4 }
 0x7c4   : > { %v8649_v6 = vmax.f32 %v7200_v1, 0.0  ;;  %v8905_v54 = vmax.f32 %v7840_v2, 0.0 }
 0x7c5   : > { %v8138_v60 = vmax.f32 %v5922_v40, 0.0  ;;  %v8394_v9 = vmax.f32 %v6562_v5, 0.0 }
 0x7c6   : > { %v9673_v10 = vpack.c.bf16 %v8649_v6, %v8649_v6  ;;  %v9929_v11 = vpack.c.bf16 %v8905_v54, %v8905_v54 }
 0x7c7   : > { %v9162_v12 = vpack.c.bf16 %v8138_v60, %v8138_v60  ;;  %v9418_v13 = vpack.c.bf16 %v8394_v9, %v8394_v9 }
 0x7c8   : > { %10698 = vst.msk [vmem:[%s14775_s10 + $0xb90] sm:$0xf] %vm9957_vm3, %v9673_v10 }
 0x7c9   : > { %10954 = vst.msk [vmem:[%s14775_s10 + $0xf90] sm:$0xf] %vm9957_vm3, %v9929_v11  ;;  %v7201_v14 = vpop.f32.mrf.mxu2  ;;  %v7841_v15 = vpop.f32.mrf.mxu3 }
 0x7ca   : > { %10187 = vst.msk [vmem:[%s14775_s10 + $0x394] sm:$0xf] %vm9957_vm3, %v9162_v12  ;;  %v7202_v18 = vadd.f32 %v18315_v7, %v7201_v14  ;;  %v7842_v19 = vadd.f32 %v18315_v7, %v7841_v15  ;;  %v5924_v20 = vpop.f32.mrf.mxu0  ;;  %v6564_v21 = vpop.f32.mrf.mxu1 }
 0x7cb   : > { %10443 = vst.msk [vmem:[%s14775_s10 + $0x794] sm:$0xf] %vm9957_vm3, %v9418_v13  ;;  %v5925_v24 = vadd.f32 %v18315_v7, %v5924_v20  ;;  %v6565_v8 = vadd.f32 %v18315_v7, %v6564_v21 }
 0x7cc   : > { %v8650_v25 = vmax.f32 %v7202_v18, 0.0  ;;  %v8906_v27 = vmax.f32 %v7842_v19, 0.0 }
 0x7cd   : > { %v8139_v28 = vmax.f32 %v5925_v24, 0.0  ;;  %v8395_v29 = vmax.f32 %v6565_v8, 0.0  ;;  %13508 = vmatmul.msk.bf16.gmra.mxu0 %vm3796_vm2, %v14037_v0  ;;  %13636 = vmatmul.msk.bf16.gmra.mxu1 %vm3796_vm2, %v14165_v16  ;;  %v14039_v8 = vld [vmem:[%s14693_s5 + $0x3e8] sm:$0xff] }
 0x7ce   : > { %v9674_v30 = vpack.c.bf16 %v8650_v25, %v8650_v25  ;;  %v9930_v31 = vpack.c.bf16 %v8906_v27, %v8906_v27  ;;  %13764 = vmatmul.msk.bf16.gmra.mxu2 %vm3796_vm2, %v14293_v22  ;;  %13892 = vmatmul.msk.bf16.gmra.mxu3 %vm3796_vm2, %v14421_v23  ;;  %v14167_v25 = vld [vmem:[%s14693_s5 + $0x7e8] sm:$0xff] }
 0x7cf   : > { %v9163_v32 = vpack.c.bf16 %v8139_v28, %v8139_v28  ;;  %v9419_v33 = vpack.c.bf16 %v8395_v29, %v8395_v29 }
 0x7d0   : > { %10699 = vst.msk [vmem:[%s14775_s10 + $0xb94] sm:$0xf] %vm9957_vm3, %v9674_v30 }
 0x7d1   : > { %10955 = vst.msk [vmem:[%s14775_s10 + $0xf94] sm:$0xf] %vm9957_vm3, %v9930_v31  ;;  %v7204_v17 = vpop.f32.mrf.mxu2  ;;  %v7844_v34 = vpop.f32.mrf.mxu3  ;;  %v14295_v31 = vld [vmem:[%s14693_s5 + $0xbe8] sm:$0xff] }
 0x7d2   : > { %10188 = vst.msk [vmem:[%s14775_s10 + $0x398] sm:$0xf] %vm9957_vm3, %v9163_v32  ;;  %v7205_v36 = vadd.f32 %v18315_v7, %v7204_v17  ;;  %v7845_v37 = vadd.f32 %v18315_v7, %v7844_v34  ;;  %v5926_v38 = vpop.f32.mrf.mxu0  ;;  %v6566_v39 = vpop.f32.mrf.mxu1  ;;  %v14423_v32 = vld [vmem:[%s14693_s5 + $0xfe8] sm:$0xff] }
 0x7d3   : > { %10444 = vst.msk [vmem:[%s14775_s10 + $0x798] sm:$0xf] %vm9957_vm3, %v9419_v33  ;;  %v5927_v41 = vadd.f32 %v18315_v7, %v5926_v38  ;;  %v6567_v42 = vadd.f32 %v18315_v7, %v6566_v39 }
 0x7d4   : > { %v8651_v43 = vmax.f32 %v7205_v36, 0.0  ;;  %v8907_v26 = vmax.f32 %v7845_v37, 0.0 }
 0x7d5   : > { %v8140_v44 = vmax.f32 %v5927_v41, 0.0  ;;  %v8396_v46 = vmax.f32 %v6567_v42, 0.0 }
 0x7d6   : > { %v9675_v47 = vpack.c.bf16 %v8651_v43, %v8651_v43  ;;  %v9931_v48 = vpack.c.bf16 %v8907_v26, %v8907_v26 }
 0x7d7   : > { %v9164_v49 = vpack.c.bf16 %v8140_v44, %v8140_v44  ;;  %v9420_v50 = vpack.c.bf16 %v8396_v46, %v8396_v46 }
 0x7d8   : > { %10700 = vst.msk [vmem:[%s14775_s10 + $0xb98] sm:$0xf] %vm9957_vm3, %v9675_v47 }
 0x7d9   : > { %10956 = vst.msk [vmem:[%s14775_s10 + $0xf98] sm:$0xf] %vm9957_vm3, %v9931_v48  ;;  %v7206_v51 = vpop.f32.mrf.mxu2  ;;  %v7846_v52 = vpop.f32.mrf.mxu3 }
 0x7da   : > { %10189 = vst.msk [vmem:[%s14775_s10 + $0x39c] sm:$0xf] %vm9957_vm3, %v9164_v49  ;;  %v7207_v55 = vadd.f32 %v18315_v7, %v7206_v51  ;;  %v7847_v56 = vadd.f32 %v18315_v7, %v7846_v52  ;;  %v5929_v57 = vpop.f32.mrf.mxu0  ;;  %v6569_v58 = vpop.f32.mrf.mxu1 }
 0x7db   : > { %10445 = vst.msk [vmem:[%s14775_s10 + $0x79c] sm:$0xf] %vm9957_vm3, %v9420_v50  ;;  %v5930_v62 = vadd.f32 %v18315_v7, %v5929_v57  ;;  %v6570_v45 = vadd.f32 %v18315_v7, %v6569_v58 }
 0x7dc   : > { %v8652_v63 = vmax.f32 %v7207_v55, 0.0  ;;  %v8908_v1 = vmax.f32 %v7847_v56, 0.0 }
 0x7dd   : > { %v8141_v2 = vmax.f32 %v5930_v62, 0.0  ;;  %v8397_v3 = vmax.f32 %v6570_v45, 0.0  ;;  %13509 = vmatmul.msk.bf16.gmra.mxu0 %vm3796_vm2, %v14038_v35  ;;  %13637 = vmatmul.msk.bf16.gmra.mxu1 %vm3796_vm2, %v14166_v53  ;;  %v14040_v45 = vld [vmem:[%s14693_s5 + $0x3f0] sm:$0xff] }
 0x7de   : > { %v9676_v4 = vpack.c.bf16 %v8652_v63, %v8652_v63  ;;  %v9932_v40 = vpack.c.bf16 %v8908_v1, %v8908_v1  ;;  %13765 = vmatmul.msk.bf16.gmra.mxu2 %vm3796_vm2, %v14294_v59  ;;  %13893 = vmatmul.msk.bf16.gmra.mxu3 %vm3796_vm2, %v14422_v61  ;;  %v14168_v63 = vld [vmem:[%s14693_s5 + $0x7f0] sm:$0xff] }
 0x7df   : > { %v9165_v5 = vpack.c.bf16 %v8141_v2, %v8141_v2  ;;  %v9421_v6 = vpack.c.bf16 %v8397_v3, %v8397_v3 }
 0x7e0   : > { %10701 = vst.msk [vmem:[%s14775_s10 + $0xb9c] sm:$0xf] %vm9957_vm3, %v9676_v4 }
 0x7e1   : > { %10957 = vst.msk [vmem:[%s14775_s10 + $0xf9c] sm:$0xf] %vm9957_vm3, %v9932_v40  ;;  %v7209_v54 = vpop.f32.mrf.mxu2  ;;  %v7849_v60 = vpop.f32.mrf.mxu3  ;;  %v14296_v40 = vld [vmem:[%s14693_s5 + $0xbf0] sm:$0xff] }
 0x7e2   : > { %10190 = vst.msk [vmem:[%s14775_s10 + $0x3a0] sm:$0xf] %vm9957_vm3, %v9165_v5  ;;  %v7210_v9 = vadd.f32 %v18315_v7, %v7209_v54  ;;  %v7850_v10 = vadd.f32 %v18315_v7, %v7849_v60  ;;  %v5931_v11 = vpop.f32.mrf.mxu0  ;;  %v6571_v12 = vpop.f32.mrf.mxu1  ;;  %v14424_v5 = vld [vmem:[%s14693_s5 + $0xff0] sm:$0xff] }
 0x7e3   : > { %10446 = vst.msk [vmem:[%s14775_s10 + $0x7a0] sm:$0xf] %vm9957_vm3, %v9421_v6  ;;  %v5932_v13 = vadd.f32 %v18315_v7, %v5931_v11  ;;  %v6572_v14 = vadd.f32 %v18315_v7, %v6571_v12 }
 0x7e4   : > { %v8653_v15 = vmax.f32 %v7210_v9, 0.0  ;;  %v8909_v0 = vmax.f32 %v7850_v10, 0.0 }
 0x7e5   : > { %v8142_v16 = vmax.f32 %v5932_v13, 0.0  ;;  %v8398_v18 = vmax.f32 %v6572_v14, 0.0 }
 0x7e6   : > { %v9677_v19 = vpack.c.bf16 %v8653_v15, %v8653_v15  ;;  %v9933_v20 = vpack.c.bf16 %v8909_v0, %v8909_v0 }
 0x7e7   : > { %v9166_v21 = vpack.c.bf16 %v8142_v16, %v8142_v16  ;;  %v9422_v22 = vpack.c.bf16 %v8398_v18, %v8398_v18 }
 0x7e8   : > { %10702 = vst.msk [vmem:[%s14775_s10 + $0xba0] sm:$0xf] %vm9957_vm3, %v9677_v19 }
 0x7e9   : > { %10958 = vst.msk [vmem:[%s14775_s10 + $0xfa0] sm:$0xf] %vm9957_vm3, %v9933_v20  ;;  %v7211_v23 = vpop.f32.mrf.mxu2  ;;  %v7851_v24 = vpop.f32.mrf.mxu3 }
 0x7ea   : > { %10191 = vst.msk [vmem:[%s14775_s10 + $0x3a4] sm:$0xf] %vm9957_vm3, %v9166_v21  ;;  %v7212_v27 = vadd.f32 %v18315_v7, %v7211_v23  ;;  %v7852_v28 = vadd.f32 %v18315_v7, %v7851_v24  ;;  %v5934_v29 = vpop.f32.mrf.mxu0  ;;  %v6574_v30 = vpop.f32.mrf.mxu1 }
 0x7eb   : > { %10447 = vst.msk [vmem:[%s14775_s10 + $0x7a4] sm:$0xf] %vm9957_vm3, %v9422_v22  ;;  %v5935_v33 = vadd.f32 %v18315_v7, %v5934_v29  ;;  %v6575_v17 = vadd.f32 %v18315_v7, %v6574_v30 }
 0x7ec   : > { %v8654_v34 = vmax.f32 %v7212_v27, 0.0  ;;  %v8910_v36 = vmax.f32 %v7852_v28, 0.0 }
 0x7ed   : > { %v8143_v37 = vmax.f32 %v5935_v33, 0.0  ;;  %v8399_v38 = vmax.f32 %v6575_v17, 0.0  ;;  %13510 = vmatmul.msk.bf16.gmra.mxu0 %vm3796_vm2, %v14039_v8  ;;  %13638 = vmatmul.msk.bf16.gmra.mxu1 %vm3796_vm2, %v14167_v25  ;;  %v14041_v17 = vld [vmem:[%s14693_s5 + $0x3f8] sm:$0xff] }
 0x7ee   : > { %v9678_v39 = vpack.c.bf16 %v8654_v34, %v8654_v34  ;;  %v9934_v41 = vpack.c.bf16 %v8910_v36, %v8910_v36  ;;  %13766 = vmatmul.msk.bf16.gmra.mxu2 %vm3796_vm2, %v14295_v31  ;;  %13894 = vmatmul.msk.bf16.gmra.mxu3 %vm3796_vm2, %v14423_v32  ;;  %v14169_v34 = vld [vmem:[%s14693_s5 + $0x7f8] sm:$0xff] }
 0x7ef   : > { %v9167_v42 = vpack.c.bf16 %v8143_v37, %v8143_v37  ;;  %v9423_v43 = vpack.c.bf16 %v8399_v38, %v8399_v38 }
 0x7f0   : > { %10703 = vst.msk [vmem:[%s14775_s10 + $0xba4] sm:$0xf] %vm9957_vm3, %v9678_v39 }
 0x7f1   : > { %10959 = vst.msk [vmem:[%s14775_s10 + $0xfa4] sm:$0xf] %vm9957_vm3, %v9934_v41  ;;  %v7214_v26 = vpop.f32.mrf.mxu2  ;;  %v7854_v44 = vpop.f32.mrf.mxu3  ;;  %v14297_v41 = vld [vmem:[%s14693_s5 + $0xbf8] sm:$0xff] }
 0x7f2   : > { %10192 = vst.msk [vmem:[%s14775_s10 + $0x3a8] sm:$0xf] %vm9957_vm3, %v9167_v42  ;;  %v7215_v46 = vadd.f32 %v18315_v7, %v7214_v26  ;;  %v7855_v47 = vadd.f32 %v18315_v7, %v7854_v44  ;;  %v5936_v48 = vpop.f32.mrf.mxu0  ;;  %v6576_v49 = vpop.f32.mrf.mxu1  ;;  %v14425_v42 = vld [vmem:[%s14693_s5 + $0xff8] sm:$0xff] }
 0x7f3   : > { %10448 = vst.msk [vmem:[%s14775_s10 + $0x7a8] sm:$0xf] %vm9957_vm3, %v9423_v43  ;;  %v5937_v50 = vadd.f32 %v18315_v7, %v5936_v48  ;;  %v6577_v51 = vadd.f32 %v18315_v7, %v6576_v49 }
 0x7f4   : > { %v8655_v52 = vmax.f32 %v7215_v46, 0.0  ;;  %v8911_v35 = vmax.f32 %v7855_v47, 0.0 }
 0x7f5   : > { %v8144_v53 = vmax.f32 %v5937_v50, 0.0  ;;  %v8400_v55 = vmax.f32 %v6577_v51, 0.0 }
 0x7f6   : > { %v9679_v56 = vpack.c.bf16 %v8655_v52, %v8655_v52  ;;  %v9935_v57 = vpack.c.bf16 %v8911_v35, %v8911_v35 }
 0x7f7   : > { %v9168_v58 = vpack.c.bf16 %v8144_v53, %v8144_v53  ;;  %v9424_v59 = vpack.c.bf16 %v8400_v55, %v8400_v55 }
 0x7f8   : > { %10704 = vst.msk [vmem:[%s14775_s10 + $0xba8] sm:$0xf] %vm9957_vm3, %v9679_v56 }
 0x7f9   : > { %10960 = vst.msk [vmem:[%s14775_s10 + $0xfa8] sm:$0xf] %vm9957_vm3, %v9935_v57  ;;  %v7216_v61 = vpop.f32.mrf.mxu2  ;;  %v7856_v62 = vpop.f32.mrf.mxu3 }
 0x7fa   : > { %10193 = vst.msk [vmem:[%s14775_s10 + $0x3ac] sm:$0xf] %vm9957_vm3, %v9168_v58  ;;  %v7217_v1 = vadd.f32 %v18315_v7, %v7216_v61  ;;  %v7857_v2 = vadd.f32 %v18315_v7, %v7856_v62  ;;  %v5939_v3 = vpop.f32.mrf.mxu0  ;;  %v6579_v4 = vpop.f32.mrf.mxu1 }
 0x7fb   : > { %10449 = vst.msk [vmem:[%s14775_s10 + $0x7ac] sm:$0xf] %vm9957_vm3, %v9424_v59  ;;  %v5940_v6 = vadd.f32 %v18315_v7, %v5939_v3  ;;  %v6580_v54 = vadd.f32 %v18315_v7, %v6579_v4 }
 0x7fc   : > { %v8656_v60 = vmax.f32 %v7217_v1, 0.0  ;;  %v8912_v9 = vmax.f32 %v7857_v2, 0.0 }
 0x7fd   : > { %v8145_v10 = vmax.f32 %v5940_v6, 0.0  ;;  %v8401_v11 = vmax.f32 %v6580_v54, 0.0  ;;  %13511 = vmatmul.msk.bf16.gmra.mxu0 %vm3796_vm2, %v14040_v45  ;;  %13639 = vmatmul.msk.bf16.gmra.mxu1 %vm3796_vm2, %v14168_v63 }
 0x7fe   : > { %v9680_v12 = vpack.c.bf16 %v8656_v60, %v8656_v60  ;;  %v9936_v13 = vpack.c.bf16 %v8912_v9, %v8912_v9  ;;  %13767 = vmatmul.msk.bf16.gmra.mxu2 %vm3796_vm2, %v14296_v40  ;;  %13895 = vmatmul.msk.bf16.gmra.mxu3 %vm3796_vm2, %v14424_v5 }
 0x7ff   : > { %v9169_v14 = vpack.c.bf16 %v8145_v10, %v8145_v10  ;;  %v9425_v15 = vpack.c.bf16 %v8401_v11, %v8401_v11 }
 0x800   : > { %10705 = vst.msk [vmem:[%s14775_s10 + $0xbac] sm:$0xf] %vm9957_vm3, %v9680_v12 }
 0x801   : > { %10961 = vst.msk [vmem:[%s14775_s10 + $0xfac] sm:$0xf] %vm9957_vm3, %v9936_v13  ;;  %v7219_v0 = vpop.f32.mrf.mxu2  ;;  %v7859_v16 = vpop.f32.mrf.mxu3 }
 0x802   : > { %10194 = vst.msk [vmem:[%s14775_s10 + $0x3b0] sm:$0xf] %vm9957_vm3, %v9169_v14  ;;  %v7220_v18 = vadd.f32 %v18315_v7, %v7219_v0  ;;  %v7860_v19 = vadd.f32 %v18315_v7, %v7859_v16  ;;  %v5941_v20 = vpop.f32.mrf.mxu0  ;;  %v6581_v21 = vpop.f32.mrf.mxu1 }
 0x803   : > { %10450 = vst.msk [vmem:[%s14775_s10 + $0x7b0] sm:$0xf] %vm9957_vm3, %v9425_v15  ;;  %v5942_v22 = vadd.f32 %v18315_v7, %v5941_v20  ;;  %v6582_v23 = vadd.f32 %v18315_v7, %v6581_v21 }
 0x804   : > { %v8657_v24 = vmax.f32 %v7220_v18, 0.0  ;;  %v8913_v8 = vmax.f32 %v7860_v19, 0.0 }
 0x805   : > { %v8146_v25 = vmax.f32 %v5942_v22, 0.0  ;;  %v8402_v27 = vmax.f32 %v6582_v23, 0.0 }
 0x806   : > { %v9681_v28 = vpack.c.bf16 %v8657_v24, %v8657_v24  ;;  %v9937_v29 = vpack.c.bf16 %v8913_v8, %v8913_v8 }
 0x807   : > { %v9170_v30 = vpack.c.bf16 %v8146_v25, %v8146_v25  ;;  %v9426_v31 = vpack.c.bf16 %v8402_v27, %v8402_v27 }
 0x808   : > { %10706 = vst.msk [vmem:[%s14775_s10 + $0xbb0] sm:$0xf] %vm9957_vm3, %v9681_v28 }
 0x809   : > { %10962 = vst.msk [vmem:[%s14775_s10 + $0xfb0] sm:$0xf] %vm9957_vm3, %v9937_v29  ;;  %v7221_v32 = vpop.f32.mrf.mxu2  ;;  %v7861_v33 = vpop.f32.mrf.mxu3 }
 0x80a   : > { %10195 = vst.msk [vmem:[%s14775_s10 + $0x3b4] sm:$0xf] %vm9957_vm3, %v9170_v30  ;;  %v7222_v36 = vadd.f32 %v18315_v7, %v7221_v32  ;;  %v7862_v37 = vadd.f32 %v18315_v7, %v7861_v33  ;;  %v5944_v38 = vpop.f32.mrf.mxu0  ;;  %v6584_v39 = vpop.f32.mrf.mxu1 }
 0x80b   : > { %10451 = vst.msk [vmem:[%s14775_s10 + $0x7b4] sm:$0xf] %vm9957_vm3, %v9426_v31  ;;  %v5945_v43 = vadd.f32 %v18315_v7, %v5944_v38  ;;  %v6585_v26 = vadd.f32 %v18315_v7, %v6584_v39 }
 0x80c   : > { %v8658_v44 = vmax.f32 %v7222_v36, 0.0  ;;  %v8914_v46 = vmax.f32 %v7862_v37, 0.0 }
 0x80d   : > { %v8147_v47 = vmax.f32 %v5945_v43, 0.0  ;;  %v8403_v48 = vmax.f32 %v6585_v26, 0.0  ;;  %13512 = vmatmul.msk.bf16.gmra.mxu0 %vm3796_vm2, %v14041_v17  ;;  %13640 = vmatmul.msk.bf16.gmra.mxu1 %vm3796_vm2, %v14169_v34 }
 0x80e   : > { %v9682_v49 = vpack.c.bf16 %v8658_v44, %v8658_v44  ;;  %v9938_v50 = vpack.c.bf16 %v8914_v46, %v8914_v46  ;;  %13768 = vmatmul.msk.bf16.gmra.mxu2 %vm3796_vm2, %v14297_v41  ;;  %13896 = vmatmul.msk.bf16.gmra.mxu3 %vm3796_vm2, %v14425_v42 }
 0x80f   : > { %v9171_v51 = vpack.c.bf16 %v8147_v47, %v8147_v47  ;;  %v9427_v52 = vpack.c.bf16 %v8403_v48, %v8403_v48 }
 0x810   : > { %10707 = vst.msk [vmem:[%s14775_s10 + $0xbb4] sm:$0xf] %vm9957_vm3, %v9682_v49 }
 0x811   : > { %10963 = vst.msk [vmem:[%s14775_s10 + $0xfb4] sm:$0xf] %vm9957_vm3, %v9938_v50  ;;  %v7224_v35 = vpop.f32.mrf.mxu2  ;;  %v7864_v53 = vpop.f32.mrf.mxu3 }
 0x812   : > { %10196 = vst.msk [vmem:[%s14775_s10 + $0x3b8] sm:$0xf] %vm9957_vm3, %v9171_v51  ;;  %v7225_v55 = vadd.f32 %v18315_v7, %v7224_v35  ;;  %v7865_v56 = vadd.f32 %v18315_v7, %v7864_v53  ;;  %v5946_v57 = vpop.f32.mrf.mxu0  ;;  %v6586_v58 = vpop.f32.mrf.mxu1 }
 0x813   : > { %10452 = vst.msk [vmem:[%s14775_s10 + $0x7b8] sm:$0xf] %vm9957_vm3, %v9427_v52  ;;  %v5947_v59 = vadd.f32 %v18315_v7, %v5946_v57  ;;  %v6587_v61 = vadd.f32 %v18315_v7, %v6586_v58 }
 0x814   : > { %v8659_v62 = vmax.f32 %v7225_v55, 0.0  ;;  %v8915_v45 = vmax.f32 %v7865_v56, 0.0 }
 0x815   : > { %v8148_v63 = vmax.f32 %v5947_v59, 0.0  ;;  %v8404_v1 = vmax.f32 %v6587_v61, 0.0 }
 0x816   : > { %v9683_v2 = vpack.c.bf16 %v8659_v62, %v8659_v62  ;;  %v9939_v3 = vpack.c.bf16 %v8915_v45, %v8915_v45 }
 0x817   : > { %v9172_v4 = vpack.c.bf16 %v8148_v63, %v8148_v63  ;;  %v9428_v40 = vpack.c.bf16 %v8404_v1, %v8404_v1 }
 0x818   : > { %10708 = vst.msk [vmem:[%s14775_s10 + $0xbb8] sm:$0xf] %vm9957_vm3, %v9683_v2 }
 0x819   : > { %10964 = vst.msk [vmem:[%s14775_s10 + $0xfb8] sm:$0xf] %vm9957_vm3, %v9939_v3  ;;  %v7226_v5 = vpop.f32.mrf.mxu2  ;;  %v7866_v6 = vpop.f32.mrf.mxu3 }
 0x81a   : > { %10197 = vst.msk [vmem:[%s14775_s10 + $0x3bc] sm:$0xf] %vm9957_vm3, %v9172_v4  ;;  %v7227_v54 = vadd.f32 %v18315_v7, %v7226_v5  ;;  %v7867_v60 = vadd.f32 %v18315_v7, %v7866_v6  ;;  %v5949_v9 = vpop.f32.mrf.mxu0  ;;  %v6589_v10 = vpop.f32.mrf.mxu1 }
 0x81b   : > { %10453 = vst.msk [vmem:[%s14775_s10 + $0x7bc] sm:$0xf] %vm9957_vm3, %v9428_v40  ;;  %v5950_v11 = vadd.f32 %v18315_v7, %v5949_v9  ;;  %v6590_v12 = vadd.f32 %v18315_v7, %v6589_v10  ;;  %v18664_v7 = vld [vmem:[%s18998_s2] ss:$0 sm:$0xff] }
 0x81c   : > { %v8660_v13 = vmax.f32 %v7227_v54, 0.0  ;;  %v8916_v14 = vmax.f32 %v7867_v60, 0.0 }
 0x81d   : > { %v8149_v15 = vmax.f32 %v5950_v11, 0.0  ;;  %v8405_v0 = vmax.f32 %v6590_v12, 0.0 }
 0x81e   : > { %v9684_v16 = vpack.c.bf16 %v8660_v13, %v8660_v13  ;;  %v9940_v18 = vpack.c.bf16 %v8916_v14, %v8916_v14 }
 0x81f   : > { %v9173_v19 = vpack.c.bf16 %v8149_v15, %v8149_v15  ;;  %v9429_v20 = vpack.c.bf16 %v8405_v0, %v8405_v0 }
 0x820   : > { %10709 = vst.msk [vmem:[%s14775_s10 + $0xbbc] sm:$0xf] %vm9957_vm3, %v9684_v16 }
 0x821   : > { %10965 = vst.msk [vmem:[%s14775_s10 + $0xfbc] sm:$0xf] %vm9957_vm3, %v9940_v18  ;;  %v7229_v21 = vpop.f32.mrf.mxu2  ;;  %v7869_v22 = vpop.f32.mrf.mxu3 }
 0x822   : > { %10198 = vst.msk [vmem:[%s14775_s10 + $0x3c0] sm:$0xf] %vm9957_vm3, %v9173_v19  ;;  %v7230_v23 = vadd.f32 %v18664_v7, %v7229_v21  ;;  %v7870_v24 = vadd.f32 %v18664_v7, %v7869_v22  ;;  %v5951_v8 = vpop.f32.mrf.mxu0  ;;  %v6591_v25 = vpop.f32.mrf.mxu1 }
 0x823   : > { %10454 = vst.msk [vmem:[%s14775_s10 + $0x7c0] sm:$0xf] %vm9957_vm3, %v9429_v20  ;;  %v5952_v27 = vadd.f32 %v18664_v7, %v5951_v8  ;;  %v6592_v28 = vadd.f32 %v18664_v7, %v6591_v25 }
 0x824   : > { %v8661_v29 = vmax.f32 %v7230_v23, 0.0  ;;  %v8917_v30 = vmax.f32 %v7870_v24, 0.0 }
 0x825   : > { %v8150_v31 = vmax.f32 %v5952_v27, 0.0  ;;  %v8406_v32 = vmax.f32 %v6592_v28, 0.0 }
 0x826   : > { %v9685_v33 = vpack.c.bf16 %v8661_v29, %v8661_v29  ;;  %v9941_v17 = vpack.c.bf16 %v8917_v30, %v8917_v30 }
 0x827   : > { %v9174_v34 = vpack.c.bf16 %v8150_v31, %v8150_v31  ;;  %v9430_v36 = vpack.c.bf16 %v8406_v32, %v8406_v32 }
 0x828   : > { %10710 = vst.msk [vmem:[%s14775_s10 + $0xbc0] sm:$0xf] %vm9957_vm3, %v9685_v33 }
 0x829   : > { %10966 = vst.msk [vmem:[%s14775_s10 + $0xfc0] sm:$0xf] %vm9957_vm3, %v9941_v17  ;;  %v7231_v37 = vpop.f32.mrf.mxu2  ;;  %v7871_v38 = vpop.f32.mrf.mxu3 }
 0x82a   : > { %10199 = vst.msk [vmem:[%s14775_s10 + $0x3c4] sm:$0xf] %vm9957_vm3, %v9174_v34  ;;  %v7232_v39 = vadd.f32 %v18664_v7, %v7231_v37  ;;  %v7872_v41 = vadd.f32 %v18664_v7, %v7871_v38  ;;  %v5954_v42 = vpop.f32.mrf.mxu0  ;;  %v6594_v43 = vpop.f32.mrf.mxu1 }
 0x82b   : > { %10455 = vst.msk [vmem:[%s14775_s10 + $0x7c4] sm:$0xf] %vm9957_vm3, %v9430_v36  ;;  %v5955_v26 = vadd.f32 %v18664_v7, %v5954_v42  ;;  %v6595_v44 = vadd.f32 %v18664_v7, %v6594_v43 }
 0x82c   : > { %v8662_v46 = vmax.f32 %v7232_v39, 0.0  ;;  %v8918_v47 = vmax.f32 %v7872_v41, 0.0 }
 0x82d   : > { %v8151_v48 = vmax.f32 %v5955_v26, 0.0  ;;  %v8407_v49 = vmax.f32 %v6595_v44, 0.0 }
 0x82e   : > { %v9686_v50 = vpack.c.bf16 %v8662_v46, %v8662_v46  ;;  %v9942_v51 = vpack.c.bf16 %v8918_v47, %v8918_v47 }
 0x82f   : > { %v9175_v52 = vpack.c.bf16 %v8151_v48, %v8151_v48  ;;  %v9431_v35 = vpack.c.bf16 %v8407_v49, %v8407_v49 }
 0x830   : > { %10711 = vst.msk [vmem:[%s14775_s10 + $0xbc4] sm:$0xf] %vm9957_vm3, %v9686_v50 }
 0x831   : > { %10967 = vst.msk [vmem:[%s14775_s10 + $0xfc4] sm:$0xf] %vm9957_vm3, %v9942_v51  ;;  %v7234_v53 = vpop.f32.mrf.mxu2  ;;  %v7874_v55 = vpop.f32.mrf.mxu3 }
 0x832   : > { %10200 = vst.msk [vmem:[%s14775_s10 + $0x3c8] sm:$0xf] %vm9957_vm3, %v9175_v52  ;;  %v7235_v56 = vadd.f32 %v18664_v7, %v7234_v53  ;;  %v7875_v57 = vadd.f32 %v18664_v7, %v7874_v55  ;;  %v5956_v58 = vpop.f32.mrf.mxu0  ;;  %v6596_v59 = vpop.f32.mrf.mxu1 }
 0x833   : > { %10456 = vst.msk [vmem:[%s14775_s10 + $0x7c8] sm:$0xf] %vm9957_vm3, %v9431_v35  ;;  %v5957_v61 = vadd.f32 %v18664_v7, %v5956_v58  ;;  %v6597_v62 = vadd.f32 %v18664_v7, %v6596_v59 }
 0x834   : > { %v8663_v45 = vmax.f32 %v7235_v56, 0.0  ;;  %v8919_v63 = vmax.f32 %v7875_v57, 0.0 }
 0x835   : > { %v8152_v1 = vmax.f32 %v5957_v61, 0.0  ;;  %v8408_v2 = vmax.f32 %v6597_v62, 0.0 }
 0x836   : > { %v9687_v3 = vpack.c.bf16 %v8663_v45, %v8663_v45  ;;  %v9943_v4 = vpack.c.bf16 %v8919_v63, %v8919_v63 }
 0x837   : > { %v9176_v40 = vpack.c.bf16 %v8152_v1, %v8152_v1  ;;  %v9432_v5 = vpack.c.bf16 %v8408_v2, %v8408_v2 }
 0x838   : > { %10712 = vst.msk [vmem:[%s14775_s10 + $0xbc8] sm:$0xf] %vm9957_vm3, %v9687_v3 }
 0x839   : > { %10968 = vst.msk [vmem:[%s14775_s10 + $0xfc8] sm:$0xf] %vm9957_vm3, %v9943_v4  ;;  %v7236_v6 = vpop.f32.mrf.mxu2  ;;  %v7876_v54 = vpop.f32.mrf.mxu3 }
 0x83a   : > { %10201 = vst.msk [vmem:[%s14775_s10 + $0x3cc] sm:$0xf] %vm9957_vm3, %v9176_v40  ;;  %v7237_v60 = vadd.f32 %v18664_v7, %v7236_v6  ;;  %v7877_v9 = vadd.f32 %v18664_v7, %v7876_v54  ;;  %v5959_v10 = vpop.f32.mrf.mxu0  ;;  %v6599_v11 = vpop.f32.mrf.mxu1 }
 0x83b   : > { %10457 = vst.msk [vmem:[%s14775_s10 + $0x7cc] sm:$0xf] %vm9957_vm3, %v9432_v5  ;;  %v5960_v12 = vadd.f32 %v18664_v7, %v5959_v10  ;;  %v6600_v13 = vadd.f32 %v18664_v7, %v6599_v11 }
 0x83c   : > { %v8664_v14 = vmax.f32 %v7237_v60, 0.0  ;;  %v8920_v15 = vmax.f32 %v7877_v9, 0.0 }
 0x83d   : > { %v8153_v0 = vmax.f32 %v5960_v12, 0.0  ;;  %v8409_v16 = vmax.f32 %v6600_v13, 0.0 }
 0x83e   : > { %v9688_v18 = vpack.c.bf16 %v8664_v14, %v8664_v14  ;;  %v9944_v19 = vpack.c.bf16 %v8920_v15, %v8920_v15 }
 0x83f   : > { %v9177_v20 = vpack.c.bf16 %v8153_v0, %v8153_v0  ;;  %v9433_v21 = vpack.c.bf16 %v8409_v16, %v8409_v16 }
 0x840   : > { %10713 = vst.msk [vmem:[%s14775_s10 + $0xbcc] sm:$0xf] %vm9957_vm3, %v9688_v18 }
 0x841   : > { %10969 = vst.msk [vmem:[%s14775_s10 + $0xfcc] sm:$0xf] %vm9957_vm3, %v9944_v19  ;;  %v7239_v22 = vpop.f32.mrf.mxu2  ;;  %v7879_v23 = vpop.f32.mrf.mxu3 }
 0x842   : > { %10202 = vst.msk [vmem:[%s14775_s10 + $0x3d0] sm:$0xf] %vm9957_vm3, %v9177_v20  ;;  %v7240_v24 = vadd.f32 %v18664_v7, %v7239_v22  ;;  %v7880_v8 = vadd.f32 %v18664_v7, %v7879_v23  ;;  %v5961_v25 = vpop.f32.mrf.mxu0  ;;  %v6601_v27 = vpop.f32.mrf.mxu1 }
 0x843   : > { %10458 = vst.msk [vmem:[%s14775_s10 + $0x7d0] sm:$0xf] %vm9957_vm3, %v9433_v21  ;;  %v5962_v28 = vadd.f32 %v18664_v7, %v5961_v25  ;;  %v6602_v29 = vadd.f32 %v18664_v7, %v6601_v27 }
 0x844   : > { %v8665_v30 = vmax.f32 %v7240_v24, 0.0  ;;  %v8921_v31 = vmax.f32 %v7880_v8, 0.0 }
 0x845   : > { %v8154_v32 = vmax.f32 %v5962_v28, 0.0  ;;  %v8410_v33 = vmax.f32 %v6602_v29, 0.0 }
 0x846   : > { %v9689_v17 = vpack.c.bf16 %v8665_v30, %v8665_v30  ;;  %v9945_v34 = vpack.c.bf16 %v8921_v31, %v8921_v31 }
 0x847   : > { %v9178_v36 = vpack.c.bf16 %v8154_v32, %v8154_v32  ;;  %v9434_v37 = vpack.c.bf16 %v8410_v33, %v8410_v33 }
 0x848   : > { %10714 = vst.msk [vmem:[%s14775_s10 + $0xbd0] sm:$0xf] %vm9957_vm3, %v9689_v17 }
 0x849   : > { %10970 = vst.msk [vmem:[%s14775_s10 + $0xfd0] sm:$0xf] %vm9957_vm3, %v9945_v34  ;;  %v7241_v38 = vpop.f32.mrf.mxu2  ;;  %v7881_v39 = vpop.f32.mrf.mxu3 }
 0x84a   : > { %10203 = vst.msk [vmem:[%s14775_s10 + $0x3d4] sm:$0xf] %vm9957_vm3, %v9178_v36  ;;  %v7242_v41 = vadd.f32 %v18664_v7, %v7241_v38  ;;  %v7882_v42 = vadd.f32 %v18664_v7, %v7881_v39  ;;  %v5964_v43 = vpop.f32.mrf.mxu0  ;;  %v6604_v26 = vpop.f32.mrf.mxu1 }
 0x84b   : > { %10459 = vst.msk [vmem:[%s14775_s10 + $0x7d4] sm:$0xf] %vm9957_vm3, %v9434_v37  ;;  %v5965_v44 = vadd.f32 %v18664_v7, %v5964_v43  ;;  %v6605_v46 = vadd.f32 %v18664_v7, %v6604_v26 }
 0x84c   : > { %v8666_v47 = vmax.f32 %v7242_v41, 0.0  ;;  %v8922_v48 = vmax.f32 %v7882_v42, 0.0 }
 0x84d   : > { %v8155_v49 = vmax.f32 %v5965_v44, 0.0  ;;  %v8411_v50 = vmax.f32 %v6605_v46, 0.0 }
 0x84e   : > { %v9690_v51 = vpack.c.bf16 %v8666_v47, %v8666_v47  ;;  %v9946_v52 = vpack.c.bf16 %v8922_v48, %v8922_v48 }
 0x84f   : > { %v9179_v35 = vpack.c.bf16 %v8155_v49, %v8155_v49  ;;  %v9435_v53 = vpack.c.bf16 %v8411_v50, %v8411_v50 }
 0x850   : > { %10715 = vst.msk [vmem:[%s14775_s10 + $0xbd4] sm:$0xf] %vm9957_vm3, %v9690_v51 }
 0x851   : > { %10971 = vst.msk [vmem:[%s14775_s10 + $0xfd4] sm:$0xf] %vm9957_vm3, %v9946_v52  ;;  %v7244_v55 = vpop.f32.mrf.mxu2  ;;  %v7884_v56 = vpop.f32.mrf.mxu3 }
 0x852   : > { %10204 = vst.msk [vmem:[%s14775_s10 + $0x3d8] sm:$0xf] %vm9957_vm3, %v9179_v35  ;;  %v7245_v57 = vadd.f32 %v18664_v7, %v7244_v55  ;;  %v7885_v58 = vadd.f32 %v18664_v7, %v7884_v56  ;;  %v5966_v59 = vpop.f32.mrf.mxu0  ;;  %v6606_v61 = vpop.f32.mrf.mxu1 }
 0x853   : > { %10460 = vst.msk [vmem:[%s14775_s10 + $0x7d8] sm:$0xf] %vm9957_vm3, %v9435_v53  ;;  %v5967_v62 = vadd.f32 %v18664_v7, %v5966_v59  ;;  %v6607_v45 = vadd.f32 %v18664_v7, %v6606_v61 }
 0x854   : > { %v8667_v63 = vmax.f32 %v7245_v57, 0.0  ;;  %v8923_v1 = vmax.f32 %v7885_v58, 0.0 }
 0x855   : > { %v8156_v2 = vmax.f32 %v5967_v62, 0.0  ;;  %v8412_v3 = vmax.f32 %v6607_v45, 0.0 }
 0x856   : > { %v9691_v4 = vpack.c.bf16 %v8667_v63, %v8667_v63  ;;  %v9947_v40 = vpack.c.bf16 %v8923_v1, %v8923_v1 }
 0x857   : > { %v9180_v5 = vpack.c.bf16 %v8156_v2, %v8156_v2  ;;  %v9436_v6 = vpack.c.bf16 %v8412_v3, %v8412_v3 }
 0x858   : > { %10716 = vst.msk [vmem:[%s14775_s10 + $0xbd8] sm:$0xf] %vm9957_vm3, %v9691_v4 }
 0x859   : > { %10972 = vst.msk [vmem:[%s14775_s10 + $0xfd8] sm:$0xf] %vm9957_vm3, %v9947_v40  ;;  %v7246_v54 = vpop.f32.mrf.mxu2  ;;  %v7886_v60 = vpop.f32.mrf.mxu3 }
 0x85a   : > { %10205 = vst.msk [vmem:[%s14775_s10 + $0x3dc] sm:$0xf] %vm9957_vm3, %v9180_v5  ;;  %v7247_v9 = vadd.f32 %v18664_v7, %v7246_v54  ;;  %v7887_v10 = vadd.f32 %v18664_v7, %v7886_v60  ;;  %v5969_v11 = vpop.f32.mrf.mxu0  ;;  %v6609_v12 = vpop.f32.mrf.mxu1 }
 0x85b   : > { %10461 = vst.msk [vmem:[%s14775_s10 + $0x7dc] sm:$0xf] %vm9957_vm3, %v9436_v6  ;;  %v5970_v13 = vadd.f32 %v18664_v7, %v5969_v11  ;;  %v6610_v14 = vadd.f32 %v18664_v7, %v6609_v12 }
 0x85c   : > { %v8668_v15 = vmax.f32 %v7247_v9, 0.0  ;;  %v8924_v0 = vmax.f32 %v7887_v10, 0.0 }
 0x85d   : > { %v8157_v16 = vmax.f32 %v5970_v13, 0.0  ;;  %v8413_v18 = vmax.f32 %v6610_v14, 0.0 }
 0x85e   : > { %v9692_v19 = vpack.c.bf16 %v8668_v15, %v8668_v15  ;;  %v9948_v20 = vpack.c.bf16 %v8924_v0, %v8924_v0 }
 0x85f   : > { %v9181_v21 = vpack.c.bf16 %v8157_v16, %v8157_v16  ;;  %v9437_v22 = vpack.c.bf16 %v8413_v18, %v8413_v18 }
 0x860   : > { %10717 = vst.msk [vmem:[%s14775_s10 + $0xbdc] sm:$0xf] %vm9957_vm3, %v9692_v19 }
 0x861   : > { %10973 = vst.msk [vmem:[%s14775_s10 + $0xfdc] sm:$0xf] %vm9957_vm3, %v9948_v20  ;;  %v7249_v23 = vpop.f32.mrf.mxu2  ;;  %v7889_v24 = vpop.f32.mrf.mxu3 }
 0x862   : > { %10206 = vst.msk [vmem:[%s14775_s10 + $0x3e0] sm:$0xf] %vm9957_vm3, %v9181_v21  ;;  %v7250_v8 = vadd.f32 %v18664_v7, %v7249_v23  ;;  %v7890_v25 = vadd.f32 %v18664_v7, %v7889_v24  ;;  %v5971_v27 = vpop.f32.mrf.mxu0  ;;  %v6611_v28 = vpop.f32.mrf.mxu1 }
 0x863   : > { %10462 = vst.msk [vmem:[%s14775_s10 + $0x7e0] sm:$0xf] %vm9957_vm3, %v9437_v22  ;;  %v5972_v29 = vadd.f32 %v18664_v7, %v5971_v27  ;;  %v6612_v30 = vadd.f32 %v18664_v7, %v6611_v28 }
 0x864   : > { %v8669_v31 = vmax.f32 %v7250_v8, 0.0  ;;  %v8925_v32 = vmax.f32 %v7890_v25, 0.0 }
 0x865   : > { %v8158_v33 = vmax.f32 %v5972_v29, 0.0  ;;  %v8414_v17 = vmax.f32 %v6612_v30, 0.0 }
 0x866   : > { %v9693_v34 = vpack.c.bf16 %v8669_v31, %v8669_v31  ;;  %v9949_v36 = vpack.c.bf16 %v8925_v32, %v8925_v32 }
 0x867   : > { %v9182_v37 = vpack.c.bf16 %v8158_v33, %v8158_v33  ;;  %v9438_v38 = vpack.c.bf16 %v8414_v17, %v8414_v17 }
 0x868   : > { %10718 = vst.msk [vmem:[%s14775_s10 + $0xbe0] sm:$0xf] %vm9957_vm3, %v9693_v34 }
 0x869   : > { %10974 = vst.msk [vmem:[%s14775_s10 + $0xfe0] sm:$0xf] %vm9957_vm3, %v9949_v36  ;;  %v7251_v39 = vpop.f32.mrf.mxu2  ;;  %v7891_v41 = vpop.f32.mrf.mxu3 }
 0x86a   : > { %10207 = vst.msk [vmem:[%s14775_s10 + $0x3e4] sm:$0xf] %vm9957_vm3, %v9182_v37  ;;  %v7252_v42 = vadd.f32 %v18664_v7, %v7251_v39  ;;  %v7892_v43 = vadd.f32 %v18664_v7, %v7891_v41  ;;  %v5974_v26 = vpop.f32.mrf.mxu0  ;;  %v6614_v44 = vpop.f32.mrf.mxu1 }
 0x86b   : > { %10463 = vst.msk [vmem:[%s14775_s10 + $0x7e4] sm:$0xf] %vm9957_vm3, %v9438_v38  ;;  %v5975_v46 = vadd.f32 %v18664_v7, %v5974_v26  ;;  %v6615_v47 = vadd.f32 %v18664_v7, %v6614_v44 }
 0x86c   : > { %v8670_v48 = vmax.f32 %v7252_v42, 0.0  ;;  %v8926_v49 = vmax.f32 %v7892_v43, 0.0 }
 0x86d   : > { %v8159_v50 = vmax.f32 %v5975_v46, 0.0  ;;  %v8415_v51 = vmax.f32 %v6615_v47, 0.0 }
 0x86e   : > { %v9694_v52 = vpack.c.bf16 %v8670_v48, %v8670_v48  ;;  %v9950_v35 = vpack.c.bf16 %v8926_v49, %v8926_v49 }
 0x86f   : > { %v9183_v53 = vpack.c.bf16 %v8159_v50, %v8159_v50  ;;  %v9439_v55 = vpack.c.bf16 %v8415_v51, %v8415_v51 }
 0x870   : > { %10719 = vst.msk [vmem:[%s14775_s10 + $0xbe4] sm:$0xf] %vm9957_vm3, %v9694_v52 }
 0x871   : > { %10975 = vst.msk [vmem:[%s14775_s10 + $0xfe4] sm:$0xf] %vm9957_vm3, %v9950_v35  ;;  %v7254_v56 = vpop.f32.mrf.mxu2  ;;  %v7894_v57 = vpop.f32.mrf.mxu3 }
 0x872   : > { %10208 = vst.msk [vmem:[%s14775_s10 + $0x3e8] sm:$0xf] %vm9957_vm3, %v9183_v53  ;;  %v7255_v58 = vadd.f32 %v18664_v7, %v7254_v56  ;;  %v7895_v59 = vadd.f32 %v18664_v7, %v7894_v57  ;;  %v5976_v61 = vpop.f32.mrf.mxu0  ;;  %v6616_v62 = vpop.f32.mrf.mxu1 }
 0x873   : > { %10464 = vst.msk [vmem:[%s14775_s10 + $0x7e8] sm:$0xf] %vm9957_vm3, %v9439_v55  ;;  %v5977_v45 = vadd.f32 %v18664_v7, %v5976_v61  ;;  %v6617_v63 = vadd.f32 %v18664_v7, %v6616_v62 }
 0x874   : > { %v8671_v1 = vmax.f32 %v7255_v58, 0.0  ;;  %v8927_v2 = vmax.f32 %v7895_v59, 0.0 }
 0x875   : > { %v8160_v3 = vmax.f32 %v5977_v45, 0.0  ;;  %v8416_v4 = vmax.f32 %v6617_v63, 0.0 }
 0x876   : > { %v9695_v40 = vpack.c.bf16 %v8671_v1, %v8671_v1  ;;  %v9951_v5 = vpack.c.bf16 %v8927_v2, %v8927_v2 }
 0x877   : > { %v9184_v6 = vpack.c.bf16 %v8160_v3, %v8160_v3  ;;  %v9440_v54 = vpack.c.bf16 %v8416_v4, %v8416_v4 }
 0x878   : > { %10720 = vst.msk [vmem:[%s14775_s10 + $0xbe8] sm:$0xf] %vm9957_vm3, %v9695_v40 }
 0x879   : > { %10976 = vst.msk [vmem:[%s14775_s10 + $0xfe8] sm:$0xf] %vm9957_vm3, %v9951_v5  ;;  %v7256_v60 = vpop.f32.mrf.mxu2  ;;  %v7896_v9 = vpop.f32.mrf.mxu3 }
 0x87a   : > { %10209 = vst.msk [vmem:[%s14775_s10 + $0x3ec] sm:$0xf] %vm9957_vm3, %v9184_v6  ;;  %v7257_v10 = vadd.f32 %v18664_v7, %v7256_v60  ;;  %v7897_v11 = vadd.f32 %v18664_v7, %v7896_v9  ;;  %v5979_v12 = vpop.f32.mrf.mxu0  ;;  %v6619_v13 = vpop.f32.mrf.mxu1 }
 0x87b   : > { %10465 = vst.msk [vmem:[%s14775_s10 + $0x7ec] sm:$0xf] %vm9957_vm3, %v9440_v54  ;;  %v5980_v14 = vadd.f32 %v18664_v7, %v5979_v12  ;;  %v6620_v15 = vadd.f32 %v18664_v7, %v6619_v13 }
 0x87c   : > { %v8672_v0 = vmax.f32 %v7257_v10, 0.0  ;;  %v8928_v16 = vmax.f32 %v7897_v11, 0.0 }
 0x87d   : > { %v8161_v18 = vmax.f32 %v5980_v14, 0.0  ;;  %v8417_v19 = vmax.f32 %v6620_v15, 0.0 }
 0x87e   : > { %v9696_v20 = vpack.c.bf16 %v8672_v0, %v8672_v0  ;;  %v9952_v21 = vpack.c.bf16 %v8928_v16, %v8928_v16 }
 0x87f   : > { %v9185_v22 = vpack.c.bf16 %v8161_v18, %v8161_v18  ;;  %v9441_v23 = vpack.c.bf16 %v8417_v19, %v8417_v19 }
 0x880   : > { %10721 = vst.msk [vmem:[%s14775_s10 + $0xbec] sm:$0xf] %vm9957_vm3, %v9696_v20 }
 0x881   : > { %10977 = vst.msk [vmem:[%s14775_s10 + $0xfec] sm:$0xf] %vm9957_vm3, %v9952_v21  ;;  %v7259_v24 = vpop.f32.mrf.mxu2  ;;  %v7899_v8 = vpop.f32.mrf.mxu3 }
 0x882   : > { %10210 = vst.msk [vmem:[%s14775_s10 + $0x3f0] sm:$0xf] %vm9957_vm3, %v9185_v22  ;;  %v7260_v25 = vadd.f32 %v18664_v7, %v7259_v24  ;;  %v7900_v27 = vadd.f32 %v18664_v7, %v7899_v8  ;;  %v5981_v28 = vpop.f32.mrf.mxu0  ;;  %v6621_v29 = vpop.f32.mrf.mxu1 }
 0x883   : > { %10466 = vst.msk [vmem:[%s14775_s10 + $0x7f0] sm:$0xf] %vm9957_vm3, %v9441_v23  ;;  %v5982_v30 = vadd.f32 %v18664_v7, %v5981_v28  ;;  %v6622_v31 = vadd.f32 %v18664_v7, %v6621_v29 }
 0x884   : > { %v8673_v32 = vmax.f32 %v7260_v25, 0.0  ;;  %v8929_v33 = vmax.f32 %v7900_v27, 0.0 }
 0x885   : > { %v8162_v17 = vmax.f32 %v5982_v30, 0.0  ;;  %v8418_v34 = vmax.f32 %v6622_v31, 0.0 }
 0x886   : > { %v9697_v36 = vpack.c.bf16 %v8673_v32, %v8673_v32  ;;  %v9953_v37 = vpack.c.bf16 %v8929_v33, %v8929_v33 }
 0x887   : > { %v9186_v38 = vpack.c.bf16 %v8162_v17, %v8162_v17  ;;  %v9442_v39 = vpack.c.bf16 %v8418_v34, %v8418_v34 }
 0x888   : > { %10722 = vst.msk [vmem:[%s14775_s10 + $0xbf0] sm:$0xf] %vm9957_vm3, %v9697_v36 }
 0x889   : > { %10978 = vst.msk [vmem:[%s14775_s10 + $0xff0] sm:$0xf] %vm9957_vm3, %v9953_v37  ;;  %v7261_v41 = vpop.f32.mrf.mxu2  ;;  %v7901_v42 = vpop.f32.mrf.mxu3 }
 0x88a   : > { %10211 = vst.msk [vmem:[%s14775_s10 + $0x3f4] sm:$0xf] %vm9957_vm3, %v9186_v38  ;;  %v7262_v43 = vadd.f32 %v18664_v7, %v7261_v41  ;;  %v7902_v26 = vadd.f32 %v18664_v7, %v7901_v42  ;;  %v5984_v44 = vpop.f32.mrf.mxu0  ;;  %v6624_v46 = vpop.f32.mrf.mxu1 }
 0x88b   : > { %10467 = vst.msk [vmem:[%s14775_s10 + $0x7f4] sm:$0xf] %vm9957_vm3, %v9442_v39  ;;  %v5985_v47 = vadd.f32 %v18664_v7, %v5984_v44  ;;  %v6625_v48 = vadd.f32 %v18664_v7, %v6624_v46 }
 0x88c   : > { %v8674_v49 = vmax.f32 %v7262_v43, 0.0  ;;  %v8930_v50 = vmax.f32 %v7902_v26, 0.0 }
 0x88d   : > { %v8163_v51 = vmax.f32 %v5985_v47, 0.0  ;;  %v8419_v52 = vmax.f32 %v6625_v48, 0.0 }
 0x88e   : > { %v9698_v35 = vpack.c.bf16 %v8674_v49, %v8674_v49  ;;  %v9954_v53 = vpack.c.bf16 %v8930_v50, %v8930_v50 }
 0x88f   : > { %v9187_v55 = vpack.c.bf16 %v8163_v51, %v8163_v51  ;;  %v9443_v56 = vpack.c.bf16 %v8419_v52, %v8419_v52 }
 0x890   : > { %10723 = vst.msk [vmem:[%s14775_s10 + $0xbf4] sm:$0xf] %vm9957_vm3, %v9698_v35 }
 0x891   : > { %10979 = vst.msk [vmem:[%s14775_s10 + $0xff4] sm:$0xf] %vm9957_vm3, %v9954_v53  ;;  %v7264_v57 = vpop.f32.mrf.mxu2  ;;  %v7904_v58 = vpop.f32.mrf.mxu3 }
 0x892   : > { %10212 = vst.msk [vmem:[%s14775_s10 + $0x3f8] sm:$0xf] %vm9957_vm3, %v9187_v55  ;;  %v7265_v59 = vadd.f32 %v18664_v7, %v7264_v57  ;;  %v7905_v61 = vadd.f32 %v18664_v7, %v7904_v58  ;;  %v5986_v62 = vpop.f32.mrf.mxu0  ;;  %v6626_v45 = vpop.f32.mrf.mxu1 }
 0x893   : > { %10468 = vst.msk [vmem:[%s14775_s10 + $0x7f8] sm:$0xf] %vm9957_vm3, %v9443_v56  ;;  %v5987_v63 = vadd.f32 %v18664_v7, %v5986_v62  ;;  %v6627_v1 = vadd.f32 %v18664_v7, %v6626_v45 }
 0x894   : > { %v8675_v2 = vmax.f32 %v7265_v59, 0.0  ;;  %v8931_v3 = vmax.f32 %v7905_v61, 0.0 }
 0x895   : > { %v8164_v4 = vmax.f32 %v5987_v63, 0.0  ;;  %v8420_v40 = vmax.f32 %v6627_v1, 0.0 }
 0x896   : > { %v9699_v5 = vpack.c.bf16 %v8675_v2, %v8675_v2  ;;  %v9955_v6 = vpack.c.bf16 %v8931_v3, %v8931_v3 }
 0x897   : > { %v9188_v54 = vpack.c.bf16 %v8164_v4, %v8164_v4  ;;  %v9444_v60 = vpack.c.bf16 %v8420_v40, %v8420_v40 }
 0x898   : > { %10724 = vst.msk [vmem:[%s14775_s10 + $0xbf8] sm:$0xf] %vm9957_vm3, %v9699_v5 }
 0x899   : > { %10980 = vst.msk [vmem:[%s14775_s10 + $0xff8] sm:$0xf] %vm9957_vm3, %v9955_v6  ;;  %v7266_v9 = vpop.f32.mrf.mxu2  ;;  %v7906_v10 = vpop.f32.mrf.mxu3 }
 0x89a   : > { %10213 = vst.msk [vmem:[%s14775_s10 + $0x3fc] sm:$0xf] %vm9957_vm3, %v9188_v54  ;;  %v7267_v11 = vadd.f32 %v18664_v7, %v7266_v9  ;;  %v7907_v12 = vadd.f32 %v18664_v7, %v7906_v10 }
 0x89b   : > { %10469 = vst.msk [vmem:[%s14775_s10 + $0x7fc] sm:$0xf] %vm9957_vm3, %v9444_v60 }
 0x89c   : > { %v8676_v13 = vmax.f32 %v7267_v11, 0.0  ;;  %v8932_v14 = vmax.f32 %v7907_v12, 0.0 }
 0x89d   : > { %10988 = sbr.rel (!%p14672_p4) target bundleno = 2274 (0x8e2), region = 36 }
 0x89e   : > { %v9700_v15 = vpack.c.bf16 %v8676_v13, %v8676_v13  ;;  %v9956_v0 = vpack.c.bf16 %v8932_v14, %v8932_v14 }
 0x8a0   : > { %10725 = vst.msk [vmem:[%s14775_s10 + $0xbfc] sm:$0xf] %vm9957_vm3, %v9700_v15 }
 0x8a1   : > { %10981 = vst.msk [vmem:[%s14775_s10 + $0xffc] sm:$0xf] %vm9957_vm3, %v9956_v0 }
 0x8a2   : > { %s19010_s14 = smov (!%p10991_p8, %s10990_s14), 1024 }
 0x8a3   : > { %s13899_s23 = sshll.u32 %s19010_s14, 2 }
 0x8a4   : > { %p13902_p9 = scmp.eq.s32.totalorder %s13899_s23, 0 }
 0x8a5   : > { %s18867_s24 = sshrl.u32 (!%p13902_p9), %s19010_s14, 5 }
 0x8a6   : > { %10999 = sbr.rel (%p13902_p9) target bundleno = 2274 (0x8e2), region = 40  ;;  %p13903_p10 = scmp.le.s32.totalorder (!%p13902_p9), %s18867_s24, 0 }
 0x8ab   : > { %11278 = sbr.rel (%p13903_p10) target bundleno = 2257 (0x8d1), region = 112  ;;  %s19001_s15 = smov (!%p13903_p10), %s18861_s22 }
 0x8ac   : > { %s19002_s20 = smov (!%p13903_p10), %s14775_s10  ;;  %s18876_s25 = smov (!%p13903_p10), 0  }
 0x8ad   : > { %s18878_s26 = smov (!%p13903_p10), 0  }
 0x8b0 LB: >> { %v11016_v7 = vld [vmem:[%s14600_s20] sm:$0xf]  ;;  %v11018_v16 = vld [vmem:[%s14600_s20 + $0x4] sm:$0xf]  ;;  %v11020_v18 = vld [vmem:[%s14600_s20 + $0x8] sm:$0xf]  ;;  %s14608_s26 = sphi %s18878_s26, %s11010_s26   ;;  %s14604_s25 = sphi %s18876_s25, %s19005_s25   ;;  %s14600_s20 = sphi %s19002_s20, %s19004_s20   ;;  %s14596_s15 = sphi %s19001_s15, %s19003_s15  }
 0x8b1   : >> { %11017 = vst [vmem:[%s14596_s15] sm:$0xf] %v11016_v7  ;;  %v11022_v19 = vld [vmem:[%s14600_s20 + $0xc] sm:$0xf]  ;;  %v11024_v20 = vld [vmem:[%s14600_s20 + $0x10] sm:$0xf]  ;;  %s11080_s27 = sadd.s32 1, %s14604_s25 }
 0x8b2   : >> { %11019 = vst [vmem:[%s14596_s15 + $0x4] sm:$0xf] %v11018_v16  ;;  %v11026_v21 = vld [vmem:[%s14600_s20 + $0x14] sm:$0xf]  ;;  %v11028_v22 = vld [vmem:[%s14600_s20 + $0x18] sm:$0xf]  ;;  %p11081_p11 = scmp.ge.s32.totalorder %s11080_s27, %s18867_s24 }
 0x8b3   : >> { %11021 = vst [vmem:[%s14596_s15 + $0x8] sm:$0xf] %v11020_v18  ;;  %v11030_v23 = vld [vmem:[%s14600_s20 + $0x1c] sm:$0xf]  ;;  %v11032_v24 = vld [vmem:[%s14600_s20 + $0x20] sm:$0xf] }
 0x8b4   : >> { %11023 = vst [vmem:[%s14596_s15 + $0xc] sm:$0xf] %v11022_v19  ;;  %v11034_v8 = vld [vmem:[%s14600_s20 + $0x24] sm:$0xf]  ;;  %v11036_v25 = vld [vmem:[%s14600_s20 + $0x28] sm:$0xf] }
 0x8b5   : >> { %11025 = vst [vmem:[%s14596_s15 + $0x10] sm:$0xf] %v11024_v20  ;;  %v11038_v27 = vld [vmem:[%s14600_s20 + $0x2c] sm:$0xf]  ;;  %v11040_v28 = vld [vmem:[%s14600_s20 + $0x30] sm:$0xf] }
 0x8b6   : >> { %11027 = vst [vmem:[%s14596_s15 + $0x14] sm:$0xf] %v11026_v21  ;;  %v11042_v29 = vld [vmem:[%s14600_s20 + $0x34] sm:$0xf]  ;;  %v11044_v30 = vld [vmem:[%s14600_s20 + $0x38] sm:$0xf] }
 0x8b7   : >> { %11029 = vst [vmem:[%s14596_s15 + $0x18] sm:$0xf] %v11028_v22  ;;  %v11046_v31 = vld [vmem:[%s14600_s20 + $0x3c] sm:$0xf]  ;;  %v11048_v32 = vld [vmem:[%s14600_s20 + $0x40] sm:$0xf] }
 0x8b8   : >> { %11031 = vst [vmem:[%s14596_s15 + $0x1c] sm:$0xf] %v11030_v23  ;;  %v11050_v33 = vld [vmem:[%s14600_s20 + $0x44] sm:$0xf]  ;;  %s19012_s27 = smov (%p11081_p11, %s11080_s27), 0  ;;  %s11010_s26 = sadd.s32 1, %s14608_s26  }
 0x8b9   : >> { %11033 = vst [vmem:[%s14596_s15 + $0x20] sm:$0xf] %v11032_v24  ;;  %v11052_v17 = vld [vmem:[%s14600_s20 + $0x48] sm:$0xf]  ;;  %v11054_v34 = vld [vmem:[%s14600_s20 + $0x4c] sm:$0xf]  ;;  %p11009_p12 = scmp.ge.s32.totalorder %s11010_s26, %s18867_s24  ;;  %s19005_s25 = smov %s19012_s27 }
 0x8ba   : >> { %11035 = vst [vmem:[%s14596_s15 + $0x24] sm:$0xf] %v11034_v8  ;;  %s13904_s28 = sshll.u32 %s19012_s27, 7  ;;  %v11056_v36 = vld [vmem:[%s14600_s20 + $0x50] sm:$0xf] }
 0x8bb   : >> { %11037 = vst [vmem:[%s14596_s15 + $0x28] sm:$0xf] %v11036_v25  ;;  %s18937_s29 = scalar_lea.vmem %s14775_s10, %s13904_s28 [#allocation2]   ;;  %s11086_s30 = scalar_lea.vmem %s18861_s22, %s13904_s28   ;;  %v11058_v37 = vld [vmem:[%s14600_s20 + $0x54] sm:$0xf]  ;;  %v11060_v38 = vld [vmem:[%s14600_s20 + $0x58] sm:$0xf] }
 0x8bc   : >> { %11039 = vst [vmem:[%s14596_s15 + $0x2c] sm:$0xf] %v11038_v27  ;;  %v11062_v39 = vld [vmem:[%s14600_s20 + $0x5c] sm:$0xf]  ;;  %v11064_v41 = vld [vmem:[%s14600_s20 + $0x60] sm:$0xf] }
 0x8bd   : >> { %11041 = vst [vmem:[%s14596_s15 + $0x30] sm:$0xf] %v11040_v28  ;;  %v11066_v42 = vld [vmem:[%s14600_s20 + $0x64] sm:$0xf]  ;;  %v11068_v43 = vld [vmem:[%s14600_s20 + $0x68] sm:$0xf] }
 0x8be   : >> { %11043 = vst [vmem:[%s14596_s15 + $0x34] sm:$0xf] %v11042_v29  ;;  %v11070_v26 = vld [vmem:[%s14600_s20 + $0x6c] sm:$0xf]  ;;  %v11072_v44 = vld [vmem:[%s14600_s20 + $0x70] sm:$0xf] }
 0x8bf   : >> { %11045 = vst [vmem:[%s14596_s15 + $0x38] sm:$0xf] %v11044_v30  ;;  %v11074_v46 = vld [vmem:[%s14600_s20 + $0x74] sm:$0xf]  ;;  %v11076_v47 = vld [vmem:[%s14600_s20 + $0x78] sm:$0xf] }
 0x8c0   : >> { %11047 = vst [vmem:[%s14596_s15 + $0x3c] sm:$0xf] %v11046_v31  ;;  %v11078_v48 = vld [vmem:[%s14600_s20 + $0x7c] sm:$0xf]  ;;  %s19004_s20 = smov %s18937_s29 }
 0x8c1   : >> { %11049 = vst [vmem:[%s14596_s15 + $0x40] sm:$0xf] %v11048_v32 }
 0x8c2   : >> { %11051 = vst [vmem:[%s14596_s15 + $0x44] sm:$0xf] %v11050_v33 }
 0x8c3   : >> { %11053 = vst [vmem:[%s14596_s15 + $0x48] sm:$0xf] %v11052_v17 }
 0x8c4   : >> { %11055 = vst [vmem:[%s14596_s15 + $0x4c] sm:$0xf] %v11054_v34 }
 0x8c5   : >> { %11057 = vst [vmem:[%s14596_s15 + $0x50] sm:$0xf] %v11056_v36 }
 0x8c6   : >> { %11059 = vst [vmem:[%s14596_s15 + $0x54] sm:$0xf] %v11058_v37 }
 0x8c7   : >> { %11061 = vst [vmem:[%s14596_s15 + $0x58] sm:$0xf] %v11060_v38 }
 0x8c8   : >> { %11063 = vst [vmem:[%s14596_s15 + $0x5c] sm:$0xf] %v11062_v39 }
 0x8c9   : >> { %11065 = vst [vmem:[%s14596_s15 + $0x60] sm:$0xf] %v11064_v41 }
 0x8ca   : >> { %11067 = vst [vmem:[%s14596_s15 + $0x64] sm:$0xf] %v11066_v42 }
 0x8cb   : >> { %11069 = vst [vmem:[%s14596_s15 + $0x68] sm:$0xf] %v11068_v43 }
 0x8cc   : >> { %11071 = vst [vmem:[%s14596_s15 + $0x6c] sm:$0xf] %v11070_v26  ;;  %11012 = sbr.rel (!%p11009_p12) target bundleno = 2224 (0x8b0), region = 118 }
 0x8cd   : >> { %11073 = vst [vmem:[%s14596_s15 + $0x70] sm:$0xf] %v11072_v44 }
 0x8ce   : >> { %11075 = vst [vmem:[%s14596_s15 + $0x74] sm:$0xf] %v11074_v46 }
 0x8cf   : >> { %11077 = vst [vmem:[%s14596_s15 + $0x78] sm:$0xf] %v11076_v47 }
 0x8d0   : >> { %11079 = vst [vmem:[%s14596_s15 + $0x7c] sm:$0xf] %v11078_v48  ;;  %s19003_s15 = smov %s11086_s30 }
 0x8d1 PF: > { %s18978_s4 = sand.u32 31, %s19010_s14   ;;  %s14429_s6 = sshll.u32 %s18867_s24, 7 }
 0x8d2   : > { %s11091_s7 = scalar_lea.vmem %s14775_s10, %s14429_s6 [#allocation2]   ;;  %s11093_s8 = scalar_lea.vmem %s18861_s22, %s14429_s6  }
 0x8d3   : > { %p13909_p13 = scmp.le.s32.totalorder %s18978_s4, 0 }
 0x8d4   : > { %s14610_s9 = smov (!%p13909_p13), %s11093_s8   ;;  %s14614_s11 = smov (!%p13909_p13), %s11091_s7  }
 0x8d5   : > { %11292 = sbr.rel (%p13909_p13) target bundleno = 2274 (0x8e2), region = 123  ;;  %s14618_s5 = smov (!%p13909_p13), 0  }
 0x8d6   : > { %s14622_s12 = smov (!%p13909_p13), 0  }
 0x8da LB: >> { %v11103_v49 = vld [vmem:[%s14616_s11] sm:$0xf]  ;;  %s11105_s14 = sadd.s32 1, %s14620_s5  ;;  %s11097_s12 = sadd.s32 1, %s14624_s12   ;;  %s14624_s12 = sphi %s14622_s12, %s11097_s12   ;;  %s14620_s5 = sphi %s14618_s5, %s14619_s5   ;;  %s14616_s11 = sphi %s14614_s11, %s11110_s11   ;;  %s14612_s9 = sphi %s14610_s9, %s11111_s9  }
 0x8db   : >> { %11104 = vst [vmem:[%s14612_s9] sm:$0xf] %v11103_v49  ;;  %p11106_p0 = scmp.ge.s32.totalorder %s11105_s14, %s18978_s4  ;;  %p11096_p1 = scmp.ge.s32.totalorder %s11097_s12, %s18978_s4 }
 0x8dd   : >> { %s19014_s14 = smov (%p11106_p0, %s11105_s14), 0  ;;  %11099 = sbr.rel (!%p11096_p1) target bundleno = 2266 (0x8da), region = 129 }
 0x8de   : >> { %s13910_s10 = sshll.u32 %s19014_s14, 2  ;;  %s14619_s5 = smov %s19014_s14  }
 0x8df   : >> { %s11110_s11 = scalar_lea.vmem %s11091_s7, %s13910_s10 [#allocation2]   ;;  %s11111_s9 = scalar_lea.vmem %s11093_s8, %s13910_s10  }
 0x8e2 PF: > { %p10_p2 = scmp.ge.s32.totalorder %s14662_s16, 24   ;;  %s19006_s12 = smov %s14588_s13 }
 0x8e3   : > { %s19007_s13 = smov %s14670_s19  ;;  %s19008_s14 = smov %s14662_s16 }
 0x8e4   :  { %12 = sbr.rel (!%p10_p2) target bundleno = 2 (0x2), region = 140 }

</bundles_post_ra>
